<compile_context>
chip_gen: v7x
topology: tpu7x:2x2x1
jax: 0.10.0
libtpu: 0.0.40
codegen_flags: <defaults>
</compile_context>

<pallas_src>
import jax
import jax.numpy as jnp
from jax.experimental import pallas as pl
from jax.experimental.pallas import tpu as pltpu


# ---------------------------------------------------------------------------
# Per-generation tiling defaults.
# ---------------------------------------------------------------------------
def _device_kind():
    try:
        return jax.devices()[0].device_kind.lower()
    except Exception:
        return ""


def _matmul_defaults():
    """(TM, TN, vmem_limit_bytes) for the pointwise-conv matmul kernel."""
    kind = _device_kind()
    if "v7" in kind or "7x" in kind:
        return 512, 256, 48 * 1024 * 1024          # 64 MiB physical VMEM
    if "v5" in kind or "v6" in kind:
        return 1024, 256, 96 * 1024 * 1024         # 128 MiB physical VMEM
    return 512, 256, 48 * 1024 * 1024              # unknown: conservative


def _pool_vmem_limit():
    kind = _device_kind()
    if "v5" in kind or "v6" in kind:
        return 96 * 1024 * 1024
    return 48 * 1024 * 1024


# ---------------------------------------------------------------------------
# Kernel 1: pointwise (1x1) conv + folded BatchNorm + Hardswish  (used for cv1)
#   x2d     : (M, Cin)   flattened N*H*W rows (f32; cast to bf16 on-chip)
#   w_bf16  : (Cin, Cout) pre-cast bf16 weight
#   scale2d : (1, Cout)  = gamma / sqrt(var + eps)   (f32 epilogue)
#   bias2d  : (1, Cout)  = beta  - mean * scale
# ---------------------------------------------------------------------------
def _pw_conv_bn_hswish_kernel(x_ref, w_ref, scale_ref, bias_ref, o_ref):
    x = x_ref[...]
    if x.dtype != jnp.bfloat16:         # cast on-chip; VPU filler hidden by MXU
        x = x.astype(jnp.bfloat16)
    # bf16 x bf16 -> f32 accumulate on the MXU.
    y = jnp.dot(x, w_ref[...], preferred_element_type=jnp.float32)
    # Folded BatchNorm + Hardswish epilogue in f32.
    y = y * scale_ref[...] + bias_ref[...]
    o_ref[...] = (y * jnp.clip(y + 3.0, 0.0, 6.0) * (1.0 / 6.0)).astype(o_ref.dtype)


def pointwise_conv_bn_hswish(x2d, w_bf16, scale2d, bias2d, out_dtype):
    M, Cin = x2d.shape
    Cout = w_bf16.shape[1]
    tm, tn, vmem = _matmul_defaults()
    TM = min(M, tm)                      # multiple of 8 or full M
    TN = min(Cout, tn)                   # multiple of 128 or full Cout
    grid = (pl.cdiv(M, TM), pl.cdiv(Cout, TN))

    return pl.pallas_call(
        _pw_conv_bn_hswish_kernel,
        out_shape=jax.ShapeDtypeStruct((M, Cout), out_dtype),
        grid=grid,
        in_specs=[
            pl.BlockSpec((TM, Cin), lambda i, j: (i, 0)),   # activation tiles
            pl.BlockSpec((Cin, TN), lambda i, j: (0, j)),   # weight column slab
            pl.BlockSpec((1, TN), lambda i, j: (0, j)),
            pl.BlockSpec((1, TN), lambda i, j: (0, j)),
        ],
        out_specs=pl.BlockSpec((TM, TN), lambda i, j: (i, j)),
        compiler_params=pltpu.CompilerParams(
            dimension_semantics=("parallel", "parallel"),   # megacore-shardable
            vmem_limit_bytes=vmem,
        ),
    )(x2d, w_bf16, scale2d, bias2d)


# ---------------------------------------------------------------------------
# Kernel 2: fused [3x MaxPool2d(5,1,2)] + cv2 (1x1 conv + BN + Hardswish).
#
# Grid = (batch, channel-tiles of c_).  For each (n, ci) the kernel:
#   * builds pyramid levels 0..3 of the (1, H, W, TC) y1 slab entirely in VMEM
#     (bf16 max; -inf halo strips in a bf16 scratch; interior stored at column
#     offset 8 so the big per-level store stays sublane-aligned),
#   * immediately multiplies each level's (H*W, TC) slab by the matching rows
#     of the pre-permuted cv2 weight and accumulates in an f32 VMEM scratch
#     across channel tiles (inner 'arbitrary' grid axis),
#   * on the last channel tile applies BN + Hardswish and writes the output.
# The (N, H, W, 4*c_) concat tensor is never materialized in HBM.
# ---------------------------------------------------------------------------
def _fused_pool_cv2_kernel(y1_ref, w_ref, scale_ref, bias_ref, o_ref,
                           acc_ref, pad_ref):
    ci = pl.program_id(1)
    H, W, TC = y1_ref.shape[1], y1_ref.shape[2], y1_ref.shape[3]
    WP = pad_ref.shape[2]                        # = W + 10
    c2 = o_ref.shape[3]

    @pl.when(ci == 0)
    def _():
        acc_ref[...] = jnp.zeros_like(acc_ref)

    # -inf halo STRIPS only; the interior is overwritten every level.
    dt = pad_ref.dtype
    pad_ref[:, 0:2, :, :] = jnp.full((1, 2, WP, TC), -jnp.inf, dt)
    pad_ref[:, 2 + H:H + 4, :, :] = jnp.full((1, 2, WP, TC), -jnp.inf, dt)
    pad_ref[:, :, 0:8, :] = jnp.full((1, H + 4, 8, TC), -jnp.inf, dt)
    pad_ref[:, :, 8 + W:WP, :] = jnp.full((1, H + 4, WP - 8 - W, TC), -jnp.inf, dt)

    # Level 0 = y1 tile; partial cv2 matmul against this tile's level-0 rows.
    y = y1_ref[...]                              # (1, H, W, TC) bf16
    partial = jnp.dot(y.reshape(H * W, TC), w_ref[0:TC, :],
                      preferred_element_type=jnp.float32)

    for level in range(1, 4):
        # Place current level in the padded scratch (rows +2, cols +8; column
        # offset 8 keeps the large interior store sublane-aligned).
        pad_ref[:, 2:2 + H, 8:8 + W, :] = y
        xp = pad_ref[...]                        # (1, H+4, W+10, TC) bf16
        # Separable 5x5 'same' max (bf16 max is exact): rows then columns.
        tmp = xp[:, 0:H, :, :]
        for di in range(1, 5):
            tmp = jnp.maximum(tmp, xp[:, di:di + H, :, :])
        y = tmp[:, :, 6:6 + W, :]
        for dj in range(1, 5):
            y = jnp.maximum(y, tmp[:, :, 6 + dj:6 + dj + W, :])
        # Partial cv2 matmul for this pyramid level / channel tile.
        partial = partial + jnp.dot(
            y.reshape(H * W, TC), w_ref[level * TC:(level + 1) * TC, :],
            preferred_element_type=jnp.float32)

    acc_ref[...] += partial

    @pl.when(ci == pl.num_programs(1) - 1)
    def _():
        r = acc_ref[...] * scale_ref[...] + bias_ref[...]
        r = r * jnp.clip(r + 3.0, 0.0, 6.0) * (1.0 / 6.0)
        o_ref[...] = r.reshape(1, H, W, c2).astype(o_ref.dtype)


def _pool_channel_tile(c):
    # 128-wide channel tiles when possible (lane-dense), else full extent.
    return 128 if (c % 128 == 0) else c


def fused_sppf_pool_cv2(y1_nhwc, w2_perm_bf16, scale2d, bias2d, out_dtype):
    N, H, W, C = y1_nhwc.shape
    TC = _pool_channel_tile(C)
    n_ct = C // TC
    c2 = w2_perm_bf16.shape[1]
    # Note: for very large feature maps on v7x (H*W*c2 output block approaching
    # the 64 MiB VMEM), tile H into row bands with a 2-row re-read halo.
    return pl.pallas_call(
        _fused_pool_cv2_kernel,
        out_shape=jax.ShapeDtypeStruct((N, H, W, c2), out_dtype),
        grid=(N, n_ct),                          # reduction (channel-tile) axis last
        in_specs=[
            pl.BlockSpec((1, H, W, TC), lambda n, c: (n, 0, 0, c)),
            pl.BlockSpec((4 * TC, c2), lambda n, c: (c, 0)),
            pl.BlockSpec((1, c2), lambda n, c: (0, 0)),
            pl.BlockSpec((1, c2), lambda n, c: (0, 0)),
        ],
        out_specs=pl.BlockSpec((1, H, W, c2), lambda n, c: (n, 0, 0, 0)),
        scratch_shapes=[
            pltpu.VMEM((H * W, c2), jnp.float32),              # cv2 accumulator
            pltpu.VMEM((1, H + 4, W + 10, TC), jnp.bfloat16),  # -inf padded slab
        ],
        compiler_params=pltpu.CompilerParams(
            dimension_semantics=("parallel", "arbitrary"),
            vmem_limit_bytes=_pool_vmem_limit(),
        ),
    )(y1_nhwc, w2_perm_bf16, scale2d, bias2d)


def _cv2_row_permutation(c_, tc):
    # Kernel concat layout: per channel tile -> [lvl0 | lvl1 | lvl2 | lvl3].
    # PyTorch concat layout: [lvl0 all ch | lvl1 all ch | lvl2 | lvl3].
    # perm[q] = PyTorch row feeding kernel-layout row q.
    perm = []
    for c in range(c_ // tc):
        for lvl in range(4):
            for j in range(tc):
                perm.append(lvl * c_ + c * tc + j)
    return jnp.asarray(perm, dtype=jnp.int32)


# ---------------------------------------------------------------------------
# Parameter construction (deterministic, synthetic).  BatchNorm is folded
# (eval-mode / running-stats semantics) into a per-channel scale + bias.
# All kernel-side weight prep (bf16 cast, row permutation, (1,C) reshapes) is
# done ONCE here, never per forward pass.
# ---------------------------------------------------------------------------
def make_conv_params(key, c_in, c_out, eps=1e-3):
    kw, kg, kb, km, kv = jax.random.split(key, 5)
    # nn.Conv2d weight (c_out, c_in, 1, 1) stored as (c_in, c_out) matmul weight
    w = 0.1 * jax.random.normal(kw, (c_in, c_out), jnp.float32)
    gamma = 1.0 + 0.1 * jax.random.normal(kg, (c_out,), jnp.float32)
    beta = 0.1 * jax.random.normal(kb, (c_out,), jnp.float32)
    running_mean = 0.1 * jax.random.normal(km, (c_out,), jnp.float32)
    running_var = jnp.abs(1.0 + 0.1 * jax.random.normal(kv, (c_out,), jnp.float32))
    scale = gamma / jnp.sqrt(running_var + eps)
    bias = beta - running_mean * scale
    return {
        "w": w, "scale": scale, "bias": bias,            # reference copies (f32)
        "w_bf16": w.astype(jnp.bfloat16),                # kernel-ready copies
        "scale2d": scale.reshape(1, c_out),
        "bias2d": bias.reshape(1, c_out),
    }


def init_sppf_params(key, c1, c2):
    c_ = c1 // 2
    k1, k2 = jax.random.split(key)
    cv1 = make_conv_params(k1, c1, c_)
    cv2 = make_conv_params(k2, 4 * c_, c2)
    # Pre-permute cv2's weight rows into the fused kernel's per-channel-tile
    # [lvl0 | lvl1 | lvl2 | lvl3] layout (one-time gather, hoisted from forward).
    tc = _pool_channel_tile(c_)
    cv2["w_perm_bf16"] = jnp.take(cv2["w_bf16"], _cv2_row_permutation(c_, tc), axis=0)
    return {"cv1": cv1, "cv2": cv2}


# ---------------------------------------------------------------------------
# SPPF forward (NCHW in, NCHW out — matching the PyTorch module interface).
# ---------------------------------------------------------------------------
def sppf_forward(x_nchw, params):
    x = jnp.transpose(x_nchw, (0, 2, 3, 1))      # NCHW -> NHWC (layout plumbing)
    N, H, W, C1 = x.shape
    p1, p2 = params["cv1"], params["cv2"]
    c_ = p1["w_bf16"].shape[1]

    # cv1: 1x1 conv + BN + Hardswish (bf16 output feeds the pool chain)
    y1 = pointwise_conv_bn_hswish(
        x.reshape(N * H * W, C1), p1["w_bf16"], p1["scale2d"], p1["bias2d"],
        out_dtype=jnp.bfloat16,
    ).reshape(N, H, W, c_)

    # fused [y1 | pool | pool^2 | pool^3] -> cv2 (+BN+Hardswish); the 4*c_
    # concat tensor never touches HBM.
    out = fused_sppf_pool_cv2(
        y1, p2["w_perm_bf16"], p2["scale2d"], p2["bias2d"],
        out_dtype=x_nchw.dtype,
    )

    return jnp.transpose(out, (0, 3, 1, 2))      # NHWC -> NCHW


# ---------------------------------------------------------------------------
# Pure-JAX reference (f32, PyTorch channel order) for a correctness check.
# ---------------------------------------------------------------------------
def sppf_reference(x_nchw, params):
    x = jnp.transpose(x_nchw, (0, 2, 3, 1)).astype(jnp.float32)

    def conv_bn_hswish(z, p):
        y = jnp.einsum("nhwc,co->nhwo", z, p["w"]) * p["scale"] + p["bias"]
        return y * jnp.clip(y + 3.0, 0.0, 6.0) / 6.0

    def pool(z):
        return jax.lax.reduce_window(z, -jnp.inf, jax.lax.max,
                                     (1, 5, 5, 1), (1, 1, 1, 1), "SAME")

    y1 = conv_bn_hswish(x, params["cv1"])
    y2 = pool(y1)
    y3 = pool(y2)
    y4 = pool(y3)
    out = conv_bn_hswish(jnp.concatenate([y1, y2, y3, y4], axis=-1), params["cv2"])
    return jnp.transpose(out, (0, 3, 1, 2))


if __name__ == "__main__":
    key = jax.random.PRNGKey(0)
    k_x, k_p = jax.random.split(key)

    # Small shapes: batch=2, c1=4, spatial=16x16, c2=8
    N, C1, H, W = 2, 4, 16, 16
    C2 = 8
    x = jax.random.normal(k_x, (N, C1, H, W), jnp.float32)
    params = init_sppf_params(k_p, C1, C2)

    fwd = jax.jit(sppf_forward)
    out = jax.block_until_ready(fwd(x, params))

    assert out.shape == (N, C2, H, W), out.shape
    assert bool(jnp.all(jnp.isfinite(out)))

    # correctness check against a pure-JAX reference (bf16 matmul tolerance)
    ref = sppf_reference(x, params)
    max_err = float(jnp.max(jnp.abs(out - ref)))
    assert bool(jnp.allclose(out, ref, atol=5e-2, rtol=5e-2)), max_err

    print("KERNEL_OK")
</pallas_src>

<mosaic_0001>
module attributes {stable_mosaic.version = 11 : i64} {
  func.func @_fused_pool_cv2_kernel(%arg0: i32, %arg1: i32, %arg2: memref<1x16x16x2xbf16, #tpu.memory_space<vmem>>, %arg3: memref<8x8xbf16, #tpu.memory_space<vmem>>, %arg4: memref<1x8xf32, #tpu.memory_space<vmem>>, %arg5: memref<1x8xf32, #tpu.memory_space<vmem>>, %arg6: memref<1x16x16x8xf32, #tpu.memory_space<vmem>>, %arg7: memref<256x8xf32, #tpu.memory_space<vmem>>, %arg8: memref<1x20x26x2xbf16, #tpu.memory_space<vmem>>) attributes {dimension_semantics = [#tpu.dimension_semantics<parallel>, #tpu.dimension_semantics<arbitrary>], iteration_bounds = array<i64: 2, 1>, scalar_prefetch = 0 : i64, scratch_operands = 2 : i64, tpu.core_type = #tpu.core_type<tc>, window_params = [{transform_indices = @transform_0, window_bounds = array<i64: 1, 16, 16, 2>}, {transform_indices = @transform_1, window_bounds = array<i64: 8, 8>}, {pipeline_mode = #tpu.pipeline_mode<synchronous>, transform_indices = @transform_2, window_bounds = array<i64: 1, 8>}, {pipeline_mode = #tpu.pipeline_mode<synchronous>, transform_indices = @transform_3, window_bounds = array<i64: 1, 8>}, {transform_indices = @transform_4, window_bounds = array<i64: 1, 16, 16, 8>}]} {
    %c0_i32 = arith.constant 0 : i32
    %0 = arith.cmpi eq, %arg1, %c0_i32 : i32
    %1 = arith.extui %0 : i1 to i32
    %c0_i32_0 = arith.constant 0 : i32
    %2 = arith.cmpi ne, %1, %c0_i32_0 : i32
    scf.if %2 {
      %cst_59 = arith.constant 0.000000e+00 : f32
      %93 = vector.broadcast %cst_59 : f32 to vector<256x8xf32>
      %c0_60 = arith.constant 0 : index
      %c0_61 = arith.constant 0 : index
      %94 = vector.load %arg7[%c0_60, %c0_61] : memref<256x8xf32, #tpu.memory_space<vmem>>, vector<256x8xf32>
      tpu.vector_store %arg7[%c0_60, %c0_61], %93 {strides = array<i32>} : memref<256x8xf32, #tpu.memory_space<vmem>>, vector<256x8xf32>,
    } else {
    }
    %cst = arith.constant 0xFF80 : bf16
    %3 = vector.broadcast %cst : bf16 to vector<1x2x26x2xbf16>
    %c0 = arith.constant 0 : index
    %c0_1 = arith.constant 0 : index
    %c0_2 = arith.constant 0 : index
    %c0_3 = arith.constant 0 : index
    %4 = vector.load %arg8[%c0, %c0_1, %c0_2, %c0_3] : memref<1x20x26x2xbf16, #tpu.memory_space<vmem>>, vector<1x2x26x2xbf16>
    tpu.vector_store %arg8[%c0, %c0_1, %c0_2, %c0_3], %3 {strides = array<i32>} : memref<1x20x26x2xbf16, #tpu.memory_space<vmem>>, vector<1x2x26x2xbf16>,
    %cst_4 = arith.constant 0xFF80 : bf16
    %5 = vector.broadcast %cst_4 : bf16 to vector<1x2x26x2xbf16>
    %c0_5 = arith.constant 0 : index
    %c18 = arith.constant 18 : index
    %c0_6 = arith.constant 0 : index
    %c0_7 = arith.constant 0 : index
    %6 = vector.load %arg8[%c0_5, %c18, %c0_6, %c0_7] : memref<1x20x26x2xbf16, #tpu.memory_space<vmem>>, vector<1x2x26x2xbf16>
    tpu.vector_store %arg8[%c0_5, %c18, %c0_6, %c0_7], %5 {strides = array<i32>} : memref<1x20x26x2xbf16, #tpu.memory_space<vmem>>, vector<1x2x26x2xbf16>,
    %cst_8 = arith.constant 0xFF80 : bf16
    %7 = vector.broadcast %cst_8 : bf16 to vector<1x20x8x2xbf16>
    %c0_9 = arith.constant 0 : index
    %c0_10 = arith.constant 0 : index
    %c0_11 = arith.constant 0 : index
    %c0_12 = arith.constant 0 : index
    %8 = vector.load %arg8[%c0_9, %c0_10, %c0_11, %c0_12] : memref<1x20x26x2xbf16, #tpu.memory_space<vmem>>, vector<1x20x8x2xbf16>
    tpu.vector_store %arg8[%c0_9, %c0_10, %c0_11, %c0_12], %7 {strides = array<i32>} : memref<1x20x26x2xbf16, #tpu.memory_space<vmem>>, vector<1x20x8x2xbf16>,
    %cst_13 = arith.constant 0xFF80 : bf16
    %9 = vector.broadcast %cst_13 : bf16 to vector<1x20x2x2xbf16>
    %c0_14 = arith.constant 0 : index
    %c0_15 = arith.constant 0 : index
    %c24 = arith.constant 24 : index
    %c0_16 = arith.constant 0 : index
    %10 = vector.load %arg8[%c0_14, %c0_15, %c24, %c0_16] : memref<1x20x26x2xbf16, #tpu.memory_space<vmem>>, vector<1x20x2x2xbf16>
    tpu.vector_store %arg8[%c0_14, %c0_15, %c24, %c0_16], %9 {strides = array<i32>} : memref<1x20x26x2xbf16, #tpu.memory_space<vmem>>, vector<1x20x2x2xbf16>,
    %c0_17 = arith.constant 0 : index
    %c0_18 = arith.constant 0 : index
    %c0_19 = arith.constant 0 : index
    %c0_20 = arith.constant 0 : index
    %11 = vector.load %arg2[%c0_17, %c0_18, %c0_19, %c0_20] : memref<1x16x16x2xbf16, #tpu.memory_space<vmem>>, vector<1x16x16x2xbf16>
    %12 = vector.shape_cast %11 : vector<1x16x16x2xbf16> to vector<256x2xbf16>
    %c0_21 = arith.constant 0 : index
    %c0_22 = arith.constant 0 : index
    %13 = vector.load %arg3[%c0_21, %c0_22] : memref<8x8xbf16, #tpu.memory_space<vmem>>, vector<2x8xbf16>
    %cst_23 = arith.constant dense<0.000000e+00> : vector<256x8xf32>
    %14 = tpu.matmul %12, %13, %cst_23 {dimension_numbers = #tpu.dot_dimension_numbers<[1], [0], [0], [1], [0, 0, 1, 1], [], []>} : vector<256x2xbf16>, vector<2x8xbf16>, vector<256x8xf32> -> vector<256x8xf32>
    %c0_24 = arith.constant 0 : index
    %c2 = arith.constant 2 : index
    %c8 = arith.constant 8 : index
    %c0_25 = arith.constant 0 : index
    %15 = vector.load %arg8[%c0_24, %c2, %c8, %c0_25] : memref<1x20x26x2xbf16, #tpu.memory_space<vmem>>, vector<1x16x16x2xbf16>
    tpu.vector_store %arg8[%c0_24, %c2, %c8, %c0_25], %11 {strides = array<i32>} : memref<1x20x26x2xbf16, #tpu.memory_space<vmem>>, vector<1x16x16x2xbf16>,
    %c0_26 = arith.constant 0 : index
    %c0_27 = arith.constant 0 : index
    %c0_28 = arith.constant 0 : index
    %c0_29 = arith.constant 0 : index
    %16 = vector.load %arg8[%c0_26, %c0_27, %c0_28, %c0_29] : memref<1x20x26x2xbf16, #tpu.memory_space<vmem>>, vector<1x20x26x2xbf16>
    %17 = vector.extract_strided_slice %16 {offsets = [0, 0, 0, 0], sizes = [1, 16, 26, 2], strides = [1, 1, 1, 1]} : vector<1x20x26x2xbf16> to vector<1x16x26x2xbf16>
    %18 = vector.extract_strided_slice %16 {offsets = [0, 1, 0, 0], sizes = [1, 16, 26, 2], strides = [1, 1, 1, 1]} : vector<1x20x26x2xbf16> to vector<1x16x26x2xbf16>
    %19 = arith.maximumf %17, %18 : vector<1x16x26x2xbf16>
    %20 = vector.extract_strided_slice %16 {offsets = [0, 2, 0, 0], sizes = [1, 16, 26, 2], strides = [1, 1, 1, 1]} : vector<1x20x26x2xbf16> to vector<1x16x26x2xbf16>
    %21 = arith.maximumf %19, %20 : vector<1x16x26x2xbf16>
    %22 = vector.extract_strided_slice %16 {offsets = [0, 3, 0, 0], sizes = [1, 16, 26, 2], strides = [1, 1, 1, 1]} : vector<1x20x26x2xbf16> to vector<1x16x26x2xbf16>
    %23 = arith.maximumf %21, %22 : vector<1x16x26x2xbf16>
    %24 = vector.extract_strided_slice %16 {offsets = [0, 4, 0, 0], sizes = [1, 16, 26, 2], strides = [1, 1, 1, 1]} : vector<1x20x26x2xbf16> to vector<1x16x26x2xbf16>
    %25 = arith.maximumf %23, %24 : vector<1x16x26x2xbf16>
    %26 = vector.extract_strided_slice %25 {offsets = [0, 0, 6, 0], sizes = [1, 16, 16, 2], strides = [1, 1, 1, 1]} : vector<1x16x26x2xbf16> to vector<1x16x16x2xbf16>
    %27 = vector.extract_strided_slice %25 {offsets = [0, 0, 7, 0], sizes = [1, 16, 16, 2], strides = [1, 1, 1, 1]} : vector<1x16x26x2xbf16> to vector<1x16x16x2xbf16>
    %28 = arith.maximumf %26, %27 : vector<1x16x16x2xbf16>
    %29 = vector.extract_strided_slice %25 {offsets = [0, 0, 8, 0], sizes = [1, 16, 16, 2], strides = [1, 1, 1, 1]} : vector<1x16x26x2xbf16> to vector<1x16x16x2xbf16>
    %30 = arith.maximumf %28, %29 : vector<1x16x16x2xbf16>
    %31 = vector.extract_strided_slice %25 {offsets = [0, 0, 9, 0], sizes = [1, 16, 16, 2], strides = [1, 1, 1, 1]} : vector<1x16x26x2xbf16> to vector<1x16x16x2xbf16>
    %32 = arith.maximumf %30, %31 : vector<1x16x16x2xbf16>
    %33 = vector.extract_strided_slice %25 {offsets = [0, 0, 10, 0], sizes = [1, 16, 16, 2], strides = [1, 1, 1, 1]} : vector<1x16x26x2xbf16> to vector<1x16x16x2xbf16>
    %34 = arith.maximumf %32, %33 : vector<1x16x16x2xbf16>
    %35 = vector.shape_cast %34 : vector<1x16x16x2xbf16> to vector<256x2xbf16>
    %c2_30 = arith.constant 2 : index
    %c0_31 = arith.constant 0 : index
    %36 = vector.load %arg3[%c2_30, %c0_31] : memref<8x8xbf16, #tpu.memory_space<vmem>>, vector<2x8xbf16>
    %cst_32 = arith.constant dense<0.000000e+00> : vector<256x8xf32>
    %37 = tpu.matmul %35, %36, %cst_32 {dimension_numbers = #tpu.dot_dimension_numbers<[1], [0], [0], [1], [0, 0, 1, 1], [], []>} : vector<256x2xbf16>, vector<2x8xbf16>, vector<256x8xf32> -> vector<256x8xf32>
    %38 = arith.addf %14, %37 : vector<256x8xf32>
    %c0_33 = arith.constant 0 : index
    %c2_34 = arith.constant 2 : index
    %c8_35 = arith.constant 8 : index
    %c0_36 = arith.constant 0 : index
    %39 = vector.load %arg8[%c0_33, %c2_34, %c8_35, %c0_36] : memref<1x20x26x2xbf16, #tpu.memory_space<vmem>>, vector<1x16x16x2xbf16>
    tpu.vector_store %arg8[%c0_33, %c2_34, %c8_35, %c0_36], %34 {strides = array<i32>} : memref<1x20x26x2xbf16, #tpu.memory_space<vmem>>, vector<1x16x16x2xbf16>,
    %c0_37 = arith.constant 0 : index
    %c0_38 = arith.constant 0 : index
    %c0_39 = arith.constant 0 : index
    %c0_40 = arith.constant 0 : index
    %40 = vector.load %arg8[%c0_37, %c0_38, %c0_39, %c0_40] : memref<1x20x26x2xbf16, #tpu.memory_space<vmem>>, vector<1x20x26x2xbf16>
    %41 = vector.extract_strided_slice %40 {offsets = [0, 0, 0, 0], sizes = [1, 16, 26, 2], strides = [1, 1, 1, 1]} : vector<1x20x26x2xbf16> to vector<1x16x26x2xbf16>
    %42 = vector.extract_strided_slice %40 {offsets = [0, 1, 0, 0], sizes = [1, 16, 26, 2], strides = [1, 1, 1, 1]} : vector<1x20x26x2xbf16> to vector<1x16x26x2xbf16>
    %43 = arith.maximumf %41, %42 : vector<1x16x26x2xbf16>
    %44 = vector.extract_strided_slice %40 {offsets = [0, 2, 0, 0], sizes = [1, 16, 26, 2], strides = [1, 1, 1, 1]} : vector<1x20x26x2xbf16> to vector<1x16x26x2xbf16>
    %45 = arith.maximumf %43, %44 : vector<1x16x26x2xbf16>
    %46 = vector.extract_strided_slice %40 {offsets = [0, 3, 0, 0], sizes = [1, 16, 26, 2], strides = [1, 1, 1, 1]} : vector<1x20x26x2xbf16> to vector<1x16x26x2xbf16>
    %47 = arith.maximumf %45, %46 : vector<1x16x26x2xbf16>
    %48 = vector.extract_strided_slice %40 {offsets = [0, 4, 0, 0], sizes = [1, 16, 26, 2], strides = [1, 1, 1, 1]} : vector<1x20x26x2xbf16> to vector<1x16x26x2xbf16>
    %49 = arith.maximumf %47, %48 : vector<1x16x26x2xbf16>
    %50 = vector.extract_strided_slice %49 {offsets = [0, 0, 6, 0], sizes = [1, 16, 16, 2], strides = [1, 1, 1, 1]} : vector<1x16x26x2xbf16> to vector<1x16x16x2xbf16>
    %51 = vector.extract_strided_slice %49 {offsets = [0, 0, 7, 0], sizes = [1, 16, 16, 2], strides = [1, 1, 1, 1]} : vector<1x16x26x2xbf16> to vector<1x16x16x2xbf16>
    %52 = arith.maximumf %50, %51 : vector<1x16x16x2xbf16>
    %53 = vector.extract_strided_slice %49 {offsets = [0, 0, 8, 0], sizes = [1, 16, 16, 2], strides = [1, 1, 1, 1]} : vector<1x16x26x2xbf16> to vector<1x16x16x2xbf16>
    %54 = arith.maximumf %52, %53 : vector<1x16x16x2xbf16>
    %55 = vector.extract_strided_slice %49 {offsets = [0, 0, 9, 0], sizes = [1, 16, 16, 2], strides = [1, 1, 1, 1]} : vector<1x16x26x2xbf16> to vector<1x16x16x2xbf16>
    %56 = arith.maximumf %54, %55 : vector<1x16x16x2xbf16>
    %57 = vector.extract_strided_slice %49 {offsets = [0, 0, 10, 0], sizes = [1, 16, 16, 2], strides = [1, 1, 1, 1]} : vector<1x16x26x2xbf16> to vector<1x16x16x2xbf16>
    %58 = arith.maximumf %56, %57 : vector<1x16x16x2xbf16>
    %59 = vector.shape_cast %58 : vector<1x16x16x2xbf16> to vector<256x2xbf16>
    %c4 = arith.constant 4 : index
    %c0_41 = arith.constant 0 : index
    %60 = vector.load %arg3[%c4, %c0_41] : memref<8x8xbf16, #tpu.memory_space<vmem>>, vector<2x8xbf16>
    %cst_42 = arith.constant dense<0.000000e+00> : vector<256x8xf32>
    %61 = tpu.matmul %59, %60, %cst_42 {dimension_numbers = #tpu.dot_dimension_numbers<[1], [0], [0], [1], [0, 0, 1, 1], [], []>} : vector<256x2xbf16>, vector<2x8xbf16>, vector<256x8xf32> -> vector<256x8xf32>
    %62 = arith.addf %38, %61 : vector<256x8xf32>
    %c0_43 = arith.constant 0 : index
    %c2_44 = arith.constant 2 : index
    %c8_45 = arith.constant 8 : index
    %c0_46 = arith.constant 0 : index
    %63 = vector.load %arg8[%c0_43, %c2_44, %c8_45, %c0_46] : memref<1x20x26x2xbf16, #tpu.memory_space<vmem>>, vector<1x16x16x2xbf16>
    tpu.vector_store %arg8[%c0_43, %c2_44, %c8_45, %c0_46], %58 {strides = array<i32>} : memref<1x20x26x2xbf16, #tpu.memory_space<vmem>>, vector<1x16x16x2xbf16>,
    %c0_47 = arith.constant 0 : index
    %c0_48 = arith.constant 0 : index
    %c0_49 = arith.constant 0 : index
    %c0_50 = arith.constant 0 : index
    %64 = vector.load %arg8[%c0_47, %c0_48, %c0_49, %c0_50] : memref<1x20x26x2xbf16, #tpu.memory_space<vmem>>, vector<1x20x26x2xbf16>
    %65 = vector.extract_strided_slice %64 {offsets = [0, 0, 0, 0], sizes = [1, 16, 26, 2], strides = [1, 1, 1, 1]} : vector<1x20x26x2xbf16> to vector<1x16x26x2xbf16>
    %66 = vector.extract_strided_slice %64 {offsets = [0, 1, 0, 0], sizes = [1, 16, 26, 2], strides = [1, 1, 1, 1]} : vector<1x20x26x2xbf16> to vector<1x16x26x2xbf16>
    %67 = arith.maximumf %65, %66 : vector<1x16x26x2xbf16>
    %68 = vector.extract_strided_slice %64 {offsets = [0, 2, 0, 0], sizes = [1, 16, 26, 2], strides = [1, 1, 1, 1]} : vector<1x20x26x2xbf16> to vector<1x16x26x2xbf16>
    %69 = arith.maximumf %67, %68 : vector<1x16x26x2xbf16>
    %70 = vector.extract_strided_slice %64 {offsets = [0, 3, 0, 0], sizes = [1, 16, 26, 2], strides = [1, 1, 1, 1]} : vector<1x20x26x2xbf16> to vector<1x16x26x2xbf16>
    %71 = arith.maximumf %69, %70 : vector<1x16x26x2xbf16>
    %72 = vector.extract_strided_slice %64 {offsets = [0, 4, 0, 0], sizes = [1, 16, 26, 2], strides = [1, 1, 1, 1]} : vector<1x20x26x2xbf16> to vector<1x16x26x2xbf16>
    %73 = arith.maximumf %71, %72 : vector<1x16x26x2xbf16>
    %74 = vector.extract_strided_slice %73 {offsets = [0, 0, 6, 0], sizes = [1, 16, 16, 2], strides = [1, 1, 1, 1]} : vector<1x16x26x2xbf16> to vector<1x16x16x2xbf16>
    %75 = vector.extract_strided_slice %73 {offsets = [0, 0, 7, 0], sizes = [1, 16, 16, 2], strides = [1, 1, 1, 1]} : vector<1x16x26x2xbf16> to vector<1x16x16x2xbf16>
    %76 = arith.maximumf %74, %75 : vector<1x16x16x2xbf16>
    %77 = vector.extract_strided_slice %73 {offsets = [0, 0, 8, 0], sizes = [1, 16, 16, 2], strides = [1, 1, 1, 1]} : vector<1x16x26x2xbf16> to vector<1x16x16x2xbf16>
    %78 = arith.maximumf %76, %77 : vector<1x16x16x2xbf16>
    %79 = vector.extract_strided_slice %73 {offsets = [0, 0, 9, 0], sizes = [1, 16, 16, 2], strides = [1, 1, 1, 1]} : vector<1x16x26x2xbf16> to vector<1x16x16x2xbf16>
    %80 = arith.maximumf %78, %79 : vector<1x16x16x2xbf16>
    %81 = vector.extract_strided_slice %73 {offsets = [0, 0, 10, 0], sizes = [1, 16, 16, 2], strides = [1, 1, 1, 1]} : vector<1x16x26x2xbf16> to vector<1x16x16x2xbf16>
    %82 = arith.maximumf %80, %81 : vector<1x16x16x2xbf16>
    %83 = vector.shape_cast %82 : vector<1x16x16x2xbf16> to vector<256x2xbf16>
    %c6 = arith.constant 6 : index
    %c0_51 = arith.constant 0 : index
    %84 = vector.load %arg3[%c6, %c0_51] : memref<8x8xbf16, #tpu.memory_space<vmem>>, vector<2x8xbf16>
    %cst_52 = arith.constant dense<0.000000e+00> : vector<256x8xf32>
    %85 = tpu.matmul %83, %84, %cst_52 {dimension_numbers = #tpu.dot_dimension_numbers<[1], [0], [0], [1], [0, 0, 1, 1], [], []>} : vector<256x2xbf16>, vector<2x8xbf16>, vector<256x8xf32> -> vector<256x8xf32>
    %86 = arith.addf %62, %85 : vector<256x8xf32>
    %c0_53 = arith.constant 0 : index
    %c0_54 = arith.constant 0 : index
    %87 = vector.load %arg7[%c0_53, %c0_54] : memref<256x8xf32, #tpu.memory_space<vmem>>, vector<256x8xf32>
    %88 = arith.addf %87, %86 : vector<256x8xf32>
    %c0_55 = arith.constant 0 : index
    %c0_56 = arith.constant 0 : index
    %89 = vector.load %arg7[%c0_55, %c0_56] : memref<256x8xf32, #tpu.memory_space<vmem>>, vector<256x8xf32>
    tpu.vector_store %arg7[%c0_55, %c0_56], %88 {strides = array<i32>} : memref<256x8xf32, #tpu.memory_space<vmem>>, vector<256x8xf32>,
    %c0_i32_57 = arith.constant 0 : i32
    %90 = arith.cmpi eq, %arg1, %c0_i32_57 : i32
    %91 = arith.extui %90 : i1 to i32
    %c0_i32_58 = arith.constant 0 : i32
    %92 = arith.cmpi ne, %91, %c0_i32_58 : i32
    scf.if %92 {
      %c0_59 = arith.constant 0 : index
      %c0_60 = arith.constant 0 : index
      %93 = vector.load %arg7[%c0_59, %c0_60] : memref<256x8xf32, #tpu.memory_space<vmem>>, vector<256x8xf32>
      %c0_61 = arith.constant 0 : index
      %c0_62 = arith.constant 0 : index
      %94 = vector.load %arg4[%c0_61, %c0_62] : memref<1x8xf32, #tpu.memory_space<vmem>>, vector<1x8xf32>
      %95 = vector.broadcast %94 : vector<1x8xf32> to vector<256x8xf32>
      %96 = arith.mulf %93, %95 : vector<256x8xf32>
      %c0_63 = arith.constant 0 : index
      %c0_64 = arith.constant 0 : index
      %97 = vector.load %arg5[%c0_63, %c0_64] : memref<1x8xf32, #tpu.memory_space<vmem>>, vector<1x8xf32>
      %98 = vector.broadcast %97 : vector<1x8xf32> to vector<256x8xf32>
      %99 = arith.addf %96, %98 : vector<256x8xf32>
      %cst_65 = arith.constant 3.000000e+00 : f32
      %100 = vector.broadcast %cst_65 : f32 to vector<256x8xf32>
      %101 = arith.addf %99, %100 : vector<256x8xf32>
      %cst_66 = arith.constant 0.000000e+00 : f32
      %cst_67 = arith.constant 6.000000e+00 : f32
      %102 = vector.broadcast %cst_66 : f32 to vector<256x8xf32>
      %103 = arith.maximumf %102, %101 : vector<256x8xf32>
      %104 = vector.broadcast %cst_67 : f32 to vector<256x8xf32>
      %105 = arith.minimumf %104, %103 : vector<256x8xf32>
      %106 = arith.mulf %99, %105 : vector<256x8xf32>
      %cst_68 = arith.constant 0.166666672 : f32
      %107 = vector.broadcast %cst_68 : f32 to vector<256x8xf32>
      %108 = arith.mulf %106, %107 : vector<256x8xf32>
      %109 = vector.shape_cast %108 : vector<256x8xf32> to vector<1x16x16x8xf32>
      %c0_69 = arith.constant 0 : index
      %c0_70 = arith.constant 0 : index
      %c0_71 = arith.constant 0 : index
      %c0_72 = arith.constant 0 : index
      %110 = vector.load %arg6[%c0_69, %c0_70, %c0_71, %c0_72] : memref<1x16x16x8xf32, #tpu.memory_space<vmem>>, vector<1x16x16x8xf32>
      tpu.vector_store %arg6[%c0_69, %c0_70, %c0_71, %c0_72], %109 {strides = array<i32>} : memref<1x16x16x8xf32, #tpu.memory_space<vmem>>, vector<1x16x16x8xf32>,
    } else {
    }
    return
  }
  func.func @transform_0(%arg0: i32, %arg1: i32) -> (i32, i32, i32, i32) {
    %c0_i32 = arith.constant 0 : i32
    %c0_i32_0 = arith.constant 0 : i32
    %c0_i32_1 = arith.constant 0 : i32
    return %arg0, %c0_i32, %c0_i32_0, %arg1 : i32, i32, i32, i32
  }
  func.func @transform_1(%arg0: i32, %arg1: i32) -> (i32, i32) {
    %c0_i32 = arith.constant 0 : i32
    %c0_i32_0 = arith.constant 0 : i32
    return %arg1, %c0_i32 : i32, i32
  }
  func.func @transform_2(%arg0: i32, %arg1: i32) -> (i32, i32) {
    %c0_i32 = arith.constant 0 : i32
    %c0_i32_0 = arith.constant 0 : i32
    %c0_i32_1 = arith.constant 0 : i32
    return %c0_i32, %c0_i32_0 : i32, i32
  }
  func.func @transform_3(%arg0: i32, %arg1: i32) -> (i32, i32) {
    %c0_i32 = arith.constant 0 : i32
    %c0_i32_0 = arith.constant 0 : i32
    %c0_i32_1 = arith.constant 0 : i32
    return %c0_i32, %c0_i32_0 : i32, i32
  }
  func.func @transform_4(%arg0: i32, %arg1: i32) -> (i32, i32, i32, i32) {
    %c0_i32 = arith.constant 0 : i32
    %c0_i32_0 = arith.constant 0 : i32
    %c0_i32_1 = arith.constant 0 : i32
    %c0_i32_2 = arith.constant 0 : i32
    return %arg0, %c0_i32, %c0_i32_0, %c0_i32_1 : i32, i32, i32, i32
  }
}

module attributes {stable_mosaic.version = 11 : i64} {
  func.func @_pw_conv_bn_hswish_kernel(%arg0: i32, %arg1: i32, %arg2: memref<512x4xf32, #tpu.memory_space<vmem>>, %arg3: memref<4x2xbf16, #tpu.memory_space<vmem>>, %arg4: memref<1x2xf32, #tpu.memory_space<vmem>>, %arg5: memref<1x2xf32, #tpu.memory_space<vmem>>, %arg6: memref<512x2xbf16, #tpu.memory_space<vmem>>) attributes {dimension_semantics = [#tpu.dimension_semantics<parallel>, #tpu.dimension_semantics<parallel>], iteration_bounds = array<i64: 1, 1>, scalar_prefetch = 0 : i64, scratch_operands = 0 : i64, tpu.core_type = #tpu.core_type<tc>, window_params = [{transform_indices = @transform_0, window_bounds = array<i64: 512, 4>}, {transform_indices = @transform_1, window_bounds = array<i64: 4, 2>}, {transform_indices = @transform_2, window_bounds = array<i64: 1, 2>}, {transform_indices = @transform_3, window_bounds = array<i64: 1, 2>}, {transform_indices = @transform_4, window_bounds = array<i64: 512, 2>}]} {
    %c0 = arith.constant 0 : index
    %c0_0 = arith.constant 0 : index
    %0 = vector.load %arg2[%c0, %c0_0] : memref<512x4xf32, #tpu.memory_space<vmem>>, vector<512x4xf32>
    %1 = arith.truncf %0 : vector<512x4xf32> to vector<512x4xbf16>
    %c0_1 = arith.constant 0 : index
    %c0_2 = arith.constant 0 : index
    %2 = vector.load %arg3[%c0_1, %c0_2] : memref<4x2xbf16, #tpu.memory_space<vmem>>, vector<4x2xbf16>
    %cst = arith.constant dense<0.000000e+00> : vector<512x2xf32>
    %3 = tpu.matmul %1, %2, %cst {dimension_numbers = #tpu.dot_dimension_numbers<[1], [0], [0], [1], [0, 0, 1, 1], [], []>} : vector<512x4xbf16>, vector<4x2xbf16>, vector<512x2xf32> -> vector<512x2xf32>
    %c0_3 = arith.constant 0 : index
    %c0_4 = arith.constant 0 : index
    %4 = vector.load %arg4[%c0_3, %c0_4] : memref<1x2xf32, #tpu.memory_space<vmem>>, vector<1x2xf32>
    %5 = vector.broadcast %4 : vector<1x2xf32> to vector<512x2xf32>
    %6 = arith.mulf %3, %5 : vector<512x2xf32>
    %c0_5 = arith.constant 0 : index
    %c0_6 = arith.constant 0 : index
    %7 = vector.load %arg5[%c0_5, %c0_6] : memref<1x2xf32, #tpu.memory_space<vmem>>, vector<1x2xf32>
    %8 = vector.broadcast %7 : vector<1x2xf32> to vector<512x2xf32>
    %9 = arith.addf %6, %8 : vector<512x2xf32>
    %cst_7 = arith.constant 3.000000e+00 : f32
    %10 = vector.broadcast %cst_7 : f32 to vector<512x2xf32>
    %11 = arith.addf %9, %10 : vector<512x2xf32>
    %cst_8 = arith.constant 0.000000e+00 : f32
    %cst_9 = arith.constant 6.000000e+00 : f32
    %12 = vector.broadcast %cst_8 : f32 to vector<512x2xf32>
    %13 = arith.maximumf %12, %11 : vector<512x2xf32>
    %14 = vector.broadcast %cst_9 : f32 to vector<512x2xf32>
    %15 = arith.minimumf %14, %13 : vector<512x2xf32>
    %16 = arith.mulf %9, %15 : vector<512x2xf32>
    %cst_10 = arith.constant 0.166666672 : f32
    %17 = vector.broadcast %cst_10 : f32 to vector<512x2xf32>
    %18 = arith.mulf %16, %17 : vector<512x2xf32>
    %19 = arith.truncf %18 : vector<512x2xf32> to vector<512x2xbf16>
    %c0_11 = arith.constant 0 : index
    %c0_12 = arith.constant 0 : index
    %20 = vector.load %arg6[%c0_11, %c0_12] : memref<512x2xbf16, #tpu.memory_space<vmem>>, vector<512x2xbf16>
    tpu.vector_store %arg6[%c0_11, %c0_12], %19 {strides = array<i32>} : memref<512x2xbf16, #tpu.memory_space<vmem>>, vector<512x2xbf16>,
    return
  }
  func.func @transform_0(%arg0: i32, %arg1: i32) -> (i32, i32) {
    %c0_i32 = arith.constant 0 : i32
    %c0_i32_0 = arith.constant 0 : i32
    return %arg0, %c0_i32 : i32, i32
  }
  func.func @transform_1(%arg0: i32, %arg1: i32) -> (i32, i32) {
    %c0_i32 = arith.constant 0 : i32
    %c0_i32_0 = arith.constant 0 : i32
    return %c0_i32, %arg1 : i32, i32
  }
  func.func @transform_2(%arg0: i32, %arg1: i32) -> (i32, i32) {
    %c0_i32 = arith.constant 0 : i32
    %c0_i32_0 = arith.constant 0 : i32
    return %c0_i32, %arg1 : i32, i32
  }
  func.func @transform_3(%arg0: i32, %arg1: i32) -> (i32, i32) {
    %c0_i32 = arith.constant 0 : i32
    %c0_i32_0 = arith.constant 0 : i32
    return %c0_i32, %arg1 : i32, i32
  }
  func.func @transform_4(%arg0: i32, %arg1: i32) -> (i32, i32) {
    %c0_i32 = arith.constant 0 : i32
    return %arg0, %arg1 : i32, i32
  }
}

</mosaic_0001>

<bundles_post_ra>
// kernel: sppf_forward.2
= control target key start
LH: loop header
LB: loop body
LE: loop exit
PB: predicated region body
PF: predicated region fallthrough
CT: control target
= control target key end

     0   :  { %vm212_vm0 = vcmask 1041408   ;;  %vm115_vm1 = vcmask 31744   ;;  %vm1223_vm2 = vcmask 11264   ;;  %s2349_s1 = inlined_call_operand.vmem [shape: bf16[4,2], index: 1, kind: input, shape index: {}]   ;;  %s2350_s0 = inlined_call_operand.vmem [shape: f32[512,4], index: 0, kind: input, shape index: {}]   ;;  %s2351_s2 = inlined_call_operand.vmem [shape: f32[1,2], index: 2, kind: input, shape index: {}]   ;;  %s2352_s3 = inlined_call_operand.vmem [shape: f32[1,2], index: 3, kind: input, shape index: {}]   ;;  %s2353_s4 = inlined_call_operand.vmem [shape: bf16[512,2], index: 4, kind: output, shape index: {}]  }
   0x1   :  { %v114_v0 = vld [vmem:[%s2349_s1] sm:$0x3]  ;;  %v19_v2 = vld [vmem:[%s2350_s0 + $0x8] sm:$0xff]  ;;  %v20_v7 = vld [vmem:[%s2350_s0 + $0x10] sm:$0xff] }
   0x2   :  { %v18_v1 = vld [vmem:[%s2350_s0] sm:$0xff]  ;;  %1555 = vmatprep.subr.msk.bf16.mxu0 %vm212_vm0, %v114_v0  ;;  %1556 = vmatprep.subr.msk.bf16.mxu1 %vm212_vm0, %v114_v0  ;;  %v214_v3 = vsel %vm212_vm0, %v114_v0, 0  ;;  %v51_v6 = vld [vmem:[%s2350_s0 + $0x108] sm:$0xff]  ;;  %v21_v9 = vld [vmem:[%s2350_s0 + $0x18] sm:$0xff] }
   0x3   :  { %v82_v4 = vpack.c.bf16 %v19_v2, %v18_v1  ;;  %v50_v5 = vld [vmem:[%s2350_s0 + $0x100] sm:$0xff]  ;;  %1488 = vmatpush3.bf16.msra.mxu0 %v214_v3  ;;  %1554 = vmatpush3.bf16.msra.mxu1 %v214_v3  ;;  %v52_v10 = vld [vmem:[%s2350_s0 + $0x110] sm:$0xff]  ;;  %v53_v11 = vld [vmem:[%s2350_s0 + $0x118] sm:$0xff]  ;;  %v83_v12 = vpack.c.bf16 %v21_v9, %v20_v7 }
   0x4   :  { %v98_v8 = vpack.c.bf16 %v51_v6, %v50_v5  ;;  %v99_v13 = vpack.c.bf16 %v53_v11, %v52_v10  ;;  %v22_v14 = vld [vmem:[%s2350_s0 + $0x20] sm:$0xff]  ;;  %v23_v15 = vld [vmem:[%s2350_s0 + $0x28] sm:$0xff]  ;;  %v24_v20 = vld [vmem:[%s2350_s0 + $0x30] sm:$0xff] }
   0x5   :  { %1489 = vmatprep.mubr.msk.bf16.mxu0 %vm115_vm1, %v82_v4  ;;  %v54_v16 = vld [vmem:[%s2350_s0 + $0x120] sm:$0xff]  ;;  %v84_v17 = vpack.c.bf16 %v23_v15, %v22_v14  ;;  %v55_v18 = vld [vmem:[%s2350_s0 + $0x128] sm:$0xff]  ;;  %v25_v21 = vld [vmem:[%s2350_s0 + $0x38] sm:$0xff] }
   0x6   :  { %1521 = vmatprep.mubr.msk.bf16.mxu1 %vm115_vm1, %v98_v8  ;;  %1490 = vmatmul.mubr.msk.bf16.vlgmr.msra.gmra.mrb[0].mxu0 %vm115_vm1, %v83_v12  ;;  %v100_v19 = vpack.c.bf16 %v55_v18, %v54_v16  ;;  %v56_v22 = vld [vmem:[%s2350_s0 + $0x130] sm:$0xff]  ;;  %v57_v23 = vld [vmem:[%s2350_s0 + $0x138] sm:$0xff]  ;;  %v26_v24 = vld [vmem:[%s2350_s0 + $0x40] sm:$0xff]  ;;  %v85_v28 = vpack.c.bf16 %v25_v21, %v24_v20 }
   0x7   :  { %1522 = vmatmul.mubr.msk.bf16.vlgmr.msra.gmra.mrb[0].mxu1 %vm115_vm1, %v99_v13  ;;  %1493 = vmatprep.mubr.msk.bf16.mxu0 %vm115_vm1, %v84_v17  ;;  %v27_v25 = vld [vmem:[%s2350_s0 + $0x48] sm:$0xff]  ;;  %v58_v26 = vld [vmem:[%s2350_s0 + $0x140] sm:$0xff]  ;;  %v101_v29 = vpack.c.bf16 %v57_v23, %v56_v22  ;;  %v28_v32 = vld [vmem:[%s2350_s0 + $0x50] sm:$0xff] }
   0x8   :  { %1525 = vmatprep.mubr.msk.bf16.mxu1 %vm115_vm1, %v100_v19  ;;  %v59_v27 = vld [vmem:[%s2350_s0 + $0x148] sm:$0xff]  ;;  %v86_v30 = vpack.c.bf16 %v27_v25, %v26_v24  ;;  %v29_v33 = vld [vmem:[%s2350_s0 + $0x58] sm:$0xff]  ;;  %v60_v34 = vld [vmem:[%s2350_s0 + $0x150] sm:$0xff] }
   0x9   :  { %v102_v31 = vpack.c.bf16 %v59_v27, %v58_v26  ;;  %v61_v35 = vld [vmem:[%s2350_s0 + $0x158] sm:$0xff]  ;;  %v30_v36 = vld [vmem:[%s2350_s0 + $0x60] sm:$0xff]  ;;  %v31_v37 = vld [vmem:[%s2350_s0 + $0x68] sm:$0xff]  ;;  %v87_v40 = vpack.c.bf16 %v29_v33, %v28_v32 }
   0xa   :  { %v62_v38 = vld [vmem:[%s2350_s0 + $0x160] sm:$0xff]  ;;  %v63_v39 = vld [vmem:[%s2350_s0 + $0x168] sm:$0xff]  ;;  %v103_v41 = vpack.c.bf16 %v61_v35, %v60_v34  ;;  %v88_v42 = vpack.c.bf16 %v31_v37, %v30_v36  ;;  %v32_v44 = vld [vmem:[%s2350_s0 + $0x70] sm:$0xff] }
   0xb   :  { %v104_v43 = vpack.c.bf16 %v63_v39, %v62_v38  ;;  %v33_v45 = vld [vmem:[%s2350_s0 + $0x78] sm:$0xff]  ;;  %v64_v46 = vld [vmem:[%s2350_s0 + $0x170] sm:$0xff]  ;;  %v34_v48 = vld [vmem:[%s2350_s0 + $0x80] sm:$0xff] }
   0xc   :  { %v65_v47 = vld [vmem:[%s2350_s0 + $0x178] sm:$0xff]  ;;  %v35_v49 = vld [vmem:[%s2350_s0 + $0x88] sm:$0xff]  ;;  %v66_v50 = vld [vmem:[%s2350_s0 + $0x180] sm:$0xff]  ;;  %v89_v52 = vpack.c.bf16 %v33_v45, %v32_v44 }
   0xd   :  { %v67_v51 = vld [vmem:[%s2350_s0 + $0x188] sm:$0xff]  ;;  %v105_v53 = vpack.c.bf16 %v65_v47, %v64_v46  ;;  %v90_v54 = vpack.c.bf16 %v35_v49, %v34_v48  ;;  %v36_v56 = vld [vmem:[%s2350_s0 + $0x90] sm:$0xff]  ;;  %v37_v57 = vld [vmem:[%s2350_s0 + $0x98] sm:$0xff] }
   0xe   :  { %1494 = vmatmul.mubr.msk.bf16.gmra.mrb[4].mxu0 %vm115_vm1, %v85_v28  ;;  %v106_v55 = vpack.c.bf16 %v67_v51, %v66_v50  ;;  %v68_v58 = vld [vmem:[%s2350_s0 + $0x190] sm:$0xff]  ;;  %v69_v59 = vld [vmem:[%s2350_s0 + $0x198] sm:$0xff]  ;;  %v38_v60 = vld [vmem:[%s2350_s0 + $0xa0] sm:$0xff]  ;;  %v91_v0 = vpack.c.bf16 %v37_v57, %v36_v56 }
   0xf   :  { %1526 = vmatmul.mubr.msk.bf16.gmra.mrb[4].mxu1 %vm115_vm1, %v101_v29  ;;  %1497 = vmatprep.mubr.msk.bf16.mxu0 %vm115_vm1, %v86_v30  ;;  %v39_v61 = vld [vmem:[%s2350_s0 + $0xa8] sm:$0xff]  ;;  %v70_v62 = vld [vmem:[%s2350_s0 + $0x1a0] sm:$0xff]  ;;  %v107_v1 = vpack.c.bf16 %v69_v59, %v68_v58  ;;  %v40_v4 = vld [vmem:[%s2350_s0 + $0xb0] sm:$0xff] }
  0x10   :  { %1529 = vmatprep.mubr.msk.bf16.mxu1 %vm115_vm1, %v102_v31  ;;  %v71_v63 = vld [vmem:[%s2350_s0 + $0x1a8] sm:$0xff]  ;;  %v92_v2 = vpack.c.bf16 %v39_v61, %v38_v60  ;;  %v41_v5 = vld [vmem:[%s2350_s0 + $0xb8] sm:$0xff]  ;;  %v72_v6 = vld [vmem:[%s2350_s0 + $0x1b0] sm:$0xff] }
  0x11   :  { %v108_v3 = vpack.c.bf16 %v71_v63, %v70_v62  ;;  %v73_v7 = vld [vmem:[%s2350_s0 + $0x1b8] sm:$0xff]  ;;  %v42_v8 = vld [vmem:[%s2350_s0 + $0xc0] sm:$0xff]  ;;  %v43_v9 = vld [vmem:[%s2350_s0 + $0xc8] sm:$0xff]  ;;  %v93_v12 = vpack.c.bf16 %v41_v5, %v40_v4 }
  0x12   :  { %v74_v10 = vld [vmem:[%s2350_s0 + $0x1c0] sm:$0xff]  ;;  %v75_v11 = vld [vmem:[%s2350_s0 + $0x1c8] sm:$0xff]  ;;  %v109_v13 = vpack.c.bf16 %v73_v7, %v72_v6  ;;  %v94_v14 = vpack.c.bf16 %v43_v9, %v42_v8  ;;  %v44_v16 = vld [vmem:[%s2350_s0 + $0xd0] sm:$0xff] }
  0x13   :  { %v110_v15 = vpack.c.bf16 %v75_v11, %v74_v10  ;;  %v45_v17 = vld [vmem:[%s2350_s0 + $0xd8] sm:$0xff]  ;;  %v76_v18 = vld [vmem:[%s2350_s0 + $0x1d0] sm:$0xff]  ;;  %v46_v20 = vld [vmem:[%s2350_s0 + $0xe0] sm:$0xff] }
  0x14   :  { %v77_v19 = vld [vmem:[%s2350_s0 + $0x1d8] sm:$0xff]  ;;  %v47_v21 = vld [vmem:[%s2350_s0 + $0xe8] sm:$0xff]  ;;  %v78_v22 = vld [vmem:[%s2350_s0 + $0x1e0] sm:$0xff]  ;;  %v95_v24 = vpack.c.bf16 %v45_v17, %v44_v16 }
  0x15   :  { %v79_v23 = vld [vmem:[%s2350_s0 + $0x1e8] sm:$0xff]  ;;  %v111_v25 = vpack.c.bf16 %v77_v19, %v76_v18  ;;  %v96_v26 = vpack.c.bf16 %v47_v21, %v46_v20  ;;  %v48_v28 = vld [vmem:[%s2350_s0 + $0xf0] sm:$0xff]  ;;  %v49_v29 = vld [vmem:[%s2350_s0 + $0xf8] sm:$0xff] }
  0x16   :  { %1498 = vmatmul.mubr.msk.bf16.gmra.mrb[8].mxu0 %vm115_vm1, %v87_v40  ;;  %v112_v27 = vpack.c.bf16 %v79_v23, %v78_v22  ;;  %v80_v30 = vld [vmem:[%s2350_s0 + $0x1f0] sm:$0xff]  ;;  %v81_v31 = vld [vmem:[%s2350_s0 + $0x1f8] sm:$0xff]  ;;  %v97_v32 = vpack.c.bf16 %v49_v29, %v48_v28  ;;  %v1814_v34 = vld [vmem:[%s2351_s2] ss:$0 sm:$0xff] }
  0x17   :  { %1530 = vmatmul.mubr.msk.bf16.gmra.mrb[8].mxu1 %vm115_vm1, %v103_v41  ;;  %1501 = vmatprep.mubr.msk.bf16.mxu0 %vm115_vm1, %v88_v42  ;;  %v113_v33 = vpack.c.bf16 %v81_v31, %v80_v30  ;;  %v1819_v36 = vld [vmem:[%s2352_s3] ss:$0 sm:$0xff] }
  0x18   :  { %1533 = vmatprep.mubr.msk.bf16.mxu1 %vm115_vm1, %v104_v43 }
  0x1e   :  { %1502 = vmatmul.mubr.msk.bf16.gmra.mrb[12].mxu0 %vm115_vm1, %v89_v52 }
  0x1f   :  { %1534 = vmatmul.mubr.msk.bf16.gmra.mrb[12].mxu1 %vm115_vm1, %v105_v53  ;;  %1505 = vmatprep.mubr.msk.bf16.mxu0 %vm115_vm1, %v90_v54 }
  0x20   :  { %1537 = vmatprep.mubr.msk.bf16.mxu1 %vm115_vm1, %v106_v55 }
  0x26   :  { %1506 = vmatmul.mubr.msk.bf16.gmra.mrb[16].mxu0 %vm115_vm1, %v91_v0 }
  0x27   :  { %1538 = vmatmul.mubr.msk.bf16.gmra.mrb[16].mxu1 %vm115_vm1, %v107_v1  ;;  %1509 = vmatprep.mubr.msk.bf16.mxu0 %vm115_vm1, %v92_v2 }
  0x28   :  { %1541 = vmatprep.mubr.msk.bf16.mxu1 %vm115_vm1, %v108_v3 }
  0x2e   :  { %1510 = vmatmul.mubr.msk.bf16.gmra.mrb[20].mxu0 %vm115_vm1, %v93_v12 }
  0x2f   :  { %1542 = vmatmul.mubr.msk.bf16.gmra.mrb[20].mxu1 %vm115_vm1, %v109_v13  ;;  %1513 = vmatprep.mubr.msk.bf16.mxu0 %vm115_vm1, %v94_v14 }
  0x30   :  { %1545 = vmatprep.mubr.msk.bf16.mxu1 %vm115_vm1, %v110_v15 }
  0x36   :  { %1514 = vmatmul.mubr.msk.bf16.gmra.mrb[24].mxu0 %vm115_vm1, %v95_v24 }
  0x37   :  { %1546 = vmatmul.mubr.msk.bf16.gmra.mrb[24].mxu1 %vm115_vm1, %v111_v25  ;;  %1517 = vmatprep.mubr.msk.bf16.mxu0 %vm115_vm1, %v96_v26 }
  0x38   :  { %1549 = vmatprep.mubr.msk.bf16.mxu1 %vm115_vm1, %v112_v27 }
  0x3e   :  { %1518 = vmatmul.mubr.msk.bf16.gmra.mrb[28].mxu0 %vm115_vm1, %v97_v32 }
  0x3f   :  { %1550 = vmatmul.mubr.msk.bf16.gmra.mrb[28].mxu1 %vm115_vm1, %v113_v33 }
  0xd9   :  { %v1491_v35 = vpop.f32.mrb[0].mxu0 }
  0xda   :  { %v1523_v37 = vpop.f32.mrb[0].mxu1  ;;  %v514_v38 = vmul.f32 %v1491_v35, %v1814_v34  ;;  %v250_v40 = vpop.f32.mrb[1].mxu0 }
  0xdb   :  { %v546_v39 = vmul.f32 %v1523_v37, %v1814_v34  ;;  %v378_v41 = vpop.f32.mrb[1].mxu1  ;;  %v512_v42 = vmul.f32 %v1814_v34, %v250_v40  ;;  %v1492_v44 = vpop.f32.mrb[2].mxu0 }
  0xdc   :  { %v544_v43 = vmul.f32 %v1814_v34, %v378_v41  ;;  %v1524_v45 = vpop.f32.mrb[2].mxu1  ;;  %v585_v46 = vadd.f32 %v1819_v36, %v514_v38  ;;  %v515_v48 = vmul.f32 %v1492_v44, %v1814_v34  ;;  %v253_v50 = vpop.f32.mrb[3].mxu0 }
  0xdd   :  { %v617_v47 = vadd.f32 %v1819_v36, %v546_v39  ;;  %v547_v49 = vmul.f32 %v1524_v45, %v1814_v34  ;;  %v381_v51 = vpop.f32.mrb[3].mxu1  ;;  %v583_v52 = vadd.f32 %v1819_v36, %v512_v42  ;;  %v513_v54 = vmul.f32 %v1814_v34, %v253_v50 }
  0xde   :  { %v615_v53 = vadd.f32 %v1819_v36, %v544_v43  ;;  %v545_v55 = vmul.f32 %v1814_v34, %v381_v51  ;;  %v649_v56 = vadd.f32 3.0, %v585_v46  ;;  %v586_v58 = vadd.f32 %v1819_v36, %v515_v48 }
  0xdf   :  { %v681_v57 = vadd.f32 3.0, %v617_v47  ;;  %v618_v59 = vadd.f32 %v1819_v36, %v547_v49  ;;  %v647_v60 = vadd.f32 3.0, %v583_v52  ;;  %v584_v62 = vadd.f32 %v1819_v36, %v513_v54 }
  0xe0   :  { %v679_v61 = vadd.f32 3.0, %v615_v53  ;;  %v616_v63 = vadd.f32 %v1819_v36, %v545_v55  ;;  %v713_v0 = vmax.f32 %v649_v56, 0.0  ;;  %v650_v2 = vadd.f32 3.0, %v586_v58 }
  0xe1   :  { %v745_v1 = vmax.f32 %v681_v57, 0.0  ;;  %v682_v3 = vadd.f32 3.0, %v618_v59  ;;  %v711_v4 = vmax.f32 %v647_v60, 0.0  ;;  %v648_v6 = vadd.f32 3.0, %v584_v62  ;;  %v1495_v8 = vpop.f32.mrb[4].mxu0 }
  0xe2   :  { %v743_v5 = vmax.f32 %v679_v61, 0.0  ;;  %v680_v7 = vadd.f32 3.0, %v616_v63  ;;  %v1527_v9 = vpop.f32.mrb[4].mxu1  ;;  %v777_v10 = vmin.f32 %v713_v0, 6.0  ;;  %v714_v12 = vmax.f32 %v650_v2, 0.0  ;;  %v266_v14 = vpop.f32.mrb[5].mxu0 }
  0xe3   :  { %v809_v11 = vmin.f32 %v745_v1, 6.0  ;;  %v746_v13 = vmax.f32 %v682_v3, 0.0  ;;  %v394_v15 = vpop.f32.mrb[5].mxu1  ;;  %v775_v16 = vmin.f32 %v711_v4, 6.0  ;;  %v712_v18 = vmax.f32 %v648_v6, 0.0  ;;  %v1496_v20 = vpop.f32.mrb[6].mxu0 }
  0xe4   :  { %v807_v17 = vmin.f32 %v743_v5, 6.0  ;;  %v744_v19 = vmax.f32 %v680_v7, 0.0  ;;  %v1528_v21 = vpop.f32.mrb[6].mxu1  ;;  %v841_v22 = vmul.f32 %v777_v10, %v585_v46  ;;  %v778_v24 = vmin.f32 %v714_v12, 6.0  ;;  %v269_v26 = vpop.f32.mrb[7].mxu0 }
  0xe5   :  { %v873_v23 = vmul.f32 %v809_v11, %v617_v47  ;;  %v810_v25 = vmin.f32 %v746_v13, 6.0  ;;  %v397_v27 = vpop.f32.mrb[7].mxu1  ;;  %v839_v28 = vmul.f32 %v775_v16, %v583_v52  ;;  %v776_v30 = vmin.f32 %v712_v18, 6.0 }
  0xe6   :  { %v871_v29 = vmul.f32 %v807_v17, %v615_v53  ;;  %v808_v31 = vmin.f32 %v744_v19, 6.0  ;;  %v905_v32 = vmul.f32 0.16666667, %v841_v22  ;;  %v842_v35 = vmul.f32 %v778_v24, %v586_v58 }
  0xe7   :  { %v937_v33 = vmul.f32 0.16666667, %v873_v23  ;;  %v874_v37 = vmul.f32 %v810_v25, %v618_v59  ;;  %v903_v38 = vmul.f32 0.16666667, %v839_v28  ;;  %v840_v40 = vmul.f32 %v776_v30, %v584_v62 }
  0xe8   :  { %v935_v39 = vmul.f32 0.16666667, %v871_v29  ;;  %v872_v41 = vmul.f32 %v808_v31, %v616_v63  ;;  %v1392_v42 = vpack.c.bf16 %v905_v32, %v905_v32  ;;  %v906_v44 = vmul.f32 0.16666667, %v842_v35 }
  0xe9   :  { %v1424_v43 = vpack.c.bf16 %v937_v33, %v937_v33  ;;  %v938_v45 = vmul.f32 0.16666667, %v874_v37  ;;  %v1390_v46 = vpack.c.bf16 %v903_v38, %v903_v38  ;;  %v904_v48 = vmul.f32 0.16666667, %v840_v40  ;;  %v1837_v50 = vpop.f32.mrb[8].mxu0 }
  0xea   :  { %v1422_v47 = vpack.c.bf16 %v935_v39, %v935_v39  ;;  %v936_v49 = vmul.f32 0.16666667, %v872_v41  ;;  %v1839_v51 = vpop.f32.mrb[8].mxu1  ;;  %1226 = vst.msk [vmem:[%s2353_s4 + $0x8] sm:$0xf] %vm1223_vm2, %v1392_v42  ;;  %v1393_v52 = vpack.c.bf16 %v906_v44, %v906_v44  ;;  %v518_v54 = vmul.f32 %v1495_v8, %v1814_v34  ;;  %v1851_v56 = vpop.f32.mrb[9].mxu0 }
  0xeb   :  { %1258 = vst.msk [vmem:[%s2353_s4 + $0x88] sm:$0xf] %vm1223_vm2, %v1424_v43  ;;  %v1425_v53 = vpack.c.bf16 %v938_v45, %v938_v45  ;;  %v550_v55 = vmul.f32 %v1527_v9, %v1814_v34  ;;  %v1853_v57 = vpop.f32.mrb[9].mxu1  ;;  %1224 = vst.msk [vmem:[%s2353_s4] sm:$0xf] %vm1223_vm2, %v1390_v46  ;;  %v1391_v58 = vpack.c.bf16 %v904_v48, %v904_v48  ;;  %v1865_v62 = vpop.f32.mrb[10].mxu0 }
  0xec   :  { %1256 = vst.msk [vmem:[%s2353_s4 + $0x80] sm:$0xf] %vm1223_vm2, %v1422_v47  ;;  %v1423_v59 = vpack.c.bf16 %v936_v49, %v936_v49  ;;  %v516_v60 = vmul.f32 %v1814_v34, %v266_v14  ;;  %v548_v61 = vmul.f32 %v1814_v34, %v394_v15  ;;  %v1867_v63 = vpop.f32.mrb[10].mxu1  ;;  %1227 = vst.msk [vmem:[%s2353_s4 + $0xc] sm:$0xf] %vm1223_vm2, %v1393_v52  ;;  %v1881_v4 = vpop.f32.mrb[11].mxu0 }
  0xed   :  { %1259 = vst.msk [vmem:[%s2353_s4 + $0x8c] sm:$0xf] %vm1223_vm2, %v1425_v53  ;;  %v589_v0 = vadd.f32 %v1819_v36, %v518_v54  ;;  %v621_v1 = vadd.f32 %v1819_v36, %v550_v55  ;;  %v519_v2 = vmul.f32 %v1496_v20, %v1814_v34  ;;  %v551_v3 = vmul.f32 %v1528_v21, %v1814_v34  ;;  %v1883_v5 = vpop.f32.mrb[11].mxu1 }
  0xee   :  { %1225 = vst.msk [vmem:[%s2353_s4 + $0x4] sm:$0xf] %vm1223_vm2, %v1391_v58  ;;  %1257 = vst.msk [vmem:[%s2353_s4 + $0x84] sm:$0xf] %vm1223_vm2, %v1423_v59  ;;  %v587_v6 = vadd.f32 %v1819_v36, %v516_v60  ;;  %v619_v7 = vadd.f32 %v1819_v36, %v548_v61  ;;  %v517_v8 = vmul.f32 %v1814_v34, %v269_v26 }
  0xef   :  { %v549_v9 = vmul.f32 %v1814_v34, %v397_v27  ;;  %v653_v10 = vadd.f32 3.0, %v589_v0  ;;  %v685_v11 = vadd.f32 3.0, %v621_v1  ;;  %v590_v12 = vadd.f32 %v1819_v36, %v519_v2 }
  0xf0   :  { %v622_v13 = vadd.f32 %v1819_v36, %v551_v3  ;;  %v651_v14 = vadd.f32 3.0, %v587_v6  ;;  %v683_v15 = vadd.f32 3.0, %v619_v7  ;;  %v588_v16 = vadd.f32 %v1819_v36, %v517_v8 }
  0xf1   :  { %v620_v17 = vadd.f32 %v1819_v36, %v549_v9  ;;  %v717_v18 = vmax.f32 %v653_v10, 0.0  ;;  %v749_v19 = vmax.f32 %v685_v11, 0.0  ;;  %v654_v20 = vadd.f32 3.0, %v590_v12  ;;  %v1901_v26 = vpop.f32.mrb[12].mxu0 }
  0xf2   :  { %v686_v21 = vadd.f32 3.0, %v622_v13  ;;  %v715_v22 = vmax.f32 %v651_v14, 0.0  ;;  %v747_v23 = vmax.f32 %v683_v15, 0.0  ;;  %v652_v24 = vadd.f32 3.0, %v588_v16  ;;  %v1903_v27 = vpop.f32.mrb[12].mxu1  ;;  %v1905_v32 = vpop.f32.mrb[13].mxu0 }
  0xf3   :  { %v684_v25 = vadd.f32 3.0, %v620_v17  ;;  %v781_v28 = vmin.f32 %v717_v18, 6.0  ;;  %v813_v29 = vmin.f32 %v749_v19, 6.0  ;;  %v718_v30 = vmax.f32 %v654_v20, 0.0  ;;  %v1907_v33 = vpop.f32.mrb[13].mxu1  ;;  %v1909_v40 = vpop.f32.mrb[14].mxu0 }
  0xf4   :  { %v750_v31 = vmax.f32 %v686_v21, 0.0  ;;  %v779_v35 = vmin.f32 %v715_v22, 6.0  ;;  %v811_v37 = vmin.f32 %v747_v23, 6.0  ;;  %v716_v38 = vmax.f32 %v652_v24, 0.0  ;;  %v1911_v41 = vpop.f32.mrb[14].mxu1  ;;  %v1913_v46 = vpop.f32.mrb[15].mxu0 }
  0xf5   :  { %v748_v39 = vmax.f32 %v684_v25, 0.0  ;;  %v845_v42 = vmul.f32 %v781_v28, %v589_v0  ;;  %v877_v43 = vmul.f32 %v813_v29, %v621_v1  ;;  %v782_v44 = vmin.f32 %v718_v30, 6.0  ;;  %v1915_v47 = vpop.f32.mrb[15].mxu1 }
  0xf6   :  { %v814_v45 = vmin.f32 %v750_v31, 6.0  ;;  %v843_v48 = vmul.f32 %v779_v35, %v587_v6  ;;  %v875_v49 = vmul.f32 %v811_v37, %v619_v7  ;;  %v780_v52 = vmin.f32 %v716_v38, 6.0 }
  0xf7   :  { %v812_v53 = vmin.f32 %v748_v39, 6.0  ;;  %v909_v54 = vmul.f32 0.16666667, %v845_v42  ;;  %v941_v55 = vmul.f32 0.16666667, %v877_v43  ;;  %v846_v58 = vmul.f32 %v782_v44, %v590_v12 }
  0xf8   :  { %v878_v59 = vmul.f32 %v814_v45, %v622_v13  ;;  %v907_v60 = vmul.f32 0.16666667, %v843_v48  ;;  %v939_v61 = vmul.f32 0.16666667, %v875_v49  ;;  %v844_v2 = vmul.f32 %v780_v52, %v588_v16 }
  0xf9   :  { %v876_v3 = vmul.f32 %v812_v53, %v620_v17  ;;  %v1396_v0 = vpack.c.bf16 %v909_v54, %v909_v54  ;;  %v1428_v1 = vpack.c.bf16 %v941_v55, %v941_v55  ;;  %v910_v8 = vmul.f32 0.16666667, %v846_v58  ;;  %v1917_v6 = vpop.f32.mrb[16].mxu0 }
  0xfa   :  { %v942_v9 = vmul.f32 0.16666667, %v878_v59  ;;  %v1394_v10 = vpack.c.bf16 %v907_v60, %v907_v60  ;;  %v1426_v11 = vpack.c.bf16 %v939_v61, %v939_v61  ;;  %v908_v14 = vmul.f32 0.16666667, %v844_v2  ;;  %v1919_v7 = vpop.f32.mrb[16].mxu1  ;;  %v1933_v18 = vpop.f32.mrb[17].mxu0 }
  0xfb   :  { %v940_v15 = vmul.f32 0.16666667, %v876_v3  ;;  %1230 = vst.msk [vmem:[%s2353_s4 + $0x18] sm:$0xf] %vm1223_vm2, %v1396_v0  ;;  %1262 = vst.msk [vmem:[%s2353_s4 + $0x98] sm:$0xf] %vm1223_vm2, %v1428_v1  ;;  %v1397_v12 = vpack.c.bf16 %v910_v8, %v910_v8  ;;  %v522_v16 = vmul.f32 %v1837_v50, %v1814_v34  ;;  %v554_v17 = vmul.f32 %v1839_v51, %v1814_v34 }
  0xfc   :  { %v1429_v13 = vpack.c.bf16 %v942_v9, %v942_v9  ;;  %v1935_v19 = vpop.f32.mrb[17].mxu1  ;;  %1228 = vst.msk [vmem:[%s2353_s4 + $0x10] sm:$0xf] %vm1223_vm2, %v1394_v10  ;;  %1260 = vst.msk [vmem:[%s2353_s4 + $0x90] sm:$0xf] %vm1223_vm2, %v1426_v11  ;;  %v1395_v20 = vpack.c.bf16 %v908_v14, %v908_v14  ;;  %v520_v50 = vmul.f32 %v1814_v34, %v1851_v56  ;;  %v1949_v22 = vpop.f32.mrb[18].mxu0 }
  0xfd   :  { %v1427_v21 = vpack.c.bf16 %v940_v15, %v940_v15  ;;  %v552_v51 = vmul.f32 %v1814_v34, %v1853_v57  ;;  %v1951_v23 = vpop.f32.mrb[18].mxu1  ;;  %1231 = vst.msk [vmem:[%s2353_s4 + $0x1c] sm:$0xf] %vm1223_vm2, %v1397_v12  ;;  %v593_v24 = vadd.f32 %v1819_v36, %v522_v16  ;;  %v625_v56 = vadd.f32 %v1819_v36, %v554_v17  ;;  %v1967_v28 = vpop.f32.mrb[19].mxu0 }
  0xfe   :  { %1263 = vst.msk [vmem:[%s2353_s4 + $0x9c] sm:$0xf] %vm1223_vm2, %v1429_v13  ;;  %v523_v57 = vmul.f32 %v1865_v62, %v1814_v34  ;;  %v555_v25 = vmul.f32 %v1867_v63, %v1814_v34  ;;  %v1969_v29 = vpop.f32.mrb[19].mxu1  ;;  %1229 = vst.msk [vmem:[%s2353_s4 + $0x14] sm:$0xf] %vm1223_vm2, %v1395_v20  ;;  %v591_v30 = vadd.f32 %v1819_v36, %v520_v50 }
  0xff   :  { %1261 = vst.msk [vmem:[%s2353_s4 + $0x94] sm:$0xf] %vm1223_vm2, %v1427_v21  ;;  %v623_v62 = vadd.f32 %v1819_v36, %v552_v51  ;;  %v521_v63 = vmul.f32 %v1814_v34, %v1881_v4  ;;  %v553_v31 = vmul.f32 %v1814_v34, %v1883_v5  ;;  %v657_v35 = vadd.f32 3.0, %v593_v24 }
 0x100   :  { %v689_v37 = vadd.f32 3.0, %v625_v56  ;;  %v594_v38 = vadd.f32 %v1819_v36, %v523_v57  ;;  %v626_v39 = vadd.f32 %v1819_v36, %v555_v25  ;;  %v655_v42 = vadd.f32 3.0, %v591_v30 }
 0x101   :  { %v687_v43 = vadd.f32 3.0, %v623_v62  ;;  %v592_v44 = vadd.f32 %v1819_v36, %v521_v63  ;;  %v624_v45 = vadd.f32 %v1819_v36, %v553_v31  ;;  %v721_v48 = vmax.f32 %v657_v35, 0.0  ;;  %v1989_v58 = vpop.f32.mrb[20].mxu0 }
 0x102   :  { %v753_v49 = vmax.f32 %v689_v37, 0.0  ;;  %v658_v52 = vadd.f32 3.0, %v594_v38  ;;  %v690_v53 = vadd.f32 3.0, %v626_v39  ;;  %v719_v4 = vmax.f32 %v655_v42, 0.0  ;;  %v1991_v59 = vpop.f32.mrb[20].mxu1  ;;  %v1993_v0 = vpop.f32.mrb[21].mxu0 }
 0x103   :  { %v751_v54 = vmax.f32 %v687_v43, 0.0  ;;  %v656_v55 = vadd.f32 3.0, %v592_v44  ;;  %v688_v5 = vadd.f32 3.0, %v624_v45  ;;  %v785_v60 = vmin.f32 %v721_v48, 6.0  ;;  %v1995_v1 = vpop.f32.mrb[21].mxu1  ;;  %v1997_v14 = vpop.f32.mrb[22].mxu0 }
 0x104   :  { %v817_v61 = vmin.f32 %v753_v49, 6.0  ;;  %v722_v2 = vmax.f32 %v658_v52, 0.0  ;;  %v754_v3 = vmax.f32 %v690_v53, 0.0  ;;  %v783_v8 = vmin.f32 %v719_v4, 6.0  ;;  %v1999_v15 = vpop.f32.mrb[22].mxu1  ;;  %v2001_v20 = vpop.f32.mrb[23].mxu0 }
 0x105   :  { %v815_v9 = vmin.f32 %v751_v54, 6.0  ;;  %v720_v10 = vmax.f32 %v656_v55, 0.0  ;;  %v752_v11 = vmax.f32 %v688_v5, 0.0  ;;  %v849_v12 = vmul.f32 %v785_v60, %v593_v24  ;;  %v2003_v21 = vpop.f32.mrb[23].mxu1 }
 0x106   :  { %v881_v13 = vmul.f32 %v817_v61, %v625_v56  ;;  %v786_v16 = vmin.f32 %v722_v2, 6.0  ;;  %v818_v17 = vmin.f32 %v754_v3, 6.0  ;;  %v847_v50 = vmul.f32 %v783_v8, %v591_v30 }
 0x107   :  { %v879_v51 = vmul.f32 %v815_v9, %v623_v62  ;;  %v784_v57 = vmin.f32 %v720_v10, 6.0  ;;  %v816_v25 = vmin.f32 %v752_v11, 6.0  ;;  %v913_v63 = vmul.f32 0.16666667, %v849_v12 }
 0x108   :  { %v945_v31 = vmul.f32 0.16666667, %v881_v13  ;;  %v850_v35 = vmul.f32 %v786_v16, %v594_v38  ;;  %v882_v37 = vmul.f32 %v818_v17, %v626_v39  ;;  %v911_v42 = vmul.f32 0.16666667, %v847_v50 }
 0x109   :  { %v943_v43 = vmul.f32 0.16666667, %v879_v51  ;;  %v848_v48 = vmul.f32 %v784_v57, %v592_v44  ;;  %v880_v49 = vmul.f32 %v816_v25, %v624_v45  ;;  %v1400_v24 = vpack.c.bf16 %v913_v63, %v913_v63  ;;  %v2005_v30 = vpop.f32.mrb[24].mxu0 }
 0x10a   :  { %v1432_v56 = vpack.c.bf16 %v945_v31, %v945_v31  ;;  %v914_v52 = vmul.f32 0.16666667, %v850_v35  ;;  %v946_v53 = vmul.f32 0.16666667, %v882_v37  ;;  %v1398_v4 = vpack.c.bf16 %v911_v42, %v911_v42  ;;  %v2007_v62 = vpop.f32.mrb[24].mxu1  ;;  %v2021_v60 = vpop.f32.mrb[25].mxu0 }
 0x10b   :  { %v1430_v54 = vpack.c.bf16 %v943_v43, %v943_v43  ;;  %v912_v55 = vmul.f32 0.16666667, %v848_v48  ;;  %v944_v5 = vmul.f32 0.16666667, %v880_v49  ;;  %1234 = vst.msk [vmem:[%s2353_s4 + $0x28] sm:$0xf] %vm1223_vm2, %v1400_v24  ;;  %v526_v44 = vmul.f32 %v1901_v26, %v1814_v34 }
 0x10c   :  { %1266 = vst.msk [vmem:[%s2353_s4 + $0xa8] sm:$0xf] %vm1223_vm2, %v1432_v56  ;;  %v1401_v38 = vpack.c.bf16 %v914_v52, %v914_v52  ;;  %v1433_v39 = vpack.c.bf16 %v946_v53, %v946_v53  ;;  %v558_v45 = vmul.f32 %v1903_v27, %v1814_v34  ;;  %v2023_v61 = vpop.f32.mrb[25].mxu1  ;;  %1232 = vst.msk [vmem:[%s2353_s4 + $0x20] sm:$0xf] %vm1223_vm2, %v1398_v4  ;;  %v2037_v8 = vpop.f32.mrb[26].mxu0 }
 0x10d   :  { %1264 = vst.msk [vmem:[%s2353_s4 + $0xa0] sm:$0xf] %vm1223_vm2, %v1430_v54  ;;  %v1399_v2 = vpack.c.bf16 %v912_v55, %v912_v55  ;;  %v1431_v3 = vpack.c.bf16 %v944_v5, %v944_v5  ;;  %v524_v26 = vmul.f32 %v1814_v34, %v1905_v32  ;;  %v556_v27 = vmul.f32 %v1814_v34, %v1907_v33  ;;  %v2039_v9 = vpop.f32.mrb[26].mxu1  ;;  %v2055_v12 = vpop.f32.mrb[27].mxu0 }
 0x10e   :  { %1235 = vst.msk [vmem:[%s2353_s4 + $0x2c] sm:$0xf] %vm1223_vm2, %v1401_v38  ;;  %1267 = vst.msk [vmem:[%s2353_s4 + $0xac] sm:$0xf] %vm1223_vm2, %v1433_v39  ;;  %v597_v10 = vadd.f32 %v1819_v36, %v526_v44  ;;  %v629_v32 = vadd.f32 %v1819_v36, %v558_v45  ;;  %v527_v33 = vmul.f32 %v1909_v40, %v1814_v34  ;;  %v2057_v13 = vpop.f32.mrb[27].mxu1 }
 0x10f   :  { %v559_v11 = vmul.f32 %v1911_v41, %v1814_v34  ;;  %1233 = vst.msk [vmem:[%s2353_s4 + $0x24] sm:$0xf] %vm1223_vm2, %v1399_v2  ;;  %1265 = vst.msk [vmem:[%s2353_s4 + $0xa4] sm:$0xf] %vm1223_vm2, %v1431_v3  ;;  %v595_v16 = vadd.f32 %v1819_v36, %v524_v26  ;;  %v627_v40 = vadd.f32 %v1819_v36, %v556_v27 }
 0x110   :  { %v525_v41 = vmul.f32 %v1814_v34, %v1913_v46  ;;  %v557_v17 = vmul.f32 %v1814_v34, %v1915_v47  ;;  %v661_v50 = vadd.f32 3.0, %v597_v10  ;;  %v693_v51 = vadd.f32 3.0, %v629_v32 }
 0x111   :  { %v598_v57 = vadd.f32 %v1819_v36, %v527_v33  ;;  %v630_v25 = vadd.f32 %v1819_v36, %v559_v11  ;;  %v659_v63 = vadd.f32 3.0, %v595_v16  ;;  %v691_v31 = vadd.f32 3.0, %v627_v40  ;;  %v2077_v52 = vpop.f32.mrb[28].mxu0 }
 0x112   :  { %v596_v35 = vadd.f32 %v1819_v36, %v525_v41  ;;  %v628_v37 = vadd.f32 %v1819_v36, %v557_v17  ;;  %v725_v42 = vmax.f32 %v661_v50, 0.0  ;;  %v757_v43 = vmax.f32 %v693_v51, 0.0  ;;  %v2079_v53 = vpop.f32.mrb[28].mxu1  ;;  %v2081_v38 = vpop.f32.mrb[29].mxu0 }
 0x113   :  { %v662_v48 = vadd.f32 3.0, %v598_v57  ;;  %v694_v49 = vadd.f32 3.0, %v630_v25  ;;  %v723_v46 = vmax.f32 %v659_v63, 0.0  ;;  %v755_v24 = vmax.f32 %v691_v31, 0.0  ;;  %v2083_v39 = vpop.f32.mrb[29].mxu1  ;;  %v2085_v26 = vpop.f32.mrb[30].mxu0 }
 0x114   :  { %v660_v56 = vadd.f32 3.0, %v596_v35  ;;  %v692_v47 = vadd.f32 3.0, %v628_v37  ;;  %v789_v4 = vmin.f32 %v725_v42, 6.0  ;;  %v821_v54 = vmin.f32 %v757_v43, 6.0  ;;  %2354 = vst [vmem:[#allocation2_spill] sm:$0xff] %v2085_v26  ;;  %v2087_v27 = vpop.f32.mrb[30].mxu1 }
 0x115   :  { %v726_v55 = vmax.f32 %v662_v48, 0.0  ;;  %v758_v5 = vmax.f32 %v694_v49, 0.0  ;;  %v787_v44 = vmin.f32 %v723_v46, 6.0  ;;  %v819_v45 = vmin.f32 %v755_v24, 6.0  ;;  %2355 = vst [vmem:[#allocation3_spill] sm:$0xff] %v2087_v27  ;;  %v2089_v50 = vpop.f32.mrb[31].mxu0 }
 0x116   :  { %v724_v2 = vmax.f32 %v660_v56, 0.0  ;;  %v756_v3 = vmax.f32 %v692_v47, 0.0  ;;  %v853_v33 = vmul.f32 %v789_v4, %v597_v10  ;;  %v885_v11 = vmul.f32 %v821_v54, %v629_v32  ;;  %2356 = vst [vmem:[#allocation4_spill] sm:$0xff] %v2089_v50  ;;  %v2091_v51 = vpop.f32.mrb[31].mxu1 }
 0x117   :  { %v790_v41 = vmin.f32 %v726_v55, 6.0  ;;  %v822_v17 = vmin.f32 %v758_v5, 6.0  ;;  %2357 = vst [vmem:[#allocation5_spill] sm:$0xff] %v2091_v51  ;;  %v851_v63 = vmul.f32 %v787_v44, %v595_v16  ;;  %v883_v31 = vmul.f32 %v819_v45, %v627_v40 }
 0x118   :  { %v788_v42 = vmin.f32 %v724_v2, 6.0  ;;  %v820_v43 = vmin.f32 %v756_v3, 6.0  ;;  %v917_v48 = vmul.f32 0.16666667, %v853_v33  ;;  %v949_v49 = vmul.f32 0.16666667, %v885_v11 }
 0x119   :  { %v854_v46 = vmul.f32 %v790_v41, %v598_v57  ;;  %v886_v24 = vmul.f32 %v822_v17, %v630_v25  ;;  %v915_v56 = vmul.f32 0.16666667, %v851_v63  ;;  %v947_v47 = vmul.f32 0.16666667, %v883_v31 }
 0x11a   :  { %v852_v26 = vmul.f32 %v788_v42, %v596_v35  ;;  %v884_v27 = vmul.f32 %v820_v43, %v628_v37  ;;  %v1404_v10 = vpack.c.bf16 %v917_v48, %v917_v48  ;;  %v1436_v32 = vpack.c.bf16 %v949_v49, %v949_v49 }
 0x11b   :  { %v918_v4 = vmul.f32 0.16666667, %v854_v46  ;;  %v950_v54 = vmul.f32 0.16666667, %v886_v24  ;;  %v1402_v55 = vpack.c.bf16 %v915_v56, %v915_v56  ;;  %v1434_v5 = vpack.c.bf16 %v947_v47, %v947_v47 }
 0x11c   :  { %v916_v50 = vmul.f32 0.16666667, %v852_v26  ;;  %v948_v51 = vmul.f32 0.16666667, %v884_v27  ;;  %1238 = vst.msk [vmem:[%s2353_s4 + $0x38] sm:$0xf] %vm1223_vm2, %v1404_v10  ;;  %v530_v57 = vmul.f32 %v1917_v6, %v1814_v34  ;;  %v562_v25 = vmul.f32 %v1919_v7, %v1814_v34 }
 0x11d   :  { %1270 = vst.msk [vmem:[%s2353_s4 + $0xb8] sm:$0xf] %vm1223_vm2, %v1436_v32  ;;  %v1405_v16 = vpack.c.bf16 %v918_v4, %v918_v4  ;;  %v1437_v40 = vpack.c.bf16 %v950_v54, %v950_v54  ;;  %1236 = vst.msk [vmem:[%s2353_s4 + $0x30] sm:$0xf] %vm1223_vm2, %v1402_v55  ;;  %v528_v44 = vmul.f32 %v1814_v34, %v1933_v18 }
 0x11e   :  { %1268 = vst.msk [vmem:[%s2353_s4 + $0xb0] sm:$0xf] %vm1223_vm2, %v1434_v5  ;;  %v1403_v35 = vpack.c.bf16 %v916_v50, %v916_v50  ;;  %v1435_v37 = vpack.c.bf16 %v948_v51, %v948_v51  ;;  %v560_v6 = vmul.f32 %v1814_v34, %v1935_v19  ;;  %v601_v7 = vadd.f32 %v1819_v36, %v530_v57 }
 0x11f   :  { %1239 = vst.msk [vmem:[%s2353_s4 + $0x3c] sm:$0xf] %vm1223_vm2, %v1405_v16  ;;  %1271 = vst.msk [vmem:[%s2353_s4 + $0xbc] sm:$0xf] %vm1223_vm2, %v1437_v40  ;;  %v633_v45 = vadd.f32 %v1819_v36, %v562_v25  ;;  %v531_v18 = vmul.f32 %v1949_v22, %v1814_v34  ;;  %v563_v19 = vmul.f32 %v1951_v23, %v1814_v34 }
 0x120   :  { %1237 = vst.msk [vmem:[%s2353_s4 + $0x34] sm:$0xf] %vm1223_vm2, %v1403_v35  ;;  %1269 = vst.msk [vmem:[%s2353_s4 + $0xb4] sm:$0xf] %vm1223_vm2, %v1435_v37  ;;  %v599_v2 = vadd.f32 %v1819_v36, %v528_v44  ;;  %v631_v3 = vadd.f32 %v1819_v36, %v560_v6  ;;  %v529_v22 = vmul.f32 %v1814_v34, %v1967_v28  ;;  %v665_v26 = vadd.f32 3.0, %v601_v7 }
 0x121   :  { %v561_v23 = vmul.f32 %v1814_v34, %v1969_v29  ;;  %v697_v27 = vadd.f32 3.0, %v633_v45  ;;  %v602_v33 = vadd.f32 %v1819_v36, %v531_v18  ;;  %v634_v11 = vadd.f32 %v1819_v36, %v563_v19 }
 0x122   :  { %v663_v41 = vadd.f32 3.0, %v599_v2  ;;  %v695_v17 = vadd.f32 3.0, %v631_v3  ;;  %v600_v50 = vadd.f32 %v1819_v36, %v529_v22  ;;  %v729_v63 = vmax.f32 %v665_v26, 0.0 }
 0x123   :  { %v632_v51 = vadd.f32 %v1819_v36, %v561_v23  ;;  %v761_v31 = vmax.f32 %v697_v27, 0.0  ;;  %v666_v42 = vadd.f32 3.0, %v602_v33  ;;  %v698_v43 = vadd.f32 3.0, %v634_v11 }
 0x124   :  { %v727_v28 = vmax.f32 %v663_v41, 0.0  ;;  %v759_v48 = vmax.f32 %v695_v17, 0.0  ;;  %v664_v49 = vadd.f32 3.0, %v600_v50  ;;  %v793_v46 = vmin.f32 %v729_v63, 6.0 }
 0x125   :  { %v696_v29 = vadd.f32 3.0, %v632_v51  ;;  %v825_v24 = vmin.f32 %v761_v31, 6.0  ;;  %v730_v56 = vmax.f32 %v666_v42, 0.0  ;;  %v762_v47 = vmax.f32 %v698_v43, 0.0 }
 0x126   :  { %v791_v10 = vmin.f32 %v727_v28, 6.0  ;;  %v823_v32 = vmin.f32 %v759_v48, 6.0  ;;  %v728_v4 = vmax.f32 %v664_v49, 0.0  ;;  %v857_v55 = vmul.f32 %v793_v46, %v601_v7 }
 0x127   :  { %v760_v54 = vmax.f32 %v696_v29, 0.0  ;;  %v889_v5 = vmul.f32 %v825_v24, %v633_v45  ;;  %v794_v16 = vmin.f32 %v730_v56, 6.0  ;;  %v826_v40 = vmin.f32 %v762_v47, 6.0 }
 0x128   :  { %v855_v57 = vmul.f32 %v791_v10, %v599_v2  ;;  %v887_v25 = vmul.f32 %v823_v32, %v631_v3  ;;  %v792_v35 = vmin.f32 %v728_v4, 6.0  ;;  %v921_v44 = vmul.f32 0.16666667, %v857_v55 }
 0x129   :  { %v824_v37 = vmin.f32 %v760_v54, 6.0  ;;  %v953_v6 = vmul.f32 0.16666667, %v889_v5  ;;  %v858_v18 = vmul.f32 %v794_v16, %v602_v33  ;;  %v890_v19 = vmul.f32 %v826_v40, %v634_v11 }
 0x12a   :  { %v919_v22 = vmul.f32 0.16666667, %v855_v57  ;;  %v951_v23 = vmul.f32 0.16666667, %v887_v25  ;;  %v856_v26 = vmul.f32 %v792_v35, %v600_v50  ;;  %v1408_v41 = vpack.c.bf16 %v921_v44, %v921_v44 }
 0x12b   :  { %v888_v27 = vmul.f32 %v824_v37, %v632_v51  ;;  %v1440_v17 = vpack.c.bf16 %v953_v6, %v953_v6  ;;  %v922_v63 = vmul.f32 0.16666667, %v858_v18  ;;  %v954_v31 = vmul.f32 0.16666667, %v890_v19 }
 0x12c   :  { %v1406_v7 = vpack.c.bf16 %v919_v22, %v919_v22  ;;  %v1438_v45 = vpack.c.bf16 %v951_v23, %v951_v23  ;;  %v920_v42 = vmul.f32 0.16666667, %v856_v26  ;;  %1242 = vst.msk [vmem:[%s2353_s4 + $0x48] sm:$0xf] %vm1223_vm2, %v1408_v41  ;;  %v534_v33 = vmul.f32 %v1989_v58, %v1814_v34 }
 0x12d   :  { %v952_v43 = vmul.f32 0.16666667, %v888_v27  ;;  %1274 = vst.msk [vmem:[%s2353_s4 + $0xc8] sm:$0xf] %vm1223_vm2, %v1440_v17  ;;  %v1409_v2 = vpack.c.bf16 %v922_v63, %v922_v63  ;;  %v1441_v3 = vpack.c.bf16 %v954_v31, %v954_v31  ;;  %v566_v11 = vmul.f32 %v1991_v59, %v1814_v34 }
 0x12e   :  { %1240 = vst.msk [vmem:[%s2353_s4 + $0x40] sm:$0xf] %vm1223_vm2, %v1406_v7  ;;  %1272 = vst.msk [vmem:[%s2353_s4 + $0xc0] sm:$0xf] %vm1223_vm2, %v1438_v45  ;;  %v1407_v50 = vpack.c.bf16 %v920_v42, %v920_v42  ;;  %v532_v28 = vmul.f32 %v1814_v34, %v1993_v0  ;;  %v564_v58 = vmul.f32 %v1814_v34, %v1995_v1 }
 0x12f   :  { %v1439_v51 = vpack.c.bf16 %v952_v43, %v952_v43  ;;  %1243 = vst.msk [vmem:[%s2353_s4 + $0x4c] sm:$0xf] %vm1223_vm2, %v1409_v2  ;;  %1275 = vst.msk [vmem:[%s2353_s4 + $0xcc] sm:$0xf] %vm1223_vm2, %v1441_v3  ;;  %v605_v59 = vadd.f32 %v1819_v36, %v534_v33  ;;  %v637_v48 = vadd.f32 %v1819_v36, %v566_v11 }
 0x130   :  { %v535_v0 = vmul.f32 %v1997_v14, %v1814_v34  ;;  %v567_v1 = vmul.f32 %v1999_v15, %v1814_v34  ;;  %1241 = vst.msk [vmem:[%s2353_s4 + $0x44] sm:$0xf] %vm1223_vm2, %v1407_v50  ;;  %v603_v49 = vadd.f32 %v1819_v36, %v532_v28  ;;  %v635_v29 = vadd.f32 %v1819_v36, %v564_v58 }
 0x131   :  { %1273 = vst.msk [vmem:[%s2353_s4 + $0xc4] sm:$0xf] %vm1223_vm2, %v1439_v51  ;;  %v533_v14 = vmul.f32 %v1814_v34, %v2001_v20  ;;  %v565_v15 = vmul.f32 %v1814_v34, %v2003_v21  ;;  %v669_v46 = vadd.f32 3.0, %v605_v59  ;;  %v701_v24 = vadd.f32 3.0, %v637_v48 }
 0x132   :  { %v606_v56 = vadd.f32 %v1819_v36, %v535_v0  ;;  %v638_v47 = vadd.f32 %v1819_v36, %v567_v1  ;;  %v667_v10 = vadd.f32 3.0, %v603_v49  ;;  %v699_v32 = vadd.f32 3.0, %v635_v29 }
 0x133   :  { %v604_v4 = vadd.f32 %v1819_v36, %v533_v14  ;;  %v636_v54 = vadd.f32 %v1819_v36, %v565_v15  ;;  %v733_v55 = vmax.f32 %v669_v46, 0.0  ;;  %v765_v5 = vmax.f32 %v701_v24, 0.0 }
 0x134   :  { %v670_v16 = vadd.f32 3.0, %v606_v56  ;;  %v702_v40 = vadd.f32 3.0, %v638_v47  ;;  %v731_v20 = vmax.f32 %v667_v10, 0.0  ;;  %v763_v57 = vmax.f32 %v699_v32, 0.0 }
 0x135   :  { %v668_v25 = vadd.f32 3.0, %v604_v4  ;;  %v700_v21 = vadd.f32 3.0, %v636_v54  ;;  %v797_v35 = vmin.f32 %v733_v55, 6.0  ;;  %v829_v37 = vmin.f32 %v765_v5, 6.0 }
 0x136   :  { %v734_v44 = vmax.f32 %v670_v16, 0.0  ;;  %v766_v6 = vmax.f32 %v702_v40, 0.0  ;;  %v795_v18 = vmin.f32 %v731_v20, 6.0  ;;  %v827_v19 = vmin.f32 %v763_v57, 6.0  ;;  %v2260_v16 = vld [vmem:[%s2352_s3] ss:$0 sm:$0xff] }
 0x137   :  { %v732_v22 = vmax.f32 %v668_v25, 0.0  ;;  %v764_v23 = vmax.f32 %v700_v21, 0.0  ;;  %v861_v26 = vmul.f32 %v797_v35, %v605_v59  ;;  %v893_v27 = vmul.f32 %v829_v37, %v637_v48 }
 0x138   :  { %v798_v41 = vmin.f32 %v734_v44, 6.0  ;;  %v830_v17 = vmin.f32 %v766_v6, 6.0  ;;  %v859_v63 = vmul.f32 %v795_v18, %v603_v49  ;;  %v891_v31 = vmul.f32 %v827_v19, %v635_v29 }
 0x139   :  { %v796_v7 = vmin.f32 %v732_v22, 6.0  ;;  %v828_v45 = vmin.f32 %v764_v23, 6.0  ;;  %v925_v42 = vmul.f32 0.16666667, %v861_v26  ;;  %v957_v43 = vmul.f32 0.16666667, %v893_v27 }
 0x13a   :  { %v862_v2 = vmul.f32 %v798_v41, %v606_v56  ;;  %v894_v3 = vmul.f32 %v830_v17, %v638_v47  ;;  %v923_v33 = vmul.f32 0.16666667, %v859_v63  ;;  %v955_v11 = vmul.f32 0.16666667, %v891_v31 }
 0x13b   :  { %v860_v50 = vmul.f32 %v796_v7, %v604_v4  ;;  %v892_v51 = vmul.f32 %v828_v45, %v636_v54  ;;  %v1412_v28 = vpack.c.bf16 %v925_v42, %v925_v42  ;;  %v1444_v58 = vpack.c.bf16 %v957_v43, %v957_v43 }
 0x13c   :  { %v926_v0 = vmul.f32 0.16666667, %v862_v2  ;;  %v958_v1 = vmul.f32 0.16666667, %v894_v3  ;;  %v1410_v59 = vpack.c.bf16 %v923_v33, %v923_v33  ;;  %v1442_v48 = vpack.c.bf16 %v955_v11, %v955_v11 }
 0x13d   :  { %v924_v14 = vmul.f32 0.16666667, %v860_v50  ;;  %v956_v15 = vmul.f32 0.16666667, %v892_v51  ;;  %1246 = vst.msk [vmem:[%s2353_s4 + $0x58] sm:$0xf] %vm1223_vm2, %v1412_v28  ;;  %v538_v46 = vmul.f32 %v2005_v30, %v1814_v34  ;;  %v570_v24 = vmul.f32 %v2007_v62, %v1814_v34 }
 0x13e   :  { %1278 = vst.msk [vmem:[%s2353_s4 + $0xd8] sm:$0xf] %vm1223_vm2, %v1444_v58  ;;  %v1413_v49 = vpack.c.bf16 %v926_v0, %v926_v0  ;;  %v1445_v29 = vpack.c.bf16 %v958_v1, %v958_v1  ;;  %1244 = vst.msk [vmem:[%s2353_s4 + $0x50] sm:$0xf] %vm1223_vm2, %v1410_v59  ;;  %v536_v10 = vmul.f32 %v1814_v34, %v2021_v60 }
 0x13f   :  { %1276 = vst.msk [vmem:[%s2353_s4 + $0xd0] sm:$0xf] %vm1223_vm2, %v1442_v48  ;;  %v1411_v56 = vpack.c.bf16 %v924_v14, %v924_v14  ;;  %v1443_v47 = vpack.c.bf16 %v956_v15, %v956_v15  ;;  %v568_v30 = vmul.f32 %v1814_v34, %v2023_v61  ;;  %v609_v62 = vadd.f32 %v1819_v36, %v538_v46 }
 0x140   :  { %1247 = vst.msk [vmem:[%s2353_s4 + $0x5c] sm:$0xf] %vm1223_vm2, %v1413_v49  ;;  %1279 = vst.msk [vmem:[%s2353_s4 + $0xdc] sm:$0xf] %vm1223_vm2, %v1445_v29  ;;  %v641_v32 = vadd.f32 %v1819_v36, %v570_v24  ;;  %v539_v60 = vmul.f32 %v2037_v8, %v1814_v34  ;;  %v571_v61 = vmul.f32 %v2039_v9, %v1814_v34 }
 0x141   :  { %1245 = vst.msk [vmem:[%s2353_s4 + $0x54] sm:$0xf] %vm1223_vm2, %v1411_v56  ;;  %1277 = vst.msk [vmem:[%s2353_s4 + $0xd4] sm:$0xf] %vm1223_vm2, %v1443_v47  ;;  %v607_v4 = vadd.f32 %v1819_v36, %v536_v10  ;;  %v639_v54 = vadd.f32 %v1819_v36, %v568_v30  ;;  %v537_v8 = vmul.f32 %v1814_v34, %v2055_v12  ;;  %v673_v55 = vadd.f32 3.0, %v609_v62 }
 0x142   :  { %v569_v9 = vmul.f32 %v1814_v34, %v2057_v13  ;;  %v705_v5 = vadd.f32 3.0, %v641_v32  ;;  %v610_v40 = vadd.f32 %v2260_v16, %v539_v60  ;;  %v642_v20 = vadd.f32 %v2260_v16, %v571_v61  ;;  %v1558_v30 = vld [vmem:[%s2351_s2] ss:$0 sm:$0xff] }
 0x143   :  { %v671_v57 = vadd.f32 3.0, %v607_v4  ;;  %v703_v25 = vadd.f32 3.0, %v639_v54  ;;  %v608_v36 = vadd.f32 %v2260_v16, %v537_v8  ;;  %v737_v21 = vmax.f32 %v673_v55, 0.0  ;;  %v2358_v8 = vld [vmem:[#allocation2_spill] sm:$0xff]  ;;  %v2359_v55 = vld [vmem:[#allocation3_spill] sm:$0xff] }
 0x144   :  { %v640_v12 = vadd.f32 %v2260_v16, %v569_v9  ;;  %v769_v35 = vmax.f32 %v705_v5, 0.0  ;;  %v674_v34 = vadd.f32 3.0, %v610_v40  ;;  %v706_v13 = vadd.f32 3.0, %v642_v20 }
 0x145   :  { %v735_v37 = vmax.f32 %v671_v57, 0.0  ;;  %v767_v44 = vmax.f32 %v703_v25, 0.0  ;;  %v672_v6 = vadd.f32 3.0, %v608_v36  ;;  %v801_v19 = vmin.f32 %v737_v21, 6.0  ;;  %v2361_v57 = vld [vmem:[#allocation5_spill] sm:$0xff] }
 0x146   :  { %v704_v18 = vadd.f32 3.0, %v640_v12  ;;  %v833_v22 = vmin.f32 %v769_v35, 6.0  ;;  %v738_v23 = vmax.f32 %v674_v34, 0.0  ;;  %v770_v26 = vmax.f32 %v706_v13, 0.0 }
 0x147   :  { %v799_v27 = vmin.f32 %v735_v37, 6.0  ;;  %v831_v41 = vmin.f32 %v767_v44, 6.0  ;;  %v736_v17 = vmax.f32 %v672_v6, 0.0  ;;  %v865_v31 = vmul.f32 %v801_v19, %v609_v62 }
 0x148   :  { %v768_v63 = vmax.f32 %v704_v18, 0.0  ;;  %v897_v7 = vmul.f32 %v833_v22, %v641_v32  ;;  %v802_v45 = vmin.f32 %v738_v23, 6.0  ;;  %v834_v42 = vmin.f32 %v770_v26, 6.0 }
 0x149   :  { %v863_v43 = vmul.f32 %v799_v27, %v607_v4  ;;  %v895_v2 = vmul.f32 %v831_v41, %v639_v54  ;;  %v800_v3 = vmin.f32 %v736_v17, 6.0  ;;  %v929_v11 = vmul.f32 0.16666667, %v865_v31 }
 0x14a   :  { %v832_v33 = vmin.f32 %v768_v63, 6.0  ;;  %v961_v50 = vmul.f32 0.16666667, %v897_v7  ;;  %v866_v51 = vmul.f32 %v802_v45, %v610_v40  ;;  %v898_v28 = vmul.f32 %v834_v42, %v642_v20  ;;  %v2360_v40 = vld [vmem:[#allocation4_spill] sm:$0xff] }
 0x14b   :  { %v927_v58 = vmul.f32 0.16666667, %v863_v43  ;;  %v959_v0 = vmul.f32 0.16666667, %v895_v2  ;;  %v864_v1 = vmul.f32 %v800_v3, %v608_v36  ;;  %v1416_v48 = vpack.c.bf16 %v929_v11, %v929_v11 }
 0x14c   :  { %v896_v59 = vmul.f32 %v832_v33, %v640_v12  ;;  %v1448_v14 = vpack.c.bf16 %v961_v50, %v961_v50  ;;  %v930_v15 = vmul.f32 0.16666667, %v866_v51  ;;  %v962_v49 = vmul.f32 0.16666667, %v898_v28 }
 0x14d   :  { %v1414_v29 = vpack.c.bf16 %v927_v58, %v927_v58  ;;  %v1446_v46 = vpack.c.bf16 %v959_v0, %v959_v0  ;;  %v928_v24 = vmul.f32 0.16666667, %v864_v1  ;;  %1250 = vst.msk [vmem:[%s2353_s4 + $0x68] sm:$0xf] %vm1223_vm2, %v1416_v48  ;;  %v542_v62 = vmul.f32 %v1558_v30, %v2077_v52 }
 0x14e   :  { %v960_v56 = vmul.f32 0.16666667, %v896_v59  ;;  %1282 = vst.msk [vmem:[%s2353_s4 + $0xe8] sm:$0xf] %vm1223_vm2, %v1448_v14  ;;  %v1417_v47 = vpack.c.bf16 %v930_v15, %v930_v15  ;;  %v1449_v10 = vpack.c.bf16 %v962_v49, %v962_v49  ;;  %v574_v32 = vmul.f32 %v1558_v30, %v2079_v53 }
 0x14f   :  { %1248 = vst.msk [vmem:[%s2353_s4 + $0x60] sm:$0xf] %vm1223_vm2, %v1414_v29  ;;  %1280 = vst.msk [vmem:[%s2353_s4 + $0xe0] sm:$0xf] %vm1223_vm2, %v1446_v46  ;;  %v1415_v60 = vpack.c.bf16 %v928_v24, %v928_v24  ;;  %v540_v4 = vmul.f32 %v1558_v30, %v2081_v38  ;;  %v572_v54 = vmul.f32 %v1558_v30, %v2083_v39 }
 0x150   :  { %v1447_v61 = vpack.c.bf16 %v960_v56, %v960_v56  ;;  %1251 = vst.msk [vmem:[%s2353_s4 + $0x6c] sm:$0xf] %vm1223_vm2, %v1417_v47  ;;  %1283 = vst.msk [vmem:[%s2353_s4 + $0xec] sm:$0xf] %vm1223_vm2, %v1449_v10  ;;  %v613_v52 = vadd.f32 %v2260_v16, %v542_v62  ;;  %v645_v53 = vadd.f32 %v2260_v16, %v574_v32 }
 0x151   :  { %v543_v9 = vmul.f32 %v1558_v30, %v2358_v8  ;;  %v575_v38 = vmul.f32 %v1558_v30, %v2359_v55  ;;  %1249 = vst.msk [vmem:[%s2353_s4 + $0x64] sm:$0xf] %vm1223_vm2, %v1415_v60  ;;  %v611_v39 = vadd.f32 %v2260_v16, %v540_v4  ;;  %v643_v5 = vadd.f32 %v2260_v16, %v572_v54 }
 0x152   :  { %1281 = vst.msk [vmem:[%s2353_s4 + $0xe4] sm:$0xf] %vm1223_vm2, %v1447_v61  ;;  %v541_v20 = vmul.f32 %v1558_v30, %v2360_v40  ;;  %v573_v25 = vmul.f32 %v1558_v30, %v2361_v57  ;;  %v677_v36 = vadd.f32 3.0, %v613_v52  ;;  %v709_v12 = vadd.f32 3.0, %v645_v53 }
 0x153   :  { %v614_v21 = vadd.f32 %v2260_v16, %v543_v9  ;;  %v646_v35 = vadd.f32 %v2260_v16, %v575_v38  ;;  %v675_v34 = vadd.f32 3.0, %v611_v39  ;;  %v707_v13 = vadd.f32 3.0, %v643_v5 }
 0x154   :  { %v612_v37 = vadd.f32 %v2260_v16, %v541_v20  ;;  %v644_v44 = vadd.f32 %v2260_v16, %v573_v25  ;;  %v741_v6 = vmax.f32 %v677_v36, 0.0  ;;  %v773_v18 = vmax.f32 %v709_v12, 0.0 }
 0x155   :  { %v678_v19 = vadd.f32 3.0, %v614_v21  ;;  %v710_v22 = vadd.f32 3.0, %v646_v35  ;;  %v739_v23 = vmax.f32 %v675_v34, 0.0  ;;  %v771_v26 = vmax.f32 %v707_v13, 0.0 }
 0x156   :  { %v676_v27 = vadd.f32 3.0, %v612_v37  ;;  %v708_v41 = vadd.f32 3.0, %v644_v44  ;;  %v805_v17 = vmin.f32 %v741_v6, 6.0  ;;  %v837_v63 = vmin.f32 %v773_v18, 6.0 }
 0x157   :  { %v742_v31 = vmax.f32 %v678_v19, 0.0  ;;  %v774_v7 = vmax.f32 %v710_v22, 0.0  ;;  %v803_v45 = vmin.f32 %v739_v23, 6.0  ;;  %v835_v42 = vmin.f32 %v771_v26, 6.0 }
 0x158   :  { %v740_v43 = vmax.f32 %v676_v27, 0.0  ;;  %v772_v2 = vmax.f32 %v708_v41, 0.0  ;;  %v869_v3 = vmul.f32 %v805_v17, %v613_v52  ;;  %v901_v33 = vmul.f32 %v837_v63, %v645_v53 }
 0x159   :  { %v806_v11 = vmin.f32 %v742_v31, 6.0  ;;  %v838_v16 = vmin.f32 %v774_v7, 6.0  ;;  %v867_v50 = vmul.f32 %v803_v45, %v611_v39  ;;  %v899_v51 = vmul.f32 %v835_v42, %v643_v5 }
 0x15a   :  { %v804_v28 = vmin.f32 %v740_v43, 6.0  ;;  %v836_v58 = vmin.f32 %v772_v2, 6.0  ;;  %v933_v0 = vmul.f32 0.16666667, %v869_v3  ;;  %v965_v1 = vmul.f32 0.16666667, %v901_v33 }
 0x15b   :  { %v870_v59 = vmul.f32 %v806_v11, %v614_v21  ;;  %v902_v48 = vmul.f32 %v838_v16, %v646_v35  ;;  %v931_v14 = vmul.f32 0.16666667, %v867_v50  ;;  %v963_v15 = vmul.f32 0.16666667, %v899_v51 }
 0x15c   :  { %v868_v49 = vmul.f32 %v804_v28, %v612_v37  ;;  %v900_v29 = vmul.f32 %v836_v58, %v644_v44  ;;  %v1420_v46 = vpack.c.bf16 %v933_v0, %v933_v0  ;;  %v1452_v24 = vpack.c.bf16 %v965_v1, %v965_v1 }
 0x15d   :  { %v934_v56 = vmul.f32 0.16666667, %v870_v59  ;;  %v966_v47 = vmul.f32 0.16666667, %v902_v48  ;;  %v1418_v10 = vpack.c.bf16 %v931_v14, %v931_v14  ;;  %v1450_v30 = vpack.c.bf16 %v963_v15, %v963_v15 }
 0x15e   :  { %v932_v62 = vmul.f32 0.16666667, %v868_v49  ;;  %v964_v32 = vmul.f32 0.16666667, %v900_v29  ;;  %1254 = vst.msk [vmem:[%s2353_s4 + $0x78] sm:$0xf] %vm1223_vm2, %v1420_v46 }
 0x15f   :  { %1286 = vst.msk [vmem:[%s2353_s4 + $0xf8] sm:$0xf] %vm1223_vm2, %v1452_v24  ;;  %v1421_v60 = vpack.c.bf16 %v934_v56, %v934_v56  ;;  %v1453_v61 = vpack.c.bf16 %v966_v47, %v966_v47  ;;  %1252 = vst.msk [vmem:[%s2353_s4 + $0x70] sm:$0xf] %vm1223_vm2, %v1418_v10 }
 0x160   :  { %1284 = vst.msk [vmem:[%s2353_s4 + $0xf0] sm:$0xf] %vm1223_vm2, %v1450_v30  ;;  %v1419_v4 = vpack.c.bf16 %v932_v62, %v932_v62  ;;  %v1451_v54 = vpack.c.bf16 %v964_v32, %v964_v32 }
 0x161   :  { %1255 = vst.msk [vmem:[%s2353_s4 + $0x7c] sm:$0xf] %vm1223_vm2, %v1421_v60  ;;  %1287 = vst.msk [vmem:[%s2353_s4 + $0xfc] sm:$0xf] %vm1223_vm2, %v1453_v61 }
 0x162   :  { %1253 = vst.msk [vmem:[%s2353_s4 + $0x74] sm:$0xf] %vm1223_vm2, %v1419_v4  ;;  %1285 = vst.msk [vmem:[%s2353_s4 + $0xf4] sm:$0xf] %vm1223_vm2, %v1451_v54 }

// kernel: sppf_forward.3
= control target key start
LH: loop header
LB: loop body
LE: loop exit
PB: predicated region body
PF: predicated region fallthrough
CT: control target
= control target key end

     0   :  { %s8065_s15 = smov 0   ;;  %s8067_s16 = smov 0   ;;  %s11666_s0 = inlined_call_operand.vmem [shape: bf16[2,16,16,2], index: 0, kind: input, shape index: {}]   ;;  %s11667_s1 = inlined_call_operand.vmem [shape: bf16[8,8], index: 1, kind: input, shape index: {}]   ;;  %s11668_s2 = inlined_call_operand.vmem [shape: f32[1,8], index: 2, kind: input, shape index: {}]   ;;  %s11669_s3 = inlined_call_operand.vmem [shape: f32[1,8], index: 3, kind: input, shape index: {}]   ;;  %s11670_s4 = inlined_call_operand.vmem [shape: f32[2,16,16,8], index: 4, kind: output, shape index: {}]  }
   0x1   :  { %s8069_s17 = smov 0  }
   0x2 LB: > { %s26_s18 = sadd.s32 1, %s8032_s16  ;;  %p7422_p0 = scmp.ge.s32.totalorder %s8036_s17, 1  ;;  %s8036_s17 = sphi %s8069_s17, %s14_s17   ;;  %s8032_s16 = sphi %s8067_s16, %s11952_s16   ;;  %s8028_s15 = sphi %s8065_s15, %s11951_s15  }
   0x3   : > { %p28_p1 = scmp.ge.s32.totalorder %s26_s18, 2  ;;  %p188_p2 = scmp.lt.s32.totalorder %s8036_s17, 3 }
   0x5   : > { %s11954_s18 = smov (%p28_p1, %s26_s18), 0  ;;  %p189_p3 = pnand %p7422_p0, %p188_p2 }
   0x7   : > { %192 = sbr.rel (%p189_p3) target bundleno = 1224 (0x4c8), region = 36 }
   0xe   : > { %p221_p4 = scmp.lt.s32.totalorder %s8028_s15, 1  ;;  %vm277_vm0 = vcmask 11264   ;;  %v8086_v0 = vld [vmem:[%s11667_s1] ss:$0 sps:$4 sm:$0x22]   ;;  %vm281_vm1 = vcmask 8192  }
   0xf   : > { %v8038_v1 = vmov 4286644096   ;;  %v2213_v2 = vrot.slane %v8086_v0, 1  ;;  %vm2046_vm2 = vcmask 1040384   ;;  %vm738_vm3 = vsmask.f32 3328 }
  0x10   : > { %s11956_s15 = smov (!%p221_p4, %s8028_s15), 1  ;;  %278 = vst.msk [vmem:[#allocation3] sm:$0xf] %vm277_vm0, %v8038_v1  ;;  %279 = vst.msk [vmem:[#allocation3 + $0x4] sm:$0xf] %vm277_vm0, %v8038_v1  ;;  %vm1269_vm5 = vcmask 1042432  }
  0x11   : > { %280 = vst.msk [vmem:[#allocation3 + $0x8] sm:$0xf] %vm277_vm0, %v8038_v1  ;;  %283 = vst.msk [vmem:[#allocation3 + $0x10] sm:$0xf] %vm277_vm0, %v8038_v1  ;;  %s7658_s21 = sshll.u32 %s11956_s15, 7  ;;  %7960 = vmatprep.subr.msk.bf16.mxu1 %vm2046_vm2, %v2213_v2  ;;  %v2265_v3 = vsel %vm2046_vm2, %v2213_v2, 0 }
  0x12   : > { %282 = vst.msk [vmem:[#allocation3 + $0xc] sm:$0x1] %vm281_vm1, %v8038_v1  ;;  %286 = vst.msk [vmem:[#allocation3 + $0x1c] sm:$0x1] %vm281_vm1, %v8038_v1  ;;  %s8153_s24 = scalar_lea.vmem %s11666_s0, %s7658_s21  ;;  %7729 = vmatpush3.bf16.msra.mxu1 %v2265_v3  ;;  %vm739_vm4 = vsmask.f32 7440 }
  0x13   : > { %284 = vst.msk [vmem:[#allocation3 + $0x14] sm:$0xf] %vm277_vm0, %v8038_v1  ;;  %285 = vst.msk [vmem:[#allocation3 + $0x18] sm:$0xf] %vm277_vm0, %v8038_v1  ;;  %v8156_v4 = vld [vmem:[%s8153_s24] sm:$0xf] }
  0x14   : > { %298 = vst.msk [vmem:[#allocation3 + $0x20] sm:$0xf] %vm277_vm0, %v8038_v1  ;;  %299 = vst.msk [vmem:[#allocation3 + $0x30] sm:$0xf] %vm277_vm0, %v8038_v1  ;;  %v8159_v5 = vld [vmem:[%s8153_s24 + $0x4] sm:$0xf] }
  0x15   : > { %300 = vst.msk [vmem:[#allocation3 + $0x40] sm:$0xf] %vm277_vm0, %v8038_v1  ;;  %288 = vst.msk [vmem:[#allocation3 + $0x120] sm:$0xf] %vm277_vm0, %v8038_v1  ;;  %v8162_v6 = vld [vmem:[%s8153_s24 + $0x8] sm:$0xf] }
  0x16   : > { %318 = vst.msk [vmem:[#allocation3 + $0x2c] sm:$0x1] %vm281_vm1, %v8038_v1  ;;  %319 = vst.msk [vmem:[#allocation3 + $0x3c] sm:$0x1] %vm281_vm1, %v8038_v1  ;;  %v8165_v7 = vld [vmem:[%s8153_s24 + $0xc] sm:$0xf] }
  0x17   : > { %320 = vst.msk [vmem:[#allocation3 + $0x4c] sm:$0x1] %vm281_vm1, %v8038_v1  ;;  %291 = vst.msk [vmem:[#allocation3 + $0x12c] sm:$0x1] %vm281_vm1, %v8038_v1  ;;  %v8168_v8 = vld [vmem:[%s8153_s24 + $0x10] sm:$0xf] }
  0x18   : > { %289 = vst.msk [vmem:[#allocation3 + $0x124] sm:$0xf] %vm277_vm0, %v8038_v1  ;;  %290 = vst.msk [vmem:[#allocation3 + $0x128] sm:$0xf] %vm277_vm0, %v8038_v1  ;;  %v8171_v9 = vld [vmem:[%s8153_s24 + $0x14] sm:$0xf] }
  0x19   : > { %292 = vst.msk [vmem:[#allocation3 + $0x130] sm:$0xf] %vm277_vm0, %v8038_v1  ;;  %293 = vst.msk [vmem:[#allocation3 + $0x134] sm:$0xf] %vm277_vm0, %v8038_v1  ;;  %v8180_v10 = vld [vmem:[%s8153_s24 + $0x18] sm:$0xf] }
  0x1a   : > { %294 = vst.msk [vmem:[#allocation3 + $0x138] sm:$0xf] %vm277_vm0, %v8038_v1  ;;  %301 = vst.msk [vmem:[#allocation3 + $0x50] sm:$0xf] %vm277_vm0, %v8038_v1  ;;  %v8183_v11 = vld [vmem:[%s8153_s24 + $0x1c] sm:$0xf] }
  0x1b   : > { %295 = vst.msk [vmem:[#allocation3 + $0x13c] sm:$0x1] %vm281_vm1, %v8038_v1  ;;  %321 = vst.msk [vmem:[#allocation3 + $0x5c] sm:$0x1] %vm281_vm1, %v8038_v1  ;;  %v8186_v12 = vld [vmem:[%s8153_s24 + $0x20] sm:$0xf] }
  0x1c   : > { %302 = vst.msk [vmem:[#allocation3 + $0x60] sm:$0xf] %vm277_vm0, %v8038_v1  ;;  %303 = vst.msk [vmem:[#allocation3 + $0x70] sm:$0xf] %vm277_vm0, %v8038_v1  ;;  %v8195_v13 = vld [vmem:[%s8153_s24 + $0x24] sm:$0xf] }
  0x1d   : > { %304 = vst.msk [vmem:[#allocation3 + $0x80] sm:$0xf] %vm277_vm0, %v8038_v1  ;;  %305 = vst.msk [vmem:[#allocation3 + $0x90] sm:$0xf] %vm277_vm0, %v8038_v1  ;;  %v403_v14 = vld [vmem:[#allocation3 + $0x4] sm:$0xf] }
  0x1e   : > { %306 = vst.msk [vmem:[#allocation3 + $0xa0] sm:$0xf] %vm277_vm0, %v8038_v1  ;;  %307 = vst.msk [vmem:[#allocation3 + $0xb0] sm:$0xf] %vm277_vm0, %v8038_v1  ;;  %v404_v15 = vld [vmem:[#allocation3 + $0x8] sm:$0xf] }
  0x1f   : > { %308 = vst.msk [vmem:[#allocation3 + $0xc0] sm:$0xf] %vm277_vm0, %v8038_v1  ;;  %309 = vst.msk [vmem:[#allocation3 + $0xd0] sm:$0xf] %vm277_vm0, %v8038_v1  ;;  %v407_v19 = vld [vmem:[#allocation3 + $0x14] sm:$0xf] }
  0x20   : > { %310 = vst.msk [vmem:[#allocation3 + $0xe0] sm:$0xf] %vm277_vm0, %v8038_v1  ;;  %311 = vst.msk [vmem:[#allocation3 + $0xf0] sm:$0xf] %vm277_vm0, %v8038_v1  ;;  %v408_v20 = vld [vmem:[#allocation3 + $0x18] sm:$0xf]  ;;  %v483_v26 = vmax.bf16 %v407_v19, %v403_v14 }
  0x21   : > { %312 = vst.msk [vmem:[#allocation3 + $0x100] sm:$0xf] %vm277_vm0, %v8038_v1  ;;  %313 = vst.msk [vmem:[#allocation3 + $0x110] sm:$0xf] %vm277_vm0, %v8038_v1  ;;  %v8210_v23 = vld [vmem:[#allocation3 + $0x20] sm:$0xf]  ;;  %v484_v27 = vmax.bf16 %v408_v20, %v404_v15 }
  0x22   : > { %322 = vst.msk [vmem:[#allocation3 + $0x6c] sm:$0x1] %vm281_vm1, %v8038_v1  ;;  %323 = vst.msk [vmem:[#allocation3 + $0x7c] sm:$0x1] %vm281_vm1, %v8038_v1  ;;  %v8212_v24 = vld [vmem:[#allocation3 + $0x2c] sm:$0x1] }
  0x23   : > { %324 = vst.msk [vmem:[#allocation3 + $0x8c] sm:$0x1] %vm281_vm1, %v8038_v1  ;;  %325 = vst.msk [vmem:[#allocation3 + $0x9c] sm:$0x1] %vm281_vm1, %v8038_v1  ;;  %v8214_v25 = vld [vmem:[#allocation3 + $0x30] sm:$0xf] }
  0x24   : > { %326 = vst.msk [vmem:[#allocation3 + $0xac] sm:$0x1] %vm281_vm1, %v8038_v1  ;;  %327 = vst.msk [vmem:[#allocation3 + $0xbc] sm:$0x1] %vm281_vm1, %v8038_v1  ;;  %v8217_v29 = vld [vmem:[#allocation3 + $0x3c] sm:$0x1] }
  0x25   : > { %328 = vst.msk [vmem:[#allocation3 + $0xcc] sm:$0x1] %vm281_vm1, %v8038_v1  ;;  %329 = vst.msk [vmem:[#allocation3 + $0xdc] sm:$0x1] %vm281_vm1, %v8038_v1  ;;  %v8219_v30 = vld [vmem:[#allocation3 + $0x40] sm:$0xf] }
  0x26   : > { %330 = vst.msk [vmem:[#allocation3 + $0xec] sm:$0x1] %vm281_vm1, %v8038_v1  ;;  %331 = vst.msk [vmem:[#allocation3 + $0xfc] sm:$0x1] %vm281_vm1, %v8038_v1  ;;  %v8221_v31 = vld [vmem:[#allocation3 + $0x4c] sm:$0x1] }
  0x27   : > { %332 = vst.msk [vmem:[#allocation3 + $0x10c] sm:$0x1] %vm281_vm1, %v8038_v1  ;;  %333 = vst.msk [vmem:[#allocation3 + $0x11c] sm:$0x1] %vm281_vm1, %v8038_v1  ;;  %vm1270_vm6 = vcmask 1046532   ;;  %vm1787_vm9 = vcmask 1041408  }
  0x28   : > { %296 = vst.msk [vmem:[#allocation3] sm:$0xf] %vm277_vm0, %v8038_v1  ;;  %297 = vst.msk [vmem:[#allocation3 + $0x10] sm:$0xf] %vm277_vm0, %v8038_v1  ;;  %vm1448_vm7 = vsmask.f32 2304 }
  0x29   : > { %316 = vst.msk [vmem:[#allocation3 + $0xc] sm:$0x1] %vm281_vm1, %v8038_v1  ;;  %317 = vst.msk [vmem:[#allocation3 + $0x1c] sm:$0x1] %vm281_vm1, %v8038_v1  ;;  %vm1449_vm8 = vsmask.f32 6416 }
  0x2a   : > { %314 = vst.msk [vmem:[#allocation3 + $0x120] sm:$0xf] %vm277_vm0, %v8038_v1  ;;  %315 = vst.msk [vmem:[#allocation3 + $0x130] sm:$0xf] %vm277_vm0, %v8038_v1  ;;  %vm1788_vm10 = vcmask 1045508   ;;  %vm2047_vm13 = vcmask 1044484  }
  0x2b   : > { %334 = vst.msk [vmem:[#allocation3 + $0x12c] sm:$0x1] %vm281_vm1, %v8038_v1  ;;  %335 = vst.msk [vmem:[#allocation3 + $0x13c] sm:$0x1] %vm281_vm1, %v8038_v1  ;;  %v8342_v33 = vld [vmem:[%s8153_s24 + $0x40] sm:$0xf] }
  0x2c   : > { %11731 = vst [vmem:[#allocation4_spill] sm:$0xff] %v8156_v4  ;;  %11732 = vst [vmem:[#allocation5_spill] sm:$0xff] %v8159_v5  ;;  %vm2214_vm1 = vcmask 15360   ;;  %s7659_s11 = sshll.u32 %s11956_s15, 8 }
  0x2d   : > { %11733 = vst [vmem:[#allocation6_spill] sm:$0xff] %v8162_v6  ;;  %11734 = vst [vmem:[#allocation7_spill] sm:$0xff] %v8165_v7  ;;  %s11495_s14 = scalar_lea.vmem %s11670_s4, %s7659_s11 }
  0x2e   : > { %11735 = vst [vmem:[#allocation8_spill] sm:$0xff] %v8168_v8  ;;  %11736 = vst [vmem:[#allocation9_spill] sm:$0xff] %v8171_v9 }
  0x2f   : > { %370 = vst.msk [vmem:[#allocation3 + $0x24] sm:$0xf] %vm277_vm0, %v8156_v4  ;;  %371 = vst.msk [vmem:[#allocation3 + $0x28] sm:$0xf] %vm277_vm0, %v8159_v5  ;;  %v402_v16 = vld [vmem:[#allocation3] sm:$0xf] }
  0x30   : > { %372 = vst.msk [vmem:[#allocation3 + $0x34] sm:$0xf] %vm277_vm0, %v8162_v6  ;;  %11737 = vst [vmem:[#allocation10_spill] sm:$0xff] %v8180_v10  ;;  %v405_v17 = vld [vmem:[#allocation3 + $0xc] sm:$0x1] }
  0x31   : > { %11738 = vst [vmem:[#allocation11_spill] sm:$0xff] %v8183_v11  ;;  %11739 = vst [vmem:[#allocation12_spill] sm:$0xff] %v8186_v12  ;;  %v8205_v18 = vld [vmem:[#allocation3 + $0x10] sm:$0xf]  ;;  %v8207_v21 = vld [vmem:[#allocation3 + $0x1c] sm:$0x1] }
  0x32   : > { %373 = vst.msk [vmem:[#allocation3 + $0x38] sm:$0xf] %vm277_vm0, %v8165_v7  ;;  %374 = vst.msk [vmem:[#allocation3 + $0x44] sm:$0xf] %vm277_vm0, %v8168_v8  ;;  %v482_v22 = vmax.bf16 %v8205_v18, %v402_v16  ;;  %v485_v28 = vmax.bf16 %v8207_v21, %v405_v17  ;;  %v8273_v16 = vld [vmem:[%s8153_s24 + $0x28] sm:$0xf] }
  0x33   : > { %375 = vst.msk [vmem:[#allocation3 + $0x48] sm:$0xf] %vm277_vm0, %v8171_v9  ;;  %11740 = vst [vmem:[#allocation13_spill] sm:$0xff] %v8195_v13  ;;  %v8276_v17 = vld [vmem:[%s8153_s24 + $0x2c] sm:$0xf] }
  0x34   : > { %376 = vst.msk [vmem:[#allocation3 + $0x54] sm:$0xf] %vm277_vm0, %v8180_v10  ;;  %377 = vst.msk [vmem:[#allocation3 + $0x58] sm:$0xf] %vm277_vm0, %v8183_v11  ;;  %v546_v35 = vmax.bf16 %v482_v22, %v8210_v23  ;;  %v549_v42 = vmax.bf16 %v485_v28, %v8212_v24 }
  0x35   : > { %378 = vst.msk [vmem:[#allocation3 + $0x64] sm:$0xf] %vm277_vm0, %v8186_v12  ;;  %379 = vst.msk [vmem:[#allocation3 + $0x68] sm:$0xf] %vm277_vm0, %v8195_v13 }
  0x36   : > { %v411_v36 = vld [vmem:[#allocation3 + $0x24] sm:$0xf]  ;;  %v412_v37 = vld [vmem:[#allocation3 + $0x28] sm:$0xf]  ;;  %v610_v54 = vmax.bf16 %v546_v35, %v8214_v25  ;;  %v613_v63 = vmax.bf16 %v549_v42, %v8217_v29  ;;  %11741 = vst [vmem:[#allocation14_spill] sm:$0xff] %v8273_v16  ;;  %11742 = vst [vmem:[#allocation15_spill] sm:$0xff] %v8276_v17 }
  0x37   : > { %v8230_v38 = vld [vmem:[#allocation3 + $0x34] sm:$0xf]  ;;  %v487_v46 = vmax.bf16 %v411_v36, %v407_v19  ;;  %v488_v47 = vmax.bf16 %v412_v37, %v408_v20  ;;  %v547_v49 = vmax.bf16 %v483_v26, %v411_v36  ;;  %v548_v53 = vmax.bf16 %v484_v27, %v412_v37  ;;  %380 = vst.msk [vmem:[#allocation3 + $0x74] sm:$0xf] %vm277_vm0, %v8273_v16  ;;  %v8290_v27 = vld [vmem:[%s8153_s24 + $0x30] sm:$0xf]  ;;  %vm8312_vm11 = vmor %vm738_vm3, %vm739_vm4 }
  0x38   : > { %v491_v48 = vmax.bf16 %v8230_v38, %v411_v36  ;;  %v674_v0 = vmax.bf16 %v610_v54, %v8219_v30  ;;  %v8283_v22 = vmax.bf16 %v613_v63, %v8221_v31  ;;  %381 = vst.msk [vmem:[#allocation3 + $0x78] sm:$0xf] %vm277_vm0, %v8276_v17  ;;  %11743 = vst [vmem:[#allocation16_spill] sm:$0xff] %v8290_v27  ;;  %v8303_v42 = vld [vmem:[%s8153_s24 + $0x34] sm:$0xf] }
  0x39   : > { %v8239_v43 = vld [vmem:[#allocation3 + $0x38] sm:$0xf]  ;;  %v8241_v44 = vld [vmem:[#allocation3 + $0x44] sm:$0xf]  ;;  %v551_v56 = vmax.bf16 %v487_v46, %v8230_v38  ;;  %v611_v59 = vmax.bf16 %v547_v49, %v8230_v38  ;;  %11744 = vst [vmem:[#allocation17_spill] sm:$0xff] %v8303_v42  ;;  %vm8328_vm12 = vmor %vm1269_vm5, %vm1270_vm6 }
  0x3a   : > { %v8243_v45 = vld [vmem:[#allocation3 + $0x48] sm:$0xf]  ;;  %v492_v51 = vmax.bf16 %v8239_v43, %v412_v37  ;;  %v552_v57 = vmax.bf16 %v488_v47, %v8239_v43  ;;  %v555_v58 = vmax.bf16 %v491_v48, %v8241_v44  ;;  %v612_v62 = vmax.bf16 %v548_v53, %v8239_v43  ;;  %382 = vst.msk [vmem:[#allocation3 + $0x84] sm:$0xf] %vm277_vm0, %v8290_v27  ;;  %vm8351_vm14 = vmor %vm1448_vm7, %vm1449_vm8 }
  0x3b   : > { %v8246_v50 = vld [vmem:[#allocation3 + $0x54] sm:$0xf]  ;;  %v8252_v55 = vld [vmem:[#allocation3 + $0x58] sm:$0xf]  ;;  %v615_v2 = vmax.bf16 %v551_v56, %v8241_v44  ;;  %v8270_v15 = vmax.bf16 %v611_v59, %v8241_v44  ;;  %v742_v26 = vshrl.u32 %v674_v0, 16  ;;  %11751 = vst [vmem:[#allocation20_spill] sm:$0xff] %v8342_v33  ;;  %vm8363_vm15 = vmor %vm1787_vm9, %vm1788_vm10 }
  0x3c   : > { %v8258_v60 = vld [vmem:[#allocation3 + $0x64] sm:$0xf]  ;;  %v556_v61 = vmax.bf16 %v492_v51, %v8243_v45  ;;  %v8264_v1 = vld [vmem:[#allocation3 + $0x68] sm:$0xf]  ;;  %v616_v3 = vmax.bf16 %v552_v57, %v8243_v45  ;;  %v619_v14 = vmax.bf16 %v555_v58, %v8246_v50  ;;  %v8280_v20 = vmax.bf16 %v612_v62, %v8243_v45  ;;  %383 = vst.msk [vmem:[#allocation3 + $0x88] sm:$0xf] %vm277_vm0, %v8303_v42  ;;  %vm8429_vm3 = vmor %vm2046_vm2, %vm2047_vm13 }
  0x3d   : > { %v8293_v28 = vmax.bf16 %v615_v2, %v8246_v50  ;;  %v747_v37 = vshll.u32 %v8270_v15, 16  ;;  %v751_v48 = vshrl.u32 %v8270_v15, 16  ;;  %v1272_v54 = vrot.slane %v8270_v15, 5  ;;  %v8324_v58 = vld [vmem:[%s8153_s24 + $0x38] sm:$0xf] }
  0x3e   : > { %v620_v19 = vmax.bf16 %v556_v61, %v8252_v55  ;;  %v8296_v35 = vmax.bf16 %v616_v3, %v8252_v55  ;;  %v8299_v36 = vmax.bf16 %v619_v14, %v8258_v60  ;;  %v757_v49 = vshll.u32 %v8280_v20, 16  ;;  %11747 = vst [vmem:[#allocation18_spill] sm:$0xff] %v8324_v58  ;;  %v8333_v3 = vld [vmem:[%s8153_s24 + $0x3c] sm:$0xf]  ;;  %384 = vst.msk [vmem:[#allocation3 + $0x94] sm:$0xf] %vm277_vm0, %v8324_v58 }
  0x3f   : > { %v761_v51 = vshrl.u32 %v8280_v20, 16  ;;  %v749_v53 = vrot.slane %v747_v37, 5  ;;  %v1274_v56 = vrot.slane %v8280_v20, 5  ;;  %v1452_v57 = vrot.slane %v747_v37, 6  ;;  %11750 = vst [vmem:[#allocation19_spill] sm:$0xff] %v8333_v3 }
  0x40   : > { %v8308_v46 = vmax.bf16 %v620_v19, %v8264_v1  ;;  %v753_v59 = vrot.slane %v751_v48, 4  ;;  %v759_v61 = vrot.slane %v757_v49, 5  ;;  %v1451_v2 = vrot.slane %v751_v48, 5  ;;  %385 = vst.msk [vmem:[#allocation3 + $0x98] sm:$0xf] %vm277_vm0, %v8333_v3 }
  0x41   : > { %v763_v62 = vrot.slane %v761_v51, 4  ;;  %v750_v14 = vsel %vm8312_vm11, %v742_v26, %v749_v53  ;;  %v1273_v19 = vrot.slane %v1272_v54, 4  ;;  %v1276_v37 = vrot.slane %v1274_v56, 4  ;;  %v8345_v48 = vld [vmem:[%s8153_s24 + $0x44] sm:$0xf] }
  0x42   : > { %v1455_v41 = vrot.slane %v761_v51, 5  ;;  %v754_v52 = vor.u32 %v753_v59, %v749_v53  ;;  %v1189_v39 = vmax.bf16 %v750_v14, %v674_v0  ;;  %v1453_v34 = vor.u32 %v1452_v57, %v1451_v2  ;;  %11752 = vst [vmem:[#allocation21_spill] sm:$0xff] %v8345_v48  ;;  %386 = vst.msk [vmem:[#allocation3 + $0xa4] sm:$0xf] %vm277_vm0, %v8342_v33 }
  0x43   : > { %v764_v40 = vor.u32 %v763_v62, %v759_v61  ;;  %v1275_v32 = vsel %vm8328_vm12, %v1273_v19, %v1274_v56  ;;  %v1456_v51 = vrot.slane %v757_v49, 6  ;;  %v1461_v53 = vshll.u32 %v8283_v22, 16  ;;  %387 = vst.msk [vmem:[#allocation3 + $0xa8] sm:$0xf] %vm277_vm0, %v8345_v48 }
  0x44   : > { %v1790_v0 = vrot.slane %v8270_v15, 6  ;;  %v755_v57 = vrot.slane %v754_v52, 4  ;;  %v1400_v56 = vmax.bf16 %v1272_v54, %v1189_v39  ;;  %v1454_v62 = vrot.slane %v1453_v34, 4 }
  0x45   : > { %v765_v59 = vrot.slane %v764_v40, 4  ;;  %v1457_v49 = vor.u32 %v1456_v51, %v1455_v41  ;;  %v1463_v14 = vrot.slane %v1461_v53, 6  ;;  %v1792_v58 = vrot.slane %v8280_v20, 6 }
  0x46   : > { %v1791_v19 = vrot.slane %v1790_v0, 4  ;;  %v760_v33 = vsel %vm8312_vm11, %v755_v57, %v759_v61  ;;  %v1723_v40 = vmax.bf16 %v1453_v34, %v1400_v56  ;;  %v1795_v39 = vrot.slane %v8283_v22, 6  ;;  %v8382_v61 = vld [vmem:[%s8153_s24 + $0x48] sm:$0xf]  ;;  %v8400_v56 = vld [vmem:[#allocation3 + $0x5c] sm:$0x1] }
  0x47   : > { %v1191_v52 = vmax.bf16 %v765_v59, %v8280_v20  ;;  %v1190_v54 = vmax.bf16 %v760_v33, %v8270_v15  ;;  %v1458_v48 = vsel %vm8351_vm14, %v1454_v62, %v1457_v49  ;;  %v1459_v41 = vrot.slane %v1457_v49, 4  ;;  %11758 = vst [vmem:[#allocation22_spill] sm:$0xff] %v8382_v61  ;;  %v8386_v15 = vld [vmem:[#allocation3 + $0x50] sm:$0xf]  ;;  %388 = vst.msk [vmem:[#allocation3 + $0xb4] sm:$0xf] %vm277_vm0, %v8382_v61 }
  0x48   : > { %v1793_v51 = vsel %vm8363_vm15, %v1791_v19, %v1792_v58  ;;  %v1794_v3 = vrot.slane %v1792_v58, 4  ;;  %v1950_v27 = vmax.bf16 %v1790_v0, %v1723_v40  ;;  %v11757_v20 = vmax.bf16 %v8210_v23, %v8205_v18  ;;  %v8394_v0 = vld [vmem:[%s8153_s24 + $0x4c] sm:$0xf] }
  0x49   : > { %v1402_v53 = vmax.bf16 %v1276_v37, %v1191_v52  ;;  %v1401_v22 = vmax.bf16 %v1275_v32, %v1190_v54  ;;  %v1464_v33 = vsel %vm8351_vm14, %v1459_v41, %v1463_v14  ;;  %v11759_v57 = vmax.bf16 %v8212_v24, %v8207_v21  ;;  %11760 = vst [vmem:[#allocation23_spill] sm:$0xff] %v8394_v0  ;;  %v8408_v52 = vld [vmem:[%s8153_s24 + $0x50] sm:$0xf]  ;;  %v8414_v54 = vld [vmem:[%s8153_s24 + $0x54] sm:$0xf] }
  0x4a   : > { %v550_v34 = vmax.bf16 %v11757_v20, %v8214_v25  ;;  %v772_v37 = vshll.u32 %v8293_v28, 16  ;;  %v1796_v32 = vsel %vm8363_vm15, %v1794_v3, %v1795_v39  ;;  %v7443_v59 = vrot.slane %v1950_v27, 11  ;;  %389 = vst.msk [vmem:[#allocation3 + $0xb8] sm:$0xf] %vm277_vm0, %v8394_v0  ;;  %11761 = vst [vmem:[#allocation24_spill] sm:$0xff] %v8408_v52 }
  0x4b   : > { %v553_v58 = vmax.bf16 %v11759_v57, %v8217_v29  ;;  %v1725_v18 = vmax.bf16 %v1464_v33, %v1402_v53  ;;  %v1724_v21 = vmax.bf16 %v1458_v48, %v1401_v22  ;;  %v776_v19 = vshrl.u32 %v8293_v28, 16  ;;  %11762 = vst [vmem:[#allocation25_spill] sm:$0xff] %v8414_v54  ;;  %390 = vst.msk [vmem:[#allocation3 + $0xc4] sm:$0xf] %vm277_vm0, %v8408_v52 }
  0x4c   : > { %v614_v62 = vmax.bf16 %v550_v34, %v8219_v30  ;;  %v774_v14 = vrot.slane %v772_v37, 5  ;;  %v782_v3 = vshll.u32 %v8296_v35, 16  ;;  %v786_v39 = vshrl.u32 %v8296_v35, 16  ;;  %391 = vst.msk [vmem:[#allocation3 + $0xc8] sm:$0xf] %vm277_vm0, %v8414_v54 }
  0x4d   : > { %v617_v49 = vmax.bf16 %v553_v58, %v8221_v31  ;;  %v1952_v40 = vmax.bf16 %v1796_v32, %v1725_v18  ;;  %v1951_v48 = vmax.bf16 %v1793_v51, %v1724_v21  ;;  %v778_v53 = vrot.slane %v776_v19, 4  ;;  %v8425_v34 = vld [vmem:[%s8153_s24 + $0x58] sm:$0xf]  ;;  %v8434_v18 = vld [vmem:[%s8153_s24 + $0x5c] sm:$0xf] }
  0x4e   : > { %v678_v27 = vmax.bf16 %v614_v62, %v8386_v15  ;;  %v1277_v20 = vrot.slane %v8293_v28, 5  ;;  %11763 = vst [vmem:[#allocation26_spill] sm:$0xff] %v8425_v34  ;;  %v784_v51 = vrot.slane %v782_v3, 5  ;;  %v788_v58 = vrot.slane %v786_v39, 4  ;;  %11766 = vst [vmem:[#allocation27_spill] sm:$0xff] %v8434_v18 }
  0x4f   : > { %v8419_v41 = vmax.bf16 %v617_v49, %v8400_v56  ;;  %v2054_v33 = vrot.slane %v1952_v40, 7  ;;  %392 = vst.msk [vmem:[#allocation3 + $0xd4] sm:$0xf] %vm277_vm0, %v8425_v34  ;;  %v2051_v32 = vrot.slane %v1951_v48, 7  ;;  %v779_v62 = vor.u32 %v778_v53, %v774_v14  ;;  %393 = vst.msk [vmem:[#allocation3 + $0xd8] sm:$0xf] %vm277_vm0, %v8434_v18 }
  0x50   : > { %v767_v57 = vshrl.u32 %v678_v27, 16  ;;  %v1278_v21 = vrot.slane %v1277_v20, 4  ;;  %v1279_v49 = vrot.slane %v8296_v35, 5  ;;  %v789_v40 = vor.u32 %v788_v58, %v784_v51 }
  0x51   : > { %v1465_v54 = vrot.slane %v776_v19, 5  ;;  %v1466_v61 = vrot.slane %v772_v37, 6  ;;  %v2052_v0 = vsel %vm8429_vm3, %v7443_v59, %v2051_v32  ;;  %v2053_v42 = vrot.slane %v2051_v32, 4 }
  0x52   : > { %v775_v52 = vsel %vm8312_vm11, %v767_v57, %v774_v14  ;;  %v780_v16 = vrot.slane %v779_v62, 4  ;;  %2752 = vst.msk [vmem:[#allocation3 + $0x24] sm:$0xf] %vm277_vm0, %v2052_v0  ;;  %v790_v48 = vrot.slane %v789_v40, 4  ;;  %v1280_v53 = vsel %vm8328_vm12, %v1278_v21, %v1279_v49 }
  0x53   : > { %v1192_v34 = vmax.bf16 %v775_v52, %v678_v27  ;;  %v1281_v17 = vrot.slane %v1279_v49, 4  ;;  %v1467_v18 = vor.u32 %v1466_v61, %v1465_v54  ;;  %v2055_v14 = vsel %vm8429_vm3, %v2053_v42, %v2054_v33 }
  0x54   : > { %v785_v37 = vsel %vm8312_vm11, %v780_v16, %v784_v51  ;;  %v1469_v57 = vrot.slane %v786_v39, 5  ;;  %v7459_v59 = vcombine.low %v2052_v0, %v2055_v14  ;;  %2753 = vst.msk [vmem:[#allocation3 + $0x28] sm:$0xf] %vm277_vm0, %v2055_v14  ;;  %v1194_v27 = vmax.bf16 %v790_v48, %v8296_v35  ;;  %v8475_v14 = vld [vmem:[#allocation3 + $0x6c] sm:$0x1] }
  0x55   : > { %v1403_v19 = vmax.bf16 %v1277_v20, %v1192_v34  ;;  %v1193_v52 = vmax.bf16 %v785_v37, %v8293_v28  ;;  %v1468_v58 = vrot.slane %v1467_v18, 4  ;;  %v1470_v32 = vrot.slane %v782_v3, 6 }
  0x56   : > { %v1475_v62 = vshll.u32 %v8419_v41, 16  ;;  %v1797_v54 = vrot.slane %v8293_v28, 6  ;;  %7730 = vmatprep.mubr.msk.bf16.mxu1 %vm2214_vm1, %v7459_v59  ;;  %v1405_v16 = vmax.bf16 %v1281_v17, %v1194_v27  ;;  %v1799_v39 = vrot.slane %v8296_v35, 6 }
  0x57   : > { %v1726_v61 = vmax.bf16 %v1467_v18, %v1403_v19  ;;  %v1404_v42 = vmax.bf16 %v1280_v53, %v1193_v52  ;;  %v1802_v0 = vrot.slane %v8419_v41, 6  ;;  %v1471_v20 = vor.u32 %v1470_v32, %v1469_v57  ;;  %v8473_v53 = vld [vmem:[#allocation3 + $0x60] sm:$0xf] }
  0x58   : > { %v1477_v34 = vrot.slane %v1475_v62, 6  ;;  %v1798_v33 = vrot.slane %v1797_v54, 4  ;;  %v1801_v21 = vrot.slane %v1799_v39, 4  ;;  %v11767_v3 = vmax.bf16 %v8214_v25, %v8210_v23 }
  0x59   : > { %v1953_v51 = vmax.bf16 %v1797_v54, %v1726_v61  ;;  %v11768_v28 = vmax.bf16 %v8217_v29, %v8212_v24  ;;  %v797_v17 = vshll.u32 %v8299_v36, 16  ;;  %v1472_v35 = vsel %vm8351_vm14, %v1468_v58, %v1471_v20 }
  0x5a   : > { %v554_v18 = vmax.bf16 %v11767_v3, %v8219_v30  ;;  %v1473_v41 = vrot.slane %v1471_v20, 4  ;;  %v1800_v40 = vsel %vm8363_vm15, %v1798_v33, %v1799_v39  ;;  %v1727_v23 = vmax.bf16 %v1472_v35, %v1404_v42 }
  0x5b   : > { %v557_v49 = vmax.bf16 %v11768_v28, %v8221_v31  ;;  %v7444_v48 = vrot.slane %v1953_v51, 11  ;;  %v1803_v37 = vsel %vm8363_vm15, %v1801_v21, %v1802_v0  ;;  %v799_v59 = vrot.slane %v797_v17, 5 }
  0x5c   : > { %v618_v24 = vmax.bf16 %v554_v18, %v8386_v15  ;;  %v1478_v57 = vsel %vm8351_vm14, %v1473_v41, %v1477_v34  ;;  %v801_v52 = vshrl.u32 %v8299_v36, 16  ;;  %v807_v27 = vshll.u32 %v8308_v46, 16 }
  0x5d   : > { %v621_v19 = vmax.bf16 %v557_v49, %v8400_v56  ;;  %v1728_v58 = vmax.bf16 %v1478_v57, %v1405_v16  ;;  %v1954_v32 = vmax.bf16 %v1800_v40, %v1727_v23  ;;  %v811_v39 = vshrl.u32 %v8308_v46, 16 }
  0x5e   : > { %v682_v62 = vmax.bf16 %v618_v24, %v8473_v53  ;;  %v803_v54 = vrot.slane %v801_v52, 4  ;;  %v809_v42 = vrot.slane %v807_v27, 5  ;;  %v1282_v0 = vrot.slane %v8299_v36, 5 }
  0x5f   : > { %v685_v61 = vmax.bf16 %v621_v19, %v8475_v14  ;;  %v1955_v20 = vmax.bf16 %v1803_v37, %v1728_v58  ;;  %v2058_v33 = vrot.slane %v1954_v32, 7  ;;  %v1284_v51 = vrot.slane %v8308_v46, 5 }
  0x60   : > { %v792_v34 = vshrl.u32 %v682_v62, 16  ;;  %v804_v21 = vor.u32 %v803_v54, %v799_v59  ;;  %v813_v3 = vrot.slane %v811_v39, 4  ;;  %v1283_v18 = vrot.slane %v1282_v0, 4 }
  0x61   : > { %v1479_v16 = vrot.slane %v801_v52, 5  ;;  %v2059_v28 = vsel %vm8429_vm3, %v7444_v48, %v2058_v33  ;;  %v2060_v49 = vrot.slane %v2058_v33, 4  ;;  %v2061_v35 = vrot.slane %v1955_v20, 7 }
  0x62   : > { %v800_v41 = vsel %vm8312_vm11, %v792_v34, %v799_v59  ;;  %2754 = vst.msk [vmem:[#allocation3 + $0x34] sm:$0xf] %vm277_vm0, %v2059_v28  ;;  %v805_v40 = vrot.slane %v804_v21, 4  ;;  %v814_v23 = vor.u32 %v813_v3, %v809_v42  ;;  %v1285_v24 = vsel %vm8328_vm12, %v1283_v18, %v1284_v51 }
  0x63   : > { %v1195_v37 = vmax.bf16 %v800_v41, %v682_v62  ;;  %v2062_v19 = vsel %vm8429_vm3, %v2060_v49, %v2061_v35  ;;  %v1286_v57 = vrot.slane %v1284_v51, 4  ;;  %v1480_v52 = vrot.slane %v797_v17, 6 }
  0x64   : > { %v1483_v58 = vrot.slane %v811_v39, 5  ;;  %v7460_v48 = vcombine.low %v2059_v28, %v2062_v19  ;;  %2755 = vst.msk [vmem:[#allocation3 + $0x38] sm:$0xf] %vm277_vm0, %v2062_v19  ;;  %v810_v59 = vsel %vm8312_vm11, %v805_v40, %v809_v42  ;;  %v815_v32 = vrot.slane %v814_v23, 4 }
  0x65   : > { %v1406_v54 = vmax.bf16 %v1282_v0, %v1195_v37  ;;  %v1196_v20 = vmax.bf16 %v810_v59, %v8299_v36  ;;  %v1481_v62 = vor.u32 %v1480_v52, %v1479_v16  ;;  %v1484_v33 = vrot.slane %v807_v27, 6  ;;  %v8523_v52 = vld [vmem:[#allocation3 + $0x7c] sm:$0x1] }
  0x66   : > { %v1489_v34 = vshll.u32 %v685_v61, 16  ;;  %7731 = vmatmul.mubr.msk.bf16.vlgmr.msra.gmra.mrb[0].mxu1 %vm2214_vm1, %v7460_v48  ;;  %v1197_v21 = vmax.bf16 %v815_v32, %v8308_v46  ;;  %v1804_v17 = vrot.slane %v8299_v36, 6  ;;  %v1806_v39 = vrot.slane %v8308_v46, 6 }
  0x67   : > { %v1809_v51 = vrot.slane %v685_v61, 6  ;;  %v1407_v3 = vmax.bf16 %v1285_v24, %v1196_v20  ;;  %v1482_v18 = vrot.slane %v1481_v62, 4  ;;  %v1485_v28 = vor.u32 %v1484_v33, %v1483_v58  ;;  %v8536_v33 = vld [vmem:[#allocation3 + $0x78] sm:$0xf] }
  0x68   : > { %v1491_v42 = vrot.slane %v1489_v34, 6  ;;  %v1408_v49 = vmax.bf16 %v1286_v57, %v1197_v21  ;;  %v1729_v0 = vmax.bf16 %v1481_v62, %v1406_v54  ;;  %v1805_v35 = vrot.slane %v1804_v17, 4  ;;  %v8521_v57 = vld [vmem:[#allocation3 + $0x70] sm:$0xf]  ;;  %v8534_v62 = vld [vmem:[#allocation3 + $0x74] sm:$0xf] }
  0x69   : > { %v1808_v41 = vrot.slane %v1806_v39, 4  ;;  %v1486_v27 = vsel %vm8351_vm14, %v1482_v18, %v1485_v28  ;;  %v1487_v16 = vrot.slane %v1485_v28, 4  ;;  %v495_v40 = vmax.bf16 %v8241_v44, %v8230_v38 }
  0x6a   : > { %v11769_v36 = vmax.bf16 %v8219_v30, %v8214_v25  ;;  %v1730_v61 = vmax.bf16 %v1486_v27, %v1407_v3  ;;  %v1807_v23 = vsel %vm8363_vm15, %v1805_v35, %v1806_v39  ;;  %v1956_v24 = vmax.bf16 %v1804_v17, %v1729_v0 }
  0x6b   : > { %v1810_v37 = vsel %vm8363_vm15, %v1808_v41, %v1809_v51  ;;  %v1492_v19 = vsel %vm8351_vm14, %v1487_v16, %v1491_v42  ;;  %v559_v38 = vmax.bf16 %v495_v40, %v8246_v50  ;;  %v11770_v25 = vmax.bf16 %v8243_v45, %v8239_v43 }
  0x6c   : > { %v558_v46 = vmax.bf16 %v11769_v36, %v8386_v15  ;;  %v11771_v48 = vmax.bf16 %v8221_v31, %v8217_v29  ;;  %v1731_v32 = vmax.bf16 %v1492_v19, %v1408_v49  ;;  %v1957_v54 = vmax.bf16 %v1807_v23, %v1730_v61 }
  0x6d   : > { %v560_v58 = vmax.bf16 %v11770_v25, %v8252_v55  ;;  %v7445_v20 = vrot.slane %v1956_v24, 11  ;;  %v623_v21 = vmax.bf16 %v559_v38, %v8258_v60  ;;  %v500_v0 = vmax.bf16 %v8252_v55, %v8243_v45 }
  0x6e   : > { %v561_v59 = vmax.bf16 %v11771_v48, %v8400_v56  ;;  %v622_v34 = vmax.bf16 %v558_v46, %v8473_v53  ;;  %v1958_v29 = vmax.bf16 %v1810_v37, %v1731_v32  ;;  %v2065_v51 = vrot.slane %v1957_v54, 7 }
  0x6f   : > { %v624_v17 = vmax.bf16 %v560_v58, %v8264_v1  ;;  %v687_v28 = vmax.bf16 %v623_v21, %v8534_v62 }
  0x70   : > { %v625_v43 = vmax.bf16 %v561_v59, %v8475_v14  ;;  %v686_v3 = vmax.bf16 %v622_v34, %v8521_v57  ;;  %v2066_v35 = vsel %vm8429_vm3, %v7445_v20, %v2065_v51  ;;  %v2067_v41 = vrot.slane %v2065_v51, 4 }
  0x71   : > { %v688_v42 = vmax.bf16 %v624_v17, %v8536_v33  ;;  %v2068_v27 = vrot.slane %v1958_v29, 7  ;;  %2756 = vst.msk [vmem:[#allocation3 + $0x44] sm:$0xf] %vm277_vm0, %v2066_v35  ;;  %v822_v40 = vshll.u32 %v687_v28, 16  ;;  %v826_v36 = vshrl.u32 %v687_v28, 16 }
  0x72   : > { %v689_v49 = vmax.bf16 %v625_v43, %v8523_v52  ;;  %v817_v16 = vshrl.u32 %v686_v3, 16  ;;  %v1287_v37 = vrot.slane %v687_v28, 5  ;;  %v1811_v18 = vrot.slane %v687_v28, 6 }
  0x73   : > { %v832_v46 = vshll.u32 %v688_v42, 16  ;;  %v836_v61 = vshrl.u32 %v688_v42, 16  ;;  %v2069_v23 = vsel %vm8429_vm3, %v2067_v41, %v2068_v27  ;;  %v1289_v24 = vrot.slane %v688_v42, 5 }
  0x74   : > { %v1503_v19 = vshll.u32 %v689_v49, 16  ;;  %v7461_v38 = vcombine.low %v2066_v35, %v2069_v23  ;;  %2757 = vst.msk [vmem:[#allocation3 + $0x48] sm:$0xf] %vm277_vm0, %v2069_v23  ;;  %v824_v45 = vrot.slane %v822_v40, 5  ;;  %v828_v25 = vrot.slane %v826_v36, 4 }
  0x75   : > { %v834_v58 = vrot.slane %v832_v46, 5  ;;  %v838_v48 = vrot.slane %v836_v61, 4  ;;  %v1288_v59 = vrot.slane %v1287_v37, 4  ;;  %v1291_v32 = vrot.slane %v1289_v24, 4 }
  0x76   : > { %v1493_v54 = vrot.slane %v826_v36, 5  ;;  %7734 = vmatprep.mubr.msk.bf16.mxu1 %vm2214_vm1, %v7461_v38  ;;  %v825_v20 = vsel %vm8312_vm11, %v817_v16, %v824_v45  ;;  %v829_v34 = vor.u32 %v828_v25, %v824_v45  ;;  %v1494_v21 = vrot.slane %v822_v40, 6  ;;  %v368_v16 = vld [vmem:[%s11667_s1] sm:$0x1] }
  0x77   : > { %v1497_v17 = vrot.slane %v836_v61, 5  ;;  %v839_v43 = vor.u32 %v838_v48, %v834_v58  ;;  %v1198_v29 = vmax.bf16 %v825_v20, %v686_v3  ;;  %v1290_v51 = vsel %vm8328_vm12, %v1288_v59, %v1289_v24  ;;  %7961 = vmatprep.subr.msk.bf16.mxu1 %vm2046_vm2, %v368_v16 }
  0x78   : > { %v1498_v35 = vrot.slane %v832_v46, 6  ;;  %v830_v41 = vrot.slane %v829_v34, 4  ;;  %v1495_v27 = vor.u32 %v1494_v21, %v1493_v54  ;;  %v1505_v23 = vrot.slane %v1503_v19, 6 }
  0x79   : > { %v840_v39 = vrot.slane %v839_v43, 4  ;;  %v1409_v36 = vmax.bf16 %v1287_v37, %v1198_v29  ;;  %v1813_v38 = vrot.slane %v688_v42, 6  ;;  %v1812_v61 = vrot.slane %v1811_v18, 4 }
  0x7a   : > { %v1499_v12 = vor.u32 %v1498_v35, %v1497_v17  ;;  %v835_v40 = vsel %vm8312_vm11, %v830_v41, %v834_v58  ;;  %v1496_v3 = vrot.slane %v1495_v27, 4  ;;  %v1816_v45 = vrot.slane %v689_v49, 6  ;;  %v8591_v17 = vld [vmem:[%s8153_s24 + $0x60] sm:$0xf]  ;;  %v8595_v35 = vld [vmem:[#allocation3 + $0x88] sm:$0xf] }
  0x7b   : > { %v1199_v46 = vmax.bf16 %v835_v40, %v687_v28  ;;  %v1200_v24 = vmax.bf16 %v840_v39, %v688_v42  ;;  %v1732_v25 = vmax.bf16 %v1495_v27, %v1409_v36  ;;  %v1814_v48 = vsel %vm8363_vm15, %v1812_v61, %v1813_v38  ;;  %v8579_v42 = vld [vmem:[#allocation3 + $0x80] sm:$0xf]  ;;  %11774 = vst [vmem:[#allocation28_spill] sm:$0xff] %v8591_v17  ;;  %v8600_v41 = vld [vmem:[#allocation3 + $0x8c] sm:$0x1] }
  0x7c   : > { %v1501_v19 = vrot.slane %v1499_v12, 4  ;;  %v1500_v37 = vsel %vm8351_vm14, %v1496_v3, %v1499_v12  ;;  %v1815_v59 = vrot.slane %v1813_v38, 4  ;;  %v501_v58 = vmax.bf16 %v8400_v56, %v8221_v31  ;;  %394 = vst.msk [vmem:[#allocation3 + $0xe4] sm:$0xf] %vm277_vm0, %v8591_v17 }
  0x7d   : > { %v1410_v54 = vmax.bf16 %v1290_v51, %v1199_v46  ;;  %v1411_v20 = vmax.bf16 %v1291_v32, %v1200_v24  ;;  %v1959_v28 = vmax.bf16 %v1811_v18, %v1732_v25  ;;  %v11772_v12 = vmax.bf16 %v8386_v15, %v8219_v30  ;;  %v8593_v51 = vld [vmem:[#allocation3 + $0x84] sm:$0xf] }
  0x7e   : > { %v1506_v49 = vsel %vm8351_vm14, %v1501_v19, %v1505_v23  ;;  %v1817_v39 = vsel %vm8363_vm15, %v1815_v59, %v1816_v45  ;;  %v11773_v31 = vmax.bf16 %v8246_v50, %v8241_v44  ;;  %v564_v32 = vmax.bf16 %v500_v0, %v8264_v1  ;;  %v8616_v24 = vld [vmem:[%s8153_s24 + $0x64] sm:$0xf] }
  0x7f   : > { %v562_v34 = vmax.bf16 %v11772_v12, %v8473_v53  ;;  %v1733_v18 = vmax.bf16 %v1500_v37, %v1410_v54  ;;  %v1734_v43 = vmax.bf16 %v1506_v49, %v1411_v20  ;;  %v7446_v29 = vrot.slane %v1959_v28, 11  ;;  %11775 = vst [vmem:[#allocation29_spill] sm:$0xff] %v8616_v24  ;;  %395 = vst.msk [vmem:[#allocation3 + $0xe8] sm:$0xf] %vm277_vm0, %v8616_v24 }
  0x80   : > { %v563_v21 = vmax.bf16 %v11773_v31, %v8258_v60  ;;  %v565_v30 = vmax.bf16 %v501_v58, %v8475_v14  ;;  %v628_v27 = vmax.bf16 %v564_v32, %v8536_v33 }
  0x81   : > { %v626_v44 = vmax.bf16 %v562_v34, %v8521_v57  ;;  %v1960_v36 = vmax.bf16 %v1814_v48, %v1733_v18  ;;  %v1961_v38 = vmax.bf16 %v1817_v39, %v1734_v43 }
  0x82   : > { %v627_v0 = vmax.bf16 %v563_v21, %v8534_v62  ;;  %v629_v16 = vmax.bf16 %v565_v30, %v8523_v52  ;;  %v692_v45 = vmax.bf16 %v628_v27, %v8595_v35 }
  0x83   : > { %v690_v3 = vmax.bf16 %v626_v44, %v8579_v42  ;;  %v2072_v19 = vrot.slane %v1960_v36, 7  ;;  %v2075_v25 = vrot.slane %v1961_v38, 7 }
  0x84   : > { %v691_v61 = vmax.bf16 %v627_v0, %v8593_v51  ;;  %v693_v37 = vmax.bf16 %v629_v16, %v8600_v41  ;;  %v857_v20 = vshll.u32 %v692_v45, 16  ;;  %v861_v39 = vshrl.u32 %v692_v45, 16 }
  0x85   : > { %v842_v59 = vshrl.u32 %v690_v3, 16  ;;  %v2073_v49 = vsel %vm8429_vm3, %v7446_v29, %v2072_v19  ;;  %v2074_v28 = vrot.slane %v2072_v19, 4  ;;  %v1294_v32 = vrot.slane %v692_v45, 5 }
  0x86   : > { %v847_v58 = vshll.u32 %v691_v61, 16  ;;  %v851_v54 = vshrl.u32 %v691_v61, 16  ;;  %v1292_v12 = vrot.slane %v691_v61, 5  ;;  %2758 = vst.msk [vmem:[#allocation3 + $0x54] sm:$0xf] %vm277_vm0, %v2073_v49  ;;  %v859_v21 = vrot.slane %v857_v20, 5 }
  0x87   : > { %v2076_v18 = vsel %vm8429_vm3, %v2074_v28, %v2075_v25  ;;  %v863_v43 = vrot.slane %v861_v39, 4  ;;  %v1296_v36 = vrot.slane %v1294_v32, 4  ;;  %v1511_v28 = vrot.slane %v861_v39, 5 }
  0x88   : > { %v849_v34 = vrot.slane %v847_v58, 5  ;;  %v853_v31 = vrot.slane %v851_v54, 4  ;;  %v1293_v30 = vrot.slane %v1292_v12, 4  ;;  %v1507_v44 = vrot.slane %v851_v54, 5  ;;  %2759 = vst.msk [vmem:[#allocation3 + $0x58] sm:$0xf] %vm277_vm0, %v2076_v18 }
  0x89   : > { %v7462_v0 = vcombine.low %v2073_v49, %v2076_v18  ;;  %v864_v38 = vor.u32 %v863_v43, %v859_v21  ;;  %v1508_v48 = vrot.slane %v847_v58, 6  ;;  %v1512_v46 = vrot.slane %v857_v20, 6 }
  0x8a   : > { %v850_v29 = vsel %vm8312_vm11, %v842_v59, %v849_v34  ;;  %v854_v27 = vor.u32 %v853_v31, %v849_v34  ;;  %v1295_v19 = vsel %vm8328_vm12, %v1293_v30, %v1294_v32  ;;  %v1517_v54 = vshll.u32 %v693_v37, 16 }
  0x8b   : > { %v1201_v16 = vmax.bf16 %v850_v29, %v690_v3  ;;  %7735 = vmatmul.mubr.msk.bf16.gmra.mrb[4].mxu1 %vm2214_vm1, %v7462_v0  ;;  %v865_v49 = vrot.slane %v864_v38, 4  ;;  %v1509_v18 = vor.u32 %v1508_v48, %v1507_v44  ;;  %v1818_v23 = vrot.slane %v691_v61, 6  ;;  %v8648_v38 = vld [vmem:[#allocation3 + $0x90] sm:$0xf] }
  0x8c   : > { %v855_v25 = vrot.slane %v854_v27, 4  ;;  %v1513_v34 = vor.u32 %v1512_v46, %v1511_v28  ;;  %v1519_v31 = vrot.slane %v1517_v54, 6  ;;  %v1820_v3 = vrot.slane %v692_v45, 6 }
  0x8d   : > { %v1412_v40 = vmax.bf16 %v1292_v12, %v1201_v16  ;;  %v1203_v29 = vmax.bf16 %v865_v49, %v692_v45  ;;  %v1510_v32 = vrot.slane %v1509_v18, 4  ;;  %v1819_v0 = vrot.slane %v1818_v23, 4 }
  0x8e   : > { %v860_v59 = vsel %vm8312_vm11, %v855_v25, %v859_v21  ;;  %v1515_v30 = vrot.slane %v1513_v34, 4  ;;  %v1822_v27 = vrot.slane %v1820_v3, 4  ;;  %v1823_v39 = vrot.slane %v693_v37, 6 }
  0x8f   : > { %v1202_v43 = vmax.bf16 %v860_v59, %v691_v61  ;;  %v1735_v58 = vmax.bf16 %v1509_v18, %v1412_v40  ;;  %v1414_v17 = vmax.bf16 %v1296_v36, %v1203_v29  ;;  %v1514_v48 = vsel %vm8351_vm14, %v1510_v32, %v1513_v34  ;;  %v8667_v59 = vld [vmem:[#allocation3 + $0x98] sm:$0xf]  ;;  %v8669_v34 = vld [vmem:[#allocation3 + $0x9c] sm:$0x1] }
  0x90   : > { %v1520_v21 = vsel %vm8351_vm14, %v1515_v30, %v1519_v31  ;;  %v1821_v46 = vsel %vm8363_vm15, %v1819_v0, %v1820_v3  ;;  %v1824_v61 = vsel %vm8363_vm15, %v1822_v27, %v1823_v39  ;;  %v11776_v40 = vmax.bf16 %v8473_v53, %v8386_v15  ;;  %v8683_v0 = vld [vmem:[%s8153_s24 + $0x68] sm:$0xf] }
  0x91   : > { %v1413_v20 = vmax.bf16 %v1295_v19, %v1202_v43  ;;  %v1962_v12 = vmax.bf16 %v1818_v23, %v1735_v58  ;;  %v1737_v44 = vmax.bf16 %v1520_v21, %v1414_v17  ;;  %v11777_v23 = vmax.bf16 %v8258_v60, %v8246_v50  ;;  %v8654_v19 = vld [vmem:[#allocation3 + $0x94] sm:$0xf]  ;;  %11780 = vst [vmem:[#allocation30_spill] sm:$0xff] %v8683_v0 }
  0x92   : > { %v566_v45 = vmax.bf16 %v11776_v40, %v8521_v57  ;;  %v11778_v25 = vmax.bf16 %v8264_v1, %v8252_v55  ;;  %v11779_v15 = vmax.bf16 %v8475_v14, %v8400_v56  ;;  %v506_v49 = vmax.bf16 %v8521_v57, %v8473_v53  ;;  %396 = vst.msk [vmem:[#allocation3 + $0xf4] sm:$0xf] %vm277_vm0, %v8683_v0 }
  0x93   : > { %v1736_v37 = vmax.bf16 %v1514_v48, %v1413_v20  ;;  %v7447_v36 = vrot.slane %v1962_v12, 11  ;;  %v567_v16 = vmax.bf16 %v11777_v23, %v8534_v62  ;;  %v1964_v18 = vmax.bf16 %v1824_v61, %v1737_v44 }
  0x94   : > { %v568_v28 = vmax.bf16 %v11778_v25, %v8536_v33  ;;  %v569_v17 = vmax.bf16 %v11779_v15, %v8523_v52  ;;  %v630_v54 = vmax.bf16 %v566_v45, %v8579_v42  ;;  %v8688_v48 = vmax.bf16 %v506_v49, %v8579_v42  ;;  %v8698_v15 = vld [vmem:[%s8153_s24 + $0x6c] sm:$0xf] }
  0x95   : > { %v1963_v50 = vmax.bf16 %v1821_v46, %v1736_v37  ;;  %v631_v55 = vmax.bf16 %v567_v16, %v8593_v51  ;;  %v2082_v32 = vrot.slane %v1964_v18, 7  ;;  %11781 = vst [vmem:[#allocation31_spill] sm:$0xff] %v8698_v15  ;;  %397 = vst.msk [vmem:[#allocation3 + $0xf8] sm:$0xf] %vm277_vm0, %v8698_v15 }
  0x96   : > { %v632_v56 = vmax.bf16 %v568_v28, %v8595_v35  ;;  %v633_v3 = vmax.bf16 %v569_v17, %v8600_v41  ;;  %v694_v43 = vmax.bf16 %v630_v54, %v8648_v38 }
  0x97   : > { %v2079_v29 = vrot.slane %v1963_v50, 7  ;;  %v695_v58 = vmax.bf16 %v631_v55, %v8654_v19 }
  0x98   : > { %v696_v27 = vmax.bf16 %v632_v56, %v8667_v59  ;;  %v697_v39 = vmax.bf16 %v633_v3, %v8669_v34  ;;  %v867_v20 = vshrl.u32 %v694_v43, 16 }
  0x99   : > { %v2080_v12 = vsel %vm8429_vm3, %v7447_v36, %v2079_v29  ;;  %v2081_v21 = vrot.slane %v2079_v29, 4  ;;  %v872_v46 = vshll.u32 %v695_v58, 16  ;;  %v876_v61 = vshrl.u32 %v695_v58, 16 }
  0x9a   : > { %2760 = vst.msk [vmem:[#allocation3 + $0x64] sm:$0xf] %vm277_vm0, %v2080_v12  ;;  %v882_v40 = vshll.u32 %v696_v27, 16  ;;  %v886_v45 = vshrl.u32 %v696_v27, 16  ;;  %v1297_v37 = vrot.slane %v695_v58, 5  ;;  %v1299_v44 = vrot.slane %v696_v27, 5 }
  0x9b   : > { %v2083_v23 = vsel %vm8429_vm3, %v2081_v21, %v2082_v32  ;;  %v874_v16 = vrot.slane %v872_v46, 5  ;;  %v878_v25 = vrot.slane %v876_v61, 4  ;;  %v1521_v28 = vrot.slane %v876_v61, 5 }
  0x9c   : > { %v7463_v17 = vcombine.low %v2080_v12, %v2083_v23  ;;  %2761 = vst.msk [vmem:[#allocation3 + $0x68] sm:$0xf] %vm277_vm0, %v2083_v23  ;;  %v884_v36 = vrot.slane %v882_v40, 5  ;;  %v888_v54 = vrot.slane %v886_v45, 4  ;;  %v1298_v49 = vrot.slane %v1297_v37, 4 }
  0x9d   : > { %v875_v50 = vsel %vm8312_vm11, %v867_v20, %v874_v16  ;;  %v879_v18 = vor.u32 %v878_v25, %v874_v16  ;;  %v1301_v55 = vrot.slane %v1299_v44, 4  ;;  %v1522_v56 = vrot.slane %v872_v46, 6 }
  0x9e   : > { %7738 = vmatprep.mubr.msk.bf16.mxu1 %vm2214_vm1, %v7463_v17  ;;  %v889_v3 = vor.u32 %v888_v54, %v884_v36  ;;  %v1204_v29 = vmax.bf16 %v875_v50, %v694_v43  ;;  %v1300_v32 = vsel %vm8328_vm12, %v1298_v49, %v1299_v44  ;;  %v1525_v12 = vrot.slane %v886_v45, 5 }
  0x9f   : > { %v880_v21 = vrot.slane %v879_v18, 4  ;;  %v1523_v61 = vor.u32 %v1522_v56, %v1521_v28  ;;  %v1526_v23 = vrot.slane %v882_v40, 6  ;;  %v1531_v30 = vshll.u32 %v697_v39, 16 }
  0xa0   : > { %v890_v53 = vrot.slane %v889_v3, 4  ;;  %v1415_v31 = vmax.bf16 %v1297_v37, %v1204_v29  ;;  %v1825_v0 = vrot.slane %v695_v58, 6  ;;  %v1827_v15 = vrot.slane %v696_v27, 6  ;;  %v8728_v3 = vld [vmem:[#allocation3 + $0xa4] sm:$0xf] }
  0xa1   : > { %v885_v20 = vsel %vm8312_vm11, %v880_v21, %v884_v36  ;;  %v1524_v46 = vrot.slane %v1523_v61, 4  ;;  %v1527_v16 = vor.u32 %v1526_v23, %v1525_v12  ;;  %v1533_v25 = vrot.slane %v1531_v30, 6  ;;  %v8730_v29 = vld [vmem:[#allocation3 + $0xa8] sm:$0xf]  ;;  %v8736_v21 = vld [vmem:[#allocation3 + $0xac] sm:$0x1] }
  0xa2   : > { %v1205_v17 = vmax.bf16 %v885_v20, %v695_v58  ;;  %v1206_v43 = vmax.bf16 %v890_v53, %v696_v27  ;;  %v1738_v54 = vmax.bf16 %v1523_v61, %v1415_v31  ;;  %v1826_v50 = vrot.slane %v1825_v0, 4  ;;  %v8718_v31 = vld [vmem:[#allocation3 + $0xa0] sm:$0xf] }
  0xa3   : > { %v1528_v45 = vsel %vm8351_vm14, %v1524_v46, %v1527_v16  ;;  %v1529_v44 = vrot.slane %v1527_v16, 4  ;;  %v1829_v40 = vrot.slane %v1827_v15, 4  ;;  %v1830_v28 = vrot.slane %v697_v39, 6 }
  0xa4   : > { %v1416_v49 = vmax.bf16 %v1300_v32, %v1205_v17  ;;  %v1417_v37 = vmax.bf16 %v1301_v55, %v1206_v43  ;;  %v1828_v18 = vsel %vm8363_vm15, %v1826_v50, %v1827_v15  ;;  %v1965_v56 = vmax.bf16 %v1825_v0, %v1738_v54 }
  0xa5   : > { %v1534_v36 = vsel %vm8351_vm14, %v1529_v44, %v1533_v25  ;;  %v1831_v53 = vsel %vm8363_vm15, %v1829_v40, %v1830_v28  ;;  %v11782_v58 = vmax.bf16 %v8534_v62, %v8258_v60  ;;  %v11783_v27 = vmax.bf16 %v8536_v33, %v8264_v1 }
  0xa6   : > { %v1739_v15 = vmax.bf16 %v1528_v45, %v1416_v49  ;;  %v1740_v0 = vmax.bf16 %v1534_v36, %v1417_v37  ;;  %v7448_v55 = vrot.slane %v1965_v56, 11  ;;  %v11784_v32 = vmax.bf16 %v8523_v52, %v8475_v14 }
  0xa7   : > { %v571_v30 = vmax.bf16 %v11782_v58, %v8593_v51  ;;  %v572_v39 = vmax.bf16 %v11783_v27, %v8595_v35  ;;  %v634_v60 = vmax.bf16 %v8688_v48, %v8648_v38  ;;  %v510_v23 = vmax.bf16 %v8579_v42, %v8521_v57 }
  0xa8   : > { %v573_v12 = vmax.bf16 %v11784_v32, %v8600_v41  ;;  %v1966_v20 = vmax.bf16 %v1828_v18, %v1739_v15  ;;  %v1967_v46 = vmax.bf16 %v1831_v53, %v1740_v0  ;;  %v11787_v57 = vmax.bf16 %v8600_v41, %v8523_v52 }
  0xa9   : > { %v635_v1 = vmax.bf16 %v571_v30, %v8654_v19  ;;  %v636_v61 = vmax.bf16 %v572_v39, %v8667_v59  ;;  %v698_v25 = vmax.bf16 %v634_v60, %v8718_v31 }
  0xaa   : > { %v637_v16 = vmax.bf16 %v573_v12, %v8669_v34  ;;  %v2086_v54 = vrot.slane %v1966_v20, 7  ;;  %v2089_v50 = vrot.slane %v1967_v46, 7 }
  0xab   : > { %v699_v17 = vmax.bf16 %v635_v1, %v8728_v3  ;;  %v700_v48 = vmax.bf16 %v636_v61, %v8730_v29  ;;  %v892_v40 = vshrl.u32 %v698_v25, 16 }
  0xac   : > { %v701_v45 = vmax.bf16 %v637_v16, %v8736_v21  ;;  %v2087_v18 = vsel %vm8429_vm3, %v7448_v55, %v2086_v54  ;;  %v2088_v56 = vrot.slane %v2086_v54, 4 }
  0xad   : > { %v897_v28 = vshll.u32 %v699_v17, 16  ;;  %v901_v49 = vshrl.u32 %v699_v17, 16  ;;  %v907_v37 = vshll.u32 %v700_v48, 16  ;;  %v911_v36 = vshrl.u32 %v700_v48, 16  ;;  %2762 = vst.msk [vmem:[#allocation3 + $0x74] sm:$0xf] %vm277_vm0, %v2087_v18 }
  0xae   : > { %v1302_v53 = vrot.slane %v699_v17, 5  ;;  %v1304_v39 = vrot.slane %v700_v48, 5  ;;  %v2090_v15 = vsel %vm8429_vm3, %v2088_v56, %v2089_v50  ;;  %v1832_v14 = vrot.slane %v699_v17, 6 }
  0xaf   : > { %v899_v58 = vrot.slane %v897_v28, 5  ;;  %v903_v30 = vrot.slane %v901_v49, 4  ;;  %v909_v27 = vrot.slane %v907_v37, 5  ;;  %v913_v0 = vrot.slane %v911_v36, 4  ;;  %2763 = vst.msk [vmem:[#allocation3 + $0x78] sm:$0xf] %vm277_vm0, %v2090_v15 }
  0xb0   : > { %v1303_v32 = vrot.slane %v1302_v53, 4  ;;  %v1535_v12 = vrot.slane %v901_v49, 5  ;;  %v7464_v60 = vcombine.low %v2087_v18, %v2090_v15  ;;  %v1306_v61 = vrot.slane %v1304_v39, 4 }
  0xb1   : > { %v900_v55 = vsel %vm8312_vm11, %v892_v40, %v899_v58  ;;  %v904_v1 = vor.u32 %v903_v30, %v899_v58  ;;  %v914_v20 = vor.u32 %v913_v0, %v909_v27  ;;  %v1536_v54 = vrot.slane %v897_v28, 6 }
  0xb2   : > { %v1207_v46 = vmax.bf16 %v900_v55, %v698_v25  ;;  %v1305_v16 = vsel %vm8328_vm12, %v1303_v32, %v1304_v39  ;;  %7739 = vmatmul.mubr.msk.bf16.gmra.mrb[8].mxu1 %vm2214_vm1, %v7464_v60  ;;  %v1539_v56 = vrot.slane %v911_v36, 5  ;;  %v1540_v44 = vrot.slane %v907_v37, 6  ;;  %v7991_v36 = vld [vmem:[%s11667_s1] ss:$0 sps:$4 sm:$0x44]  }
  0xb3   : > { %v905_v50 = vrot.slane %v904_v1, 4  ;;  %v1545_v49 = vshll.u32 %v701_v45, 16  ;;  %v915_v18 = vrot.slane %v914_v20, 4  ;;  %v1537_v15 = vor.u32 %v1536_v54, %v1535_v12 }
  0xb4   : > { %v1418_v43 = vmax.bf16 %v1302_v53, %v1207_v46  ;;  %v1541_v58 = vor.u32 %v1540_v44, %v1539_v56  ;;  %v1834_v25 = vrot.slane %v700_v48, 6  ;;  %v1833_v32 = vrot.slane %v1832_v14, 4 }
  0xb5   : > { %v910_v40 = vsel %vm8312_vm11, %v905_v50, %v909_v27  ;;  %v1547_v30 = vrot.slane %v1545_v49, 6  ;;  %v1209_v55 = vmax.bf16 %v915_v18, %v700_v48  ;;  %v1538_v39 = vrot.slane %v1537_v15, 4  ;;  %v8789_v50 = vld [vmem:[#allocation3 + $0xb4] sm:$0xf] }
  0xb6   : > { %v1208_v0 = vmax.bf16 %v910_v40, %v699_v17  ;;  %v1741_v28 = vmax.bf16 %v1537_v15, %v1418_v43  ;;  %v1543_v37 = vrot.slane %v1541_v58, 4  ;;  %v1836_v60 = vrot.slane %v1834_v25, 4 }
  0xb7   : > { %v1837_v53 = vrot.slane %v701_v45, 6  ;;  %v1420_v1 = vmax.bf16 %v1306_v61, %v1209_v55  ;;  %v1542_v27 = vsel %vm8351_vm14, %v1538_v39, %v1541_v58  ;;  %v1835_v48 = vsel %vm8363_vm15, %v1833_v32, %v1834_v25 }
  0xb8   : > { %v1419_v12 = vmax.bf16 %v1305_v16, %v1208_v0  ;;  %v1968_v44 = vmax.bf16 %v1832_v14, %v1741_v28  ;;  %v1548_v17 = vsel %vm8351_vm14, %v1543_v37, %v1547_v30  ;;  %v574_v45 = vmax.bf16 %v510_v23, %v8648_v38  ;;  %v8783_v16 = vld [vmem:[#allocation3 + $0xb0] sm:$0xf]  ;;  %v8800_v30 = vld [vmem:[#allocation3 + $0xb8] sm:$0xf] }
  0xb9   : > { %v1838_v43 = vsel %vm8363_vm15, %v1836_v60, %v1837_v53  ;;  %v1743_v61 = vmax.bf16 %v1548_v17, %v1420_v1  ;;  %v11785_v14 = vmax.bf16 %v8593_v51, %v8534_v62  ;;  %v11786_v56 = vmax.bf16 %v8595_v35, %v8536_v33  ;;  %v8802_v62 = vld [vmem:[#allocation3 + $0xbc] sm:$0x1] }
  0xba   : > { %v1742_v20 = vmax.bf16 %v1542_v27, %v1419_v12  ;;  %v7449_v46 = vrot.slane %v1968_v44, 11  ;;  %v577_v23 = vmax.bf16 %v11787_v57, %v8669_v34  ;;  %v638_v18 = vmax.bf16 %v574_v45, %v8718_v31 }
  0xbb   : > { %v575_v54 = vmax.bf16 %v11785_v14, %v8654_v19  ;;  %v576_v49 = vmax.bf16 %v11786_v56, %v8667_v59  ;;  %v4580_v15 = vrot.slane %v7991_v36, 2  ;;  %v1970_v58 = vmax.bf16 %v1838_v43, %v1743_v61 }
  0xbc   : > { %v1969_v40 = vmax.bf16 %v1835_v48, %v1742_v20  ;;  %v641_v55 = vmax.bf16 %v577_v23, %v8736_v21  ;;  %v702_v52 = vmax.bf16 %v638_v18, %v8783_v16 }
  0xbd   : > { %v639_v25 = vmax.bf16 %v575_v54, %v8728_v3  ;;  %v640_v0 = vmax.bf16 %v576_v49, %v8730_v29  ;;  %7962 = vmatprep.subr.msk.bf16.mxu0 %vm2046_vm2, %v4580_v15  ;;  %v4630_v39 = vsel %vm2046_vm2, %v4580_v15, 0  ;;  %v2096_v36 = vrot.slane %v1970_v58, 7 }
  0xbe   : > { %v2093_v28 = vrot.slane %v1969_v40, 7  ;;  %7797 = vmatpush3.bf16.msra.mxu0 %v4630_v39  ;;  %v705_v53 = vmax.bf16 %v641_v55, %v8802_v62  ;;  %v917_v12 = vshrl.u32 %v702_v52, 16 }
  0xbf   : > { %v703_v37 = vmax.bf16 %v639_v25, %v8789_v50  ;;  %v704_v60 = vmax.bf16 %v640_v0, %v8800_v30 }
  0xc0   : > { %v2094_v27 = vsel %vm8429_vm3, %v7449_v46, %v2093_v28  ;;  %v2095_v44 = vrot.slane %v2093_v28, 4 }
  0xc1   : > { %v922_v17 = vshll.u32 %v703_v37, 16  ;;  %v926_v48 = vshrl.u32 %v703_v37, 16  ;;  %2764 = vst.msk [vmem:[#allocation3 + $0x84] sm:$0xf] %vm277_vm0, %v2094_v27  ;;  %v932_v43 = vshll.u32 %v704_v60, 16  ;;  %v936_v45 = vshrl.u32 %v704_v60, 16 }
  0xc2   : > { %v1307_v20 = vrot.slane %v703_v37, 5  ;;  %v1309_v61 = vrot.slane %v704_v60, 5  ;;  %v2097_v14 = vsel %vm8429_vm3, %v2095_v44, %v2096_v36  ;;  %v1839_v32 = vrot.slane %v703_v37, 6 }
  0xc3   : > { %v924_v54 = vrot.slane %v922_v17, 5  ;;  %v928_v56 = vrot.slane %v926_v48, 4  ;;  %v1549_v49 = vrot.slane %v926_v48, 5  ;;  %v7465_v57 = vcombine.low %v2094_v27, %v2097_v14  ;;  %2765 = vst.msk [vmem:[#allocation3 + $0x88] sm:$0xf] %vm277_vm0, %v2097_v14 }
  0xc4   : > { %v934_v23 = vrot.slane %v932_v43, 5  ;;  %v938_v46 = vrot.slane %v936_v45, 4  ;;  %v1308_v18 = vrot.slane %v1307_v20, 4  ;;  %v1311_v58 = vrot.slane %v1309_v61, 4 }
  0xc5   : > { %v925_v15 = vsel %vm8312_vm11, %v917_v12, %v924_v54  ;;  %v929_v40 = vor.u32 %v928_v56, %v924_v54  ;;  %v1550_v25 = vrot.slane %v922_v17, 6  ;;  %7742 = vmatprep.mubr.msk.bf16.mxu1 %vm2214_vm1, %v7465_v57  ;;  %v1553_v28 = vrot.slane %v936_v45, 5 }
  0xc6   : > { %v939_v0 = vor.u32 %v938_v46, %v934_v23  ;;  %v1210_v55 = vmax.bf16 %v925_v15, %v702_v52  ;;  %v1310_v39 = vsel %vm8328_vm12, %v1308_v18, %v1309_v61  ;;  %v1554_v44 = vrot.slane %v932_v43, 6 }
  0xc7   : > { %v930_v36 = vrot.slane %v929_v40, 4  ;;  %v1551_v27 = vor.u32 %v1550_v25, %v1549_v49  ;;  %v1559_v48 = vshll.u32 %v705_v53, 16  ;;  %v1841_v33 = vrot.slane %v704_v60, 6  ;;  %v8837_v25 = vld [vmem:[%s8153_s24 + $0x70] sm:$0xf] }
  0xc8   : > { %v940_v14 = vrot.slane %v939_v0, 4  ;;  %v1421_v1 = vmax.bf16 %v1307_v20, %v1210_v55  ;;  %v1555_v54 = vor.u32 %v1554_v44, %v1553_v28  ;;  %v1840_v61 = vrot.slane %v1839_v32, 4  ;;  %11788 = vst [vmem:[#allocation32_spill] sm:$0xff] %v8837_v25  ;;  %398 = vst.msk [vmem:[#allocation3 + $0x104] sm:$0xf] %vm277_vm0, %v8837_v25 }
  0xc9   : > { %v935_v12 = vsel %vm8312_vm11, %v930_v36, %v934_v23  ;;  %v1552_v17 = vrot.slane %v1551_v27, 4  ;;  %v1561_v56 = vrot.slane %v1559_v48, 6  ;;  %v1843_v49 = vrot.slane %v1841_v33, 4  ;;  %v8851_v55 = vld [vmem:[#allocation3 + $0xc0] sm:$0xf] }
  0xca   : > { %v1211_v52 = vmax.bf16 %v935_v12, %v703_v37  ;;  %v1212_v57 = vmax.bf16 %v940_v14, %v704_v60  ;;  %v1744_v46 = vmax.bf16 %v1551_v27, %v1421_v1  ;;  %v1557_v43 = vrot.slane %v1555_v54, 4  ;;  %v8857_v36 = vld [vmem:[#allocation3 + $0xc4] sm:$0xf]  ;;  %v8868_v14 = vld [vmem:[%s8153_s24 + $0x74] sm:$0xf] }
  0xcb   : > { %v1556_v45 = vsel %vm8351_vm14, %v1552_v17, %v1555_v54  ;;  %v1844_v18 = vrot.slane %v705_v53, 6  ;;  %v1842_v40 = vsel %vm8363_vm15, %v1840_v61, %v1841_v33  ;;  %v517_v1 = vmax.bf16 %v8669_v34, %v8600_v41  ;;  %11792 = vst [vmem:[#allocation33_spill] sm:$0xff] %v8868_v14  ;;  %v8872_v54 = vld [vmem:[#allocation3 + $0xcc] sm:$0x1]  ;;  %399 = vst.msk [vmem:[#allocation3 + $0x108] sm:$0xf] %vm277_vm0, %v8868_v14 }
  0xcc   : > { %v1422_v20 = vmax.bf16 %v1310_v39, %v1211_v52  ;;  %v1423_v15 = vmax.bf16 %v1311_v58, %v1212_v57  ;;  %v1971_v23 = vmax.bf16 %v1839_v32, %v1744_v46  ;;  %v1562_v37 = vsel %vm8351_vm14, %v1557_v43, %v1561_v56 }
  0xcd   : > { %v1845_v60 = vsel %vm8363_vm15, %v1843_v49, %v1844_v18  ;;  %v11789_v53 = vmax.bf16 %v8648_v38, %v8579_v42  ;;  %v11790_v39 = vmax.bf16 %v8654_v19, %v8593_v51  ;;  %v11791_v42 = vmax.bf16 %v8667_v59, %v8595_v35  ;;  %v8870_v51 = vld [vmem:[#allocation3 + $0xc8] sm:$0xf] }
  0xce   : > { %v1745_v33 = vmax.bf16 %v1556_v45, %v1422_v20  ;;  %v1746_v32 = vmax.bf16 %v1562_v37, %v1423_v15  ;;  %v7450_v0 = vrot.slane %v1971_v23, 11  ;;  %v581_v27 = vmax.bf16 %v517_v1, %v8736_v21 }
  0xcf   : > { %v578_v58 = vmax.bf16 %v11789_v53, %v8718_v31  ;;  %v579_v28 = vmax.bf16 %v11790_v39, %v8728_v3  ;;  %v580_v41 = vmax.bf16 %v11791_v42, %v8730_v29  ;;  %v518_v48 = vmax.bf16 %v8718_v31, %v8648_v38 }
  0xd0   : > { %v1972_v12 = vmax.bf16 %v1842_v40, %v1745_v33  ;;  %v1973_v17 = vmax.bf16 %v1845_v60, %v1746_v32  ;;  %v645_v38 = vmax.bf16 %v581_v27, %v8802_v62 }
  0xd1   : > { %v642_v44 = vmax.bf16 %v578_v58, %v8783_v16  ;;  %v643_v56 = vmax.bf16 %v579_v28, %v8789_v50  ;;  %v644_v52 = vmax.bf16 %v580_v41, %v8800_v30  ;;  %v8890_v15 = vmax.bf16 %v518_v48, %v8783_v16 }
  0xd2   : > { %v2100_v46 = vrot.slane %v1972_v12, 7  ;;  %v2103_v61 = vrot.slane %v1973_v17, 7  ;;  %v709_v18 = vmax.bf16 %v645_v38, %v8872_v54 }
  0xd3   : > { %v706_v31 = vmax.bf16 %v642_v44, %v8851_v55  ;;  %v707_v45 = vmax.bf16 %v643_v56, %v8857_v36  ;;  %v708_v49 = vmax.bf16 %v644_v52, %v8870_v51 }
  0xd4   : > { %v2101_v40 = vsel %vm8429_vm3, %v7450_v0, %v2100_v46  ;;  %v2102_v23 = vrot.slane %v2100_v46, 4 }
  0xd5   : > { %v942_v20 = vshrl.u32 %v706_v31, 16  ;;  %v947_v37 = vshll.u32 %v707_v45, 16  ;;  %v951_v60 = vshrl.u32 %v707_v45, 16  ;;  %2766 = vst.msk [vmem:[#allocation3 + $0x94] sm:$0xf] %vm277_vm0, %v2101_v40  ;;  %v957_v1 = vshll.u32 %v708_v49, 16 }
  0xd6   : > { %v961_v53 = vshrl.u32 %v708_v49, 16  ;;  %v1312_v58 = vrot.slane %v707_v45, 5  ;;  %v1314_v33 = vrot.slane %v708_v49, 5  ;;  %v2104_v32 = vsel %vm8429_vm3, %v2102_v23, %v2103_v61 }
  0xd7   : > { %v949_v39 = vrot.slane %v947_v37, 5  ;;  %v953_v28 = vrot.slane %v951_v60, 4  ;;  %v1563_v42 = vrot.slane %v951_v60, 5  ;;  %v7466_v41 = vcombine.low %v2101_v40, %v2104_v32  ;;  %2767 = vst.msk [vmem:[#allocation3 + $0x98] sm:$0xf] %vm277_vm0, %v2104_v32 }
  0xd8   : > { %v959_v27 = vrot.slane %v957_v1, 5  ;;  %v963_v0 = vrot.slane %v961_v53, 4  ;;  %v1313_v44 = vrot.slane %v1312_v58, 4  ;;  %v1316_v17 = vrot.slane %v1314_v33, 4 }
  0xd9   : > { %v950_v48 = vsel %vm8312_vm11, %v942_v20, %v949_v39  ;;  %v954_v12 = vor.u32 %v953_v28, %v949_v39  ;;  %v1564_v56 = vrot.slane %v947_v37, 6  ;;  %7743 = vmatmul.mubr.msk.bf16.gmra.mrb[12].mxu1 %vm2214_vm1, %v7466_v41  ;;  %v1567_v61 = vrot.slane %v961_v53, 5 }
  0xda   : > { %v964_v52 = vor.u32 %v963_v0, %v959_v27  ;;  %v1213_v38 = vmax.bf16 %v950_v48, %v706_v31  ;;  %v1315_v46 = vsel %vm8328_vm12, %v1313_v44, %v1314_v33  ;;  %v1568_v60 = vrot.slane %v957_v1, 6 }
  0xdb   : > { %v955_v40 = vrot.slane %v954_v12, 4  ;;  %v1565_v23 = vor.u32 %v1564_v56, %v1563_v42  ;;  %v1573_v32 = vshll.u32 %v709_v18, 16  ;;  %v1846_v35 = vrot.slane %v707_v45, 6  ;;  %v8909_v56 = vld [vmem:[#allocation3 + $0xd0] sm:$0xf] }
  0xdc   : > { %v965_v43 = vrot.slane %v964_v52, 4  ;;  %v1424_v57 = vmax.bf16 %v1312_v58, %v1213_v38  ;;  %v1848_v25 = vrot.slane %v708_v49, 6  ;;  %v1569_v39 = vor.u32 %v1568_v60, %v1567_v61  ;;  %v8911_v52 = vld [vmem:[#allocation3 + $0xd4] sm:$0xf]  ;;  %v8934_v61 = vld [vmem:[#allocation3 + $0x4] sm:$0xf] }
  0xdd   : > { %v960_v20 = vsel %vm8312_vm11, %v955_v40, %v959_v27  ;;  %v1566_v37 = vrot.slane %v1565_v23, 4  ;;  %v1575_v28 = vrot.slane %v1573_v32, 6  ;;  %v1847_v33 = vrot.slane %v1846_v35, 4  ;;  %v8936_v40 = vld [vmem:[#allocation3 + $0x14] sm:$0xf] }
  0xde   : > { %v1214_v41 = vmax.bf16 %v960_v20, %v707_v45  ;;  %v1215_v31 = vmax.bf16 %v965_v43, %v708_v49  ;;  %v1747_v0 = vmax.bf16 %v1565_v23, %v1424_v57  ;;  %v1571_v1 = vrot.slane %v1569_v39, 4  ;;  %v8913_v45 = vld [vmem:[#allocation3] sm:$0xf]  ;;  %v8915_v57 = vld [vmem:[#allocation3 + $0x10] sm:$0xf] }
  0xdf   : > { %v1570_v53 = vsel %vm8351_vm14, %v1566_v37, %v1569_v39  ;;  %v1850_v42 = vrot.slane %v1848_v25, 4  ;;  %v1851_v44 = vrot.slane %v709_v18, 6  ;;  %v1849_v12 = vsel %vm8363_vm15, %v1847_v33, %v1848_v25  ;;  %v8918_v43 = vld [vmem:[%s8153_s24 + $0x78] sm:$0xf]  ;;  %v8944_v37 = vld [vmem:[#allocation3 + $0x8] sm:$0xf] }
  0xe0   : > { %v1425_v58 = vmax.bf16 %v1315_v46, %v1214_v41  ;;  %v1426_v48 = vmax.bf16 %v1316_v17, %v1215_v31  ;;  %v1974_v27 = vmax.bf16 %v1846_v35, %v1747_v0  ;;  %11793 = vst [vmem:[#allocation34_spill] sm:$0xff] %v8918_v43  ;;  %v1576_v49 = vsel %vm8351_vm14, %v1571_v1, %v1575_v28  ;;  %v8924_v17 = vld [vmem:[#allocation3 + $0xd8] sm:$0xf]  ;;  %v8948_v39 = vld [vmem:[#allocation3 + $0xdc] sm:$0x1] }
  0xe1   : > { %v1852_v18 = vsel %vm8363_vm15, %v1850_v42, %v1851_v44  ;;  %v11794_v25 = vmax.bf16 %v8728_v3, %v8654_v19  ;;  %v11795_v38 = vmax.bf16 %v8730_v29, %v8667_v59  ;;  %400 = vst.msk [vmem:[#allocation3 + $0x114] sm:$0xf] %vm277_vm0, %v8918_v43  ;;  %v11796_v19 = vmax.bf16 %v8736_v21, %v8669_v34  ;;  %v8946_v59 = vld [vmem:[#allocation3 + $0x18] sm:$0xf]  ;;  %v8954_v0 = vld [vmem:[#allocation3 + $0xc] sm:$0x1] }
  0xe2   : > { %v1748_v23 = vmax.bf16 %v1570_v53, %v1425_v58  ;;  %v1749_v60 = vmax.bf16 %v1576_v49, %v1426_v48  ;;  %v7451_v32 = vrot.slane %v1974_v27, 11  ;;  %v646_v28 = vmax.bf16 %v8890_v15, %v8851_v55  ;;  %v8956_v33 = vld [vmem:[#allocation3 + $0x1c] sm:$0x1] }
  0xe3   : > { %v583_v35 = vmax.bf16 %v11794_v25, %v8789_v50  ;;  %v584_v46 = vmax.bf16 %v11795_v38, %v8800_v30  ;;  %v585_v20 = vmax.bf16 %v11796_v19, %v8802_v62  ;;  %v8964_v44 = vld [vmem:[%s8153_s24 + $0x7c] sm:$0xf] }
  0xe4   : > { %v1975_v21 = vmax.bf16 %v1849_v12, %v1748_v23  ;;  %v1976_v53 = vmax.bf16 %v1852_v18, %v1749_v60  ;;  %11797 = vst [vmem:[#allocation35_spill] sm:$0xff] %v8964_v44  ;;  %v710_v15 = vmax.bf16 %v646_v28, %v8909_v56  ;;  %401 = vst.msk [vmem:[#allocation3 + $0x118] sm:$0xf] %vm277_vm0, %v8964_v44 }
  0xe5   : > { %v647_v41 = vmax.bf16 %v583_v35, %v8857_v36  ;;  %v648_v31 = vmax.bf16 %v584_v46, %v8870_v51  ;;  %v649_v1 = vmax.bf16 %v585_v20, %v8872_v54 }
  0xe6   : > { %v2107_v12 = vrot.slane %v1975_v21, 7  ;;  %v2110_v49 = vrot.slane %v1976_v53, 7  ;;  %v967_v35 = vshrl.u32 %v710_v15, 16 }
  0xe7   : > { %v711_v58 = vmax.bf16 %v647_v41, %v8911_v52  ;;  %v8969_v48 = vmax.bf16 %v648_v31, %v8924_v17  ;;  %v713_v18 = vmax.bf16 %v649_v1, %v8948_v39 }
  0xe8   : > { %v2108_v60 = vsel %vm8429_vm3, %v7451_v32, %v2107_v12  ;;  %v2109_v19 = vrot.slane %v2107_v12, 4 }
  0xe9   : > { %v972_v38 = vshll.u32 %v711_v58, 16  ;;  %v976_v46 = vshrl.u32 %v711_v58, 16  ;;  %v982_v23 = vshll.u32 %v8969_v48, 16  ;;  %v986_v20 = vshrl.u32 %v8969_v48, 16  ;;  %2768 = vst.msk [vmem:[#allocation3 + $0xa4] sm:$0xf] %vm277_vm0, %v2108_v60 }
  0xea   : > { %v1317_v28 = vrot.slane %v711_v58, 5  ;;  %v1319_v53 = vrot.slane %v8969_v48, 5  ;;  %v2111_v1 = vsel %vm8429_vm3, %v2109_v19, %v2110_v49  ;;  %v1853_v8 = vrot.slane %v711_v58, 6 }
  0xeb   : > { %v974_v41 = vrot.slane %v972_v38, 5  ;;  %v978_v31 = vrot.slane %v976_v46, 4  ;;  %v984_v21 = vrot.slane %v982_v23, 5  ;;  %v988_v25 = vrot.slane %v986_v20, 4  ;;  %2769 = vst.msk [vmem:[#allocation3 + $0xa8] sm:$0xf] %vm277_vm0, %v2111_v1 }
  0xec   : > { %v1318_v27 = vrot.slane %v1317_v28, 4  ;;  %v1577_v42 = vrot.slane %v976_v46, 5  ;;  %v7467_v34 = vcombine.low %v2108_v60, %v2111_v1  ;;  %v1321_v43 = vrot.slane %v1319_v53, 4 }
  0xed   : > { %v975_v32 = vsel %vm8312_vm11, %v967_v35, %v974_v41  ;;  %v979_v12 = vor.u32 %v978_v31, %v974_v41  ;;  %v989_v44 = vor.u32 %v988_v25, %v984_v21  ;;  %v1578_v13 = vrot.slane %v972_v38, 6 }
  0xee   : > { %v1216_v14 = vmax.bf16 %v975_v32, %v710_v15  ;;  %v1320_v24 = vsel %vm8328_vm12, %v1318_v27, %v1319_v53  ;;  %7746 = vmatprep.mubr.msk.bf16.mxu1 %vm2214_vm1, %v7467_v34  ;;  %v1581_v19 = vrot.slane %v986_v20, 5  ;;  %v1582_v10 = vrot.slane %v982_v23, 6  ;;  %v8996_v53 = vld [vmem:[#allocation3 + $0x20] sm:$0xf]  ;;  %v2794_v32 = vld [vmem:[#allocation3 + $0x28] sm:$0xf] }
  0xef   : > { %v980_v49 = vrot.slane %v979_v12, 4  ;;  %v1587_v46 = vshll.u32 %v713_v18, 16  ;;  %v990_v60 = vrot.slane %v989_v44, 4  ;;  %v1579_v1 = vor.u32 %v1578_v13, %v1577_v42  ;;  %v2793_v13 = vld [vmem:[#allocation3 + $0x24] sm:$0xf] }
  0xf0   : > { %v1427_v11 = vmax.bf16 %v1317_v28, %v1216_v14  ;;  %v1583_v41 = vor.u32 %v1582_v10, %v1581_v19  ;;  %v1855_v15 = vrot.slane %v8969_v48, 6  ;;  %v1854_v20 = vrot.slane %v1853_v8, 4  ;;  %v9000_v12 = vld [vmem:[#allocation3 + $0x2c] sm:$0x1]  ;;  %v9010_v19 = vld [vmem:[#allocation3 + $0x30] sm:$0xf] }
  0xf1   : > { %v985_v35 = vsel %vm8312_vm11, %v980_v49, %v984_v21  ;;  %v1589_v25 = vrot.slane %v1587_v46, 6  ;;  %v1218_v27 = vmax.bf16 %v990_v60, %v8969_v48  ;;  %v1580_v38 = vrot.slane %v1579_v1, 4  ;;  %v2798_v60 = vld [vmem:[#allocation3 + $0x38] sm:$0xf] }
  0xf2   : > { %v1217_v31 = vmax.bf16 %v985_v35, %v711_v58  ;;  %v1750_v34 = vmax.bf16 %v1579_v1, %v1427_v11  ;;  %v1585_v23 = vrot.slane %v1583_v41, 4  ;;  %v1857_v44 = vrot.slane %v1855_v15, 4  ;;  %v9015_v1 = vld [vmem:[#allocation3 + $0x3c] sm:$0x1]  ;;  %v9017_v35 = vld [vmem:[#allocation3 + $0x40] sm:$0xf] }
  0xf3   : > { %v1858_v14 = vrot.slane %v713_v18, 6  ;;  %v1429_v28 = vmax.bf16 %v1321_v43, %v1218_v27  ;;  %v1584_v10 = vsel %vm8351_vm14, %v1580_v38, %v1583_v41  ;;  %v1856_v11 = vsel %vm8363_vm15, %v1854_v20, %v1855_v15  ;;  %v9029_v20 = vld [vmem:[#allocation3 + $0x4c] sm:$0x1] }
  0xf4   : > { %v1428_v42 = vmax.bf16 %v1320_v24, %v1217_v31  ;;  %v1977_v21 = vmax.bf16 %v1853_v8, %v1750_v34  ;;  %v1590_v58 = vsel %vm8351_vm14, %v1585_v23, %v1589_v25  ;;  %v9012_v8 = vld [vmem:[#allocation3 + $0x34] sm:$0xf]  ;;  %v2869_v46 = vmax.bf16 %v2793_v13, %v8936_v40  ;;  %v9025_v34 = vld [vmem:[#allocation3 + $0x44] sm:$0xf]  ;;  %v9027_v23 = vld [vmem:[#allocation3 + $0x48] sm:$0xf] }
  0xf5   : > { %v1859_v48 = vsel %vm8363_vm15, %v1857_v44, %v1858_v14  ;;  %v1752_v18 = vmax.bf16 %v1590_v58, %v1429_v28  ;;  %11798 = vst [vmem:[#allocation36_spill] sm:$0xff] %v9012_v8  ;;  %v2870_v41 = vmax.bf16 %v2794_v32, %v8946_v59  ;;  %v2873_v31 = vmax.bf16 %v9012_v8, %v2793_v13  ;;  %v9057_v25 = vld [vmem:[#allocation3 + $0x58] sm:$0xf] }
  0xf6   : > { %v1751_v43 = vmax.bf16 %v1584_v10, %v1428_v42  ;;  %v7452_v49 = vrot.slane %v1977_v21, 11  ;;  %11799 = vst [vmem:[#allocation37_spill] sm:$0xff] %v9025_v34  ;;  %11800 = vst [vmem:[#allocation38_spill] sm:$0xff] %v9027_v23  ;;  %v2874_v44 = vmax.bf16 %v2798_v60, %v2794_v32  ;;  %v2878_v10 = vmax.bf16 %v9027_v23, %v2798_v60 }
  0xf7   : > { %v1979_v38 = vmax.bf16 %v1859_v48, %v1752_v18  ;;  %v11801_v48 = vmax.bf16 %v8915_v57, %v8913_v45  ;;  %v11802_v18 = vmax.bf16 %v8936_v40, %v8934_v61  ;;  %v11803_v42 = vmax.bf16 %v8946_v59, %v8944_v37  ;;  %11805 = vst [vmem:[#allocation39_spill] sm:$0xff] %v9057_v25  ;;  %v9062_v37 = vld [vmem:[#allocation3 + $0x54] sm:$0xf] }
  0xf8   : > { %v1978_v27 = vmax.bf16 %v1856_v11, %v1751_v43  ;;  %v11804_v15 = vmax.bf16 %v8956_v33, %v8954_v0  ;;  %v2937_v61 = vmax.bf16 %v2873_v31, %v9025_v34  ;;  %v2938_v40 = vmax.bf16 %v2874_v44, %v9027_v23  ;;  %11806 = vst [vmem:[#allocation40_spill] sm:$0xff] %v9062_v37 }
  0xf9   : > { %v2117_v11 = vrot.slane %v1979_v38, 7  ;;  %v2928_v43 = vmax.bf16 %v11801_v48, %v8996_v53  ;;  %v2929_v14 = vmax.bf16 %v11802_v18, %v2793_v13  ;;  %v2930_v28 = vmax.bf16 %v11803_v42, %v2794_v32 }
  0xfa   : > { %v2114_v58 = vrot.slane %v1978_v27, 7  ;;  %v2931_v21 = vmax.bf16 %v11804_v15, %v9000_v12  ;;  %v2933_v27 = vmax.bf16 %v2869_v46, %v9012_v8  ;;  %v2934_v38 = vmax.bf16 %v2870_v41, %v2798_v60  ;;  %v9071_v46 = vld [vmem:[#allocation3 + $0x64] sm:$0xf]  ;;  %v9073_v41 = vld [vmem:[#allocation3 + $0x68] sm:$0xf] }
  0xfb   : > { %v9065_v59 = vmax.bf16 %v2878_v10, %v9057_v25  ;;  %v2992_v0 = vmax.bf16 %v2928_v43, %v9010_v19  ;;  %v2993_v13 = vmax.bf16 %v2929_v14, %v9012_v8  ;;  %v2994_v32 = vmax.bf16 %v2930_v28, %v2798_v60  ;;  %11808 = vst [vmem:[#allocation42_spill] sm:$0xff] %v9071_v46 }
  0xfc   : > { %v2115_v45 = vsel %vm8429_vm3, %v7452_v49, %v2114_v58  ;;  %v2116_v48 = vrot.slane %v2114_v58, 4  ;;  %11809 = vst [vmem:[#allocation43_spill] sm:$0xff] %v9073_v41  ;;  %v2995_v15 = vmax.bf16 %v2931_v21, %v9015_v1  ;;  %v2997_v31 = vmax.bf16 %v2933_v27, %v9025_v34 }
  0xfd   : > { %2770 = vst.msk [vmem:[#allocation3 + $0xb4] sm:$0xf] %vm277_vm0, %v2115_v45  ;;  %11807 = vst [vmem:[#allocation41_spill] sm:$0xff] %v9065_v59  ;;  %v2998_v44 = vmax.bf16 %v2934_v38, %v9027_v23  ;;  %v3001_v10 = vmax.bf16 %v2937_v61, %v9062_v37  ;;  %v3002_v60 = vmax.bf16 %v2938_v40, %v9057_v25 }
  0xfe   : > { %v2118_v49 = vsel %vm8429_vm3, %v2116_v48, %v2117_v11  ;;  %v3056_v14 = vmax.bf16 %v2992_v0, %v9017_v35  ;;  %v3057_v28 = vmax.bf16 %v2993_v13, %v9025_v34  ;;  %v3058_v58 = vmax.bf16 %v2994_v32, %v9027_v23 }
  0xff   : > { %v7468_v42 = vcombine.low %v2115_v45, %v2118_v49  ;;  %2771 = vst.msk [vmem:[#allocation3 + $0xb8] sm:$0xf] %vm277_vm0, %v2118_v49  ;;  %v3059_v11 = vmax.bf16 %v2995_v15, %v9029_v20  ;;  %v9086_v21 = vmax.bf16 %v2997_v31, %v9062_v37  ;;  %v9090_v43 = vmax.bf16 %v2998_v44, %v9057_v25  ;;  %v9103_v25 = vld [vmem:[%s11667_s1] ss:$0 sps:$4 sm:$0x88]  }
 0x100   : > { %v9093_v18 = vmax.bf16 %v3001_v10, %v9071_v46  ;;  %v9096_v27 = vmax.bf16 %v3002_v60, %v9073_v41  ;;  %v3121_v38 = vshrl.u32 %v3056_v14, 16  ;;  %v3126_v45 = vshll.u32 %v3057_v28, 16 }
 0x101   : > { %7747 = vmatmul.mubr.msk.bf16.gmra.mrb[16].mxu1 %vm2214_vm1, %v7468_v42  ;;  %v3130_v48 = vshrl.u32 %v3057_v28, 16  ;;  %v3136_v61 = vshll.u32 %v3058_v58, 16  ;;  %v3140_v40 = vshrl.u32 %v3058_v58, 16  ;;  %v3648_v0 = vrot.slane %v3057_v28, 5 }
 0x102   : > { %11810 = vst [vmem:[#allocation44_spill] sm:$0xff] %v9096_v27  ;;  %v3650_v13 = vrot.slane %v3058_v58, 5  ;;  %v3834_v32 = vshll.u32 %v3059_v11, 16  ;;  %v4160_v49 = vrot.slane %v3057_v28, 6  ;;  %v3128_v15 = vrot.slane %v3126_v45, 5 }
 0x103   : > { %v3132_v31 = vrot.slane %v3130_v48, 4  ;;  %v3138_v42 = vrot.slane %v3136_v61, 5  ;;  %v3142_v44 = vrot.slane %v3140_v40, 4  ;;  %v3649_v24 = vrot.slane %v3648_v0, 4 }
 0x104   : > { %v3652_v9 = vrot.slane %v3650_v13, 4  ;;  %v3824_v10 = vrot.slane %v3130_v48, 5  ;;  %v3825_v6 = vrot.slane %v3126_v45, 6  ;;  %v3129_v60 = vsel %vm8312_vm11, %v3121_v38, %v3128_v15 }
 0x105   : > { %v3133_v7 = vor.u32 %v3132_v31, %v3128_v15  ;;  %v3143_v4 = vor.u32 %v3142_v44, %v3138_v42  ;;  %v3828_v5 = vrot.slane %v3140_v40, 5  ;;  %v3568_v23 = vmax.bf16 %v3129_v60, %v3056_v14 }
 0x106   : > { %v3651_v59 = vsel %vm8328_vm12, %v3649_v24, %v3650_v13  ;;  %v3826_v41 = vor.u32 %v3825_v6, %v3824_v10  ;;  %v3829_v46 = vrot.slane %v3136_v61, 6  ;;  %v3836_v45 = vrot.slane %v3834_v32, 6 }
 0x107   : > { %v3134_v8 = vrot.slane %v3133_v7, 4  ;;  %v3144_v48 = vrot.slane %v3143_v4, 4  ;;  %v4161_v34 = vrot.slane %v4160_v49, 4  ;;  %v3776_v37 = vmax.bf16 %v3648_v0, %v3568_v23 }
 0x108   : > { %v3827_v38 = vrot.slane %v3826_v41, 4  ;;  %v3830_v15 = vor.u32 %v3829_v46, %v3828_v5  ;;  %v4162_v31 = vrot.slane %v3058_v58, 6  ;;  %v4165_v27 = vrot.slane %v3059_v11, 6  ;;  %v7993_v5 = vld [vmem:[%s11667_s1] sm:$0x1] }
 0x109   : > { %v3139_v40 = vsel %vm8312_vm11, %v3134_v8, %v3138_v42  ;;  %v3570_v44 = vmax.bf16 %v3144_v48, %v3058_v58  ;;  %v6685_v14 = vrot.slane %v9103_v25, 3  ;;  %v4096_v7 = vmax.bf16 %v3826_v41, %v3776_v37  ;;  %v9129_v11 = vld [vmem:[#allocation3 + $0x50] sm:$0xf]  ;;  %v9136_v42 = vld [vmem:[#allocation3 + $0x5c] sm:$0x1] }
 0x10a   : > { %v3569_v60 = vmax.bf16 %v3139_v40, %v3057_v28  ;;  %v3831_v6 = vsel %vm8351_vm14, %v3827_v38, %v3830_v15  ;;  %v3832_v24 = vrot.slane %v3830_v15, 4  ;;  %v4163_v23 = vsel %vm8363_vm15, %v4161_v34, %v4162_v31 }
 0x10b   : > { %v3778_v4 = vmax.bf16 %v3652_v9, %v3570_v44  ;;  %v4164_v61 = vrot.slane %v4162_v31, 4  ;;  %7963 = vmatprep.subr.msk.bf16.mxu0 %vm2046_vm2, %v6685_v14  ;;  %v2557_v8 = vsel %vm2046_vm2, %v7993_v5, 0  ;;  %v4320_v37 = vmax.bf16 %v4160_v49, %v4096_v7 }
 0x10c   : > { %v3777_v46 = vmax.bf16 %v3651_v59, %v3569_v60  ;;  %v3837_v28 = vsel %vm8351_vm14, %v3832_v24, %v3836_v45  ;;  %7763 = vmatpush3.bf16.msra.mxu1 %v2557_v8  ;;  %v11811_v9 = vmax.bf16 %v8996_v53, %v8915_v57  ;;  %v11812_v59 = vmax.bf16 %v9000_v12, %v8956_v33 }
 0x10d   : > { %v4098_v41 = vmax.bf16 %v3837_v28, %v3778_v4  ;;  %v4166_v58 = vsel %vm8363_vm15, %v4164_v61, %v4165_v27  ;;  %v3151_v13 = vshll.u32 %v9086_v21, 16  ;;  %v7540_v49 = vrot.slane %v4320_v37, 11 }
 0x10e   : > { %v2932_v34 = vmax.bf16 %v11811_v9, %v9010_v19  ;;  %v2935_v0 = vmax.bf16 %v11812_v59, %v9015_v1  ;;  %v4097_v32 = vmax.bf16 %v3831_v6, %v3777_v46  ;;  %v3155_v10 = vshrl.u32 %v9086_v21, 16 }
 0x10f   : > { %v4322_v48 = vmax.bf16 %v4166_v58, %v4098_v41  ;;  %v3153_v45 = vrot.slane %v3151_v13, 5  ;;  %v3161_v38 = vshll.u32 %v9090_v43, 16  ;;  %v3165_v40 = vshrl.u32 %v9090_v43, 16 }
 0x110   : > { %v2996_v57 = vmax.bf16 %v2932_v34, %v9017_v35  ;;  %v2999_v27 = vmax.bf16 %v2935_v0, %v9029_v20  ;;  %v4321_v15 = vmax.bf16 %v4163_v23, %v4097_v32  ;;  %v3157_v31 = vrot.slane %v3155_v10, 4 }
 0x111   : > { %v4421_v44 = vrot.slane %v4322_v48, 7  ;;  %v3163_v6 = vrot.slane %v3161_v38, 5  ;;  %v3653_v24 = vrot.slane %v9086_v21, 5  ;;  %v3167_v5 = vrot.slane %v3165_v40, 4 }
 0x112   : > { %v3060_v33 = vmax.bf16 %v2996_v57, %v9129_v11  ;;  %v3063_v60 = vmax.bf16 %v2999_v27, %v9136_v42  ;;  %v4418_v7 = vrot.slane %v4321_v15, 7  ;;  %v3158_v61 = vor.u32 %v3157_v31, %v3153_v45 }
 0x113   : > { %v3654_v8 = vrot.slane %v3653_v24, 4  ;;  %v3655_v46 = vrot.slane %v9090_v43, 5  ;;  %v3838_v28 = vrot.slane %v3155_v10, 5  ;;  %v3839_v23 = vrot.slane %v3151_v13, 6 }
 0x114   : > { %v3146_v4 = vshrl.u32 %v3060_v33, 16  ;;  %v4419_v37 = vsel %vm8429_vm3, %v7540_v49, %v4418_v7  ;;  %v4420_v9 = vrot.slane %v4418_v7, 4  ;;  %v3159_v41 = vrot.slane %v3158_v61, 4 }
 0x115   : > { %4857 = vst.msk [vmem:[#allocation3 + $0x24] sm:$0xf] %vm277_vm0, %v4419_v37  ;;  %v3168_v58 = vor.u32 %v3167_v5, %v3163_v6  ;;  %v3656_v0 = vsel %vm8328_vm12, %v3654_v8, %v3655_v46  ;;  %v3657_v32 = vrot.slane %v3655_v46, 4  ;;  %v3840_v49 = vor.u32 %v3839_v23, %v3838_v28 }
 0x116   : > { %v3154_v34 = vsel %vm8312_vm11, %v3146_v4, %v3153_v45  ;;  %v4422_v57 = vsel %vm8429_vm3, %v4420_v9, %v4421_v44  ;;  %v3164_v13 = vsel %vm8312_vm11, %v3159_v41, %v3163_v6  ;;  %v3842_v10 = vrot.slane %v3165_v40, 5  ;;  %v7994_v41 = vld [vmem:[#allocation3 + $0xa0] sm:$0xf] }
 0x117   : > { %v3571_v59 = vmax.bf16 %v3154_v34, %v3060_v33  ;;  %v7556_v48 = vcombine.low %v4419_v37, %v4422_v57  ;;  %4858 = vst.msk [vmem:[#allocation3 + $0x28] sm:$0xf] %vm277_vm0, %v4422_v57  ;;  %v3169_v27 = vrot.slane %v3168_v58, 4  ;;  %v3572_v45 = vmax.bf16 %v3164_v13, %v9086_v21 }
 0x118   : > { %v3841_v33 = vrot.slane %v3840_v49, 4  ;;  %v3843_v31 = vrot.slane %v3161_v38, 6  ;;  %v3848_v7 = vshll.u32 %v3063_v60, 16  ;;  %v4167_v4 = vrot.slane %v9086_v21, 6 }
 0x119   : > { %v3779_v15 = vmax.bf16 %v3653_v24, %v3571_v59  ;;  %7798 = vmatprep.mubr.msk.bf16.mxu0 %vm2214_vm1, %v7556_v48  ;;  %v3573_v44 = vmax.bf16 %v3169_v27, %v9090_v43  ;;  %v3780_v61 = vmax.bf16 %v3656_v0, %v3572_v45  ;;  %v4169_v40 = vrot.slane %v9090_v43, 6  ;;  %v9182_v48 = vld [vmem:[#allocation3 + $0xe0] sm:$0xf]  ;;  %v9187_v45 = vld [vmem:[#allocation3 + $0xe4] sm:$0xf] }
 0x11a   : > { %v3844_v5 = vor.u32 %v3843_v31, %v3842_v10  ;;  %v3850_v8 = vrot.slane %v3848_v7, 6  ;;  %v4168_v46 = vrot.slane %v4167_v4, 4  ;;  %v4172_v28 = vrot.slane %v3063_v60, 6 }
 0x11b   : > { %v4099_v6 = vmax.bf16 %v3840_v49, %v3779_v15  ;;  %v3781_v23 = vmax.bf16 %v3657_v32, %v3573_v44  ;;  %v4171_v37 = vrot.slane %v4169_v40, 4  ;;  %v6735_v38 = vsel %vm2046_vm2, %v6685_v14, 0  ;;  %v7995_v32 = vld [vmem:[#allocation3 + $0xac] sm:$0x1]  ;;  %v9194_v44 = vld [vmem:[#allocation3 + $0xe8] sm:$0xf] }
 0x11c   : > { %v3845_v21 = vsel %vm8351_vm14, %v3841_v33, %v3844_v5  ;;  %v3846_v9 = vrot.slane %v3844_v5, 4  ;;  %v4170_v34 = vsel %vm8363_vm15, %v4168_v46, %v4169_v40  ;;  %v522_v43 = vmax.bf16 %v7994_v41, %v8783_v16 }
 0x11d   : > { %v4323_v24 = vmax.bf16 %v4167_v4, %v4099_v6  ;;  %v4100_v58 = vmax.bf16 %v3845_v21, %v3780_v61  ;;  %v4173_v60 = vsel %vm8363_vm15, %v4171_v37, %v4172_v28  ;;  %v523_v25 = vmax.bf16 %v8789_v50, %v8728_v3  ;;  %v9196_v61 = vld [vmem:[#allocation3 + $0xec] sm:$0x1] }
 0x11e   : > { %v3851_v14 = vsel %vm8351_vm14, %v3846_v9, %v3850_v8  ;;  %v524_v0 = vmax.bf16 %v8800_v30, %v8730_v29  ;;  %v525_v57 = vmax.bf16 %v7995_v32, %v8802_v62  ;;  %v586_v13 = vmax.bf16 %v522_v43, %v8851_v55 }
 0x11f   : > { %v7541_v59 = vrot.slane %v4323_v24, 11  ;;  %v4101_v49 = vmax.bf16 %v3851_v14, %v3781_v23  ;;  %v4324_v10 = vmax.bf16 %v4170_v34, %v4100_v58  ;;  %v587_v27 = vmax.bf16 %v523_v25, %v8857_v36 }
 0x120   : > { %v526_v3 = vmax.bf16 %v8851_v55, %v8783_v16  ;;  %v588_v15 = vmax.bf16 %v524_v0, %v8870_v51  ;;  %v589_v29 = vmax.bf16 %v525_v57, %v8872_v54  ;;  %v650_v33 = vmax.bf16 %v586_v13, %v8909_v56 }
 0x121   : > { %v527_v31 = vmax.bf16 %v8857_v36, %v8789_v50  ;;  %v4325_v7 = vmax.bf16 %v4173_v60, %v4101_v49  ;;  %v4425_v4 = vrot.slane %v4324_v10, 7  ;;  %v651_v6 = vmax.bf16 %v587_v27, %v8911_v52  ;;  %v9245_v50 = vld [vmem:[#allocation3 + $0xf8] sm:$0xf] }
 0x122   : > { %v528_v16 = vmax.bf16 %v8870_v51, %v8800_v30  ;;  %v652_v55 = vmax.bf16 %v588_v15, %v8924_v17  ;;  %v653_v40 = vmax.bf16 %v589_v29, %v8948_v39  ;;  %v714_v5 = vmax.bf16 %v650_v33, %v9182_v48  ;;  %v9253_v30 = vld [vmem:[#allocation3 + $0xfc] sm:$0x1] }
 0x123   : > { %v4426_v46 = vsel %vm8429_vm3, %v7541_v59, %v4425_v4  ;;  %v4427_v28 = vrot.slane %v4425_v4, 4  ;;  %v4428_v23 = vrot.slane %v4325_v7, 7  ;;  %v715_v37 = vmax.bf16 %v651_v6, %v9187_v45 }
 0x124   : > { %4859 = vst.msk [vmem:[#allocation3 + $0x34] sm:$0xf] %vm277_vm0, %v4426_v46  ;;  %v716_v24 = vmax.bf16 %v652_v55, %v9194_v44  ;;  %v717_v21 = vmax.bf16 %v653_v40, %v9196_v61  ;;  %v992_v9 = vshrl.u32 %v714_v5, 16  ;;  %v9213_v34 = vmax.bf16 %v526_v3, %v8909_v56 }
 0x125   : > { %v4429_v41 = vsel %vm8429_vm3, %v4427_v28, %v4428_v23  ;;  %v997_v43 = vshll.u32 %v715_v37, 16  ;;  %v1001_v58 = vshrl.u32 %v715_v37, 16  ;;  %v1322_v60 = vrot.slane %v715_v37, 5 }
 0x126   : > { %v7557_v59 = vcombine.low %v4426_v46, %v4429_v41  ;;  %4860 = vst.msk [vmem:[#allocation3 + $0x38] sm:$0xf] %vm277_vm0, %v4429_v41  ;;  %v1007_v25 = vshll.u32 %v716_v24, 16  ;;  %v1011_v14 = vshrl.u32 %v716_v24, 16  ;;  %v1324_v0 = vrot.slane %v716_v24, 5 }
 0x127   : > { %v999_v32 = vrot.slane %v997_v43, 5  ;;  %v1003_v57 = vrot.slane %v1001_v58, 4  ;;  %v1323_v13 = vrot.slane %v1322_v60, 4  ;;  %v1591_v49 = vrot.slane %v1001_v58, 5 }
 0x128   : > { %7799 = vmatmul.mubr.msk.bf16.vlgmr.msra.gmra.mrb[0].mxu0 %vm2214_vm1, %v7557_v59  ;;  %v1009_v56 = vrot.slane %v1007_v25, 5  ;;  %v1013_v10 = vrot.slane %v1011_v14, 4  ;;  %v1326_v27 = vrot.slane %v1324_v0, 4  ;;  %v1592_v3 = vrot.slane %v997_v43, 6 }
 0x129   : > { %7831 = vmatpush3.bf16.msra.mxu0 %v6735_v38  ;;  %v1000_v15 = vsel %vm8312_vm11, %v992_v9, %v999_v32  ;;  %v1004_v29 = vor.u32 %v1003_v57, %v999_v32  ;;  %v1325_v33 = vsel %vm8328_vm12, %v1323_v13, %v1324_v0  ;;  %v1595_v7 = vrot.slane %v1011_v14, 5 }
 0x12a   : > { %v1014_v4 = vor.u32 %v1013_v10, %v1009_v56  ;;  %v1219_v6 = vmax.bf16 %v1000_v15, %v714_v5  ;;  %v1593_v55 = vor.u32 %v1592_v3, %v1591_v49  ;;  %v1596_v40 = vrot.slane %v1007_v25, 6 }
 0x12b   : > { %v1005_v46 = vrot.slane %v1004_v29, 4  ;;  %v1601_v28 = vshll.u32 %v717_v21, 16  ;;  %v1860_v23 = vrot.slane %v715_v37, 6  ;;  %v1862_v41 = vrot.slane %v716_v24, 6 }
 0x12c   : > { %v1015_v58 = vrot.slane %v1014_v4, 4  ;;  %v1430_v59 = vmax.bf16 %v1322_v60, %v1219_v6  ;;  %v1594_v43 = vrot.slane %v1593_v55, 4  ;;  %v1597_v38 = vor.u32 %v1596_v40, %v1595_v7  ;;  %v9243_v7 = vld [vmem:[#allocation3 + $0xf4] sm:$0xf] }
 0x12d   : > { %v1010_v9 = vsel %vm8312_vm11, %v1005_v46, %v1009_v56  ;;  %v1603_v32 = vrot.slane %v1601_v28, 6  ;;  %v1861_v57 = vrot.slane %v1860_v23, 4  ;;  %v1864_v8 = vrot.slane %v1862_v41, 4 }
 0x12e   : > { %v1220_v0 = vmax.bf16 %v1010_v9, %v715_v37  ;;  %v1221_v14 = vmax.bf16 %v1015_v58, %v716_v24  ;;  %v1598_v5 = vsel %vm8351_vm14, %v1594_v43, %v1597_v38  ;;  %v1599_v25 = vrot.slane %v1597_v38, 4  ;;  %v9235_v24 = vld [vmem:[#allocation3 + $0xf0] sm:$0xf] }
 0x12f   : > { %v1753_v13 = vmax.bf16 %v1593_v55, %v1430_v59  ;;  %v1863_v49 = vsel %vm8363_vm15, %v1861_v57, %v1862_v41  ;;  %v1865_v10 = vrot.slane %v717_v21, 6  ;;  %v591_v60 = vmax.bf16 %v527_v31, %v8911_v52 }
 0x130   : > { %v1431_v56 = vmax.bf16 %v1325_v33, %v1220_v0  ;;  %v1432_v3 = vmax.bf16 %v1326_v27, %v1221_v14  ;;  %v1604_v37 = vsel %vm8351_vm14, %v1599_v25, %v1603_v32  ;;  %v592_v15 = vmax.bf16 %v528_v16, %v8924_v17 }
 0x131   : > { %v1866_v21 = vsel %vm8363_vm15, %v1864_v8, %v1865_v10  ;;  %v1980_v29 = vmax.bf16 %v1860_v23, %v1753_v13  ;;  %v11813_v31 = vmax.bf16 %v8872_v54, %v8802_v62  ;;  %v654_v33 = vmax.bf16 %v9213_v34, %v9182_v48 }
 0x132   : > { %v1754_v4 = vmax.bf16 %v1598_v5, %v1431_v56  ;;  %v1755_v6 = vmax.bf16 %v1604_v37, %v1432_v3  ;;  %v655_v16 = vmax.bf16 %v591_v60, %v9187_v45  ;;  %v656_v8 = vmax.bf16 %v592_v15, %v9194_v44 }
 0x133   : > { %v593_v27 = vmax.bf16 %v11813_v31, %v8948_v39  ;;  %v7453_v55 = vrot.slane %v1980_v29, 11  ;;  %v718_v46 = vmax.bf16 %v654_v33, %v9235_v24  ;;  %v11814_v62 = vmax.bf16 %v9010_v19, %v8996_v53 }
 0x134   : > { %v1981_v39 = vmax.bf16 %v1863_v49, %v1754_v4  ;;  %v1982_v34 = vmax.bf16 %v1866_v21, %v1755_v6  ;;  %v719_v28 = vmax.bf16 %v655_v16, %v9243_v7  ;;  %v720_v23 = vmax.bf16 %v656_v8, %v9245_v50 }
 0x135   : > { %v657_v40 = vmax.bf16 %v593_v27, %v9196_v61  ;;  %v9263_v54 = vmax.bf16 %v11814_v62, %v9017_v35  ;;  %v1017_v58 = vshrl.u32 %v718_v46, 16  ;;  %v11815_v59 = vmax.bf16 %v9015_v1, %v9000_v12 }
 0x136   : > { %v2121_v38 = vrot.slane %v1981_v39, 7  ;;  %v2124_v9 = vrot.slane %v1982_v34, 7  ;;  %v1022_v32 = vshll.u32 %v719_v28, 16  ;;  %v1026_v57 = vshrl.u32 %v719_v28, 16 }
 0x137   : > { %v9268_v41 = vmax.bf16 %v657_v40, %v9253_v30  ;;  %v9274_v43 = vmax.bf16 %v11815_v59, %v9029_v20  ;;  %v3000_v53 = vmax.bf16 %v9263_v54, %v9129_v11  ;;  %v1032_v0 = vshll.u32 %v720_v23, 16 }
 0x138   : > { %v1036_v14 = vshrl.u32 %v720_v23, 16  ;;  %v1327_v5 = vrot.slane %v719_v28, 5  ;;  %v1329_v25 = vrot.slane %v720_v23, 5  ;;  %v2122_v13 = vsel %vm8429_vm3, %v7453_v55, %v2121_v38 }
 0x139   : > { %v2123_v49 = vrot.slane %v2121_v38, 4  ;;  %v1024_v10 = vrot.slane %v1022_v32, 5  ;;  %v1028_v60 = vrot.slane %v1026_v57, 4  ;;  %2772 = vst.msk [vmem:[#allocation3 + $0xc4] sm:$0xf] %vm277_vm0, %v2122_v13  ;;  %v1034_v12 = vrot.slane %v1032_v0, 5 }
 0x13a   : > { %v1038_v56 = vrot.slane %v1036_v14, 4  ;;  %v1328_v3 = vrot.slane %v1327_v5, 4  ;;  %v1331_v37 = vrot.slane %v1329_v25, 4  ;;  %v1605_v31 = vrot.slane %v1026_v57, 5 }
 0x13b   : > { %v2125_v15 = vsel %vm8429_vm3, %v2123_v49, %v2124_v9  ;;  %v1025_v21 = vsel %vm8312_vm11, %v1017_v58, %v1024_v10  ;;  %v1029_v29 = vor.u32 %v1028_v60, %v1024_v10  ;;  %v1606_v8 = vrot.slane %v1022_v32, 6  ;;  %v9292_v10 = vld [vmem:[#allocation3 + $0x60] sm:$0xf] }
 0x13c   : > { %v7469_v27 = vcombine.low %v2122_v13, %v2125_v15  ;;  %2773 = vst.msk [vmem:[#allocation3 + $0xc8] sm:$0xf] %vm277_vm0, %v2125_v15  ;;  %v1039_v33 = vor.u32 %v1038_v56, %v1034_v12  ;;  %v1222_v4 = vmax.bf16 %v1025_v21, %v718_v46  ;;  %v1330_v6 = vsel %vm8328_vm12, %v1328_v3, %v1329_v25  ;;  %v9297_v3 = vld [vmem:[#allocation3 + $0x6c] sm:$0x1] }
 0x13d   : > { %v1030_v16 = vrot.slane %v1029_v29, 4  ;;  %v1609_v55 = vrot.slane %v1036_v14, 5  ;;  %v1610_v40 = vrot.slane %v1032_v0, 6  ;;  %v1615_v39 = vshll.u32 %v9268_v41, 16 }
 0x13e   : > { %7750 = vmatprep.mubr.msk.bf16.mxu1 %vm2214_vm1, %v7469_v27  ;;  %v1040_v62 = vrot.slane %v1039_v33, 4  ;;  %v1433_v54 = vmax.bf16 %v1327_v5, %v1222_v4  ;;  %v1867_v34 = vrot.slane %v719_v28, 6  ;;  %v1607_v59 = vor.u32 %v1606_v8, %v1605_v31 }
 0x13f   : > { %v1035_v58 = vsel %vm8312_vm11, %v1030_v16, %v1034_v12  ;;  %v1611_v38 = vor.u32 %v1610_v40, %v1609_v55  ;;  %v1869_v46 = vrot.slane %v720_v23, 6  ;;  %v1617_v25 = vrot.slane %v1615_v39, 6  ;;  %v11816_v40 = vld [vmem:[#allocation44_spill] sm:$0xff] }
 0x140   : > { %v1223_v9 = vmax.bf16 %v1035_v58, %v719_v28  ;;  %v1224_v57 = vmax.bf16 %v1040_v62, %v720_v23  ;;  %v1868_v13 = vrot.slane %v1867_v34, 4  ;;  %v1608_v32 = vrot.slane %v1607_v59, 4 }
 0x141   : > { %v1613_v14 = vrot.slane %v1611_v38, 4  ;;  %v1756_v0 = vmax.bf16 %v1607_v59, %v1433_v54  ;;  %v1871_v49 = vrot.slane %v1869_v46, 4  ;;  %v1872_v12 = vrot.slane %v9268_v41, 6 }
 0x142   : > { %v1434_v5 = vmax.bf16 %v1330_v6, %v1223_v9  ;;  %v1435_v60 = vmax.bf16 %v1331_v37, %v1224_v57  ;;  %v1870_v56 = vsel %vm8363_vm15, %v1868_v13, %v1869_v46  ;;  %v1612_v28 = vsel %vm8351_vm14, %v1608_v32, %v1611_v38 }
 0x143   : > { %v1618_v23 = vsel %vm8351_vm14, %v1613_v14, %v1617_v25  ;;  %v1983_v15 = vmax.bf16 %v1867_v34, %v1756_v0  ;;  %v3003_v21 = vmax.bf16 %v9274_v43, %v9136_v42  ;;  %v1873_v37 = vsel %vm8363_vm15, %v1871_v49, %v1872_v12 }
 0x144   : > { %v1757_v29 = vmax.bf16 %v1612_v28, %v1434_v5  ;;  %v1758_v31 = vmax.bf16 %v1618_v23, %v1435_v60  ;;  %v3064_v27 = vmax.bf16 %v3000_v53, %v9292_v10  ;;  %v3176_v4 = vshll.u32 %v9093_v18, 16 }
 0x145   : > { %v7454_v41 = vrot.slane %v1983_v15, 11  ;;  %v9309_v33 = vmax.bf16 %v3003_v21, %v9297_v3  ;;  %v3180_v6 = vshrl.u32 %v9093_v18, 16  ;;  %v3186_v43 = vshll.u32 %v11816_v40, 16 }
 0x146   : > { %v1984_v16 = vmax.bf16 %v1870_v56, %v1757_v29  ;;  %v1985_v8 = vmax.bf16 %v1873_v37, %v1758_v31  ;;  %v3171_v55 = vshrl.u32 %v3064_v27, 16  ;;  %v3178_v62 = vrot.slane %v3176_v4, 5 }
 0x147   : > { %v3182_v54 = vrot.slane %v3180_v6, 4  ;;  %v3190_v39 = vshrl.u32 %v11816_v40, 16  ;;  %v3658_v34 = vrot.slane %v9093_v18, 5  ;;  %v3188_v59 = vrot.slane %v3186_v43, 5 }
 0x148   : > { %v2128_v53 = vrot.slane %v1984_v16, 7  ;;  %v2131_v58 = vrot.slane %v1985_v8, 7  ;;  %v3660_v38 = vrot.slane %v11816_v40, 5  ;;  %v3179_v46 = vsel %vm8312_vm11, %v3171_v55, %v3178_v62 }
 0x149   : > { %v3183_v9 = vor.u32 %v3182_v54, %v3178_v62  ;;  %v3192_v57 = vrot.slane %v3190_v39, 4  ;;  %v3659_v25 = vrot.slane %v3658_v34, 4  ;;  %v3574_v14 = vmax.bf16 %v3179_v46, %v3064_v27 }
 0x14a   : > { %v2129_v13 = vsel %vm8429_vm3, %v7454_v41, %v2128_v53  ;;  %v2130_v32 = vrot.slane %v2128_v53, 4  ;;  %v3662_v0 = vrot.slane %v3660_v38, 4  ;;  %v3852_v56 = vrot.slane %v3180_v6, 5 }
 0x14b   : > { %2774 = vst.msk [vmem:[#allocation3 + $0xd4] sm:$0xf] %vm277_vm0, %v2129_v13  ;;  %v3184_v49 = vrot.slane %v3183_v9, 4  ;;  %v3193_v5 = vor.u32 %v3192_v57, %v3188_v59  ;;  %v3661_v60 = vsel %vm8328_vm12, %v3659_v25, %v3660_v38  ;;  %v3782_v28 = vmax.bf16 %v3658_v34, %v3574_v14  ;;  %v11819_v25 = vld [vmem:[#allocation37_spill] sm:$0xff] }
 0x14c   : > { %v2132_v12 = vsel %vm8429_vm3, %v2130_v32, %v2131_v58  ;;  %v3853_v23 = vrot.slane %v3176_v4, 6  ;;  %v3856_v15 = vrot.slane %v3190_v39, 5  ;;  %v3857_v37 = vrot.slane %v3186_v43, 6 }
 0x14d   : > { %v7470_v21 = vcombine.low %v2129_v13, %v2132_v12  ;;  %2775 = vst.msk [vmem:[#allocation3 + $0xd8] sm:$0xf] %vm277_vm0, %v2132_v12  ;;  %v3189_v29 = vsel %vm8312_vm11, %v3184_v49, %v3188_v59  ;;  %v3194_v31 = vrot.slane %v3193_v5, 4  ;;  %v3862_v16 = vshll.u32 %v9309_v33, 16  ;;  %v9356_v12 = vld [vmem:[#allocation3 + $0x78] sm:$0xf] }
 0x14e   : > { %v3575_v27 = vmax.bf16 %v3189_v29, %v9093_v18  ;;  %v3854_v41 = vor.u32 %v3853_v23, %v3852_v56  ;;  %v4174_v6 = vrot.slane %v9093_v18, 6  ;;  %v3858_v8 = vor.u32 %v3857_v37, %v3856_v15  ;;  %v9363_v29 = vld [vmem:[#allocation3 + $0x7c] sm:$0x1] }
 0x14f   : > { %7751 = vmatmul.mubr.msk.bf16.gmra.mrb[20].mxu1 %vm2214_vm1, %v7470_v21  ;;  %v3576_v4 = vmax.bf16 %v3194_v31, %v11816_v40  ;;  %v4176_v55 = vrot.slane %v11816_v40, 6  ;;  %v4179_v62 = vrot.slane %v9309_v33, 6  ;;  %v3864_v34 = vrot.slane %v3862_v16, 6  ;;  %v11818_v40 = vld [vmem:[#allocation40_spill] sm:$0xff]  ;;  %v11823_v31 = vld [vmem:[#allocation42_spill] sm:$0xff] }
 0x150   : > { %v3783_v54 = vmax.bf16 %v3661_v60, %v3575_v27  ;;  %v3855_v39 = vrot.slane %v3854_v41, 4  ;;  %v4102_v43 = vmax.bf16 %v3854_v41, %v3782_v28  ;;  %v3860_v58 = vrot.slane %v3858_v8, 4  ;;  %v11820_v33 = vld [vmem:[#allocation36_spill] sm:$0xff]  ;;  %v9352_v60 = vld [vmem:[#allocation3 + $0x70] sm:$0xf]  ;;  %v11824_v27 = vld [vmem:[#allocation43_spill] sm:$0xff] }
 0x151   : > { %v3784_v53 = vmax.bf16 %v3662_v0, %v3576_v4  ;;  %v4175_v59 = vrot.slane %v4174_v6, 4  ;;  %v4178_v38 = vrot.slane %v4176_v55, 4  ;;  %v11817_v9 = vmax.bf16 %v9017_v35, %v9010_v19  ;;  %v9354_v35 = vld [vmem:[#allocation3 + $0x74] sm:$0xf]  ;;  %v11825_v41 = vld [vmem:[#allocation41_spill] sm:$0xff] }
 0x152   : > { %v3859_v18 = vsel %vm8351_vm14, %v3855_v39, %v3858_v8  ;;  %v4326_v46 = vmax.bf16 %v4174_v6, %v4102_v43  ;;  %v11821_v13 = vmax.bf16 %v11819_v25, %v11820_v33  ;;  %v3865_v14 = vsel %vm8351_vm14, %v3860_v58, %v3864_v34  ;;  %v9368_v6 = vld [vmem:[#allocation3 + $0xc0] sm:$0xf]  ;;  %v9370_v4 = vld [vmem:[#allocation3 + $0xd0] sm:$0xf] }
 0x153   : > { %v2940_v57 = vmax.bf16 %v11817_v9, %v9129_v11  ;;  %v4103_v0 = vmax.bf16 %v3859_v18, %v3783_v54  ;;  %v4177_v49 = vsel %vm8363_vm15, %v4175_v59, %v4176_v55  ;;  %v4180_v5 = vsel %vm8363_vm15, %v4178_v38, %v4179_v62  ;;  %v9383_v38 = vld [vmem:[#allocation3 + $0xcc] sm:$0x1]  ;;  %v9385_v18 = vld [vmem:[#allocation3 + $0xdc] sm:$0x1] }
 0x154   : > { %v2941_v32 = vmax.bf16 %v11821_v13, %v11818_v40  ;;  %v4104_v56 = vmax.bf16 %v3865_v14, %v3784_v53  ;;  %v7542_v19 = vrot.slane %v4326_v46, 11  ;;  %v11822_v28 = vmax.bf16 %v9029_v20, %v9015_v1 }
 0x155   : > { %v3004_v15 = vmax.bf16 %v2940_v57, %v9292_v10  ;;  %v4327_v21 = vmax.bf16 %v4177_v49, %v4103_v0  ;;  %v3006_v16 = vmax.bf16 %v11825_v41, %v11824_v27 }
 0x156   : > { %v2943_v23 = vmax.bf16 %v11822_v28, %v9136_v42  ;;  %v3005_v37 = vmax.bf16 %v2941_v32, %v11823_v31  ;;  %v4328_v55 = vmax.bf16 %v4180_v5, %v4104_v56 }
 0x157   : > { %v3068_v20 = vmax.bf16 %v3004_v15, %v9352_v60  ;;  %v4432_v54 = vrot.slane %v4327_v21, 7  ;;  %v3070_v34 = vmax.bf16 %v3006_v16, %v9356_v12 }
 0x158   : > { %v3007_v1 = vmax.bf16 %v2943_v23, %v9297_v3  ;;  %v3069_v39 = vmax.bf16 %v3005_v37, %v9354_v35  ;;  %v4435_v53 = vrot.slane %v4328_v55, 7 }
 0x159   : > { %v3196_v59 = vshrl.u32 %v3068_v20, 16  ;;  %v4433_v9 = vsel %vm8429_vm3, %v7542_v19, %v4432_v54  ;;  %v4434_v57 = vrot.slane %v4432_v54, 4  ;;  %v3211_v32 = vshll.u32 %v3070_v34, 16 }
 0x15a   : > { %v3071_v58 = vmax.bf16 %v3007_v1, %v9363_v29  ;;  %v3201_v33 = vshll.u32 %v3069_v39, 16  ;;  %v3205_v13 = vshrl.u32 %v3069_v39, 16  ;;  %4861 = vst.msk [vmem:[#allocation3 + $0x44] sm:$0xf] %vm277_vm0, %v4433_v9  ;;  %v3215_v14 = vshrl.u32 %v3070_v34, 16 }
 0x15b   : > { %v3663_v0 = vrot.slane %v3069_v39, 5  ;;  %v3665_v49 = vrot.slane %v3070_v34, 5  ;;  %v4436_v5 = vsel %vm8429_vm3, %v4434_v57, %v4435_v53  ;;  %v3213_v21 = vrot.slane %v3211_v32, 5 }
 0x15c   : > { %v3203_v56 = vrot.slane %v3201_v33, 5  ;;  %v3207_v28 = vrot.slane %v3205_v13, 4  ;;  %v3866_v23 = vrot.slane %v3205_v13, 5  ;;  %v7558_v15 = vcombine.low %v4433_v9, %v4436_v5  ;;  %4862 = vst.msk [vmem:[#allocation3 + $0x48] sm:$0xf] %vm277_vm0, %v4436_v5 }
 0x15d   : > { %v3217_v19 = vrot.slane %v3215_v14, 4  ;;  %v3664_v31 = vrot.slane %v3663_v0, 4  ;;  %v3667_v41 = vrot.slane %v3665_v49, 4  ;;  %v3867_v16 = vrot.slane %v3201_v33, 6 }
 0x15e   : > { %v3204_v37 = vsel %vm8312_vm11, %v3196_v59, %v3203_v56  ;;  %v3208_v27 = vor.u32 %v3207_v28, %v3203_v56  ;;  %7802 = vmatprep.mubr.msk.bf16.mxu0 %vm2214_vm1, %v7558_v15  ;;  %v3870_v53 = vrot.slane %v3215_v14, 5  ;;  %v3871_v13 = vrot.slane %v3211_v32, 6 }
 0x15f   : > { %v3218_v55 = vor.u32 %v3217_v19, %v3213_v21  ;;  %v3577_v1 = vmax.bf16 %v3204_v37, %v3068_v20  ;;  %v3666_v54 = vsel %vm8328_vm12, %v3664_v31, %v3665_v49  ;;  %v3868_v57 = vor.u32 %v3867_v16, %v3866_v23 }
 0x160   : > { %v3209_v9 = vrot.slane %v3208_v27, 4  ;;  %v3876_v5 = vshll.u32 %v3071_v58, 16  ;;  %v4181_v62 = vrot.slane %v3069_v39, 6  ;;  %v4183_v8 = vrot.slane %v3070_v34, 6 }
 0x161   : > { %v3219_v46 = vrot.slane %v3218_v55, 4  ;;  %v3785_v43 = vmax.bf16 %v3663_v0, %v3577_v1  ;;  %v3869_v33 = vrot.slane %v3868_v57, 4  ;;  %v3872_v56 = vor.u32 %v3871_v13, %v3870_v53  ;;  %v9420_v1 = vld [vmem:[#allocation3 + $0x104] sm:$0xf] }
 0x162   : > { %v3214_v59 = vsel %vm8312_vm11, %v3209_v9, %v3213_v21  ;;  %v3878_v28 = vrot.slane %v3876_v5, 6  ;;  %v4182_v37 = vrot.slane %v4181_v62, 4  ;;  %v4185_v32 = vrot.slane %v4183_v8, 4  ;;  %v9426_v9 = vld [vmem:[#allocation3 + $0x108] sm:$0xf] }
 0x163   : > { %v3578_v15 = vmax.bf16 %v3214_v59, %v3069_v39  ;;  %v3579_v20 = vmax.bf16 %v3219_v46, %v3070_v34  ;;  %v4105_v19 = vmax.bf16 %v3868_v57, %v3785_v43  ;;  %v3873_v14 = vsel %vm8351_vm14, %v3869_v33, %v3872_v56 }
 0x164   : > { %v3874_v49 = vrot.slane %v3872_v56, 4  ;;  %v4186_v23 = vrot.slane %v3071_v58, 6  ;;  %v4184_v27 = vsel %vm8363_vm15, %v4182_v37, %v4183_v8  ;;  %v11826_v34 = vmax.bf16 %v9370_v4, %v9368_v6  ;;  %v9436_v56 = vld [vmem:[#allocation3 + $0x10c] sm:$0x1] }
 0x165   : > { %v3786_v31 = vmax.bf16 %v3666_v54, %v3578_v15  ;;  %v3787_v0 = vmax.bf16 %v3667_v41, %v3579_v20  ;;  %v4329_v16 = vmax.bf16 %v4181_v62, %v4105_v19  ;;  %v11827_v58 = vmax.bf16 %v8911_v52, %v8857_v36  ;;  %v9418_v62 = vld [vmem:[#allocation3 + $0x100] sm:$0xf] }
 0x166   : > { %v3879_v21 = vsel %vm8351_vm14, %v3874_v49, %v3878_v28  ;;  %v4187_v39 = vsel %vm8363_vm15, %v4185_v32, %v4186_v23  ;;  %v594_v43 = vmax.bf16 %v11826_v34, %v9182_v48  ;;  %v11828_v54 = vmax.bf16 %v8924_v17, %v8870_v51 }
 0x167   : > { %v595_v46 = vmax.bf16 %v11827_v58, %v9187_v45  ;;  %v4106_v41 = vmax.bf16 %v3873_v14, %v3786_v31  ;;  %v4107_v55 = vmax.bf16 %v3879_v21, %v3787_v0  ;;  %v7543_v8 = vrot.slane %v4329_v16, 11 }
 0x168   : > { %v596_v53 = vmax.bf16 %v11828_v54, %v9194_v44  ;;  %v11829_v6 = vmax.bf16 %v9385_v18, %v9383_v38  ;;  %v658_v57 = vmax.bf16 %v594_v43, %v9235_v24 }
 0x169   : > { %v659_v13 = vmax.bf16 %v595_v46, %v9243_v7  ;;  %v4330_v59 = vmax.bf16 %v4184_v27, %v4106_v41  ;;  %v4331_v33 = vmax.bf16 %v4187_v39, %v4107_v55 }
 0x16a   : > { %v597_v36 = vmax.bf16 %v11829_v6, %v9196_v61  ;;  %v660_v51 = vmax.bf16 %v596_v53, %v9245_v50  ;;  %v722_v38 = vmax.bf16 %v658_v57, %v9418_v62 }
 0x16b   : > { %v723_v20 = vmax.bf16 %v659_v13, %v9420_v1  ;;  %v4439_v37 = vrot.slane %v4330_v59, 7  ;;  %v4442_v14 = vrot.slane %v4331_v33, 7 }
 0x16c   : > { %v661_v15 = vmax.bf16 %v597_v36, %v9253_v30  ;;  %v724_v49 = vmax.bf16 %v660_v51, %v9426_v9  ;;  %v1042_v31 = vshrl.u32 %v722_v38, 16 }
 0x16d   : > { %v1047_v0 = vshll.u32 %v723_v20, 16  ;;  %v1051_v27 = vshrl.u32 %v723_v20, 16  ;;  %v4440_v16 = vsel %vm8429_vm3, %v7543_v8, %v4439_v37  ;;  %v4441_v21 = vrot.slane %v4439_v37, 4 }
 0x16e   : > { %v725_v23 = vmax.bf16 %v661_v15, %v9436_v56  ;;  %v1057_v39 = vshll.u32 %v724_v49, 16  ;;  %v1061_v34 = vshrl.u32 %v724_v49, 16  ;;  %4863 = vst.msk [vmem:[#allocation3 + $0x54] sm:$0xf] %vm277_vm0, %v4440_v16  ;;  %v1332_v46 = vrot.slane %v723_v20, 5 }
 0x16f   : > { %v1049_v43 = vrot.slane %v1047_v0, 5  ;;  %v1053_v58 = vrot.slane %v1051_v27, 4  ;;  %v1334_v41 = vrot.slane %v724_v49, 5  ;;  %v4443_v55 = vsel %vm8429_vm3, %v4441_v21, %v4442_v14 }
 0x170   : > { %v1059_v54 = vrot.slane %v1057_v39, 5  ;;  %v1063_v53 = vrot.slane %v1061_v34, 4  ;;  %v1619_v6 = vrot.slane %v1051_v27, 5  ;;  %v7559_v36 = vcombine.low %v4440_v16, %v4443_v55  ;;  %4864 = vst.msk [vmem:[#allocation3 + $0x58] sm:$0xf] %vm277_vm0, %v4443_v55 }
 0x171   : > { %v1050_v8 = vsel %vm8312_vm11, %v1042_v31, %v1049_v43  ;;  %v1054_v57 = vor.u32 %v1053_v58, %v1049_v43  ;;  %v1333_v13 = vrot.slane %v1332_v46, 4  ;;  %v1336_v51 = vrot.slane %v1334_v41, 4 }
 0x172   : > { %v1064_v59 = vor.u32 %v1063_v53, %v1059_v54  ;;  %v1225_v33 = vmax.bf16 %v1050_v8, %v722_v38  ;;  %v1620_v15 = vrot.slane %v1047_v0, 6  ;;  %7803 = vmatmul.mubr.msk.bf16.gmra.mrb[4].mxu0 %vm2214_vm1, %v7559_v36  ;;  %v1623_v21 = vrot.slane %v1061_v34, 5 }
 0x173   : > { %v1055_v37 = vrot.slane %v1054_v57, 4  ;;  %v1335_v14 = vsel %vm8328_vm12, %v1333_v13, %v1334_v41  ;;  %v1624_v27 = vrot.slane %v1057_v39, 6  ;;  %v1629_v19 = vshll.u32 %v725_v23, 16 }
 0x174   : > { %v1065_v16 = vrot.slane %v1064_v59, 4  ;;  %v1436_v32 = vmax.bf16 %v1332_v46, %v1225_v33  ;;  %v1621_v55 = vor.u32 %v1620_v15, %v1619_v6  ;;  %v1874_v58 = vrot.slane %v723_v20, 6 }
 0x175   : > { %v1060_v31 = vsel %vm8312_vm11, %v1055_v37, %v1059_v54  ;;  %v1625_v43 = vor.u32 %v1624_v27, %v1623_v21  ;;  %v1876_v38 = vrot.slane %v724_v49, 6  ;;  %v1631_v36 = vrot.slane %v1629_v19, 6 }
 0x176   : > { %v1226_v53 = vmax.bf16 %v1060_v31, %v723_v20  ;;  %v1227_v0 = vmax.bf16 %v1065_v16, %v724_v49  ;;  %v1622_v8 = vrot.slane %v1621_v55, 4  ;;  %v1759_v28 = vmax.bf16 %v1621_v55, %v1436_v32  ;;  %v9492_v55 = vld [vmem:[#allocation3 + $0x118] sm:$0xf] }
 0x177   : > { %v1627_v57 = vrot.slane %v1625_v43, 4  ;;  %v1875_v5 = vrot.slane %v1874_v58, 4  ;;  %v1878_v41 = vrot.slane %v1876_v38, 4  ;;  %v1879_v6 = vrot.slane %v725_v23, 6  ;;  %11836 = vst [vmem:[#allocation37_spill] sm:$0xff] %v9492_v55 }
 0x178   : > { %v1437_v34 = vmax.bf16 %v1335_v14, %v1226_v53  ;;  %v1438_v39 = vmax.bf16 %v1336_v51, %v1227_v0  ;;  %v1626_v46 = vsel %vm8351_vm14, %v1622_v8, %v1625_v43  ;;  %v1986_v20 = vmax.bf16 %v1874_v58, %v1759_v28  ;;  %v9475_v51 = vld [vmem:[#allocation3 + $0x110] sm:$0xf]  ;;  %v9497_v43 = vld [vmem:[#allocation3 + $0x40] sm:$0xf] }
 0x179   : > { %v1632_v54 = vsel %vm8351_vm14, %v1627_v57, %v1631_v36  ;;  %v1877_v13 = vsel %vm8363_vm15, %v1875_v5, %v1876_v38  ;;  %v11830_v19 = vmax.bf16 %v9370_v4, %v9182_v48  ;;  %v1880_v33 = vsel %vm8363_vm15, %v1878_v41, %v1879_v6  ;;  %11831 = vst [vmem:[#allocation44_spill] sm:$0xff] %v9475_v51  ;;  %v9481_v5 = vld [vmem:[#allocation3 + $0x114] sm:$0xf]  ;;  %v11839_v57 = vld [vmem:[#allocation39_spill] sm:$0xff]  ;;  %v9511_v6 = vld [vmem:[#allocation3 + $0x4c] sm:$0x1] }
 0x17a   : > { %v1760_v32 = vmax.bf16 %v1626_v46, %v1437_v34  ;;  %v1761_v59 = vmax.bf16 %v1632_v54, %v1438_v39  ;;  %v11832_v23 = vmax.bf16 %v9187_v45, %v8911_v52  ;;  %v7455_v37 = vrot.slane %v1986_v20, 11  ;;  %11833 = vst [vmem:[#allocation40_spill] sm:$0xff] %v9481_v5  ;;  %v9494_v52 = vld [vmem:[#allocation3 + $0x11c] sm:$0x1]  ;;  %v11838_v36 = vld [vmem:[#allocation38_spill] sm:$0xff] }
 0x17b   : > { %v598_v49 = vmax.bf16 %v11830_v19, %v9235_v24  ;;  %v11834_v48 = vmax.bf16 %v9194_v44, %v8924_v17  ;;  %v11835_v28 = vmax.bf16 %v9385_v18, %v9196_v61  ;;  %11837 = vst [vmem:[#allocation36_spill] sm:$0xff] %v9494_v52 }
 0x17c   : > { %v599_v15 = vmax.bf16 %v11832_v23, %v9243_v7  ;;  %v1987_v27 = vmax.bf16 %v1877_v13, %v1760_v32  ;;  %v1988_v16 = vmax.bf16 %v1880_v33, %v1761_v59 }
 0x17d   : > { %v600_v4 = vmax.bf16 %v11834_v48, %v9245_v50  ;;  %v601_v14 = vmax.bf16 %v11835_v28, %v9253_v30  ;;  %v662_v21 = vmax.bf16 %v598_v49, %v9418_v62 }
 0x17e   : > { %v663_v31 = vmax.bf16 %v599_v15, %v9420_v1  ;;  %v2135_v53 = vrot.slane %v1987_v27, 7  ;;  %v2138_v0 = vrot.slane %v1988_v16, 7 }
 0x17f   : > { %v664_v58 = vmax.bf16 %v600_v4, %v9426_v9  ;;  %v665_v61 = vmax.bf16 %v601_v14, %v9436_v56  ;;  %v726_v18 = vmax.bf16 %v662_v21, %v9475_v51 }
 0x180   : > { %v727_v8 = vmax.bf16 %v663_v31, %v9481_v5  ;;  %v2136_v13 = vsel %vm8429_vm3, %v7455_v37, %v2135_v53  ;;  %v2137_v20 = vrot.slane %v2135_v53, 4 }
 0x181   : > { %v728_v34 = vmax.bf16 %v664_v58, %v9492_v55  ;;  %v729_v39 = vmax.bf16 %v665_v61, %v9494_v52  ;;  %v1067_v46 = vshrl.u32 %v726_v18, 16  ;;  %2776 = vst.msk [vmem:[#allocation3 + $0xe4] sm:$0xf] %vm277_vm0, %v2136_v13 }
 0x182   : > { %v1072_v19 = vshll.u32 %v727_v8, 16  ;;  %v1076_v49 = vshrl.u32 %v727_v8, 16  ;;  %v1337_v33 = vrot.slane %v727_v8, 5  ;;  %v2139_v15 = vsel %vm8429_vm3, %v2137_v20, %v2138_v0 }
 0x183   : > { %v1082_v32 = vshll.u32 %v728_v34, 16  ;;  %v1086_v59 = vshrl.u32 %v728_v34, 16  ;;  %v1339_v23 = vrot.slane %v728_v34, 5  ;;  %v7471_v14 = vcombine.low %v2136_v13, %v2139_v15  ;;  %2777 = vst.msk [vmem:[#allocation3 + $0xe8] sm:$0xf] %vm277_vm0, %v2139_v15 }
 0x184   : > { %v1074_v48 = vrot.slane %v1072_v19, 5  ;;  %v1078_v4 = vrot.slane %v1076_v49, 4  ;;  %v1633_v28 = vrot.slane %v1076_v49, 5  ;;  %v1338_v27 = vrot.slane %v1337_v33, 4 }
 0x185   : > { %v1084_v21 = vrot.slane %v1082_v32, 5  ;;  %v1088_v37 = vrot.slane %v1086_v59, 4  ;;  %v1341_v58 = vrot.slane %v1339_v23, 4  ;;  %v1634_v61 = vrot.slane %v1072_v19, 6  ;;  %7754 = vmatprep.mubr.msk.bf16.mxu1 %vm2214_vm1, %v7471_v14 }
 0x186   : > { %v1075_v16 = vsel %vm8312_vm11, %v1067_v46, %v1074_v48  ;;  %v1079_v31 = vor.u32 %v1078_v4, %v1074_v48  ;;  %v1340_v0 = vsel %vm8328_vm12, %v1338_v27, %v1339_v23  ;;  %v1637_v20 = vrot.slane %v1086_v59, 5 }
 0x187   : > { %v1089_v53 = vor.u32 %v1088_v37, %v1084_v21  ;;  %v1228_v54 = vmax.bf16 %v1075_v16, %v726_v18  ;;  %v1635_v49 = vor.u32 %v1634_v61, %v1633_v28  ;;  %v1638_v15 = vrot.slane %v1082_v32, 6  ;;  %v9546_v61 = vld [vmem:[#allocation3 + $0x80] sm:$0xf] }
 0x188   : > { %v1080_v13 = vrot.slane %v1079_v31, 4  ;;  %v1643_v41 = vshll.u32 %v729_v39, 16  ;;  %v1881_v52 = vrot.slane %v727_v8, 6  ;;  %v1883_v55 = vrot.slane %v728_v34, 6 }
 0x189   : > { %v1090_v38 = vrot.slane %v1089_v53, 4  ;;  %v1439_v17 = vmax.bf16 %v1337_v33, %v1228_v54  ;;  %v1636_v19 = vrot.slane %v1635_v49, 4  ;;  %v1639_v48 = vor.u32 %v1638_v15, %v1637_v20  ;;  %v9548_v53 = vld [vmem:[#allocation3 + $0x84] sm:$0xf]  ;;  %v9556_v20 = vld [vmem:[#allocation3 + $0x88] sm:$0xf] }
 0x18a   : > { %v1085_v46 = vsel %vm8312_vm11, %v1080_v13, %v1084_v21  ;;  %v1645_v4 = vrot.slane %v1643_v41, 6  ;;  %v1882_v16 = vrot.slane %v1881_v52, 4  ;;  %v1885_v32 = vrot.slane %v1883_v55, 4  ;;  %v9540_v41 = vld [vmem:[#allocation3 + $0x64] sm:$0xf] }
 0x18b   : > { %v1229_v14 = vmax.bf16 %v1085_v46, %v727_v8  ;;  %v1230_v18 = vmax.bf16 %v1090_v38, %v728_v34  ;;  %v1762_v37 = vmax.bf16 %v1635_v49, %v1439_v17  ;;  %v1640_v59 = vsel %vm8351_vm14, %v1636_v19, %v1639_v48  ;;  %v9564_v46 = vld [vmem:[#allocation3 + $0x50] sm:$0xf] }
 0x18c   : > { %v1641_v23 = vrot.slane %v1639_v48, 4  ;;  %v1886_v28 = vrot.slane %v729_v39, 6  ;;  %v1884_v33 = vsel %vm8363_vm15, %v1882_v16, %v1883_v55  ;;  %v11840_v17 = vmax.bf16 %v9497_v43, %v9129_v11 }
 0x18d   : > { %v1440_v27 = vmax.bf16 %v1340_v0, %v1229_v14  ;;  %v1441_v54 = vmax.bf16 %v1341_v58, %v1230_v18  ;;  %v1989_v31 = vmax.bf16 %v1881_v52, %v1762_v37  ;;  %v11841_v34 = vmax.bf16 %v11818_v40, %v11819_v25  ;;  %v9550_v0 = vld [vmem:[#allocation3 + $0x68] sm:$0xf] }
 0x18e   : > { %v1646_v21 = vsel %vm8351_vm14, %v1641_v23, %v1645_v4  ;;  %v1887_v38 = vsel %vm8363_vm15, %v1885_v32, %v1886_v28  ;;  %v2944_v8 = vmax.bf16 %v11840_v17, %v9292_v10  ;;  %v11842_v11 = vmax.bf16 %v11839_v57, %v11838_v36  ;;  %v9568_v4 = vld [vmem:[#allocation3 + $0x8c] sm:$0x1]  ;;  %v9579_v28 = vld [vmem:[#allocation3 + $0x5c] sm:$0x1] }
 0x18f   : > { %v2945_v39 = vmax.bf16 %v9540_v41, %v11841_v34  ;;  %v1763_v55 = vmax.bf16 %v1640_v59, %v1440_v27  ;;  %v1764_v52 = vmax.bf16 %v1646_v21, %v1441_v54  ;;  %v7456_v58 = vrot.slane %v1989_v31, 11 }
 0x190   : > { %v2946_v43 = vmax.bf16 %v9550_v0, %v11842_v11  ;;  %v11843_v25 = vmax.bf16 %v9511_v6, %v9136_v42  ;;  %v3008_v49 = vmax.bf16 %v2944_v8, %v9352_v60 }
 0x191   : > { %v3009_v15 = vmax.bf16 %v2945_v39, %v9354_v35  ;;  %v1990_v48 = vmax.bf16 %v1884_v33, %v1763_v55  ;;  %v1991_v36 = vmax.bf16 %v1887_v38, %v1764_v52 }
 0x192   : > { %v2947_v13 = vmax.bf16 %v11843_v25, %v9297_v3  ;;  %v3010_v14 = vmax.bf16 %v2946_v43, %v9356_v12  ;;  %v3072_v6 = vmax.bf16 %v3008_v49, %v9546_v61 }
 0x193   : > { %v3073_v37 = vmax.bf16 %v3009_v15, %v9548_v53  ;;  %v2142_v59 = vrot.slane %v1990_v48, 7  ;;  %v2145_v23 = vrot.slane %v1991_v36, 7 }
 0x194   : > { %v3011_v42 = vmax.bf16 %v2947_v13, %v9363_v29  ;;  %v3074_v32 = vmax.bf16 %v3010_v14, %v9556_v20  ;;  %v3221_v33 = vshrl.u32 %v3072_v6, 16 }
 0x195   : > { %v3226_v31 = vshll.u32 %v3073_v37, 16  ;;  %v3230_v21 = vshrl.u32 %v3073_v37, 16  ;;  %v2143_v38 = vsel %vm8429_vm3, %v7456_v58, %v2142_v59  ;;  %v2144_v17 = vrot.slane %v2142_v59, 4 }
 0x196   : > { %v3075_v54 = vmax.bf16 %v3011_v42, %v9568_v4  ;;  %v3236_v8 = vshll.u32 %v3074_v32, 16  ;;  %v3240_v34 = vshrl.u32 %v3074_v32, 16  ;;  %2778 = vst.msk [vmem:[#allocation3 + $0xf4] sm:$0xf] %vm277_vm0, %v2143_v38  ;;  %v3668_v52 = vrot.slane %v3073_v37, 5 }
 0x197   : > { %v3228_v39 = vrot.slane %v3226_v31, 5  ;;  %v3232_v55 = vrot.slane %v3230_v21, 4  ;;  %v3670_v11 = vrot.slane %v3074_v32, 5  ;;  %v2146_v43 = vsel %vm8429_vm3, %v2144_v17, %v2145_v23 }
 0x198   : > { %v3238_v25 = vrot.slane %v3236_v8, 5  ;;  %v3242_v13 = vrot.slane %v3240_v34, 4  ;;  %v3880_v49 = vrot.slane %v3230_v21, 5  ;;  %v7472_v15 = vcombine.low %v2143_v38, %v2146_v43  ;;  %2779 = vst.msk [vmem:[#allocation3 + $0xf8] sm:$0xf] %vm277_vm0, %v2146_v43 }
 0x199   : > { %v3229_v58 = vsel %vm8312_vm11, %v3221_v33, %v3228_v39  ;;  %v3233_v48 = vor.u32 %v3232_v55, %v3228_v39  ;;  %v3669_v36 = vrot.slane %v3668_v52, 4  ;;  %v3672_v59 = vrot.slane %v3670_v11, 4 }
 0x19a   : > { %v3243_v14 = vor.u32 %v3242_v13, %v3238_v25  ;;  %v3580_v42 = vmax.bf16 %v3229_v58, %v3072_v6  ;;  %v3881_v27 = vrot.slane %v3226_v31, 6  ;;  %7755 = vmatmul.mubr.msk.bf16.gmra.mrb[24].mxu1 %vm2214_vm1, %v7472_v15  ;;  %v3884_v17 = vrot.slane %v3240_v34, 5 }
 0x19b   : > { %v3234_v16 = vrot.slane %v3233_v48, 4  ;;  %v3671_v23 = vsel %vm8328_vm12, %v3669_v36, %v3670_v11  ;;  %v3885_v21 = vrot.slane %v3236_v8, 6  ;;  %v3890_v19 = vshll.u32 %v3075_v54, 16 }
 0x19c   : > { %v3244_v38 = vrot.slane %v3243_v14, 4  ;;  %v3788_v18 = vmax.bf16 %v3668_v52, %v3580_v42  ;;  %v3882_v43 = vor.u32 %v3881_v27, %v3880_v49  ;;  %v4188_v55 = vrot.slane %v3073_v37, 6  ;;  %v9609_v14 = vld [vmem:[#allocation3 + $0x90] sm:$0xf] }
 0x19d   : > { %v3239_v33 = vsel %vm8312_vm11, %v3234_v16, %v3238_v25  ;;  %v3886_v39 = vor.u32 %v3885_v21, %v3884_v17  ;;  %v4190_v6 = vrot.slane %v3074_v32, 6  ;;  %v3892_v15 = vrot.slane %v3890_v19, 6  ;;  %11845 = vst [vmem:[#allocation42_spill] sm:$0xff] %v9609_v14 }
 0x19e   : > { %v3581_v13 = vmax.bf16 %v3239_v33, %v3073_v37  ;;  %v3582_v31 = vmax.bf16 %v3244_v38, %v3074_v32  ;;  %v3883_v58 = vrot.slane %v3882_v43, 4  ;;  %v4108_v5 = vmax.bf16 %v3882_v43, %v3788_v18  ;;  %v9626_v43 = vld [vmem:[#allocation3 + $0x98] sm:$0xf] }
 0x19f   : > { %v3888_v48 = vrot.slane %v3886_v39, 4  ;;  %v4189_v51 = vrot.slane %v4188_v55, 4  ;;  %v4192_v11 = vrot.slane %v4190_v6, 4  ;;  %v4193_v52 = vrot.slane %v3075_v54, 6  ;;  %11850 = vst [vmem:[#allocation41_spill] sm:$0xff] %v9626_v43 }
 0x1a0   : > { %v3789_v34 = vmax.bf16 %v3671_v23, %v3581_v13  ;;  %v3790_v8 = vmax.bf16 %v3672_v59, %v3582_v31  ;;  %v3887_v27 = vsel %vm8351_vm14, %v3883_v58, %v3886_v39  ;;  %v4332_v37 = vmax.bf16 %v4188_v55, %v4108_v5  ;;  %v9631_v39 = vld [vmem:[#allocation3 + $0xe0] sm:$0xf] }
 0x1a1   : > { %v3893_v16 = vsel %vm8351_vm14, %v3888_v48, %v3892_v15  ;;  %v4191_v25 = vsel %vm8363_vm15, %v4189_v51, %v4190_v6  ;;  %v11844_v19 = vmax.bf16 %v9564_v46, %v9292_v10  ;;  %v4194_v36 = vsel %vm8363_vm15, %v4192_v11, %v4193_v52  ;;  %v9615_v51 = vld [vmem:[#allocation3 + $0x94] sm:$0xf] }
 0x1a2   : > { %v4109_v32 = vmax.bf16 %v3887_v27, %v3789_v34  ;;  %v4110_v49 = vmax.bf16 %v3893_v16, %v3790_v8  ;;  %v11846_v54 = vmax.bf16 %v9540_v41, %v11818_v40  ;;  %v7544_v59 = vrot.slane %v4332_v37, 11  ;;  %11847 = vst [vmem:[#allocation43_spill] sm:$0xff] %v9615_v51  ;;  %v9628_v40 = vld [vmem:[#allocation3 + $0x9c] sm:$0x1]  ;;  %v9645_v8 = vld [vmem:[#allocation3 + $0xec] sm:$0x1] }
 0x1a3   : > { %v2948_v18 = vmax.bf16 %v11844_v19, %v9352_v60  ;;  %v11848_v10 = vmax.bf16 %v9550_v0, %v11839_v57  ;;  %v11849_v46 = vmax.bf16 %v9579_v28, %v9297_v3  ;;  %11851 = vst [vmem:[#allocation38_spill] sm:$0xff] %v9628_v40 }
 0x1a4   : > { %v2949_v42 = vmax.bf16 %v11846_v54, %v9354_v35  ;;  %v4333_v21 = vmax.bf16 %v4191_v25, %v4109_v32  ;;  %v4334_v38 = vmax.bf16 %v4194_v36, %v4110_v49 }
 0x1a5   : > { %v2950_v5 = vmax.bf16 %v11848_v10, %v9356_v12  ;;  %v2951_v23 = vmax.bf16 %v11849_v46, %v9363_v29  ;;  %v3012_v17 = vmax.bf16 %v2948_v18, %v9546_v61 }
 0x1a6   : > { %v3013_v33 = vmax.bf16 %v2949_v42, %v9548_v53  ;;  %v4446_v13 = vrot.slane %v4333_v21, 7  ;;  %v4449_v31 = vrot.slane %v4334_v38, 7 }
 0x1a7   : > { %v3014_v55 = vmax.bf16 %v2950_v5, %v9556_v20  ;;  %v3015_v3 = vmax.bf16 %v2951_v23, %v9568_v4  ;;  %v3076_v28 = vmax.bf16 %v3012_v17, %v9609_v14 }
 0x1a8   : > { %v3077_v58 = vmax.bf16 %v3013_v33, %v9615_v51  ;;  %v4447_v52 = vsel %vm8429_vm3, %v7544_v59, %v4446_v13  ;;  %v4448_v16 = vrot.slane %v4446_v13, 4 }
 0x1a9   : > { %v3078_v48 = vmax.bf16 %v3014_v55, %v9626_v43  ;;  %v3079_v11 = vmax.bf16 %v3015_v3, %v9628_v40  ;;  %v3246_v34 = vshrl.u32 %v3076_v28, 16  ;;  %4865 = vst.msk [vmem:[#allocation3 + $0x64] sm:$0xf] %vm277_vm0, %v4447_v52 }
 0x1aa   : > { %v3251_v25 = vshll.u32 %v3077_v58, 16  ;;  %v3255_v37 = vshrl.u32 %v3077_v58, 16  ;;  %v3673_v32 = vrot.slane %v3077_v58, 5  ;;  %v4450_v36 = vsel %vm8429_vm3, %v4448_v16, %v4449_v31 }
 0x1ab   : > { %v3261_v19 = vshll.u32 %v3078_v48, 16  ;;  %v3265_v18 = vshrl.u32 %v3078_v48, 16  ;;  %v3675_v49 = vrot.slane %v3078_v48, 5  ;;  %v7560_v5 = vcombine.low %v4447_v52, %v4450_v36  ;;  %4866 = vst.msk [vmem:[#allocation3 + $0x68] sm:$0xf] %vm277_vm0, %v4450_v36 }
 0x1ac   : > { %v3253_v54 = vrot.slane %v3251_v25, 5  ;;  %v3257_v42 = vrot.slane %v3255_v37, 4  ;;  %v3894_v10 = vrot.slane %v3255_v37, 5  ;;  %v3674_v23 = vrot.slane %v3673_v32, 4 }
 0x1ad   : > { %v3263_v46 = vrot.slane %v3261_v19, 5  ;;  %v3267_v59 = vrot.slane %v3265_v18, 4  ;;  %v3677_v38 = vrot.slane %v3675_v49, 4  ;;  %v3895_v33 = vrot.slane %v3251_v25, 6  ;;  %7806 = vmatprep.mubr.msk.bf16.mxu0 %vm2214_vm1, %v7560_v5 }
 0x1ae   : > { %v3254_v17 = vsel %vm8312_vm11, %v3246_v34, %v3253_v54  ;;  %v3258_v21 = vor.u32 %v3257_v42, %v3253_v54  ;;  %v3676_v13 = vsel %vm8328_vm12, %v3674_v23, %v3675_v49  ;;  %v3898_v31 = vrot.slane %v3265_v18, 5 }
 0x1af   : > { %v3268_v55 = vor.u32 %v3267_v59, %v3263_v46  ;;  %v3583_v3 = vmax.bf16 %v3254_v17, %v3076_v28  ;;  %v3896_v16 = vor.u32 %v3895_v33, %v3894_v10  ;;  %v3899_v37 = vrot.slane %v3261_v19, 6 }
 0x1b0   : > { %v3259_v52 = vrot.slane %v3258_v21, 4  ;;  %v3904_v36 = vshll.u32 %v3079_v11, 16  ;;  %v4195_v6 = vrot.slane %v3077_v58, 6  ;;  %v4197_v57 = vrot.slane %v3078_v48, 6 }
 0x1b1   : > { %v3269_v27 = vrot.slane %v3268_v55, 4  ;;  %v3791_v15 = vmax.bf16 %v3673_v32, %v3583_v3  ;;  %v3897_v25 = vrot.slane %v3896_v16, 4  ;;  %v3900_v54 = vor.u32 %v3899_v37, %v3898_v31  ;;  %v9680_v3 = vld [vmem:[#allocation3 + $0x124] sm:$0xf] }
 0x1b2   : > { %v3264_v34 = vsel %vm8312_vm11, %v3259_v52, %v3263_v46  ;;  %v3906_v42 = vrot.slane %v3904_v36, 6  ;;  %v4196_v17 = vrot.slane %v4195_v6, 4  ;;  %v4199_v19 = vrot.slane %v4197_v57, 4  ;;  %v9686_v52 = vld [vmem:[#allocation3 + $0x128] sm:$0xf]  ;;  %v11857_v37 = vld [vmem:[#allocation40_spill] sm:$0xff] }
 0x1b3   : > { %v3584_v5 = vmax.bf16 %v3264_v34, %v3077_v58  ;;  %v3585_v28 = vmax.bf16 %v3269_v27, %v3078_v48  ;;  %v4111_v59 = vmax.bf16 %v3896_v16, %v3791_v15  ;;  %v3901_v18 = vsel %vm8351_vm14, %v3897_v25, %v3900_v54  ;;  %v9694_v34 = vld [vmem:[#allocation3 + $0xf0] sm:$0xf] }
 0x1b4   : > { %v3902_v49 = vrot.slane %v3900_v54, 4  ;;  %v4200_v10 = vrot.slane %v3079_v11, 6  ;;  %v4198_v21 = vsel %vm8363_vm15, %v4196_v17, %v4197_v57  ;;  %v11852_v15 = vmax.bf16 %v9631_v39, %v9235_v24  ;;  %v11856_v39 = vld [vmem:[#allocation44_spill] sm:$0xff] }
 0x1b5   : > { %v3792_v23 = vmax.bf16 %v3676_v13, %v3584_v5  ;;  %v3793_v32 = vmax.bf16 %v3677_v38, %v3585_v28  ;;  %v4335_v33 = vmax.bf16 %v4195_v6, %v4111_v59  ;;  %v11853_v11 = vmax.bf16 %v9243_v7, %v9187_v45  ;;  %v9678_v6 = vld [vmem:[#allocation3 + $0x120] sm:$0xf]  ;;  %v11858_v5 = vld [vmem:[#allocation37_spill] sm:$0xff] }
 0x1b6   : > { %v3907_v46 = vsel %vm8351_vm14, %v3902_v49, %v3906_v42  ;;  %v4201_v58 = vsel %vm8363_vm15, %v4199_v19, %v4200_v10  ;;  %v602_v48 = vmax.bf16 %v11852_v15, %v9418_v62  ;;  %v11854_v13 = vmax.bf16 %v9245_v50, %v9194_v44  ;;  %v9698_v44 = vld [vmem:[#allocation3 + $0x12c] sm:$0x1] }
 0x1b7   : > { %v603_v27 = vmax.bf16 %v11853_v11, %v9420_v1  ;;  %v4112_v38 = vmax.bf16 %v3901_v18, %v3792_v23  ;;  %v4113_v55 = vmax.bf16 %v3907_v46, %v3793_v32  ;;  %v7545_v57 = vrot.slane %v4335_v33, 11  ;;  %v9709_v32 = vld [vmem:[#allocation3 + $0xfc] sm:$0x1] }
 0x1b8   : > { %v604_v31 = vmax.bf16 %v11854_v13, %v9426_v9  ;;  %v11855_v24 = vmax.bf16 %v9645_v8, %v9253_v30  ;;  %v666_v16 = vmax.bf16 %v602_v48, %v11856_v39  ;;  %v11859_v30 = vld [vmem:[#allocation36_spill] sm:$0xff] }
 0x1b9   : > { %v667_v36 = vmax.bf16 %v603_v27, %v11857_v37  ;;  %v4336_v54 = vmax.bf16 %v4198_v21, %v4112_v38  ;;  %v4337_v42 = vmax.bf16 %v4201_v58, %v4113_v55 }
 0x1ba   : > { %v605_v45 = vmax.bf16 %v11855_v24, %v9436_v56  ;;  %v668_v28 = vmax.bf16 %v604_v31, %v11858_v5  ;;  %v730_v17 = vmax.bf16 %v666_v16, %v9678_v6 }
 0x1bb   : > { %v731_v18 = vmax.bf16 %v667_v36, %v9680_v3  ;;  %v4453_v19 = vrot.slane %v4336_v54, 7  ;;  %v4456_v10 = vrot.slane %v4337_v42, 7 }
 0x1bc   : > { %v669_v8 = vmax.bf16 %v605_v45, %v11859_v30  ;;  %v732_v23 = vmax.bf16 %v668_v28, %v9686_v52  ;;  %v1092_v46 = vshrl.u32 %v730_v17, 16 }
 0x1bd   : > { %v1097_v58 = vshll.u32 %v731_v18, 16  ;;  %v1101_v15 = vshrl.u32 %v731_v18, 16  ;;  %v4454_v48 = vsel %vm8429_vm3, %v7545_v57, %v4453_v19  ;;  %v4455_v11 = vrot.slane %v4453_v19, 4 }
 0x1be   : > { %v733_v33 = vmax.bf16 %v669_v8, %v9698_v44  ;;  %v1107_v27 = vshll.u32 %v732_v23, 16  ;;  %v1111_v38 = vshrl.u32 %v732_v23, 16  ;;  %4867 = vst.msk [vmem:[#allocation3 + $0x74] sm:$0xf] %vm277_vm0, %v4454_v48  ;;  %v1342_v31 = vrot.slane %v731_v18, 5 }
 0x1bf   : > { %v1099_v55 = vrot.slane %v1097_v58, 5  ;;  %v1103_v13 = vrot.slane %v1101_v15, 4  ;;  %v1344_v24 = vrot.slane %v732_v23, 5  ;;  %v4457_v45 = vsel %vm8429_vm3, %v4455_v11, %v4456_v10 }
 0x1c0   : > { %v1109_v16 = vrot.slane %v1107_v27, 5  ;;  %v1113_v36 = vrot.slane %v1111_v38, 4  ;;  %v1647_v54 = vrot.slane %v1101_v15, 5  ;;  %v7561_v42 = vcombine.low %v4454_v48, %v4457_v45  ;;  %4868 = vst.msk [vmem:[#allocation3 + $0x78] sm:$0xf] %vm277_vm0, %v4457_v45 }
 0x1c1   : > { %v1100_v57 = vsel %vm8312_vm11, %v1092_v46, %v1099_v55  ;;  %v1104_v28 = vor.u32 %v1103_v13, %v1099_v55  ;;  %v1343_v8 = vrot.slane %v1342_v31, 4  ;;  %v1346_v49 = vrot.slane %v1344_v24, 4 }
 0x1c2   : > { %v1114_v19 = vor.u32 %v1113_v36, %v1109_v16  ;;  %v1231_v21 = vmax.bf16 %v1100_v57, %v730_v17  ;;  %v1648_v59 = vrot.slane %v1097_v58, 6  ;;  %7807 = vmatmul.mubr.msk.bf16.gmra.mrb[8].mxu0 %vm2214_vm1, %v7561_v42  ;;  %v1651_v11 = vrot.slane %v1111_v38, 5 }
 0x1c3   : > { %v1105_v25 = vrot.slane %v1104_v28, 4  ;;  %v1345_v10 = vsel %vm8328_vm12, %v1343_v8, %v1344_v24  ;;  %v1652_v15 = vrot.slane %v1107_v27, 6  ;;  %v1657_v43 = vshll.u32 %v733_v33, 16 }
 0x1c4   : > { %v1115_v48 = vrot.slane %v1114_v19, 4  ;;  %v1442_v40 = vmax.bf16 %v1342_v31, %v1231_v21  ;;  %v1649_v45 = vor.u32 %v1648_v59, %v1647_v54  ;;  %v1888_v13 = vrot.slane %v731_v18, 6  ;;  %v478_v54 = vld [vmem:[#allocation3 + $0x130] sm:$0xf] }
 0x1c5   : > { %v1110_v46 = vsel %vm8312_vm11, %v1105_v25, %v1109_v16  ;;  %v1653_v55 = vor.u32 %v1652_v15, %v1651_v11  ;;  %v1890_v17 = vrot.slane %v732_v23, 6  ;;  %v1659_v42 = vrot.slane %v1657_v43, 6 }
 0x1c6   : > { %v1232_v36 = vmax.bf16 %v1110_v46, %v731_v18  ;;  %v1233_v58 = vmax.bf16 %v1115_v48, %v732_v23  ;;  %v1650_v57 = vrot.slane %v1649_v45, 4  ;;  %v1765_v51 = vmax.bf16 %v1649_v45, %v1442_v40  ;;  %v480_v48 = vld [vmem:[#allocation3 + $0x138] sm:$0xf]  ;;  %v481_v45 = vld [vmem:[#allocation3 + $0x13c] sm:$0x1] }
 0x1c7   : > { %v1655_v28 = vrot.slane %v1653_v55, 4  ;;  %v1889_v14 = vrot.slane %v1888_v13, 4  ;;  %v1892_v24 = vrot.slane %v1890_v17, 4  ;;  %v1893_v21 = vrot.slane %v733_v33, 6 }
 0x1c8   : > { %v1443_v38 = vmax.bf16 %v1345_v10, %v1232_v36  ;;  %v1444_v27 = vmax.bf16 %v1346_v49, %v1233_v58  ;;  %v1654_v59 = vsel %vm8351_vm14, %v1650_v57, %v1653_v55  ;;  %v1992_v18 = vmax.bf16 %v1888_v13, %v1765_v51  ;;  %v479_v10 = vld [vmem:[#allocation3 + $0x134] sm:$0xf] }
 0x1c9   : > { %v1660_v25 = vsel %vm8351_vm14, %v1655_v28, %v1659_v42  ;;  %v1891_v31 = vsel %vm8363_vm15, %v1889_v14, %v1890_v17  ;;  %v11860_v43 = vmax.bf16 %v9694_v34, %v9418_v62  ;;  %v1894_v49 = vsel %vm8363_vm15, %v1892_v24, %v1893_v21  ;;  %v9763_v17 = vld [vmem:[#allocation3 + $0x6c] sm:$0x1] }
 0x1ca   : > { %v1766_v23 = vmax.bf16 %v1654_v59, %v1443_v38  ;;  %v1767_v16 = vmax.bf16 %v1660_v25, %v1444_v27  ;;  %v11861_v33 = vmax.bf16 %v9420_v1, %v9243_v7  ;;  %v7457_v19 = vrot.slane %v1992_v18, 11  ;;  %v9753_v1 = vld [vmem:[#allocation3 + $0x60] sm:$0xf] }
 0x1cb   : > { %v606_v40 = vmax.bf16 %v11860_v43, %v11856_v39  ;;  %v11862_v14 = vmax.bf16 %v9426_v9, %v9245_v50  ;;  %v11863_v62 = vmax.bf16 %v9709_v32, %v9436_v56  ;;  %v2889_v56 = vmax.bf16 %v9540_v41, %v9354_v35  ;;  %v11864_v41 = vld [vmem:[#allocation42_spill] sm:$0xff] }
 0x1cc   : > { %v607_v8 = vmax.bf16 %v11861_v33, %v11857_v37  ;;  %v1993_v11 = vmax.bf16 %v1891_v31, %v1766_v23  ;;  %v1994_v15 = vmax.bf16 %v1894_v49, %v1767_v16  ;;  %v2888_v37 = vmax.bf16 %v9753_v1, %v9352_v60 }
 0x1cd   : > { %v608_v51 = vmax.bf16 %v11862_v14, %v11858_v5  ;;  %v609_v39 = vmax.bf16 %v11863_v62, %v11859_v30  ;;  %v670_v34 = vmax.bf16 %v606_v40, %v9678_v6  ;;  %v2890_v46 = vmax.bf16 %v9550_v0, %v9356_v12  ;;  %v9816_v0 = vld [vmem:[#allocation3 + $0xac] sm:$0x1] }
 0x1ce   : > { %v671_v7 = vmax.bf16 %v607_v8, %v9680_v3  ;;  %v2149_v6 = vrot.slane %v1993_v11, 7  ;;  %v2152_v30 = vrot.slane %v1994_v15, 7 }
 0x1cf   : > { %v672_v50 = vmax.bf16 %v608_v51, %v9686_v52  ;;  %v673_v9 = vmax.bf16 %v609_v39, %v9698_v44  ;;  %v734_v5 = vmax.bf16 %v670_v34, %v478_v54  ;;  %v2891_v52 = vmax.bf16 %v9763_v17, %v9363_v29  ;;  %v11867_v29 = vld [vmem:[#allocation38_spill] sm:$0xff] }
 0x1d0   : > { %v735_v32 = vmax.bf16 %v671_v7, %v479_v10  ;;  %v2150_v44 = vsel %vm8429_vm3, %v7457_v19, %v2149_v6  ;;  %v2151_v36 = vrot.slane %v2149_v6, 4 }
 0x1d1   : > { %v736_v3 = vmax.bf16 %v672_v50, %v480_v48  ;;  %v737_v55 = vmax.bf16 %v673_v9, %v481_v45  ;;  %v1117_v13 = vshrl.u32 %v734_v5, 16  ;;  %2780 = vst.msk [vmem:[#allocation3 + $0x104] sm:$0xf] %vm277_vm0, %v2150_v44  ;;  %v2955_v60 = vmax.bf16 %v2891_v52, %v9568_v4 }
 0x1d2   : > { %v1122_v58 = vshll.u32 %v735_v32, 16  ;;  %v1126_v57 = vshrl.u32 %v735_v32, 16  ;;  %v1347_v24 = vrot.slane %v735_v32, 5  ;;  %v2153_v27 = vsel %vm8429_vm3, %v2151_v36, %v2152_v30 }
 0x1d3   : > { %v1132_v42 = vshll.u32 %v736_v3, 16  ;;  %v1136_v28 = vshrl.u32 %v736_v3, 16  ;;  %v1349_v38 = vrot.slane %v736_v3, 5  ;;  %v7473_v31 = vcombine.low %v2150_v44, %v2153_v27  ;;  %2781 = vst.msk [vmem:[#allocation3 + $0x108] sm:$0xf] %vm277_vm0, %v2153_v27 }
 0x1d4   : > { %v1124_v59 = vrot.slane %v1122_v58, 5  ;;  %v1128_v21 = vrot.slane %v1126_v57, 4  ;;  %v1661_v25 = vrot.slane %v1126_v57, 5  ;;  %v1348_v40 = vrot.slane %v1347_v24, 4 }
 0x1d5   : > { %v1134_v18 = vrot.slane %v1132_v42, 5  ;;  %v1138_v43 = vrot.slane %v1136_v28, 4  ;;  %v1351_v49 = vrot.slane %v1349_v38, 4  ;;  %v1662_v54 = vrot.slane %v1122_v58, 6  ;;  %7758 = vmatprep.mubr.msk.bf16.mxu1 %vm2214_vm1, %v7473_v31  ;;  %v9796_v31 = vld [vmem:[#allocation3 + $0xa0] sm:$0xf] }
 0x1d6   : > { %v1125_v23 = vsel %vm8312_vm11, %v1117_v13, %v1124_v59  ;;  %v1129_v16 = vor.u32 %v1128_v21, %v1124_v59  ;;  %v1350_v19 = vsel %vm8328_vm12, %v1348_v40, %v1349_v38  ;;  %v1665_v10 = vrot.slane %v1136_v28, 5  ;;  %v9804_v40 = vld [vmem:[#allocation3 + $0xa8] sm:$0xf] }
 0x1d7   : > { %v1139_v33 = vor.u32 %v1138_v43, %v1134_v18  ;;  %v1234_v8 = vmax.bf16 %v1125_v23, %v734_v5  ;;  %v1663_v51 = vor.u32 %v1662_v54, %v1661_v25  ;;  %v1666_v62 = vrot.slane %v1132_v42, 6  ;;  %v9812_v23 = vld [vmem:[#allocation3 + $0x70] sm:$0xf] }
 0x1d8   : > { %v1130_v14 = vrot.slane %v1129_v16, 4  ;;  %v1671_v39 = vshll.u32 %v737_v55, 16  ;;  %v1895_v15 = vrot.slane %v735_v32, 6  ;;  %v1897_v48 = vrot.slane %v736_v3, 6 }
 0x1d9   : > { %v1140_v34 = vrot.slane %v1139_v33, 4  ;;  %v1445_v11 = vmax.bf16 %v1347_v24, %v1234_v8  ;;  %v1664_v7 = vrot.slane %v1663_v51, 4  ;;  %v1667_v50 = vor.u32 %v1666_v62, %v1665_v10 }
 0x1da   : > { %v1135_v45 = vsel %vm8312_vm11, %v1130_v14, %v1134_v18  ;;  %v1673_v9 = vrot.slane %v1671_v39, 6  ;;  %v1896_v13 = vrot.slane %v1895_v15, 4  ;;  %v1899_v58 = vrot.slane %v1897_v48, 4  ;;  %v9798_v18 = vld [vmem:[#allocation3 + $0xa4] sm:$0xf] }
 0x1db   : > { %v1235_v6 = vmax.bf16 %v1135_v45, %v735_v32  ;;  %v1236_v5 = vmax.bf16 %v1140_v34, %v736_v3  ;;  %v1768_v30 = vmax.bf16 %v1663_v51, %v1445_v11  ;;  %v1668_v44 = vsel %vm8351_vm14, %v1664_v7, %v1667_v50  ;;  %v9827_v39 = vld [vmem:[#allocation3 + $0x7c] sm:$0x1] }
 0x1dc   : > { %v1669_v36 = vrot.slane %v1667_v50, 4  ;;  %v1900_v57 = vrot.slane %v737_v55, 6  ;;  %v1898_v24 = vsel %vm8363_vm15, %v1896_v13, %v1897_v48  ;;  %v2952_v3 = vmax.bf16 %v2888_v37, %v9546_v61  ;;  %v11865_v37 = vld [vmem:[#allocation43_spill] sm:$0xff] }
 0x1dd   : > { %v1446_v42 = vmax.bf16 %v1350_v19, %v1235_v6  ;;  %v1447_v28 = vmax.bf16 %v1351_v49, %v1236_v5  ;;  %v1995_v38 = vmax.bf16 %v1895_v15, %v1768_v30  ;;  %v2953_v55 = vmax.bf16 %v2889_v56, %v9548_v53 }
 0x1de   : > { %v1674_v27 = vsel %vm8351_vm14, %v1669_v36, %v1673_v9  ;;  %v1901_v32 = vsel %vm8363_vm15, %v1899_v58, %v1900_v57  ;;  %v2954_v43 = vmax.bf16 %v2890_v46, %v9556_v20  ;;  %v3016_v1 = vmax.bf16 %v2952_v3, %v11864_v41  ;;  %v11866_v46 = vld [vmem:[#allocation41_spill] sm:$0xff] }
 0x1df   : > { %v1769_v59 = vmax.bf16 %v1668_v44, %v1446_v42  ;;  %v1770_v21 = vmax.bf16 %v1674_v27, %v1447_v28  ;;  %v7458_v25 = vrot.slane %v1995_v38, 11  ;;  %v3017_v56 = vmax.bf16 %v2953_v55, %v11865_v37 }
 0x1e0   : > { %v2892_v16 = vmax.bf16 %v9812_v23, %v9546_v61  ;;  %v3018_v33 = vmax.bf16 %v2954_v43, %v11866_v46  ;;  %v2893_v8 = vmax.bf16 %v9548_v53, %v9354_v35  ;;  %v3019_v17 = vmax.bf16 %v2955_v60, %v11867_v29  ;;  %v9876_v35 = vld [vmem:[#allocation3 + $0xbc] sm:$0x1] }
 0x1e1   : > { %v1996_v49 = vmax.bf16 %v1898_v24, %v1769_v59  ;;  %v1997_v54 = vmax.bf16 %v1901_v32, %v1770_v21  ;;  %v3080_v52 = vmax.bf16 %v3016_v1, %v9796_v31  ;;  %v3081_v19 = vmax.bf16 %v3017_v56, %v9798_v18 }
 0x1e2   : > { %v2894_v10 = vmax.bf16 %v9556_v20, %v9356_v12  ;;  %v3082_v62 = vmax.bf16 %v3018_v33, %v9804_v40  ;;  %v2895_v34 = vmax.bf16 %v9827_v39, %v9568_v4  ;;  %v3083_v11 = vmax.bf16 %v3019_v17, %v9816_v0 }
 0x1e3   : > { %v2156_v14 = vrot.slane %v1996_v49, 7  ;;  %v2159_v51 = vrot.slane %v1997_v54, 7  ;;  %v3271_v15 = vshrl.u32 %v3080_v52, 16  ;;  %v3276_v48 = vshll.u32 %v3081_v19, 16 }
 0x1e4   : > { %v3280_v45 = vshrl.u32 %v3081_v19, 16  ;;  %v3286_v9 = vshll.u32 %v3082_v62, 16  ;;  %v3290_v6 = vshrl.u32 %v3082_v62, 16  ;;  %v3678_v13 = vrot.slane %v3081_v19, 5 }
 0x1e5   : > { %v2157_v7 = vsel %vm8429_vm3, %v7458_v25, %v2156_v14  ;;  %v2158_v50 = vrot.slane %v2156_v14, 4  ;;  %v3278_v5 = vrot.slane %v3276_v48, 5  ;;  %v3680_v44 = vrot.slane %v3082_v62, 5 }
 0x1e6   : > { %2782 = vst.msk [vmem:[#allocation3 + $0x114] sm:$0xf] %vm277_vm0, %v2157_v7  ;;  %v3282_v30 = vrot.slane %v3280_v45, 4  ;;  %v3288_v58 = vrot.slane %v3286_v9, 5  ;;  %v3292_v57 = vrot.slane %v3290_v6, 4  ;;  %v3908_v42 = vrot.slane %v3280_v45, 5 }
 0x1e7   : > { %v2160_v36 = vsel %vm8429_vm3, %v2158_v50, %v2159_v51  ;;  %v3279_v24 = vsel %vm8312_vm11, %v3271_v15, %v3278_v5  ;;  %v3679_v27 = vrot.slane %v3678_v13, 4  ;;  %v3682_v55 = vrot.slane %v3680_v44, 4 }
 0x1e8   : > { %v7474_v28 = vcombine.low %v2157_v7, %v2160_v36  ;;  %2783 = vst.msk [vmem:[#allocation3 + $0x118] sm:$0xf] %vm277_vm0, %v2160_v36  ;;  %v3283_v38 = vor.u32 %v3282_v30, %v3278_v5  ;;  %v3293_v32 = vor.u32 %v3292_v57, %v3288_v58  ;;  %v3586_v3 = vmax.bf16 %v3279_v24, %v3080_v52  ;;  %v9857_v24 = vld [vmem:[#allocation3 + $0xb0] sm:$0xf] }
 0x1e9   : > { %v3909_v59 = vrot.slane %v3276_v48, 6  ;;  %v3681_v25 = vsel %vm8328_vm12, %v3679_v27, %v3680_v44  ;;  %v3912_v43 = vrot.slane %v3290_v6, 5  ;;  %v3913_v60 = vrot.slane %v3286_v9, 6  ;;  %v9863_v27 = vld [vmem:[#allocation3 + $0xb4] sm:$0xf] }
 0x1ea   : > { %7759 = vmatmul.mubr.msk.bf16.gmra.mrb[28].mxu1 %vm2214_vm1, %v7474_v28  ;;  %v3284_v21 = vrot.slane %v3283_v38, 4  ;;  %v3294_v1 = vrot.slane %v3293_v32, 4  ;;  %v3794_v56 = vmax.bf16 %v3678_v13, %v3586_v3  ;;  %v3918_v54 = vshll.u32 %v3083_v11, 16 }
 0x1eb   : > { %v3910_v49 = vor.u32 %v3909_v59, %v3908_v42  ;;  %v3914_v17 = vor.u32 %v3913_v60, %v3912_v43  ;;  %v4202_v14 = vrot.slane %v3081_v19, 6  ;;  %v4204_v52 = vrot.slane %v3082_v62, 6  ;;  %v9874_v59 = vld [vmem:[#allocation3 + $0xb8] sm:$0xf]  ;;  %v11871_v60 = vld [vmem:[#allocation6_spill] sm:$0xff] }
 0x1ec   : > { %v3289_v33 = vsel %vm8312_vm11, %v3284_v21, %v3288_v58  ;;  %v3588_v15 = vmax.bf16 %v3294_v1, %v3082_v62  ;;  %v3920_v45 = vrot.slane %v3918_v54, 6  ;;  %v4207_v44 = vrot.slane %v3083_v11, 6  ;;  %v11868_v21 = vld [vmem:[#allocation5_spill] sm:$0xff] }
 0x1ed   : > { %v3587_v51 = vmax.bf16 %v3289_v33, %v3081_v19  ;;  %v3911_v48 = vrot.slane %v3910_v49, 4  ;;  %v3916_v7 = vrot.slane %v3914_v17, 4  ;;  %v4114_v50 = vmax.bf16 %v3910_v49, %v3794_v56 }
 0x1ee   : > { %v4203_v5 = vrot.slane %v4202_v14, 4  ;;  %v4206_v30 = vrot.slane %v4204_v52, 4  ;;  %v3796_v9 = vmax.bf16 %v3682_v55, %v3588_v15  ;;  %v2956_v62 = vmax.bf16 %v2892_v16, %v11864_v41 }
 0x1ef   : > { %v3795_v6 = vmax.bf16 %v3681_v25, %v3587_v51  ;;  %v3915_v13 = vsel %vm8351_vm14, %v3911_v48, %v3914_v17  ;;  %v3921_v36 = vsel %vm8351_vm14, %v3916_v7, %v3920_v45  ;;  %v4338_v19 = vmax.bf16 %v4202_v14, %v4114_v50  ;;  %v11869_v25 = vld [vmem:[#allocation4_spill] sm:$0xff] }
 0x1f0   : > { %v4205_v58 = vsel %vm8363_vm15, %v4203_v5, %v4204_v52  ;;  %v4116_v42 = vmax.bf16 %v3921_v36, %v3796_v9  ;;  %v4208_v28 = vsel %vm8363_vm15, %v4206_v30, %v4207_v44  ;;  %v2957_v11 = vmax.bf16 %v2893_v8, %v11865_v37 }
 0x1f1   : > { %v4115_v57 = vmax.bf16 %v3915_v13, %v3795_v6  ;;  %v7546_v38 = vrot.slane %v4338_v19, 11  ;;  %v2958_v23 = vmax.bf16 %v2894_v10, %v11866_v46  ;;  %v2959_v16 = vmax.bf16 %v2895_v34, %v11867_v29  ;;  %v11870_v34 = vld [vmem:[#allocation7_spill] sm:$0xff] }
 0x1f2   : > { %v3020_v32 = vmax.bf16 %v2956_v62, %v9796_v31  ;;  %v4340_v55 = vmax.bf16 %v4208_v28, %v4116_v42  ;;  %v3021_v8 = vmax.bf16 %v2957_v11, %v9798_v18  ;;  %v7492_v43 = vcombine.low %v11869_v25, %v11868_v21 }
 0x1f3   : > { %v4339_v3 = vmax.bf16 %v4205_v58, %v4115_v57  ;;  %v3022_v12 = vmax.bf16 %v2958_v23, %v9804_v40  ;;  %v3023_v10 = vmax.bf16 %v2959_v16, %v9816_v0  ;;  %v7493_v1 = vcombine.low %v11871_v60, %v11870_v34 }
 0x1f4   : > { %v3084_v39 = vmax.bf16 %v3020_v32, %v9857_v24  ;;  %v4463_v49 = vrot.slane %v4340_v55, 7  ;;  %v3085_v54 = vmax.bf16 %v3021_v8, %v9863_v27  ;;  %7764 = vmatprep.mubr.msk.bf16.mxu1 %vm2214_vm1, %v7492_v43  ;;  %v2896_v33 = vmax.bf16 %v11864_v41, %v9546_v61 }
 0x1f5   : > { %v4460_v56 = vrot.slane %v4339_v3, 7  ;;  %v3086_v17 = vmax.bf16 %v3022_v12, %v9874_v59  ;;  %v3087_v14 = vmax.bf16 %v3023_v10, %v9876_v35  ;;  %7765 = vmatmul.mubr.msk.bf16.vlgmr.msra.gmra.mrb[0].mxu1 %vm2214_vm1, %v7493_v1  ;;  %v2897_v51 = vmax.bf16 %v11865_v37, %v9548_v53 }
 0x1f6   : > { %v3296_v52 = vshrl.u32 %v3084_v39, 16  ;;  %v3301_v45 = vshll.u32 %v3085_v54, 16  ;;  %v3305_v7 = vshrl.u32 %v3085_v54, 16  ;;  %v3683_v30 = vrot.slane %v3085_v54, 5 }
 0x1f7   : > { %v4461_v15 = vsel %vm8429_vm3, %v7546_v38, %v4460_v56  ;;  %v4462_v48 = vrot.slane %v4460_v56, 4  ;;  %v3311_v50 = vshll.u32 %v3086_v17, 16  ;;  %v3315_v5 = vshrl.u32 %v3086_v17, 16 }
 0x1f8   : > { %4869 = vst.msk [vmem:[#allocation3 + $0x84] sm:$0xf] %vm277_vm0, %v4461_v15  ;;  %v3685_v6 = vrot.slane %v3086_v17, 5  ;;  %v3303_v13 = vrot.slane %v3301_v45, 5  ;;  %v3307_v44 = vrot.slane %v3305_v7, 4  ;;  %v3922_v36 = vrot.slane %v3305_v7, 5 }
 0x1f9   : > { %v4464_v9 = vsel %vm8429_vm3, %v4462_v48, %v4463_v49  ;;  %v3313_v53 = vrot.slane %v3311_v50, 5  ;;  %v3317_v19 = vrot.slane %v3315_v5, 4  ;;  %v3684_v62 = vrot.slane %v3683_v30, 4 }
 0x1fa   : > { %v7562_v58 = vcombine.low %v4461_v15, %v4464_v9  ;;  %4870 = vst.msk [vmem:[#allocation3 + $0x88] sm:$0xf] %vm277_vm0, %v4464_v9  ;;  %v3304_v57 = vsel %vm8312_vm11, %v3296_v52, %v3303_v13  ;;  %v3308_v42 = vor.u32 %v3307_v44, %v3303_v13  ;;  %v3687_v28 = vrot.slane %v3685_v6, 4 }
 0x1fb   : > { %v3923_v11 = vrot.slane %v3301_v45, 6  ;;  %v3318_v38 = vor.u32 %v3317_v19, %v3313_v53  ;;  %v3589_v23 = vmax.bf16 %v3304_v57, %v3084_v39  ;;  %v3686_v16 = vsel %vm8328_vm12, %v3684_v62, %v3685_v6  ;;  %v9924_v19 = vld [vmem:[#allocation3 + $0xc0] sm:$0xf] }
 0x1fc   : > { %7810 = vmatprep.mubr.msk.bf16.mxu0 %vm2214_vm1, %v7562_v58  ;;  %v3926_v32 = vrot.slane %v3315_v5, 5  ;;  %v3309_v3 = vrot.slane %v3308_v42, 4  ;;  %v3927_v8 = vrot.slane %v3311_v50, 6  ;;  %v3932_v21 = vshll.u32 %v3087_v14, 16 }
 0x1fd   : > { %v3924_v55 = vor.u32 %v3923_v11, %v3922_v36  ;;  %v3319_v25 = vrot.slane %v3318_v38, 4  ;;  %v3797_v43 = vmax.bf16 %v3683_v30, %v3589_v23  ;;  %v4209_v12 = vrot.slane %v3085_v54, 6  ;;  %v9931_v11 = vld [vmem:[#allocation3 + $0xc4] sm:$0xf]  ;;  %v9933_v38 = vld [vmem:[#allocation3 + $0xc8] sm:$0xf] }
 0x1fe   : > { %v4211_v10 = vrot.slane %v3086_v17, 6  ;;  %v3314_v34 = vsel %vm8312_vm11, %v3309_v3, %v3313_v53  ;;  %v3928_v1 = vor.u32 %v3927_v8, %v3926_v32  ;;  %v3934_v56 = vrot.slane %v3932_v21, 6  ;;  %v9935_v23 = vld [vmem:[#allocation3 + $0xcc] sm:$0x1] }
 0x1ff   : > { %v3925_v60 = vrot.slane %v3924_v55, 4  ;;  %v3590_v49 = vmax.bf16 %v3314_v34, %v3085_v54  ;;  %v3591_v39 = vmax.bf16 %v3319_v25, %v3086_v17  ;;  %v4117_v52 = vmax.bf16 %v3924_v55, %v3797_v43 }
 0x200   : > { %v4210_v15 = vrot.slane %v4209_v12, 4  ;;  %v3930_v45 = vrot.slane %v3928_v1, 4  ;;  %v4213_v7 = vrot.slane %v4211_v10, 4  ;;  %v4214_v50 = vrot.slane %v3087_v14, 6 }
 0x201   : > { %v3929_v48 = vsel %vm8351_vm14, %v3925_v60, %v3928_v1  ;;  %v3798_v5 = vmax.bf16 %v3686_v16, %v3590_v49  ;;  %v3799_v30 = vmax.bf16 %v3687_v28, %v3591_v39  ;;  %v4341_v9 = vmax.bf16 %v4209_v12, %v4117_v52 }
 0x202   : > { %v4212_v6 = vsel %vm8363_vm15, %v4210_v15, %v4211_v10  ;;  %v3935_v13 = vsel %vm8351_vm14, %v3930_v45, %v3934_v56  ;;  %v4215_v54 = vsel %vm8363_vm15, %v4213_v7, %v4214_v50  ;;  %v2898_v17 = vmax.bf16 %v11866_v46, %v9556_v20 }
 0x203   : > { %v2899_v44 = vmax.bf16 %v11867_v29, %v9568_v4  ;;  %v4118_v36 = vmax.bf16 %v3929_v48, %v3798_v5  ;;  %v4119_v14 = vmax.bf16 %v3935_v13, %v3799_v30  ;;  %v7547_v58 = vrot.slane %v4341_v9, 11 }
 0x204   : > { %v2960_v53 = vmax.bf16 %v2896_v33, %v9796_v31  ;;  %v2961_v62 = vmax.bf16 %v2897_v51, %v9798_v18  ;;  %v2962_v57 = vmax.bf16 %v2898_v17, %v9804_v40  ;;  %v2900_v20 = vmax.bf16 %v9796_v31, %v11864_v41 }
 0x205   : > { %v2963_v42 = vmax.bf16 %v2899_v44, %v9816_v0  ;;  %v4342_v4 = vmax.bf16 %v4212_v6, %v4118_v36  ;;  %v4343_v28 = vmax.bf16 %v4215_v54, %v4119_v14  ;;  %v2901_v33 = vmax.bf16 %v9798_v18, %v11865_v37 }
 0x206   : > { %v3024_v61 = vmax.bf16 %v2960_v53, %v9857_v24  ;;  %v3025_v51 = vmax.bf16 %v2961_v62, %v9863_v27  ;;  %v3026_v16 = vmax.bf16 %v2962_v57, %v9874_v59  ;;  %v2902_v41 = vmax.bf16 %v9804_v40, %v11866_v46 }
 0x207   : > { %v3027_v32 = vmax.bf16 %v2963_v42, %v9876_v35  ;;  %v4467_v3 = vrot.slane %v4342_v4, 7  ;;  %v4470_v55 = vrot.slane %v4343_v28, 7  ;;  %v2903_v21 = vmax.bf16 %v9816_v0, %v11867_v29 }
 0x208   : > { %v3088_v8 = vmax.bf16 %v3024_v61, %v9924_v19  ;;  %v3089_v25 = vmax.bf16 %v3025_v51, %v9931_v11  ;;  %v3090_v37 = vmax.bf16 %v3026_v16, %v9933_v38  ;;  %v9952_v12 = vmax.bf16 %v2900_v20, %v9857_v24 }
 0x209   : > { %v3091_v43 = vmax.bf16 %v3027_v32, %v9935_v23  ;;  %v4468_v10 = vsel %vm8429_vm3, %v7547_v58, %v4467_v3  ;;  %v4469_v46 = vrot.slane %v4467_v3, 4  ;;  %v9957_v60 = vmax.bf16 %v2901_v33, %v9863_v27 }
 0x20a   : > { %v3321_v34 = vshrl.u32 %v3088_v8, 16  ;;  %4871 = vst.msk [vmem:[#allocation3 + $0x94] sm:$0xf] %vm277_vm0, %v4468_v10  ;;  %v3326_v1 = vshll.u32 %v3089_v25, 16  ;;  %v3330_v56 = vshrl.u32 %v3089_v25, 16  ;;  %v3336_v49 = vshll.u32 %v3090_v37, 16 }
 0x20b   : > { %v3340_v39 = vshrl.u32 %v3090_v37, 16  ;;  %v4471_v52 = vsel %vm8429_vm3, %v4469_v46, %v4470_v55  ;;  %v3688_v15 = vrot.slane %v3089_v25, 5  ;;  %v3690_v48 = vrot.slane %v3090_v37, 5 }
 0x20c   : > { %v3946_v45 = vshll.u32 %v3091_v43, 16  ;;  %v7563_v7 = vcombine.low %v4468_v10, %v4471_v52  ;;  %4872 = vst.msk [vmem:[#allocation3 + $0x98] sm:$0xf] %vm277_vm0, %v4471_v52  ;;  %v3328_v50 = vrot.slane %v3326_v1, 5  ;;  %v3332_v5 = vrot.slane %v3330_v56, 4 }
 0x20d   : > { %v3338_v30 = vrot.slane %v3336_v49, 5  ;;  %v3342_v6 = vrot.slane %v3340_v39, 4  ;;  %v3689_v9 = vrot.slane %v3688_v15, 4  ;;  %v3692_v13 = vrot.slane %v3690_v48, 4 }
 0x20e   : > { %v3936_v54 = vrot.slane %v3330_v56, 5  ;;  %7811 = vmatmul.mubr.msk.bf16.gmra.mrb[12].mxu0 %vm2214_vm1, %v7563_v7  ;;  %v3329_v17 = vsel %vm8312_vm11, %v3321_v34, %v3328_v50  ;;  %v3333_v44 = vor.u32 %v3332_v5, %v3328_v50  ;;  %v3937_v36 = vrot.slane %v3326_v1, 6  ;;  %v9983_v50 = vld [vmem:[#allocation3 + $0xd8] sm:$0xf] }
 0x20f   : > { %v3940_v14 = vrot.slane %v3340_v39, 5  ;;  %v3343_v58 = vor.u32 %v3342_v6, %v3338_v30  ;;  %v3592_v53 = vmax.bf16 %v3329_v17, %v3088_v8  ;;  %v3691_v62 = vsel %vm8328_vm12, %v3689_v9, %v3690_v48 }
 0x210   : > { %v3941_v57 = vrot.slane %v3336_v49, 6  ;;  %v3334_v42 = vrot.slane %v3333_v44, 4  ;;  %v3938_v20 = vor.u32 %v3937_v36, %v3936_v54  ;;  %v3948_v4 = vrot.slane %v3946_v45, 6  ;;  %v9993_v54 = vld [vmem:[#allocation3 + $0xdc] sm:$0x1] }
 0x211   : > { %v4216_v28 = vrot.slane %v3089_v25, 6  ;;  %v3344_v61 = vrot.slane %v3343_v58, 4  ;;  %v3800_v33 = vmax.bf16 %v3688_v15, %v3592_v53  ;;  %v4218_v16 = vrot.slane %v3090_v37, 6 }
 0x212   : > { %v3942_v51 = vor.u32 %v3941_v57, %v3940_v14  ;;  %v3339_v32 = vsel %vm8312_vm11, %v3334_v42, %v3338_v30  ;;  %v3939_v3 = vrot.slane %v3938_v20, 4  ;;  %v4221_v10 = vrot.slane %v3091_v43, 6  ;;  %v9977_v43 = vld [vmem:[#allocation3 + $0xd0] sm:$0xf]  ;;  %v11873_v14 = vld [vmem:[#allocation8_spill] sm:$0xff] }
 0x213   : > { %v4217_v55 = vrot.slane %v4216_v28, 4  ;;  %v3593_v46 = vmax.bf16 %v3339_v32, %v3089_v25  ;;  %v3594_v8 = vmax.bf16 %v3344_v61, %v3090_v37  ;;  %v4120_v1 = vmax.bf16 %v3938_v20, %v3800_v33  ;;  %v9979_v25 = vld [vmem:[#allocation3 + $0xd4] sm:$0xf] }
 0x214   : > { %v3944_v34 = vrot.slane %v3942_v51, 4  ;;  %v3943_v56 = vsel %vm8351_vm14, %v3939_v3, %v3942_v51  ;;  %v4220_v39 = vrot.slane %v4218_v16, 4  ;;  %v2966_v52 = vmax.bf16 %v2902_v41, %v9874_v59  ;;  %v11875_v57 = vld [vmem:[#allocation10_spill] sm:$0xff] }
 0x215   : > { %v4219_v49 = vsel %vm8363_vm15, %v4217_v55, %v4218_v16  ;;  %v3801_v15 = vmax.bf16 %v3691_v62, %v3593_v46  ;;  %v3802_v48 = vmax.bf16 %v3692_v13, %v3594_v8  ;;  %v4344_v7 = vmax.bf16 %v4216_v28, %v4120_v1  ;;  %v11874_v62 = vld [vmem:[#allocation11_spill] sm:$0xff] }
 0x216   : > { %v3949_v45 = vsel %vm8351_vm14, %v3944_v34, %v3948_v4  ;;  %v4222_v37 = vsel %vm8363_vm15, %v4220_v39, %v4221_v10  ;;  %v2967_v41 = vmax.bf16 %v2903_v21, %v9876_v35  ;;  %v3028_v5 = vmax.bf16 %v9952_v12, %v9924_v19  ;;  %v11872_v21 = vld [vmem:[#allocation9_spill] sm:$0xff] }
 0x217   : > { %v3029_v30 = vmax.bf16 %v9957_v60, %v9931_v11  ;;  %v4121_v6 = vmax.bf16 %v3943_v56, %v3801_v15  ;;  %v4122_v9 = vmax.bf16 %v3949_v45, %v3802_v48  ;;  %v7548_v13 = vrot.slane %v4344_v7, 11 }
 0x218   : > { %v3030_v17 = vmax.bf16 %v2966_v52, %v9933_v38  ;;  %v3031_v44 = vmax.bf16 %v2967_v41, %v9935_v23  ;;  %v3092_v36 = vmax.bf16 %v3028_v5, %v9977_v43  ;;  %v7494_v12 = vcombine.low %v11873_v14, %v11872_v21 }
 0x219   : > { %v9999_v29 = vmax.bf16 %v3029_v30, %v9979_v25  ;;  %v4345_v58 = vmax.bf16 %v4219_v49, %v4121_v6  ;;  %v4346_v53 = vmax.bf16 %v4222_v37, %v4122_v9  ;;  %v7495_v42 = vcombine.low %v11875_v57, %v11874_v62 }
 0x21a   : > { %v3094_v60 = vmax.bf16 %v3030_v17, %v9983_v50  ;;  %v10007_v20 = vmax.bf16 %v3031_v44, %v9993_v54  ;;  %v3346_v4 = vshrl.u32 %v3092_v36, 16  ;;  %7768 = vmatprep.mubr.msk.bf16.mxu1 %vm2214_vm1, %v7494_v12 }
 0x21b   : > { %v3351_v28 = vshll.u32 %v9999_v29, 16  ;;  %v3355_v61 = vshrl.u32 %v9999_v29, 16  ;;  %v4474_v33 = vrot.slane %v4345_v58, 7  ;;  %v4477_v51 = vrot.slane %v4346_v53, 7  ;;  %7769 = vmatmul.mubr.msk.bf16.gmra.mrb[4].mxu1 %vm2214_vm1, %v7495_v42 }
 0x21c   : > { %v3361_v16 = vshll.u32 %v3094_v60, 16  ;;  %v3365_v32 = vshrl.u32 %v3094_v60, 16  ;;  %v3693_v10 = vrot.slane %v9999_v29, 5  ;;  %v3695_v46 = vrot.slane %v3094_v60, 5 }
 0x21d   : > { %v3353_v3 = vrot.slane %v3351_v28, 5  ;;  %v3357_v55 = vrot.slane %v3355_v61, 4  ;;  %v4475_v8 = vsel %vm8429_vm3, %v7548_v13, %v4474_v33  ;;  %v4476_v34 = vrot.slane %v4474_v33, 4 }
 0x21e   : > { %v3363_v1 = vrot.slane %v3361_v16, 5  ;;  %v3367_v56 = vrot.slane %v3365_v32, 4  ;;  %4873 = vst.msk [vmem:[#allocation3 + $0xa4] sm:$0xf] %vm277_vm0, %v4475_v8  ;;  %v3694_v52 = vrot.slane %v3693_v10, 4  ;;  %v3697_v15 = vrot.slane %v3695_v46, 4 }
 0x21f   : > { %v3354_v49 = vsel %vm8312_vm11, %v3346_v4, %v3353_v3  ;;  %v3358_v39 = vor.u32 %v3357_v55, %v3353_v3  ;;  %v4478_v48 = vsel %vm8429_vm3, %v4476_v34, %v4477_v51  ;;  %v3950_v37 = vrot.slane %v3355_v61, 5 }
 0x220   : > { %v3368_v45 = vor.u32 %v3367_v56, %v3363_v1  ;;  %v3595_v7 = vmax.bf16 %v3354_v49, %v3092_v36  ;;  %v7564_v41 = vcombine.low %v4475_v8, %v4478_v48  ;;  %4874 = vst.msk [vmem:[#allocation3 + $0xa8] sm:$0xf] %vm277_vm0, %v4478_v48  ;;  %v3696_v30 = vsel %vm8328_vm12, %v3694_v52, %v3695_v46 }
 0x221   : > { %v3359_v5 = vrot.slane %v3358_v39, 4  ;;  %v3951_v6 = vrot.slane %v3351_v28, 6  ;;  %v3954_v17 = vrot.slane %v3365_v32, 5  ;;  %v3955_v44 = vrot.slane %v3361_v16, 6 }
 0x222   : > { %v3369_v9 = vrot.slane %v3368_v45, 4  ;;  %v3803_v13 = vmax.bf16 %v3693_v10, %v3595_v7  ;;  %7814 = vmatprep.mubr.msk.bf16.mxu0 %vm2214_vm1, %v7564_v41  ;;  %v3960_v36 = vshll.u32 %v10007_v20, 16  ;;  %v4223_v12 = vrot.slane %v9999_v29, 6  ;;  %v10049_v45 = vld [vmem:[#allocation3 + $0xe0] sm:$0xf] }
 0x223   : > { %v3364_v21 = vsel %vm8312_vm11, %v3359_v5, %v3363_v1  ;;  %v3952_v14 = vor.u32 %v3951_v6, %v3950_v37  ;;  %v3956_v62 = vor.u32 %v3955_v44, %v3954_v17  ;;  %v4225_v57 = vrot.slane %v3094_v60, 6  ;;  %v10056_v41 = vld [vmem:[#allocation3 + $0xe4] sm:$0xf]  ;;  %v10058_v5 = vld [vmem:[#allocation3 + $0xe8] sm:$0xf] }
 0x224   : > { %v3596_v58 = vmax.bf16 %v3364_v21, %v9999_v29  ;;  %v3597_v53 = vmax.bf16 %v3369_v9, %v3094_v60  ;;  %v3962_v4 = vrot.slane %v3960_v36, 6  ;;  %v4224_v61 = vrot.slane %v4223_v12, 4 }
 0x225   : > { %v3953_v42 = vrot.slane %v3952_v14, 4  ;;  %v4123_v28 = vmax.bf16 %v3952_v14, %v3803_v13  ;;  %v3958_v16 = vrot.slane %v3956_v62, 4  ;;  %v4227_v32 = vrot.slane %v4225_v57, 4  ;;  %v10063_v13 = vld [vmem:[#allocation3 + $0xec] sm:$0x1] }
 0x226   : > { %v3804_v33 = vmax.bf16 %v3696_v30, %v3596_v58  ;;  %v3805_v51 = vmax.bf16 %v3697_v15, %v3597_v53  ;;  %v4226_v55 = vsel %vm8363_vm15, %v4224_v61, %v4225_v57  ;;  %v4228_v10 = vrot.slane %v10007_v20, 6 }
 0x227   : > { %v3957_v3 = vsel %vm8351_vm14, %v3953_v42, %v3956_v62  ;;  %v4347_v29 = vmax.bf16 %v4223_v12, %v4123_v28  ;;  %v3963_v60 = vsel %vm8351_vm14, %v3958_v16, %v3962_v4  ;;  %v2904_v8 = vmax.bf16 %v9857_v24, %v9796_v31 }
 0x228   : > { %v4124_v46 = vmax.bf16 %v3957_v3, %v3804_v33  ;;  %v2905_v34 = vmax.bf16 %v9863_v27, %v9798_v18  ;;  %v4125_v1 = vmax.bf16 %v3963_v60, %v3805_v51  ;;  %v4229_v56 = vsel %vm8363_vm15, %v4227_v32, %v4228_v10 }
 0x229   : > { %v7549_v49 = vrot.slane %v4347_v29, 11  ;;  %v2906_v39 = vmax.bf16 %v9874_v59, %v9804_v40  ;;  %v2907_v52 = vmax.bf16 %v9876_v35, %v9816_v0  ;;  %v2968_v15 = vmax.bf16 %v2904_v8, %v9924_v19 }
 0x22a   : > { %v4348_v20 = vmax.bf16 %v4226_v55, %v4124_v46  ;;  %v2969_v48 = vmax.bf16 %v2905_v34, %v9931_v11  ;;  %v4349_v31 = vmax.bf16 %v4229_v56, %v4125_v1  ;;  %v2908_v7 = vmax.bf16 %v9924_v19, %v9857_v24 }
 0x22b   : > { %v2970_v18 = vmax.bf16 %v2906_v39, %v9933_v38  ;;  %v2909_v37 = vmax.bf16 %v9931_v11, %v9863_v27  ;;  %v2971_v0 = vmax.bf16 %v2907_v52, %v9935_v23  ;;  %v3032_v30 = vmax.bf16 %v2968_v15, %v9977_v43 }
 0x22c   : > { %v4481_v40 = vrot.slane %v4348_v20, 7  ;;  %v3033_v6 = vmax.bf16 %v2969_v48, %v9979_v25  ;;  %v4484_v9 = vrot.slane %v4349_v31, 7  ;;  %v2910_v24 = vmax.bf16 %v9933_v38, %v9874_v59 }
 0x22d   : > { %v3034_v17 = vmax.bf16 %v2970_v18, %v9983_v50  ;;  %v2911_v27 = vmax.bf16 %v9935_v23, %v9876_v35  ;;  %v3035_v14 = vmax.bf16 %v2971_v0, %v9993_v54  ;;  %v3096_v36 = vmax.bf16 %v3032_v30, %v10049_v45 }
 0x22e   : > { %v4482_v44 = vsel %vm8429_vm3, %v7549_v49, %v4481_v40  ;;  %v4483_v21 = vrot.slane %v4481_v40, 4  ;;  %v3097_v12 = vmax.bf16 %v3033_v6, %v10056_v41  ;;  %v10078_v53 = vmax.bf16 %v2908_v7, %v9977_v43 }
 0x22f   : > { %4875 = vst.msk [vmem:[#allocation3 + $0xb4] sm:$0xf] %vm277_vm0, %v4482_v44  ;;  %v3098_v58 = vmax.bf16 %v3034_v17, %v10058_v5  ;;  %v10081_v59 = vmax.bf16 %v2909_v37, %v9979_v25  ;;  %v3099_v62 = vmax.bf16 %v3035_v14, %v10063_v13  ;;  %v3371_v57 = vshrl.u32 %v3096_v36, 16 }
 0x230   : > { %v4485_v35 = vsel %vm8429_vm3, %v4483_v21, %v4484_v9  ;;  %v10087_v42 = vmax.bf16 %v2910_v24, %v9983_v50  ;;  %v3376_v28 = vshll.u32 %v3097_v12, 16  ;;  %v3380_v61 = vshrl.u32 %v3097_v12, 16 }
 0x231   : > { %v7565_v4 = vcombine.low %v4482_v44, %v4485_v35  ;;  %4876 = vst.msk [vmem:[#allocation3 + $0xb8] sm:$0xf] %vm277_vm0, %v4485_v35  ;;  %v3386_v33 = vshll.u32 %v3098_v58, 16  ;;  %v3390_v51 = vshrl.u32 %v3098_v58, 16  ;;  %v3698_v16 = vrot.slane %v3097_v12, 5 }
 0x232   : > { %v3700_v32 = vrot.slane %v3098_v58, 5  ;;  %v3974_v3 = vshll.u32 %v3099_v62, 16  ;;  %v3378_v55 = vrot.slane %v3376_v28, 5  ;;  %v3382_v10 = vrot.slane %v3380_v61, 4 }
 0x233   : > { %7815 = vmatmul.mubr.msk.bf16.gmra.mrb[16].mxu0 %vm2214_vm1, %v7565_v4  ;;  %v3388_v29 = vrot.slane %v3386_v33, 5  ;;  %v3964_v60 = vrot.slane %v3380_v61, 5  ;;  %v3392_v46 = vrot.slane %v3390_v51, 4  ;;  %v3699_v8 = vrot.slane %v3698_v16, 4 }
 0x234   : > { %v3702_v34 = vrot.slane %v3700_v32, 4  ;;  %v3965_v1 = vrot.slane %v3376_v28, 6  ;;  %v3379_v56 = vsel %vm8312_vm11, %v3371_v57, %v3378_v55  ;;  %v3383_v49 = vor.u32 %v3382_v10, %v3378_v55 }
 0x235   : > { %v3968_v39 = vrot.slane %v3390_v51, 5  ;;  %v3969_v20 = vrot.slane %v3386_v33, 6  ;;  %v3393_v52 = vor.u32 %v3392_v46, %v3388_v29  ;;  %v3598_v15 = vmax.bf16 %v3379_v56, %v3096_v36  ;;  %v10103_v33 = vld [vmem:[#allocation3 + $0xf0] sm:$0xf] }
 0x236   : > { %v3701_v48 = vsel %vm8328_vm12, %v3699_v8, %v3700_v32  ;;  %v3966_v31 = vor.u32 %v3965_v1, %v3964_v60  ;;  %v3384_v18 = vrot.slane %v3383_v49, 4  ;;  %v3976_v37 = vrot.slane %v3974_v3, 6  ;;  %v10110_v3 = vld [vmem:[#allocation3 + $0xfc] sm:$0x1] }
 0x237   : > { %v3970_v7 = vor.u32 %v3969_v20, %v3968_v39  ;;  %v4230_v40 = vrot.slane %v3097_v12, 6  ;;  %v3394_v0 = vrot.slane %v3393_v52, 4  ;;  %v3806_v30 = vmax.bf16 %v3698_v16, %v3598_v15  ;;  %v11876_v39 = vld [vmem:[#allocation13_spill] sm:$0xff] }
 0x238   : > { %v3967_v6 = vrot.slane %v3966_v31, 4  ;;  %v4232_v9 = vrot.slane %v3098_v58, 6  ;;  %v3389_v17 = vsel %vm8312_vm11, %v3384_v18, %v3388_v29  ;;  %v4235_v21 = vrot.slane %v3099_v62, 6 }
 0x239   : > { %v3972_v24 = vrot.slane %v3970_v7, 4  ;;  %v4231_v44 = vrot.slane %v4230_v40, 4  ;;  %v3599_v14 = vmax.bf16 %v3389_v17, %v3097_v12  ;;  %v3600_v36 = vmax.bf16 %v3394_v0, %v3098_v58  ;;  %v10106_v12 = vld [vmem:[#allocation3 + $0xf4] sm:$0xf]  ;;  %v10108_v58 = vld [vmem:[#allocation3 + $0xf8] sm:$0xf] }
 0x23a   : > { %v3971_v35 = vsel %vm8351_vm14, %v3967_v6, %v3970_v7  ;;  %v4126_v57 = vmax.bf16 %v3966_v31, %v3806_v30  ;;  %v4234_v61 = vrot.slane %v4232_v9, 4  ;;  %v2975_v51 = vmax.bf16 %v2911_v27, %v9993_v54  ;;  %v11879_v31 = vld [vmem:[#allocation14_spill] sm:$0xff] }
 0x23b   : > { %v3977_v4 = vsel %vm8351_vm14, %v3972_v24, %v3976_v37  ;;  %v4233_v28 = vsel %vm8363_vm15, %v4231_v44, %v4232_v9  ;;  %v3807_v16 = vmax.bf16 %v3701_v48, %v3599_v14  ;;  %v3808_v32 = vmax.bf16 %v3702_v34, %v3600_v36  ;;  %v11878_v48 = vld [vmem:[#allocation15_spill] sm:$0xff] }
 0x23c   : > { %v4350_v62 = vmax.bf16 %v4230_v40, %v4126_v57  ;;  %v3036_v55 = vmax.bf16 %v10078_v53, %v10049_v45  ;;  %v4236_v10 = vsel %vm8363_vm15, %v4234_v61, %v4235_v21  ;;  %v3037_v29 = vmax.bf16 %v10081_v59, %v10056_v41  ;;  %v11877_v59 = vld [vmem:[#allocation12_spill] sm:$0xff] }
 0x23d   : > { %v3038_v27 = vmax.bf16 %v10087_v42, %v10058_v5  ;;  %v3039_v60 = vmax.bf16 %v2975_v51, %v10063_v13  ;;  %v4127_v46 = vmax.bf16 %v3971_v35, %v3807_v16  ;;  %v4128_v8 = vmax.bf16 %v3977_v4, %v3808_v32 }
 0x23e   : > { %v7550_v34 = vrot.slane %v4350_v62, 11  ;;  %v3100_v1 = vmax.bf16 %v3036_v55, %v10103_v33  ;;  %v10123_v56 = vmax.bf16 %v3037_v29, %v10106_v12  ;;  %v7496_v20 = vcombine.low %v11877_v59, %v11876_v39 }
 0x23f   : > { %v3102_v53 = vmax.bf16 %v3038_v27, %v10108_v58  ;;  %v10127_v49 = vmax.bf16 %v3039_v60, %v10110_v3  ;;  %v4351_v52 = vmax.bf16 %v4233_v28, %v4127_v46  ;;  %v4352_v42 = vmax.bf16 %v4236_v10, %v4128_v8 }
 0x240   : > { %v3396_v15 = vshrl.u32 %v3100_v1, 16  ;;  %v7497_v18 = vcombine.low %v11879_v31, %v11878_v48  ;;  %v3401_v7 = vshll.u32 %v10123_v56, 16  ;;  %v3405_v37 = vshrl.u32 %v10123_v56, 16  ;;  %7772 = vmatprep.mubr.msk.bf16.mxu1 %vm2214_vm1, %v7496_v20 }
 0x241   : > { %v3411_v40 = vshll.u32 %v3102_v53, 16  ;;  %v3415_v0 = vshrl.u32 %v3102_v53, 16  ;;  %v4488_v30 = vrot.slane %v4351_v52, 7  ;;  %v4491_v6 = vrot.slane %v4352_v42, 7 }
 0x242   : > { %v3703_v9 = vrot.slane %v10123_v56, 5  ;;  %v3705_v17 = vrot.slane %v3102_v53, 5  ;;  %7773 = vmatmul.mubr.msk.bf16.gmra.mrb[8].mxu1 %vm2214_vm1, %v7497_v18  ;;  %v3403_v24 = vrot.slane %v3401_v7, 5  ;;  %v3407_v44 = vrot.slane %v3405_v37, 4 }
 0x243   : > { %v3413_v21 = vrot.slane %v3411_v40, 5  ;;  %v3417_v14 = vrot.slane %v3415_v0, 4  ;;  %v4489_v36 = vsel %vm8429_vm3, %v7550_v34, %v4488_v30  ;;  %v4490_v35 = vrot.slane %v4488_v30, 4 }
 0x244   : > { %v3704_v57 = vrot.slane %v3703_v9, 4  ;;  %v3707_v4 = vrot.slane %v3705_v17, 4  ;;  %4877 = vst.msk [vmem:[#allocation3 + $0xc4] sm:$0xf] %vm277_vm0, %v4489_v36  ;;  %v3404_v28 = vsel %vm8312_vm11, %v3396_v15, %v3403_v24  ;;  %v3408_v61 = vor.u32 %v3407_v44, %v3403_v24 }
 0x245   : > { %v3418_v51 = vor.u32 %v3417_v14, %v3413_v21  ;;  %v3978_v16 = vrot.slane %v3405_v37, 5  ;;  %v4492_v32 = vsel %vm8429_vm3, %v4490_v35, %v4491_v6  ;;  %v3601_v62 = vmax.bf16 %v3404_v28, %v3100_v1 }
 0x246   : > { %v3706_v55 = vsel %vm8328_vm12, %v3704_v57, %v3705_v17  ;;  %v3979_v10 = vrot.slane %v3401_v7, 6  ;;  %v7566_v29 = vcombine.low %v4489_v36, %v4492_v32  ;;  %4878 = vst.msk [vmem:[#allocation3 + $0xc8] sm:$0xf] %vm277_vm0, %v4492_v32  ;;  %v3409_v27 = vrot.slane %v3408_v61, 4  ;;  %v10172_v61 = vld [vmem:[#allocation3 + $0x100] sm:$0xf] }
 0x247   : > { %v3419_v60 = vrot.slane %v3418_v51, 4  ;;  %v3982_v46 = vrot.slane %v3415_v0, 5  ;;  %v3809_v8 = vmax.bf16 %v3703_v9, %v3601_v62  ;;  %v3983_v39 = vrot.slane %v3411_v40, 6  ;;  %v10178_v62 = vld [vmem:[#allocation3 + $0x104] sm:$0xf] }
 0x248   : > { %v3980_v34 = vor.u32 %v3979_v10, %v3978_v16  ;;  %v3988_v59 = vshll.u32 %v10127_v49, 16  ;;  %7818 = vmatprep.mubr.msk.bf16.mxu0 %vm2214_vm1, %v7566_v29  ;;  %v3414_v1 = vsel %vm8312_vm11, %v3409_v27, %v3413_v21  ;;  %v4237_v52 = vrot.slane %v10123_v56, 6  ;;  %v10186_v27 = vld [vmem:[#allocation3 + $0x10c] sm:$0x1] }
 0x249   : > { %v3603_v20 = vmax.bf16 %v3419_v60, %v3102_v53  ;;  %v4239_v42 = vrot.slane %v3102_v53, 6  ;;  %v3602_v15 = vmax.bf16 %v3414_v1, %v10123_v56  ;;  %v3984_v31 = vor.u32 %v3983_v39, %v3982_v46 }
 0x24a   : > { %v3981_v48 = vrot.slane %v3980_v34, 4  ;;  %v3990_v18 = vrot.slane %v3988_v59, 6  ;;  %v4129_v37 = vmax.bf16 %v3980_v34, %v3809_v8  ;;  %v4238_v0 = vrot.slane %v4237_v52, 4 }
 0x24b   : > { %v3811_v7 = vmax.bf16 %v3707_v4, %v3603_v20  ;;  %v4241_v40 = vrot.slane %v4239_v42, 4  ;;  %v3810_v30 = vmax.bf16 %v3706_v55, %v3602_v15  ;;  %v3986_v9 = vrot.slane %v3984_v31, 4 }
 0x24c   : > { %v3985_v6 = vsel %vm8351_vm14, %v3981_v48, %v3984_v31  ;;  %v4242_v17 = vrot.slane %v10127_v49, 6  ;;  %v4240_v24 = vsel %vm8363_vm15, %v4238_v0, %v4239_v42  ;;  %v4353_v53 = vmax.bf16 %v4237_v52, %v4129_v37 }
 0x24d   : > { %v2912_v56 = vmax.bf16 %v9977_v43, %v9924_v19  ;;  %v2913_v44 = vmax.bf16 %v9979_v25, %v9931_v11  ;;  %v3991_v21 = vsel %vm8351_vm14, %v3986_v9, %v3990_v18  ;;  %v4130_v14 = vmax.bf16 %v3985_v6, %v3810_v30 }
 0x24e   : > { %v4243_v36 = vsel %vm8363_vm15, %v4241_v40, %v4242_v17  ;;  %v2914_v49 = vmax.bf16 %v9983_v50, %v9933_v38  ;;  %v4131_v35 = vmax.bf16 %v3991_v21, %v3811_v7  ;;  %v7551_v57 = vrot.slane %v4353_v53, 11  ;;  %v10180_v38 = vld [vmem:[#allocation3 + $0x108] sm:$0xf] }
 0x24f   : > { %v2915_v4 = vmax.bf16 %v9993_v54, %v9935_v23  ;;  %v2976_v19 = vmax.bf16 %v2912_v56, %v10049_v45  ;;  %v4354_v28 = vmax.bf16 %v4240_v24, %v4130_v14  ;;  %v2977_v11 = vmax.bf16 %v2913_v44, %v10056_v41 }
 0x250   : > { %v2978_v51 = vmax.bf16 %v2914_v49, %v10058_v5  ;;  %v2916_v16 = vmax.bf16 %v10049_v45, %v9977_v43  ;;  %v4355_v32 = vmax.bf16 %v4243_v36, %v4131_v35  ;;  %v2917_v10 = vmax.bf16 %v10056_v41, %v9979_v25 }
 0x251   : > { %v2979_v55 = vmax.bf16 %v2915_v4, %v10063_v13  ;;  %v3040_v23 = vmax.bf16 %v2976_v19, %v10103_v33  ;;  %v4495_v29 = vrot.slane %v4354_v28, 7  ;;  %v3041_v60 = vmax.bf16 %v2977_v11, %v10106_v12 }
 0x252   : > { %v3042_v46 = vmax.bf16 %v2978_v51, %v10108_v58  ;;  %v2918_v43 = vmax.bf16 %v10058_v5, %v9983_v50  ;;  %v4498_v8 = vrot.slane %v4355_v32, 7  ;;  %v2919_v59 = vmax.bf16 %v10063_v13, %v9993_v54 }
 0x253   : > { %v3043_v34 = vmax.bf16 %v2979_v55, %v10110_v3  ;;  %v3104_v39 = vmax.bf16 %v3040_v23, %v10172_v61  ;;  %v4496_v25 = vsel %vm8429_vm3, %v7551_v57, %v4495_v29  ;;  %v4497_v1 = vrot.slane %v4495_v29, 4 }
 0x254   : > { %v3105_v20 = vmax.bf16 %v3041_v60, %v10178_v62  ;;  %v3106_v52 = vmax.bf16 %v3042_v46, %v10180_v38  ;;  %4879 = vst.msk [vmem:[#allocation3 + $0xd4] sm:$0xf] %vm277_vm0, %v4496_v25  ;;  %v10203_v48 = vmax.bf16 %v2916_v16, %v10103_v33  ;;  %v10206_v31 = vmax.bf16 %v2917_v10, %v10106_v12 }
 0x255   : > { %v3107_v42 = vmax.bf16 %v3043_v34, %v10186_v27  ;;  %v3421_v15 = vshrl.u32 %v3104_v39, 16  ;;  %v4499_v18 = vsel %vm8429_vm3, %v4497_v1, %v4498_v8 }
 0x256   : > { %v3426_v7 = vshll.u32 %v3105_v20, 16  ;;  %v3430_v37 = vshrl.u32 %v3105_v20, 16  ;;  %v3436_v0 = vshll.u32 %v3106_v52, 16  ;;  %v7567_v40 = vcombine.low %v4496_v25, %v4499_v18  ;;  %4880 = vst.msk [vmem:[#allocation3 + $0xd8] sm:$0xf] %vm277_vm0, %v4499_v18 }
 0x257   : > { %v3440_v30 = vshrl.u32 %v3106_v52, 16  ;;  %v3708_v6 = vrot.slane %v3105_v20, 5  ;;  %v3710_v9 = vrot.slane %v3106_v52, 5  ;;  %v4002_v55 = vshll.u32 %v3107_v42, 16 }
 0x258   : > { %v3428_v17 = vrot.slane %v3426_v7, 5  ;;  %v3432_v24 = vrot.slane %v3430_v37, 4  ;;  %v3438_v53 = vrot.slane %v3436_v0, 5  ;;  %v3992_v56 = vrot.slane %v3430_v37, 5  ;;  %7819 = vmatmul.mubr.msk.bf16.gmra.mrb[20].mxu0 %vm2214_vm1, %v7567_v40 }
 0x259   : > { %v3442_v44 = vrot.slane %v3440_v30, 4  ;;  %v3709_v21 = vrot.slane %v3708_v6, 4  ;;  %v3712_v14 = vrot.slane %v3710_v9, 4  ;;  %v3993_v36 = vrot.slane %v3426_v7, 6 }
 0x25a   : > { %v3429_v49 = vsel %vm8312_vm11, %v3421_v15, %v3428_v17  ;;  %v3433_v35 = vor.u32 %v3432_v24, %v3428_v17  ;;  %v3996_v57 = vrot.slane %v3440_v30, 5  ;;  %v3997_v4 = vrot.slane %v3436_v0, 6  ;;  %v10224_v24 = vld [vmem:[#allocation3 + $0x110] sm:$0xf] }
 0x25b   : > { %v3443_v19 = vor.u32 %v3442_v44, %v3438_v53  ;;  %v3604_v28 = vmax.bf16 %v3429_v49, %v3104_v39  ;;  %v3711_v11 = vsel %vm8328_vm12, %v3709_v21, %v3710_v9  ;;  %v3994_v51 = vor.u32 %v3993_v36, %v3992_v56  ;;  %v10234_v56 = vld [vmem:[#allocation3 + $0x118] sm:$0xf] }
 0x25c   : > { %v3434_v16 = vrot.slane %v3433_v35, 4  ;;  %v3998_v32 = vor.u32 %v3997_v4, %v3996_v57  ;;  %v4244_v23 = vrot.slane %v3105_v20, 6  ;;  %v4246_v46 = vrot.slane %v3106_v52, 6  ;;  %v11881_v4 = vld [vmem:[#allocation16_spill] sm:$0xff] }
 0x25d   : > { %v3444_v10 = vrot.slane %v3443_v19, 4  ;;  %v3812_v29 = vmax.bf16 %v3708_v6, %v3604_v28  ;;  %v3995_v60 = vrot.slane %v3994_v51, 4  ;;  %v4004_v25 = vrot.slane %v4002_v55, 6 }
 0x25e   : > { %v3439_v8 = vsel %vm8312_vm11, %v3434_v16, %v3438_v53  ;;  %v4000_v34 = vrot.slane %v3998_v32, 4  ;;  %v4245_v1 = vrot.slane %v4244_v23, 4  ;;  %v4248_v40 = vrot.slane %v4246_v46, 4  ;;  %v10226_v53 = vld [vmem:[#allocation3 + $0x114] sm:$0xf] }
 0x25f   : > { %v3605_v15 = vmax.bf16 %v3439_v8, %v3105_v20  ;;  %v3606_v39 = vmax.bf16 %v3444_v10, %v3106_v52  ;;  %v3999_v18 = vsel %vm8351_vm14, %v3995_v60, %v3998_v32  ;;  %v4132_v7 = vmax.bf16 %v3994_v51, %v3812_v29  ;;  %v11883_v51 = vld [vmem:[#allocation18_spill] sm:$0xff] }
 0x260   : > { %v4005_v37 = vsel %vm8351_vm14, %v4000_v34, %v4004_v25  ;;  %v4247_v0 = vsel %vm8363_vm15, %v4245_v1, %v4246_v46  ;;  %v4249_v30 = vrot.slane %v3107_v42, 6  ;;  %v2982_v20 = vmax.bf16 %v2918_v43, %v10108_v58  ;;  %v10244_v43 = vld [vmem:[#allocation3 + $0x11c] sm:$0x1] }
 0x261   : > { %v3813_v6 = vmax.bf16 %v3711_v11, %v3605_v15  ;;  %v3814_v9 = vmax.bf16 %v3712_v14, %v3606_v39  ;;  %v4356_v17 = vmax.bf16 %v4244_v23, %v4132_v7  ;;  %v2983_v42 = vmax.bf16 %v2919_v59, %v10110_v3  ;;  %v11880_v59 = vld [vmem:[#allocation17_spill] sm:$0xff]  ;;  %v11882_v11 = vld [vmem:[#allocation19_spill] sm:$0xff] }
 0x262   : > { %v4250_v52 = vsel %vm8363_vm15, %v4248_v40, %v4249_v30  ;;  %v3044_v44 = vmax.bf16 %v10203_v48, %v10172_v61  ;;  %v3045_v21 = vmax.bf16 %v10206_v31, %v10178_v62  ;;  %v3046_v49 = vmax.bf16 %v2982_v20, %v10180_v38 }
 0x263   : > { %v4133_v14 = vmax.bf16 %v3999_v18, %v3813_v6  ;;  %v4134_v36 = vmax.bf16 %v4005_v37, %v3814_v9  ;;  %v7552_v50 = vrot.slane %v4356_v17, 11  ;;  %v3047_v35 = vmax.bf16 %v2983_v42, %v10186_v27 }
 0x264   : > { %v3108_v57 = vmax.bf16 %v3044_v44, %v10224_v24  ;;  %v10250_v54 = vmax.bf16 %v3045_v21, %v10226_v53  ;;  %v7498_v48 = vcombine.low %v11881_v4, %v11880_v59  ;;  %v3110_v31 = vmax.bf16 %v3046_v49, %v10234_v56 }
 0x265   : > { %v4357_v19 = vmax.bf16 %v4247_v0, %v4133_v14  ;;  %v4358_v28 = vmax.bf16 %v4250_v52, %v4134_v36  ;;  %v7499_v16 = vcombine.low %v11883_v51, %v11882_v11  ;;  %v10258_v32 = vmax.bf16 %v3047_v35, %v10244_v43 }
 0x266   : > { %v3446_v55 = vshrl.u32 %v3108_v57, 16  ;;  %v3451_v23 = vshll.u32 %v10250_v54, 16  ;;  %v3455_v10 = vshrl.u32 %v10250_v54, 16  ;;  %7776 = vmatprep.mubr.msk.bf16.mxu1 %vm2214_vm1, %v7498_v48  ;;  %v3461_v46 = vshll.u32 %v3110_v31, 16 }
 0x267   : > { %v4502_v29 = vrot.slane %v4357_v19, 7  ;;  %v4505_v60 = vrot.slane %v4358_v28, 7  ;;  %v3465_v8 = vshrl.u32 %v3110_v31, 16  ;;  %7777 = vmatmul.mubr.msk.bf16.gmra.mrb[12].mxu1 %vm2214_vm1, %v7499_v16  ;;  %v3713_v1 = vrot.slane %v10250_v54, 5 }
 0x268   : > { %v3453_v34 = vrot.slane %v3451_v23, 5  ;;  %v3457_v25 = vrot.slane %v3455_v10, 4  ;;  %v3715_v15 = vrot.slane %v3110_v31, 5  ;;  %v3463_v7 = vrot.slane %v3461_v46, 5 }
 0x269   : > { %v4503_v39 = vsel %vm8429_vm3, %v7552_v50, %v4502_v29  ;;  %v4504_v18 = vrot.slane %v4502_v29, 4  ;;  %v3467_v37 = vrot.slane %v3465_v8, 4  ;;  %v3714_v30 = vrot.slane %v3713_v1, 4 }
 0x26a   : > { %4881 = vst.msk [vmem:[#allocation3 + $0xe4] sm:$0xf] %vm277_vm0, %v4503_v39  ;;  %v3454_v0 = vsel %vm8312_vm11, %v3446_v55, %v3453_v34  ;;  %v3458_v40 = vor.u32 %v3457_v25, %v3453_v34  ;;  %v3717_v6 = vrot.slane %v3715_v15, 4  ;;  %v4006_v52 = vrot.slane %v3455_v10, 5 }
 0x26b   : > { %v4506_v9 = vsel %vm8429_vm3, %v4504_v18, %v4505_v60  ;;  %v3468_v17 = vor.u32 %v3467_v37, %v3463_v7  ;;  %v3607_v20 = vmax.bf16 %v3454_v0, %v3108_v57  ;;  %v3716_v21 = vsel %vm8328_vm12, %v3714_v30, %v3715_v15 }
 0x26c   : > { %v7568_v42 = vcombine.low %v4503_v39, %v4506_v9  ;;  %4882 = vst.msk [vmem:[#allocation3 + $0xe8] sm:$0xf] %vm277_vm0, %v4506_v9  ;;  %v3459_v44 = vrot.slane %v3458_v40, 4  ;;  %v4007_v14 = vrot.slane %v3451_v23, 6  ;;  %v4010_v49 = vrot.slane %v3465_v8, 5 }
 0x26d   : > { %v3469_v36 = vrot.slane %v3468_v17, 4  ;;  %v3815_v50 = vmax.bf16 %v3713_v1, %v3607_v20  ;;  %v4011_v35 = vrot.slane %v3461_v46, 6  ;;  %v4016_v57 = vshll.u32 %v10258_v32, 16  ;;  %v10300_v17 = vld [vmem:[#allocation3 + $0x120] sm:$0xf] }
 0x26e   : > { %7822 = vmatprep.mubr.msk.bf16.mxu0 %vm2214_vm1, %v7568_v42  ;;  %v3464_v59 = vsel %vm8312_vm11, %v3459_v44, %v3463_v7  ;;  %v4008_v4 = vor.u32 %v4007_v14, %v4006_v52  ;;  %v4251_v48 = vrot.slane %v10250_v54, 6  ;;  %v4253_v51 = vrot.slane %v3110_v31, 6  ;;  %v10307_v42 = vld [vmem:[#allocation3 + $0x124] sm:$0xf]  ;;  %v10309_v44 = vld [vmem:[#allocation3 + $0x128] sm:$0xf] }
 0x26f   : > { %v3608_v19 = vmax.bf16 %v3464_v59, %v10250_v54  ;;  %v3609_v28 = vmax.bf16 %v3469_v36, %v3110_v31  ;;  %v4012_v11 = vor.u32 %v4011_v35, %v4010_v49  ;;  %v4018_v55 = vrot.slane %v4016_v57, 6 }
 0x270   : > { %v4009_v16 = vrot.slane %v4008_v4, 4  ;;  %v4135_v23 = vmax.bf16 %v4008_v4, %v3815_v50  ;;  %v4252_v10 = vrot.slane %v4251_v48, 4  ;;  %v4255_v8 = vrot.slane %v4253_v51, 4  ;;  %v10314_v50 = vld [vmem:[#allocation3 + $0x12c] sm:$0x1] }
 0x271   : > { %v3816_v29 = vmax.bf16 %v3716_v21, %v3608_v19  ;;  %v3817_v60 = vmax.bf16 %v3717_v6, %v3609_v28  ;;  %v4014_v46 = vrot.slane %v4012_v11, 4  ;;  %v4256_v1 = vrot.slane %v10258_v32, 6 }
 0x272   : > { %v4013_v34 = vsel %vm8351_vm14, %v4009_v16, %v4012_v11  ;;  %v4254_v25 = vsel %vm8363_vm15, %v4252_v10, %v4253_v51  ;;  %v4359_v54 = vmax.bf16 %v4251_v48, %v4135_v23  ;;  %v2920_v39 = vmax.bf16 %v10103_v33, %v10049_v45 }
 0x273   : > { %v4019_v31 = vsel %vm8351_vm14, %v4014_v46, %v4018_v55  ;;  %v4136_v15 = vmax.bf16 %v4013_v34, %v3816_v29  ;;  %v2921_v18 = vmax.bf16 %v10106_v12, %v10056_v41  ;;  %v4257_v37 = vsel %vm8363_vm15, %v4255_v8, %v4256_v1 }
 0x274   : > { %v4137_v7 = vmax.bf16 %v4019_v31, %v3817_v60  ;;  %v7553_v0 = vrot.slane %v4359_v54, 11  ;;  %v2922_v40 = vmax.bf16 %v10108_v58, %v10058_v5  ;;  %v2923_v30 = vmax.bf16 %v10110_v3, %v10063_v13 }
 0x275   : > { %v4360_v32 = vmax.bf16 %v4254_v25, %v4136_v15  ;;  %v2984_v6 = vmax.bf16 %v2920_v39, %v10172_v61  ;;  %v2985_v9 = vmax.bf16 %v2921_v18, %v10178_v62  ;;  %v2924_v20 = vmax.bf16 %v10172_v61, %v10103_v33 }
 0x276   : > { %v4361_v45 = vmax.bf16 %v4257_v37, %v4137_v7  ;;  %v2986_v41 = vmax.bf16 %v2922_v40, %v10180_v38  ;;  %v2925_v52 = vmax.bf16 %v10178_v62, %v10106_v12  ;;  %v2987_v13 = vmax.bf16 %v2923_v30, %v10186_v27 }
 0x277   : > { %v4509_v5 = vrot.slane %v4360_v32, 7  ;;  %v3048_v21 = vmax.bf16 %v2984_v6, %v10224_v24  ;;  %v3049_v14 = vmax.bf16 %v2985_v9, %v10226_v53  ;;  %v2926_v33 = vmax.bf16 %v10180_v38, %v10108_v58 }
 0x278   : > { %v4512_v36 = vrot.slane %v4361_v45, 7  ;;  %v3050_v49 = vmax.bf16 %v2986_v41, %v10234_v56  ;;  %v2927_v12 = vmax.bf16 %v10186_v27, %v10110_v3  ;;  %v3051_v35 = vmax.bf16 %v2987_v13, %v10244_v43 }
 0x279   : > { %v4510_v61 = vsel %vm8429_vm3, %v7553_v0, %v4509_v5  ;;  %v4511_v62 = vrot.slane %v4509_v5, 4  ;;  %v3112_v59 = vmax.bf16 %v3048_v21, %v10300_v17  ;;  %v3113_v4 = vmax.bf16 %v3049_v14, %v10307_v42 }
 0x27a   : > { %4883 = vst.msk [vmem:[#allocation3 + $0xf4] sm:$0xf] %vm277_vm0, %v4510_v61  ;;  %v3114_v57 = vmax.bf16 %v3050_v49, %v10309_v44  ;;  %v10329_v48 = vmax.bf16 %v2924_v20, %v10224_v24  ;;  %v10332_v58 = vmax.bf16 %v2925_v52, %v10226_v53  ;;  %v3115_v38 = vmax.bf16 %v3051_v35, %v10314_v50  ;;  %v2860_v35 = vld [vmem:[#allocation3 + $0x130] sm:$0xf] }
 0x27b   : > { %v4513_v3 = vsel %vm8429_vm3, %v4511_v62, %v4512_v36  ;;  %v3471_v27 = vshrl.u32 %v3112_v59, 16  ;;  %v10338_v19 = vmax.bf16 %v2926_v33, %v10234_v56  ;;  %v3476_v11 = vshll.u32 %v3113_v4, 16 }
 0x27c   : > { %v7569_v28 = vcombine.low %v4510_v61, %v4513_v3  ;;  %4884 = vst.msk [vmem:[#allocation3 + $0xf8] sm:$0xf] %vm277_vm0, %v4513_v3  ;;  %v3480_v51 = vshrl.u32 %v3113_v4, 16  ;;  %v3486_v16 = vshll.u32 %v3114_v57, 16  ;;  %v3490_v24 = vshrl.u32 %v3114_v57, 16 }
 0x27d   : > { %v3718_v55 = vrot.slane %v3113_v4, 5  ;;  %v3720_v23 = vrot.slane %v3114_v57, 5  ;;  %v4030_v53 = vshll.u32 %v3115_v38, 16  ;;  %v3478_v10 = vrot.slane %v3476_v11, 5 }
 0x27e   : > { %7823 = vmatmul.mubr.msk.bf16.gmra.mrb[24].mxu0 %vm2214_vm1, %v7569_v28  ;;  %v3482_v29 = vrot.slane %v3480_v51, 4  ;;  %v3488_v60 = vrot.slane %v3486_v16, 5  ;;  %v4020_v46 = vrot.slane %v3480_v51, 5  ;;  %v3492_v8 = vrot.slane %v3490_v24, 4 }
 0x27f   : > { %v3719_v34 = vrot.slane %v3718_v55, 4  ;;  %v3722_v56 = vrot.slane %v3720_v23, 4  ;;  %v4021_v25 = vrot.slane %v3476_v11, 6  ;;  %v3479_v1 = vsel %vm8312_vm11, %v3471_v27, %v3478_v10 }
 0x280   : > { %v3483_v54 = vor.u32 %v3482_v29, %v3478_v10  ;;  %v4024_v31 = vrot.slane %v3490_v24, 5  ;;  %v4025_v15 = vrot.slane %v3486_v16, 6  ;;  %v3493_v39 = vor.u32 %v3492_v8, %v3488_v60 }
 0x281   : > { %v3610_v18 = vmax.bf16 %v3479_v1, %v3112_v59  ;;  %v3721_v7 = vsel %vm8328_vm12, %v3719_v34, %v3720_v23  ;;  %v4022_v37 = vor.u32 %v4021_v25, %v4020_v46  ;;  %v4032_v32 = vrot.slane %v4030_v53, 6  ;;  %v11886_v34 = vld [vmem:[#allocation23_spill] sm:$0xff] }
 0x282   : > { %v3484_v0 = vrot.slane %v3483_v54, 4  ;;  %v4026_v40 = vor.u32 %v4025_v15, %v4024_v31  ;;  %v4258_v30 = vrot.slane %v3113_v4, 6  ;;  %v3494_v6 = vrot.slane %v3493_v39, 4 }
 0x283   : > { %v3818_v9 = vmax.bf16 %v3718_v55, %v3610_v18  ;;  %v4023_v45 = vrot.slane %v4022_v37, 4  ;;  %v4260_v41 = vrot.slane %v3114_v57, 6  ;;  %v4263_v13 = vrot.slane %v3115_v38, 6  ;;  %v2861_v38 = vld [vmem:[#allocation3 + $0x134] sm:$0xf] }
 0x284   : > { %v3489_v20 = vsel %vm8312_vm11, %v3484_v0, %v3488_v60  ;;  %v4028_v52 = vrot.slane %v4026_v40, 4  ;;  %v4259_v5 = vrot.slane %v4258_v30, 4  ;;  %v3612_v14 = vmax.bf16 %v3494_v6, %v3114_v57  ;;  %v2863_v57 = vld [vmem:[#allocation3 + $0x13c] sm:$0x1]  ;;  %v11885_v60 = vld [vmem:[#allocation20_spill] sm:$0xff] }
 0x285   : > { %v3611_v21 = vmax.bf16 %v3489_v20, %v3113_v4  ;;  %v4027_v36 = vsel %vm8351_vm14, %v4023_v45, %v4026_v40  ;;  %v4138_v49 = vmax.bf16 %v4022_v37, %v3818_v9  ;;  %v4262_v62 = vrot.slane %v4260_v41, 4  ;;  %v2862_v4 = vld [vmem:[#allocation3 + $0x138] sm:$0xf] }
 0x286   : > { %v4033_v33 = vsel %vm8351_vm14, %v4028_v52, %v4032_v32  ;;  %v4261_v61 = vsel %vm8363_vm15, %v4259_v5, %v4260_v41  ;;  %v2991_v59 = vmax.bf16 %v2927_v12, %v10244_v43  ;;  %v3820_v27 = vmax.bf16 %v3722_v56, %v3612_v14 }
 0x287   : > { %v3819_v3 = vmax.bf16 %v3721_v7, %v3611_v21  ;;  %v4362_v28 = vmax.bf16 %v4258_v30, %v4138_v49  ;;  %v3052_v11 = vmax.bf16 %v10329_v48, %v10300_v17  ;;  %v4264_v51 = vsel %vm8363_vm15, %v4262_v62, %v4263_v13  ;;  %v11884_v48 = vld [vmem:[#allocation21_spill] sm:$0xff] }
 0x288   : > { %v3053_v16 = vmax.bf16 %v10332_v58, %v10307_v42  ;;  %v3054_v24 = vmax.bf16 %v10338_v19, %v10309_v44  ;;  %v3055_v43 = vmax.bf16 %v2991_v59, %v10314_v50  ;;  %v4140_v55 = vmax.bf16 %v4033_v33, %v3820_v27  ;;  %v11887_v44 = vld [vmem:[#allocation22_spill] sm:$0xff] }
 0x289   : > { %v4139_v12 = vmax.bf16 %v4027_v36, %v3819_v3  ;;  %v7554_v23 = vrot.slane %v4362_v28, 11  ;;  %v3116_v53 = vmax.bf16 %v3052_v11, %v2860_v35  ;;  %v7500_v46 = vcombine.low %v11885_v60, %v11884_v48  ;;  %v4890_v3 = vld [vmem:[#allocation3 + $0x4] sm:$0xf]  ;;  %v4894_v11 = vld [vmem:[#allocation3 + $0x14] sm:$0xf] }
 0x28a   : > { %v10364_v10 = vmax.bf16 %v3053_v16, %v2861_v38  ;;  %v10366_v29 = vmax.bf16 %v3054_v24, %v2862_v4  ;;  %v10368_v17 = vmax.bf16 %v3055_v43, %v2863_v57  ;;  %v4364_v42 = vmax.bf16 %v4264_v51, %v4140_v55  ;;  %v4891_v57 = vld [vmem:[#allocation3 + $0x8] sm:$0xf]  ;;  %v4893_v55 = vld [vmem:[#allocation3 + $0x10] sm:$0xf] }
 0x28b   : > { %v4363_v8 = vmax.bf16 %v4261_v61, %v4139_v12  ;;  %v3496_v58 = vshrl.u32 %v3116_v53, 16  ;;  %v7501_v19 = vcombine.low %v11887_v44, %v11886_v34  ;;  %7780 = vmatprep.mubr.msk.bf16.mxu1 %vm2214_vm1, %v7500_v46  ;;  %v4889_v12 = vld [vmem:[#allocation3] sm:$0xf]  ;;  %v4895_v46 = vld [vmem:[#allocation3 + $0x18] sm:$0xf] }
 0x28c   : > { %v3501_v50 = vshll.u32 %v10364_v10, 16  ;;  %v3505_v56 = vshrl.u32 %v10364_v10, 16  ;;  %v3511_v25 = vshll.u32 %v10366_v29, 16  ;;  %v3515_v1 = vshrl.u32 %v10366_v29, 16  ;;  %v4896_v44 = vld [vmem:[#allocation3 + $0x1c] sm:$0x1] }
 0x28d   : > { %v4516_v54 = vrot.slane %v4363_v8, 7  ;;  %v4519_v31 = vrot.slane %v4364_v42, 7  ;;  %v3723_v15 = vrot.slane %v10364_v10, 5  ;;  %v3725_v39 = vrot.slane %v10366_v29, 5  ;;  %7781 = vmatmul.mubr.msk.bf16.gmra.mrb[16].mxu1 %vm2214_vm1, %v7501_v19  ;;  %v10400_v8 = vld [vmem:[#allocation3 + $0x20] sm:$0xf] }
 0x28e   : > { %v3503_v18 = vrot.slane %v3501_v50, 5  ;;  %v3507_v7 = vrot.slane %v3505_v56, 4  ;;  %v3513_v37 = vrot.slane %v3511_v25, 5  ;;  %v3517_v0 = vrot.slane %v3515_v1, 4 }
 0x28f   : > { %v4517_v40 = vsel %vm8429_vm3, %v7554_v23, %v4516_v54  ;;  %v4518_v32 = vrot.slane %v4516_v54, 4  ;;  %v3724_v30 = vrot.slane %v3723_v15, 4  ;;  %v3727_v6 = vrot.slane %v3725_v39, 4 }
 0x290   : > { %4885 = vst.msk [vmem:[#allocation3 + $0x104] sm:$0xf] %vm277_vm0, %v4517_v40  ;;  %v3504_v9 = vsel %vm8312_vm11, %v3496_v58, %v3503_v18  ;;  %v3508_v45 = vor.u32 %v3507_v7, %v3503_v18  ;;  %v3518_v41 = vor.u32 %v3517_v0, %v3513_v37  ;;  %v4034_v20 = vrot.slane %v3505_v56, 5  ;;  %v10407_v56 = vld [vmem:[#allocation3 + $0x24] sm:$0xf] }
 0x291   : > { %v4520_v52 = vsel %vm8429_vm3, %v4518_v32, %v4519_v31  ;;  %v3613_v5 = vmax.bf16 %v3504_v9, %v3116_v53  ;;  %v3726_v13 = vsel %vm8328_vm12, %v3724_v30, %v3725_v39  ;;  %v4035_v21 = vrot.slane %v3501_v50, 6  ;;  %v10417_v0 = vld [vmem:[#allocation3 + $0x30] sm:$0xf]  ;;  %v10422_v9 = vld [vmem:[#allocation3 + $0x38] sm:$0xf] }
 0x292   : > { %v7570_v14 = vcombine.low %v4517_v40, %v4520_v52  ;;  %4886 = vst.msk [vmem:[#allocation3 + $0x108] sm:$0xf] %vm277_vm0, %v4520_v52  ;;  %v3509_v36 = vrot.slane %v3508_v45, 4  ;;  %v3519_v49 = vrot.slane %v3518_v41, 4  ;;  %v4038_v33 = vrot.slane %v3515_v1, 5 }
 0x293   : > { %v3821_v61 = vmax.bf16 %v3723_v15, %v3613_v5  ;;  %v4036_v62 = vor.u32 %v4035_v21, %v4034_v20  ;;  %v4039_v35 = vrot.slane %v3511_v25, 6  ;;  %v4044_v59 = vshll.u32 %v10368_v17, 16  ;;  %v10409_v25 = vld [vmem:[#allocation3 + $0x28] sm:$0xf]  ;;  %v10411_v1 = vld [vmem:[#allocation3 + $0x2c] sm:$0x1] }
 0x294   : > { %7826 = vmatprep.mubr.msk.bf16.mxu0 %vm2214_vm1, %v7570_v14  ;;  %v3514_v27 = vsel %vm8312_vm11, %v3509_v36, %v3513_v37  ;;  %v3615_v28 = vmax.bf16 %v3519_v49, %v10366_v29  ;;  %v4265_v38 = vrot.slane %v10364_v10, 6  ;;  %v4267_v4 = vrot.slane %v10366_v29, 6  ;;  %v10419_v40 = vld [vmem:[#allocation3 + $0x34] sm:$0xf]  ;;  %v10424_v45 = vld [vmem:[#allocation3 + $0x3c] sm:$0x1] }
 0x295   : > { %v3614_v51 = vmax.bf16 %v3514_v27, %v10364_v10  ;;  %v4037_v16 = vrot.slane %v4036_v62, 4  ;;  %v4040_v24 = vor.u32 %v4039_v35, %v4038_v33  ;;  %v4046_v43 = vrot.slane %v4044_v59, 6  ;;  %v4892_v10 = vld [vmem:[#allocation3 + $0xc] sm:$0x1]  ;;  %v10432_v49 = vld [vmem:[#allocation3 + $0x40] sm:$0xf] }
 0x296   : > { %v3823_v23 = vmax.bf16 %v3727_v6, %v3615_v28  ;;  %v4141_v53 = vmax.bf16 %v4036_v62, %v3821_v61  ;;  %v4266_v48 = vrot.slane %v4265_v38, 4  ;;  %v4269_v60 = vrot.slane %v4267_v4, 4  ;;  %v10434_v33 = vld [vmem:[#allocation3 + $0x44] sm:$0xf] }
 0x297   : > { %v3822_v42 = vmax.bf16 %v3726_v13, %v3614_v51  ;;  %v4041_v29 = vsel %vm8351_vm14, %v4037_v16, %v4040_v24  ;;  %v4042_v58 = vrot.slane %v4040_v24, 4  ;;  %v4270_v34 = vrot.slane %v10368_v17, 6 }
 0x298   : > { %v4268_v19 = vsel %vm8363_vm15, %v4266_v48, %v4267_v4  ;;  %v4365_v50 = vmax.bf16 %v4265_v38, %v4141_v53  ;;  %v4969_v54 = vmax.bf16 %v4893_v55, %v4889_v12  ;;  %v4970_v31 = vmax.bf16 %v4894_v11, %v4890_v3  ;;  %v10443_v3 = vld [vmem:[#allocation3 + $0x48] sm:$0xf] }
 0x299   : > { %v4047_v15 = vsel %vm8351_vm14, %v4042_v58, %v4046_v43  ;;  %v4142_v39 = vmax.bf16 %v4041_v29, %v3822_v42  ;;  %v4271_v17 = vsel %vm8363_vm15, %v4269_v60, %v4270_v34  ;;  %v4971_v18 = vmax.bf16 %v4895_v46, %v4891_v57 }
 0x29a   : > { %v4143_v7 = vmax.bf16 %v4047_v15, %v3823_v23  ;;  %v7555_v37 = vrot.slane %v4365_v50, 11  ;;  %v4972_v32 = vmax.bf16 %v4896_v44, %v4892_v10  ;;  %v4973_v30 = vmax.bf16 %v10400_v8, %v4893_v55 }
 0x29b   : > { %v4366_v6 = vmax.bf16 %v4268_v19, %v4142_v39  ;;  %v4974_v41 = vmax.bf16 %v10407_v56, %v4894_v11  ;;  %v4975_v20 = vmax.bf16 %v10409_v25, %v4895_v46  ;;  %v4976_v52 = vmax.bf16 %v10411_v1, %v4896_v44  ;;  %v10454_v11 = vld [vmem:[#allocation3 + $0x4c] sm:$0x1] }
 0x29c   : > { %v4367_v5 = vmax.bf16 %v4271_v17, %v4143_v7  ;;  %v5033_v13 = vmax.bf16 %v4969_v54, %v10400_v8  ;;  %v5034_v21 = vmax.bf16 %v4970_v31, %v10407_v56  ;;  %v5035_v14 = vmax.bf16 %v4971_v18, %v10409_v25 }
 0x29d   : > { %v4523_v36 = vrot.slane %v4366_v6, 7  ;;  %v5036_v61 = vmax.bf16 %v4972_v32, %v10411_v1  ;;  %v10438_v62 = vmax.bf16 %v4973_v30, %v10417_v0  ;;  %v10441_v35 = vmax.bf16 %v4974_v41, %v10419_v40 }
 0x29e   : > { %v4526_v59 = vrot.slane %v4367_v5, 7  ;;  %v10446_v27 = vmax.bf16 %v4975_v20, %v10422_v9  ;;  %v10449_v28 = vmax.bf16 %v4976_v52, %v10424_v45  ;;  %v5097_v38 = vmax.bf16 %v5033_v13, %v10417_v0 }
 0x29f   : > { %v4524_v4 = vsel %vm8429_vm3, %v7555_v37, %v4523_v36  ;;  %v4525_v57 = vrot.slane %v4523_v36, 4  ;;  %v5098_v51 = vmax.bf16 %v5034_v21, %v10419_v40  ;;  %v5099_v16 = vmax.bf16 %v5035_v14, %v10422_v9 }
 0x2a0   : > { %4887 = vst.msk [vmem:[#allocation3 + $0x114] sm:$0xf] %vm277_vm0, %v4524_v4  ;;  %v5100_v24 = vmax.bf16 %v5036_v61, %v10424_v45  ;;  %v5161_v43 = vmax.bf16 %v5097_v38, %v10432_v49  ;;  %v5101_v12 = vmax.bf16 %v10438_v62, %v10432_v49  ;;  %v5102_v55 = vmax.bf16 %v10441_v35, %v10434_v33  ;;  %v10480_v61 = vld [vmem:[#allocation3 + $0x50] sm:$0xf] }
 0x2a1   : > { %v4527_v23 = vsel %vm8429_vm3, %v4525_v57, %v4526_v59  ;;  %v5162_v53 = vmax.bf16 %v5098_v51, %v10434_v33  ;;  %v5163_v48 = vmax.bf16 %v5099_v16, %v10443_v3  ;;  %v5103_v60 = vmax.bf16 %v10446_v27, %v10443_v3  ;;  %v10482_v51 = vld [vmem:[#allocation3 + $0x54] sm:$0xf]  ;;  %v10484_v16 = vld [vmem:[#allocation3 + $0x58] sm:$0xf] }
 0x2a2   : > { %v7571_v46 = vcombine.low %v4524_v4, %v4527_v23  ;;  %4888 = vst.msk [vmem:[#allocation3 + $0x118] sm:$0xf] %vm277_vm0, %v4527_v23  ;;  %v5164_v42 = vmax.bf16 %v5100_v24, %v10454_v11  ;;  %v5226_v29 = vshrl.u32 %v5161_v43, 16  ;;  %v5104_v58 = vmax.bf16 %v10449_v28, %v10454_v11 }
 0x2a3   : > { %v5231_v34 = vshll.u32 %v5162_v53, 16  ;;  %v5235_v10 = vshrl.u32 %v5162_v53, 16  ;;  %v5241_v44 = vshll.u32 %v5163_v48, 16  ;;  %v5245_v19 = vshrl.u32 %v5163_v48, 16 }
 0x2a4   : > { %7827 = vmatmul.mubr.msk.bf16.gmra.mrb[28].mxu0 %vm2214_vm1, %v7571_v46  ;;  %v5753_v50 = vrot.slane %v5162_v53, 5  ;;  %v5755_v54 = vrot.slane %v5163_v48, 5  ;;  %v5939_v31 = vshll.u32 %v5164_v42, 16  ;;  %v6265_v15 = vrot.slane %v5162_v53, 6 }
 0x2a5   : > { %v5233_v39 = vrot.slane %v5231_v34, 5  ;;  %v5237_v17 = vrot.slane %v5235_v10, 4  ;;  %v5243_v18 = vrot.slane %v5241_v44, 5  ;;  %v5247_v7 = vrot.slane %v5245_v19, 4 }
 0x2a6   : > { %v5754_v37 = vrot.slane %v5753_v50, 4  ;;  %v5757_v32 = vrot.slane %v5755_v54, 4  ;;  %v5929_v30 = vrot.slane %v5235_v10, 5  ;;  %v5930_v6 = vrot.slane %v5231_v34, 6 }
 0x2a7   : > { %v5234_v41 = vsel %vm8312_vm11, %v5226_v29, %v5233_v39  ;;  %v5238_v20 = vor.u32 %v5237_v17, %v5233_v39  ;;  %v5248_v52 = vor.u32 %v5247_v7, %v5243_v18  ;;  %v5933_v5 = vrot.slane %v5245_v19, 5  ;;  %v10491_v19 = vld [vmem:[#allocation3 + $0x5c] sm:$0x1] }
 0x2a8   : > { %v5673_v13 = vmax.bf16 %v5234_v41, %v5161_v43  ;;  %v5756_v21 = vsel %vm8328_vm12, %v5754_v37, %v5755_v54  ;;  %v5931_v14 = vor.u32 %v5930_v6, %v5929_v30  ;;  %v5934_v36 = vrot.slane %v5241_v44, 6 }
 0x2a9   : > { %v5239_v62 = vrot.slane %v5238_v20, 4  ;;  %v5249_v35 = vrot.slane %v5248_v52, 4  ;;  %v5941_v59 = vrot.slane %v5939_v31, 6  ;;  %v6266_v27 = vrot.slane %v6265_v15, 4 }
 0x2aa   : > { %v5881_v28 = vmax.bf16 %v5753_v50, %v5673_v13  ;;  %v5932_v38 = vrot.slane %v5931_v14, 4  ;;  %v5935_v4 = vor.u32 %v5934_v36, %v5933_v5  ;;  %v6267_v57 = vrot.slane %v5163_v48, 6 }
 0x2ab   : > { %v5244_v24 = vsel %vm8312_vm11, %v5239_v62, %v5243_v18  ;;  %v5675_v43 = vmax.bf16 %v5249_v35, %v5163_v48  ;;  %v6270_v23 = vrot.slane %v5164_v42, 6  ;;  %v5165_v46 = vmax.bf16 %v5101_v12, %v10480_v61 }
 0x2ac   : > { %v5674_v29 = vmax.bf16 %v5244_v24, %v5162_v53  ;;  %v5936_v34 = vsel %vm8351_vm14, %v5932_v38, %v5935_v4  ;;  %v5937_v10 = vrot.slane %v5935_v4, 4  ;;  %v6201_v44 = vmax.bf16 %v5931_v14, %v5881_v28 }
 0x2ad   : > { %v5883_v50 = vmax.bf16 %v5757_v32, %v5675_v43  ;;  %v6268_v54 = vsel %vm8363_vm15, %v6266_v27, %v6267_v57  ;;  %v6269_v31 = vrot.slane %v6267_v57, 4  ;;  %v5166_v39 = vmax.bf16 %v5102_v55, %v10482_v51 }
 0x2ae   : > { %v5882_v17 = vmax.bf16 %v5756_v21, %v5674_v29  ;;  %v5942_v48 = vsel %vm8351_vm14, %v5937_v10, %v5941_v59  ;;  %v6425_v12 = vmax.bf16 %v6265_v15, %v6201_v44  ;;  %v10499_v53 = vmax.bf16 %v5103_v60, %v10484_v16 }
 0x2af   : > { %v6203_v42 = vmax.bf16 %v5942_v48, %v5883_v50  ;;  %v6271_v18 = vsel %vm8363_vm15, %v6269_v31, %v6270_v23  ;;  %v10504_v7 = vmax.bf16 %v5104_v58, %v10491_v19  ;;  %v5251_v37 = vshrl.u32 %v5165_v46, 16 }
 0x2b0   : > { %v6202_v32 = vmax.bf16 %v5936_v34, %v5882_v17  ;;  %v7605_v30 = vrot.slane %v6425_v12, 11  ;;  %v5256_v6 = vshll.u32 %v5166_v39, 16  ;;  %v5260_v55 = vshrl.u32 %v5166_v39, 16 }
 0x2b1   : > { %v6427_v41 = vmax.bf16 %v6271_v18, %v6203_v42  ;;  %v5266_v20 = vshll.u32 %v10499_v53, 16  ;;  %v5270_v15 = vshrl.u32 %v10499_v53, 16  ;;  %v5758_v52 = vrot.slane %v5166_v39, 5 }
 0x2b2   : > { %v6426_v60 = vmax.bf16 %v6268_v54, %v6202_v32  ;;  %v5258_v5 = vrot.slane %v5256_v6, 5  ;;  %v5262_v13 = vrot.slane %v5260_v55, 4  ;;  %v5760_v21 = vrot.slane %v10499_v53, 5 }
 0x2b3   : > { %v6526_v14 = vrot.slane %v6427_v41, 7  ;;  %v5268_v36 = vrot.slane %v5266_v20, 5  ;;  %v5272_v58 = vrot.slane %v5270_v15, 4  ;;  %v5759_v62 = vrot.slane %v5758_v52, 4 }
 0x2b4   : > { %v6523_v35 = vrot.slane %v6426_v60, 7  ;;  %v5259_v59 = vsel %vm8312_vm11, %v5251_v37, %v5258_v5  ;;  %v5263_v27 = vor.u32 %v5262_v13, %v5258_v5  ;;  %v5762_v28 = vrot.slane %v5760_v21, 4 }
 0x2b5   : > { %v5273_v38 = vor.u32 %v5272_v58, %v5268_v36  ;;  %v5676_v4 = vmax.bf16 %v5259_v59, %v5165_v46  ;;  %v5761_v57 = vsel %vm8328_vm12, %v5759_v62, %v5760_v21  ;;  %v5943_v24 = vrot.slane %v5260_v55, 5  ;;  %v11889_v62 = vld [vmem:[#allocation24_spill] sm:$0xff] }
 0x2b6   : > { %v6524_v43 = vsel %vm8429_vm3, %v7605_v30, %v6523_v35  ;;  %v6525_v23 = vrot.slane %v6523_v35, 4  ;;  %v5264_v29 = vrot.slane %v5263_v27, 4  ;;  %v5944_v34 = vrot.slane %v5256_v6, 6 }
 0x2b7   : > { %v5274_v10 = vrot.slane %v5273_v38, 4  ;;  %v5884_v44 = vmax.bf16 %v5758_v52, %v5676_v4  ;;  %v5947_v50 = vrot.slane %v5270_v15, 5  ;;  %v5948_v54 = vrot.slane %v5266_v20, 6  ;;  %v11891_v38 = vld [vmem:[#allocation26_spill] sm:$0xff] }
 0x2b8   : > { %v6527_v31 = vsel %vm8429_vm3, %v6525_v23, %v6526_v14  ;;  %v5269_v46 = vsel %vm8312_vm11, %v5264_v29, %v5268_v36  ;;  %v5945_v17 = vor.u32 %v5944_v34, %v5943_v24  ;;  %v5953_v48 = vshll.u32 %v10504_v7, 16 }
 0x2b9   : > { %v7621_v12 = vcombine.low %v6524_v43, %v6527_v31  ;;  %v5677_v42 = vmax.bf16 %v5269_v46, %v5166_v39  ;;  %v5678_v18 = vmax.bf16 %v5274_v10, %v10499_v53  ;;  %v5949_v37 = vor.u32 %v5948_v54, %v5947_v50  ;;  %v10552_v31 = vld [vmem:[#allocation3 + $0x60] sm:$0xf]  ;;  %v10554_v46 = vld [vmem:[#allocation3 + $0x64] sm:$0xf] }
 0x2ba   : > { %v5946_v32 = vrot.slane %v5945_v17, 4  ;;  %v5955_v30 = vrot.slane %v5953_v48, 6  ;;  %v6204_v6 = vmax.bf16 %v5945_v17, %v5884_v44  ;;  %v6272_v55 = vrot.slane %v5166_v39, 6  ;;  %v11888_v39 = vld [vmem:[#allocation25_spill] sm:$0xff] }
 0x2bb   : > { %7832 = vmatprep.mubr.msk.bf16.mxu0 %vm2214_vm1, %v7621_v12  ;;  %v5885_v41 = vmax.bf16 %v5761_v57, %v5677_v42  ;;  %v5886_v20 = vmax.bf16 %v5762_v28, %v5678_v18  ;;  %v5951_v15 = vrot.slane %v5949_v37, 4  ;;  %v6274_v52 = vrot.slane %v10499_v53, 6  ;;  %v11890_v28 = vld [vmem:[#allocation27_spill] sm:$0xff]  ;;  %v10562_v12 = vld [vmem:[#allocation3 + $0x68] sm:$0xf] }
 0x2bc   : > { %v5950_v60 = vsel %vm8351_vm14, %v5946_v32, %v5949_v37  ;;  %v6273_v5 = vrot.slane %v6272_v55, 4  ;;  %v6277_v13 = vrot.slane %v10504_v7, 6  ;;  %v6428_v21 = vmax.bf16 %v6272_v55, %v6204_v6  ;;  %v10564_v42 = vld [vmem:[#allocation3 + $0x6c] sm:$0x1] }
 0x2bd   : > { %v5956_v14 = vsel %vm8351_vm14, %v5951_v15, %v5955_v30  ;;  %v6205_v36 = vmax.bf16 %v5950_v60, %v5885_v41  ;;  %v6276_v58 = vrot.slane %v6274_v52, 4  ;;  %v7502_v35 = vcombine.low %v11889_v62, %v11888_v39 }
 0x2be   : > { %v6206_v59 = vmax.bf16 %v5956_v14, %v5886_v20  ;;  %v6275_v27 = vsel %vm8363_vm15, %v6273_v5, %v6274_v52  ;;  %v7606_v53 = vrot.slane %v6428_v21, 11  ;;  %v7503_v4 = vcombine.low %v11891_v38, %v11890_v28 }
 0x2bf   : > { %v6278_v7 = vsel %vm8363_vm15, %v6276_v58, %v6277_v13  ;;  %v6429_v57 = vmax.bf16 %v6275_v27, %v6205_v36  ;;  %7784 = vmatprep.mubr.msk.bf16.mxu1 %vm2214_vm1, %v7502_v35  ;;  %v4977_v24 = vmax.bf16 %v10417_v0, %v10400_v8  ;;  %v4978_v43 = vmax.bf16 %v10419_v40, %v10407_v56 }
 0x2c0   : > { %v6430_v23 = vmax.bf16 %v6278_v7, %v6206_v59  ;;  %7785 = vmatmul.mubr.msk.bf16.gmra.mrb[20].mxu1 %vm2214_vm1, %v7503_v4  ;;  %v4979_v29 = vmax.bf16 %v10422_v9, %v10409_v25  ;;  %v4980_v34 = vmax.bf16 %v10424_v45, %v10411_v1  ;;  %v4981_v10 = vmax.bf16 %v10432_v49, %v10417_v0 }
 0x2c1   : > { %v6530_v44 = vrot.slane %v6429_v57, 7  ;;  %v5041_v50 = vmax.bf16 %v4977_v24, %v10432_v49  ;;  %v5042_v8 = vmax.bf16 %v4978_v43, %v10434_v33  ;;  %v4982_v56 = vmax.bf16 %v10434_v33, %v10419_v40 }
 0x2c2   : > { %v6533_v54 = vrot.slane %v6430_v23, 7  ;;  %v5043_v25 = vmax.bf16 %v4979_v29, %v10443_v3  ;;  %v5044_v1 = vmax.bf16 %v4980_v34, %v10454_v11  ;;  %v4983_v0 = vmax.bf16 %v10443_v3, %v10422_v9 }
 0x2c3   : > { %v6531_v17 = vsel %vm8429_vm3, %v7606_v53, %v6530_v44  ;;  %v6532_v48 = vrot.slane %v6530_v44, 4  ;;  %v5105_v40 = vmax.bf16 %v5041_v50, %v10480_v61  ;;  %v5106_v18 = vmax.bf16 %v5042_v8, %v10482_v51 }
 0x2c4   : > { %v5107_v37 = vmax.bf16 %v5043_v25, %v10484_v16  ;;  %v5108_v32 = vmax.bf16 %v5044_v1, %v10491_v19  ;;  %v4984_v30 = vmax.bf16 %v10454_v11, %v10424_v45  ;;  %v10573_v9 = vmax.bf16 %v4981_v10, %v10480_v61 }
 0x2c5   : > { %v6534_v6 = vsel %vm8429_vm3, %v6532_v48, %v6533_v54  ;;  %v5169_v55 = vmax.bf16 %v5105_v40, %v10552_v31  ;;  %v5170_v41 = vmax.bf16 %v5106_v18, %v10554_v46  ;;  %v10580_v20 = vmax.bf16 %v4982_v56, %v10482_v51 }
 0x2c6   : > { %v7622_v15 = vcombine.low %v6531_v17, %v6534_v6  ;;  %v5171_v52 = vmax.bf16 %v5107_v37, %v10562_v12  ;;  %v5172_v60 = vmax.bf16 %v5108_v32, %v10564_v42  ;;  %v10585_v45 = vmax.bf16 %v4983_v0, %v10484_v16 }
 0x2c7   : > { %v5276_v5 = vshrl.u32 %v5169_v55, 16  ;;  %v5281_v13 = vshll.u32 %v5170_v41, 16  ;;  %v5285_v21 = vshrl.u32 %v5170_v41, 16  ;;  %v5763_v14 = vrot.slane %v5170_v41, 5 }
 0x2c8   : > { %7833 = vmatmul.mubr.msk.bf16.vlgmr.msra.gmra.mrb[0].mxu0 %vm2214_vm1, %v7622_v15  ;;  %v5291_v36 = vshll.u32 %v5171_v52, 16  ;;  %v5295_v58 = vshrl.u32 %v5171_v52, 16  ;;  %v5765_v39 = vrot.slane %v5171_v52, 5  ;;  %v5967_v62 = vshll.u32 %v5172_v60, 16 }
 0x2c9   : > { %v5283_v35 = vrot.slane %v5281_v13, 5  ;;  %v5287_v59 = vrot.slane %v5285_v21, 4  ;;  %v5764_v27 = vrot.slane %v5763_v14, 4  ;;  %v5957_v53 = vrot.slane %v5285_v21, 5 }
 0x2ca   : > { %v5293_v28 = vrot.slane %v5291_v36, 5  ;;  %v5297_v38 = vrot.slane %v5295_v58, 4  ;;  %v5767_v4 = vrot.slane %v5765_v39, 4  ;;  %v5958_v7 = vrot.slane %v5281_v13, 6 }
 0x2cb   : > { %v5284_v57 = vsel %vm8312_vm11, %v5276_v5, %v5283_v35  ;;  %v5288_v24 = vor.u32 %v5287_v59, %v5283_v35  ;;  %v5766_v43 = vsel %vm8328_vm12, %v5764_v27, %v5765_v39  ;;  %v5961_v23 = vrot.slane %v5295_v58, 5 }
 0x2cc   : > { %v5298_v29 = vor.u32 %v5297_v38, %v5293_v28  ;;  %v5679_v34 = vmax.bf16 %v5284_v57, %v5169_v55  ;;  %v5959_v10 = vor.u32 %v5958_v7, %v5957_v53  ;;  %v5962_v44 = vrot.slane %v5291_v36, 6  ;;  %v11892_v7 = vld [vmem:[#allocation29_spill] sm:$0xff]  ;;  %v11893_v57 = vld [vmem:[#allocation28_spill] sm:$0xff] }
 0x2cd   : > { %v5289_v50 = vrot.slane %v5288_v24, 4  ;;  %v5969_v8 = vrot.slane %v5967_v62, 6  ;;  %v6279_v56 = vrot.slane %v5170_v41, 6  ;;  %v6281_v54 = vrot.slane %v5171_v52, 6  ;;  %v10609_v62 = vld [vmem:[#allocation3 + $0x7c] sm:$0x1] }
 0x2ce   : > { %v5299_v25 = vrot.slane %v5298_v29, 4  ;;  %v5887_v1 = vmax.bf16 %v5763_v14, %v5679_v34  ;;  %v5960_v0 = vrot.slane %v5959_v10, 4  ;;  %v5963_v17 = vor.u32 %v5962_v44, %v5961_v23  ;;  %v10600_v14 = vld [vmem:[#allocation3 + $0x70] sm:$0xf] }
 0x2cf   : > { %v5294_v48 = vsel %vm8312_vm11, %v5289_v50, %v5293_v28  ;;  %v6280_v40 = vrot.slane %v6279_v56, 4  ;;  %v6283_v18 = vrot.slane %v6281_v54, 4  ;;  %v6284_v37 = vrot.slane %v5172_v60, 6  ;;  %v10607_v60 = vld [vmem:[#allocation3 + $0x78] sm:$0xf]  ;;  %v11895_v44 = vld [vmem:[#allocation30_spill] sm:$0xff] }
 0x2d0   : > { %v5680_v32 = vmax.bf16 %v5294_v48, %v5170_v41  ;;  %v5681_v6 = vmax.bf16 %v5299_v25, %v5171_v52  ;;  %v5964_v55 = vsel %vm8351_vm14, %v5960_v0, %v5963_v17  ;;  %v5965_v15 = vrot.slane %v5963_v17, 4  ;;  %v10605_v52 = vld [vmem:[#allocation3 + $0x74] sm:$0xf] }
 0x2d1   : > { %v6207_v5 = vmax.bf16 %v5959_v10, %v5887_v1  ;;  %v6282_v13 = vsel %vm8363_vm15, %v6280_v40, %v6281_v54  ;;  %v6285_v21 = vsel %vm8363_vm15, %v6283_v18, %v6284_v37  ;;  %v5048_v36 = vmax.bf16 %v4984_v30, %v10491_v19  ;;  %v11894_v10 = vld [vmem:[#allocation31_spill] sm:$0xff] }
 0x2d2   : > { %v5888_v58 = vmax.bf16 %v5766_v43, %v5680_v32  ;;  %v5889_v39 = vmax.bf16 %v5767_v4, %v5681_v6  ;;  %v5970_v41 = vsel %vm8351_vm14, %v5965_v15, %v5969_v8  ;;  %v5109_v35 = vmax.bf16 %v10573_v9, %v10552_v31 }
 0x2d3   : > { %v6431_v59 = vmax.bf16 %v6279_v56, %v6207_v5  ;;  %v5110_v27 = vmax.bf16 %v10580_v20, %v10554_v46  ;;  %v5111_v30 = vmax.bf16 %v10585_v45, %v10562_v12  ;;  %v5112_v53 = vmax.bf16 %v5048_v36, %v10564_v42 }
 0x2d4   : > { %v6208_v28 = vmax.bf16 %v5964_v55, %v5888_v58  ;;  %v6209_v38 = vmax.bf16 %v5970_v41, %v5889_v39  ;;  %v5173_v4 = vmax.bf16 %v5109_v35, %v10600_v14  ;;  %v7504_v24 = vcombine.low %v11893_v57, %v11892_v7 }
 0x2d5   : > { %v7607_v43 = vrot.slane %v6431_v59, 11  ;;  %v5174_v23 = vmax.bf16 %v5110_v27, %v10605_v52  ;;  %v5175_v9 = vmax.bf16 %v5111_v30, %v10607_v60  ;;  %v10624_v29 = vmax.bf16 %v5112_v53, %v10609_v62 }
 0x2d6   : > { %v6432_v20 = vmax.bf16 %v6282_v13, %v6208_v28  ;;  %v6433_v34 = vmax.bf16 %v6285_v21, %v6209_v38  ;;  %v5301_v45 = vshrl.u32 %v5173_v4, 16  ;;  %7788 = vmatprep.mubr.msk.bf16.mxu1 %vm2214_vm1, %v7504_v24  ;;  %v7505_v50 = vcombine.low %v11895_v44, %v11894_v10 }
 0x2d7   : > { %v5306_v8 = vshll.u32 %v5174_v23, 16  ;;  %v5310_v56 = vshrl.u32 %v5174_v23, 16  ;;  %v5316_v54 = vshll.u32 %v5175_v9, 16  ;;  %v5320_v25 = vshrl.u32 %v5175_v9, 16 }
 0x2d8   : > { %v6537_v1 = vrot.slane %v6432_v20, 7  ;;  %v6540_v0 = vrot.slane %v6433_v34, 7  ;;  %v5768_v17 = vrot.slane %v5174_v23, 5  ;;  %v5770_v48 = vrot.slane %v5175_v9, 5  ;;  %7789 = vmatmul.mubr.msk.bf16.gmra.mrb[24].mxu1 %vm2214_vm1, %v7505_v50 }
 0x2d9   : > { %v5308_v40 = vrot.slane %v5306_v8, 5  ;;  %v5312_v18 = vrot.slane %v5310_v56, 4  ;;  %v5318_v37 = vrot.slane %v5316_v54, 5  ;;  %v5322_v32 = vrot.slane %v5320_v25, 4 }
 0x2da   : > { %v6538_v6 = vsel %vm8429_vm3, %v7607_v43, %v6537_v1  ;;  %v6539_v55 = vrot.slane %v6537_v1, 4  ;;  %v5769_v15 = vrot.slane %v5768_v17, 4  ;;  %v5772_v5 = vrot.slane %v5770_v48, 4 }
 0x2db   : > { %v5309_v13 = vsel %vm8312_vm11, %v5301_v45, %v5308_v40  ;;  %v5313_v21 = vor.u32 %v5312_v18, %v5308_v40  ;;  %v5323_v36 = vor.u32 %v5322_v32, %v5318_v37  ;;  %v5971_v58 = vrot.slane %v5310_v56, 5 }
 0x2dc   : > { %v6541_v39 = vsel %vm8429_vm3, %v6539_v55, %v6540_v0  ;;  %v5682_v41 = vmax.bf16 %v5309_v13, %v5173_v4  ;;  %v5771_v35 = vsel %vm8328_vm12, %v5769_v15, %v5770_v48  ;;  %v5972_v59 = vrot.slane %v5306_v8, 6 }
 0x2dd   : > { %v7623_v27 = vcombine.low %v6538_v6, %v6541_v39  ;;  %v5314_v30 = vrot.slane %v5313_v21, 4  ;;  %v5324_v53 = vrot.slane %v5323_v36, 4  ;;  %v5975_v28 = vrot.slane %v5320_v25, 5  ;;  %v10660_v21 = vld [vmem:[#allocation3 + $0x80] sm:$0xf] }
 0x2de   : > { %v5890_v38 = vmax.bf16 %v5768_v17, %v5682_v41  ;;  %v5973_v7 = vor.u32 %v5972_v59, %v5971_v58  ;;  %v5976_v57 = vrot.slane %v5316_v54, 6  ;;  %v5981_v24 = vshll.u32 %v10624_v29, 16  ;;  %v10666_v41 = vld [vmem:[#allocation3 + $0x84] sm:$0xf] }
 0x2df   : > { %7836 = vmatprep.mubr.msk.bf16.mxu0 %vm2214_vm1, %v7623_v27  ;;  %v5319_v43 = vsel %vm8312_vm11, %v5314_v30, %v5318_v37  ;;  %v5684_v20 = vmax.bf16 %v5324_v53, %v5175_v9  ;;  %v6286_v4 = vrot.slane %v5174_v23, 6  ;;  %v6288_v34 = vrot.slane %v5175_v9, 6  ;;  %v10674_v30 = vld [vmem:[#allocation3 + $0x8c] sm:$0x1] }
 0x2e0   : > { %v5683_v45 = vmax.bf16 %v5319_v43, %v5174_v23  ;;  %v5974_v10 = vrot.slane %v5973_v7, 4  ;;  %v5977_v44 = vor.u32 %v5976_v57, %v5975_v28  ;;  %v5983_v50 = vrot.slane %v5981_v24, 6 }
 0x2e1   : > { %v5892_v8 = vmax.bf16 %v5772_v5, %v5684_v20  ;;  %v6210_v56 = vmax.bf16 %v5973_v7, %v5890_v38  ;;  %v6287_v25 = vrot.slane %v6286_v4, 4  ;;  %v6290_v1 = vrot.slane %v6288_v34, 4 }
 0x2e2   : > { %v5891_v0 = vmax.bf16 %v5771_v35, %v5683_v45  ;;  %v5978_v54 = vsel %vm8351_vm14, %v5974_v10, %v5977_v44  ;;  %v5979_v17 = vrot.slane %v5977_v44, 4  ;;  %v6291_v48 = vrot.slane %v10624_v29, 6 }
 0x2e3   : > { %v6289_v40 = vsel %vm8363_vm15, %v6287_v25, %v6288_v34  ;;  %v6434_v18 = vmax.bf16 %v6286_v4, %v6210_v56  ;;  %v4985_v23 = vmax.bf16 %v10480_v61, %v10432_v49  ;;  %v4986_v9 = vmax.bf16 %v10482_v51, %v10434_v33 }
 0x2e4   : > { %v5984_v37 = vsel %vm8351_vm14, %v5979_v17, %v5983_v50  ;;  %v6211_v32 = vmax.bf16 %v5978_v54, %v5891_v0  ;;  %v6292_v6 = vsel %vm8363_vm15, %v6290_v1, %v6291_v48  ;;  %v4987_v29 = vmax.bf16 %v10484_v16, %v10443_v3  ;;  %v10668_v3 = vld [vmem:[#allocation3 + $0x88] sm:$0xf] }
 0x2e5   : > { %v6212_v55 = vmax.bf16 %v5984_v37, %v5892_v8  ;;  %v7608_v15 = vrot.slane %v6434_v18, 11  ;;  %v4988_v5 = vmax.bf16 %v10491_v19, %v10454_v11  ;;  %v5049_v49 = vmax.bf16 %v4985_v23, %v10552_v31 }
 0x2e6   : > { %v6435_v13 = vmax.bf16 %v6289_v40, %v6211_v32  ;;  %v5050_v33 = vmax.bf16 %v4986_v9, %v10554_v46  ;;  %v5051_v36 = vmax.bf16 %v4987_v29, %v10562_v12  ;;  %v4989_v58 = vmax.bf16 %v10552_v31, %v10480_v61 }
 0x2e7   : > { %v6436_v39 = vmax.bf16 %v6292_v6, %v6212_v55  ;;  %v5052_v35 = vmax.bf16 %v4988_v5, %v10564_v42  ;;  %v5113_v11 = vmax.bf16 %v5049_v49, %v10600_v14  ;;  %v4990_v59 = vmax.bf16 %v10554_v46, %v10482_v51 }
 0x2e8   : > { %v6544_v27 = vrot.slane %v6435_v13, 7  ;;  %v5114_v53 = vmax.bf16 %v5050_v33, %v10605_v52  ;;  %v5115_v28 = vmax.bf16 %v5051_v36, %v10607_v60  ;;  %v4991_v61 = vmax.bf16 %v10562_v12, %v10484_v16 }
 0x2e9   : > { %v6547_v38 = vrot.slane %v6436_v39, 7  ;;  %v5116_v7 = vmax.bf16 %v5052_v35, %v10609_v62  ;;  %v5177_v57 = vmax.bf16 %v5113_v11, %v10660_v21  ;;  %v4992_v24 = vmax.bf16 %v10564_v42, %v10491_v19 }
 0x2ea   : > { %v6545_v51 = vsel %vm8429_vm3, %v7608_v15, %v6544_v27  ;;  %v6546_v43 = vrot.slane %v6544_v27, 4  ;;  %v5178_v20 = vmax.bf16 %v5114_v53, %v10666_v41  ;;  %v5179_v4 = vmax.bf16 %v5115_v28, %v10668_v3 }
 0x2eb   : > { %v5180_v34 = vmax.bf16 %v5116_v7, %v10674_v30  ;;  %v5326_v45 = vshrl.u32 %v5177_v57, 16  ;;  %v10690_v10 = vmax.bf16 %v4989_v58, %v10600_v14  ;;  %v10693_v44 = vmax.bf16 %v4990_v59, %v10605_v52 }
 0x2ec   : > { %v6548_v19 = vsel %vm8429_vm3, %v6546_v43, %v6547_v38  ;;  %v5331_v50 = vshll.u32 %v5178_v20, 16  ;;  %v5335_v8 = vshrl.u32 %v5178_v20, 16  ;;  %v5341_v56 = vshll.u32 %v5179_v4, 16 }
 0x2ed   : > { %v7624_v25 = vcombine.low %v6545_v51, %v6548_v19  ;;  %v5345_v1 = vshrl.u32 %v5179_v4, 16  ;;  %v5773_v0 = vrot.slane %v5178_v20, 5  ;;  %v5775_v54 = vrot.slane %v5179_v4, 5 }
 0x2ee   : > { %v5333_v17 = vrot.slane %v5331_v50, 5  ;;  %v5337_v48 = vrot.slane %v5335_v8, 4  ;;  %v5343_v40 = vrot.slane %v5341_v56, 5  ;;  %v5985_v18 = vrot.slane %v5335_v8, 5 }
 0x2ef   : > { %7837 = vmatmul.mubr.msk.bf16.gmra.mrb[4].mxu0 %vm2214_vm1, %v7624_v25  ;;  %v5347_v23 = vrot.slane %v5345_v1, 4  ;;  %v5774_v9 = vrot.slane %v5773_v0, 4  ;;  %v5777_v37 = vrot.slane %v5775_v54, 4  ;;  %v5986_v32 = vrot.slane %v5331_v50, 6 }
 0x2f0   : > { %v5334_v6 = vsel %vm8312_vm11, %v5326_v45, %v5333_v17  ;;  %v5338_v29 = vor.u32 %v5337_v48, %v5333_v17  ;;  %v5989_v55 = vrot.slane %v5345_v1, 5  ;;  %v5990_v15 = vrot.slane %v5341_v56, 6  ;;  %v10710_v17 = vld [vmem:[#allocation3 + $0x90] sm:$0xf]  ;;  %v10712_v48 = vld [vmem:[#allocation3 + $0x94] sm:$0xf] }
 0x2f1   : > { %v5348_v5 = vor.u32 %v5347_v23, %v5343_v40  ;;  %v5685_v49 = vmax.bf16 %v5334_v6, %v5177_v57  ;;  %v5776_v13 = vsel %vm8328_vm12, %v5774_v9, %v5775_v54  ;;  %v5987_v33 = vor.u32 %v5986_v32, %v5985_v18  ;;  %v10727_v6 = vld [vmem:[#allocation3 + $0x9c] sm:$0x1] }
 0x2f2   : > { %v5339_v36 = vrot.slane %v5338_v29, 4  ;;  %v5991_v58 = vor.u32 %v5990_v15, %v5989_v55  ;;  %v5995_v39 = vshll.u32 %v5180_v34, 16  ;;  %v6293_v35 = vrot.slane %v5178_v20, 6  ;;  %v11897_v15 = vld [vmem:[#allocation32_spill] sm:$0xff] }
 0x2f3   : > { %v5349_v11 = vrot.slane %v5348_v5, 4  ;;  %v5893_v59 = vmax.bf16 %v5773_v0, %v5685_v49  ;;  %v5988_v27 = vrot.slane %v5987_v33, 4  ;;  %v6295_v53 = vrot.slane %v5179_v4, 6 }
 0x2f4   : > { %v5344_v28 = vsel %vm8312_vm11, %v5339_v36, %v5343_v40  ;;  %v5993_v38 = vrot.slane %v5991_v58, 4  ;;  %v5997_v7 = vrot.slane %v5995_v39, 6  ;;  %v6294_v51 = vrot.slane %v6293_v35, 4  ;;  %v10720_v40 = vld [vmem:[#allocation3 + $0x98] sm:$0xf] }
 0x2f5   : > { %v5686_v43 = vmax.bf16 %v5344_v28, %v5178_v20  ;;  %v5687_v57 = vmax.bf16 %v5349_v11, %v5179_v4  ;;  %v5992_v45 = vsel %vm8351_vm14, %v5988_v27, %v5991_v58  ;;  %v6213_v19 = vmax.bf16 %v5987_v33, %v5893_v59  ;;  %v11899_v33 = vld [vmem:[#allocation34_spill] sm:$0xff] }
 0x2f6   : > { %v5998_v50 = vsel %vm8351_vm14, %v5993_v38, %v5997_v7  ;;  %v6296_v8 = vsel %vm8363_vm15, %v6294_v51, %v6295_v53  ;;  %v6297_v56 = vrot.slane %v6295_v53, 4  ;;  %v6298_v25 = vrot.slane %v5180_v34, 6 }
 0x2f7   : > { %v5894_v1 = vmax.bf16 %v5776_v13, %v5686_v43  ;;  %v5895_v0 = vmax.bf16 %v5777_v37, %v5687_v57  ;;  %v6437_v54 = vmax.bf16 %v6293_v35, %v6213_v19  ;;  %v5055_v20 = vmax.bf16 %v4991_v61, %v10607_v60  ;;  %v11898_v13 = vld [vmem:[#allocation35_spill] sm:$0xff] }
 0x2f8   : > { %v6299_v4 = vsel %vm8363_vm15, %v6297_v56, %v6298_v25  ;;  %v5056_v18 = vmax.bf16 %v4992_v24, %v10609_v62  ;;  %v5117_v34 = vmax.bf16 %v10690_v10, %v10660_v21  ;;  %v5118_v23 = vmax.bf16 %v10693_v44, %v10666_v41  ;;  %v11896_v24 = vld [vmem:[#allocation33_spill] sm:$0xff] }
 0x2f9   : > { %v6214_v9 = vmax.bf16 %v5992_v45, %v5894_v1  ;;  %v6215_v37 = vmax.bf16 %v5998_v50, %v5895_v0  ;;  %v7609_v32 = vrot.slane %v6437_v54, 11  ;;  %v5119_v16 = vmax.bf16 %v5055_v20, %v10668_v3 }
 0x2fa   : > { %v5120_v61 = vmax.bf16 %v5056_v18, %v10674_v30  ;;  %v5181_v29 = vmax.bf16 %v5117_v34, %v10710_v17  ;;  %v5182_v55 = vmax.bf16 %v5118_v23, %v10712_v48  ;;  %v7506_v5 = vcombine.low %v11897_v15, %v11896_v24 }
 0x2fb   : > { %v6438_v10 = vmax.bf16 %v6296_v8, %v6214_v9  ;;  %v6439_v49 = vmax.bf16 %v6299_v4, %v6215_v37  ;;  %v5183_v44 = vmax.bf16 %v5119_v16, %v10720_v40  ;;  %v7507_v36 = vcombine.low %v11899_v33, %v11898_v13 }
 0x2fc   : > { %v5184_v58 = vmax.bf16 %v5120_v61, %v10727_v6  ;;  %v5351_v39 = vshrl.u32 %v5181_v29, 16  ;;  %v5356_v35 = vshll.u32 %v5182_v55, 16  ;;  %v5360_v11 = vshrl.u32 %v5182_v55, 16  ;;  %7792 = vmatprep.mubr.msk.bf16.mxu1 %vm2214_vm1, %v7506_v5 }
 0x2fd   : > { %v6551_v59 = vrot.slane %v6438_v10, 7  ;;  %v6554_v27 = vrot.slane %v6439_v49, 7  ;;  %v5366_v53 = vshll.u32 %v5183_v44, 16  ;;  %v5370_v28 = vshrl.u32 %v5183_v44, 16  ;;  %7793 = vmatmul.mubr.msk.bf16.gmra.mrb[28].mxu1 %vm2214_vm1, %v7507_v36 }
 0x2fe   : > { %v5358_v38 = vrot.slane %v5356_v35, 5  ;;  %v5362_v7 = vrot.slane %v5360_v11, 4  ;;  %v5778_v51 = vrot.slane %v5182_v55, 5  ;;  %v5780_v43 = vrot.slane %v5183_v44, 5 }
 0x2ff   : > { %v6552_v57 = vsel %vm8429_vm3, %v7609_v32, %v6551_v59  ;;  %v6553_v45 = vrot.slane %v6551_v59, 4  ;;  %v5368_v19 = vrot.slane %v5366_v53, 5  ;;  %v5372_v50 = vrot.slane %v5370_v28, 4 }
 0x300   : > { %v5359_v8 = vsel %vm8312_vm11, %v5351_v39, %v5358_v38  ;;  %v5363_v56 = vor.u32 %v5362_v7, %v5358_v38  ;;  %v5779_v25 = vrot.slane %v5778_v51, 4  ;;  %v5782_v1 = vrot.slane %v5780_v43, 4 }
 0x301   : > { %v6555_v0 = vsel %vm8429_vm3, %v6553_v45, %v6554_v27  ;;  %v5373_v54 = vor.u32 %v5372_v50, %v5368_v19  ;;  %v5688_v20 = vmax.bf16 %v5359_v8, %v5181_v29  ;;  %v5999_v4 = vrot.slane %v5360_v11, 5 }
 0x302   : > { %v7625_v18 = vcombine.low %v6552_v57, %v6555_v0  ;;  %v5364_v34 = vrot.slane %v5363_v56, 4  ;;  %v5781_v23 = vsel %vm8328_vm12, %v5779_v25, %v5780_v43  ;;  %v6000_v9 = vrot.slane %v5356_v35, 6 }
 0x303   : > { %v5374_v37 = vrot.slane %v5373_v54, 4  ;;  %v5896_v32 = vmax.bf16 %v5778_v51, %v5688_v20  ;;  %v6003_v16 = vrot.slane %v5370_v28, 5  ;;  %v6004_v61 = vrot.slane %v5366_v53, 6  ;;  %v10770_v54 = vld [vmem:[#allocation3 + $0xa0] sm:$0xf] }
 0x304   : > { %7840 = vmatprep.mubr.msk.bf16.mxu0 %vm2214_vm1, %v7625_v18  ;;  %v5369_v24 = vsel %vm8312_vm11, %v5364_v34, %v5368_v19  ;;  %v6001_v15 = vor.u32 %v6000_v9, %v5999_v4  ;;  %v6009_v5 = vshll.u32 %v5184_v58, 16  ;;  %v6300_v10 = vrot.slane %v5182_v55, 6  ;;  %v10777_v18 = vld [vmem:[#allocation3 + $0xa4] sm:$0xf]  ;;  %v10779_v34 = vld [vmem:[#allocation3 + $0xa8] sm:$0xf] }
 0x305   : > { %v5689_v29 = vmax.bf16 %v5369_v24, %v5182_v55  ;;  %v5690_v49 = vmax.bf16 %v5374_v37, %v5183_v44  ;;  %v6005_v13 = vor.u32 %v6004_v61, %v6003_v16  ;;  %v6302_v33 = vrot.slane %v5183_v44, 6 }
 0x306   : > { %v6002_v36 = vrot.slane %v6001_v15, 4  ;;  %v6011_v39 = vrot.slane %v6009_v5, 6  ;;  %v6216_v11 = vmax.bf16 %v6001_v15, %v5896_v32  ;;  %v6301_v35 = vrot.slane %v6300_v10, 4  ;;  %v10784_v32 = vld [vmem:[#allocation3 + $0xac] sm:$0x1] }
 0x307   : > { %v5897_v59 = vmax.bf16 %v5781_v23, %v5689_v29  ;;  %v5898_v27 = vmax.bf16 %v5782_v1, %v5690_v49  ;;  %v6007_v28 = vrot.slane %v6005_v13, 4  ;;  %v6304_v53 = vrot.slane %v6302_v33, 4 }
 0x308   : > { %v6006_v38 = vsel %vm8351_vm14, %v6002_v36, %v6005_v13  ;;  %v6303_v7 = vsel %vm8363_vm15, %v6301_v35, %v6302_v33  ;;  %v6305_v51 = vrot.slane %v5184_v58, 6  ;;  %v6440_v43 = vmax.bf16 %v6300_v10, %v6216_v11 }
 0x309   : > { %v6012_v55 = vsel %vm8351_vm14, %v6007_v28, %v6011_v39  ;;  %v6217_v44 = vmax.bf16 %v6006_v38, %v5897_v59  ;;  %v4993_v57 = vmax.bf16 %v10600_v14, %v10552_v31  ;;  %v4994_v45 = vmax.bf16 %v10605_v52, %v10554_v46 }
 0x30a   : > { %v6218_v19 = vmax.bf16 %v6012_v55, %v5898_v27  ;;  %v6306_v50 = vsel %vm8363_vm15, %v6304_v53, %v6305_v51  ;;  %v7610_v8 = vrot.slane %v6440_v43, 11  ;;  %v4995_v56 = vmax.bf16 %v10607_v60, %v10562_v12 }
 0x30b   : > { %v6441_v58 = vmax.bf16 %v6303_v7, %v6217_v44  ;;  %v4996_v25 = vmax.bf16 %v10609_v62, %v10564_v42  ;;  %v5057_v1 = vmax.bf16 %v4993_v57, %v10660_v21  ;;  %v5058_v0 = vmax.bf16 %v4994_v45, %v10666_v41 }
 0x30c   : > { %v6442_v31 = vmax.bf16 %v6306_v50, %v6218_v19  ;;  %v5059_v46 = vmax.bf16 %v4995_v56, %v10668_v3  ;;  %v4997_v20 = vmax.bf16 %v10660_v21, %v10600_v14  ;;  %v4998_v4 = vmax.bf16 %v10666_v41, %v10605_v52 }
 0x30d   : > { %v6558_v12 = vrot.slane %v6441_v58, 7  ;;  %v5060_v42 = vmax.bf16 %v4996_v25, %v10674_v30  ;;  %v5121_v23 = vmax.bf16 %v5057_v1, %v10710_v17  ;;  %v5122_v9 = vmax.bf16 %v5058_v0, %v10712_v48 }
 0x30e   : > { %v6561_v37 = vrot.slane %v6442_v31, 7  ;;  %v5123_v16 = vmax.bf16 %v5059_v46, %v10720_v40  ;;  %v4999_v14 = vmax.bf16 %v10668_v3, %v10607_v60  ;;  %v5000_v52 = vmax.bf16 %v10674_v30, %v10609_v62 }
 0x30f   : > { %v6559_v61 = vsel %vm8429_vm3, %v7610_v8, %v6558_v12  ;;  %v6560_v24 = vrot.slane %v6558_v12, 4  ;;  %v5124_v15 = vmax.bf16 %v5060_v42, %v10727_v6  ;;  %v5185_v5 = vmax.bf16 %v5121_v23, %v10770_v54 }
 0x310   : > { %v5186_v10 = vmax.bf16 %v5122_v9, %v10777_v18  ;;  %v5187_v29 = vmax.bf16 %v5123_v16, %v10779_v34  ;;  %v10798_v49 = vmax.bf16 %v4997_v20, %v10710_v17  ;;  %v10801_v60 = vmax.bf16 %v4998_v4, %v10712_v48 }
 0x311   : > { %v6562_v62 = vsel %vm8429_vm3, %v6560_v24, %v6561_v37  ;;  %v5188_v13 = vmax.bf16 %v5124_v15, %v10784_v32  ;;  %v5376_v33 = vshrl.u32 %v5185_v5, 16  ;;  %v10807_v36 = vmax.bf16 %v4999_v14, %v10720_v40 }
 0x312   : > { %v7626_v39 = vcombine.low %v6559_v61, %v6562_v62  ;;  %v5381_v11 = vshll.u32 %v5186_v10, 16  ;;  %v5385_v35 = vshrl.u32 %v5186_v10, 16  ;;  %v5391_v59 = vshll.u32 %v5187_v29, 16 }
 0x313   : > { %v5395_v27 = vshrl.u32 %v5187_v29, 16  ;;  %v5783_v28 = vrot.slane %v5186_v10, 5  ;;  %v5785_v53 = vrot.slane %v5187_v29, 5  ;;  %v6023_v38 = vshll.u32 %v5188_v13, 16 }
 0x314   : > { %7841 = vmatmul.mubr.msk.bf16.gmra.mrb[8].mxu0 %vm2214_vm1, %v7626_v39  ;;  %v5383_v7 = vrot.slane %v5381_v11, 5  ;;  %v5387_v51 = vrot.slane %v5385_v35, 4  ;;  %v5393_v43 = vrot.slane %v5391_v59, 5  ;;  %v6013_v55 = vrot.slane %v5385_v35, 5 }
 0x315   : > { %v5397_v44 = vrot.slane %v5395_v27, 4  ;;  %v5784_v57 = vrot.slane %v5783_v28, 4  ;;  %v5787_v45 = vrot.slane %v5785_v53, 4  ;;  %v6014_v19 = vrot.slane %v5381_v11, 6 }
 0x316   : > { %v5384_v50 = vsel %vm8312_vm11, %v5376_v33, %v5383_v7  ;;  %v5388_v8 = vor.u32 %v5387_v51, %v5383_v7  ;;  %v6017_v56 = vrot.slane %v5395_v27, 5  ;;  %v6018_v58 = vrot.slane %v5391_v59, 6  ;;  %v10822_v59 = vld [vmem:[#allocation3 + $0xb0] sm:$0xf] }
 0x317   : > { %v5398_v25 = vor.u32 %v5397_v44, %v5393_v43  ;;  %v5691_v1 = vmax.bf16 %v5384_v50, %v5185_v5  ;;  %v5786_v0 = vsel %vm8328_vm12, %v5784_v57, %v5785_v53  ;;  %v6015_v31 = vor.u32 %v6014_v19, %v6013_v55 }
 0x318   : > { %v5389_v46 = vrot.slane %v5388_v8, 4  ;;  %v6019_v20 = vor.u32 %v6018_v58, %v6017_v56  ;;  %v6025_v4 = vrot.slane %v6023_v38, 6  ;;  %v6307_v12 = vrot.slane %v5186_v10, 6  ;;  %v10829_v38 = vld [vmem:[#allocation3 + $0xbc] sm:$0x1] }
 0x319   : > { %v5399_v42 = vrot.slane %v5398_v25, 4  ;;  %v5899_v23 = vmax.bf16 %v5783_v28, %v5691_v1  ;;  %v6016_v9 = vrot.slane %v6015_v31, 4  ;;  %v6309_v37 = vrot.slane %v5187_v29, 6 }
 0x31a   : > { %v5394_v16 = vsel %vm8312_vm11, %v5389_v46, %v5393_v43  ;;  %v6021_v14 = vrot.slane %v6019_v20, 4  ;;  %v6308_v61 = vrot.slane %v6307_v12, 4  ;;  %v6312_v24 = vrot.slane %v5188_v13, 6 }
 0x31b   : > { %v5692_v15 = vmax.bf16 %v5394_v16, %v5186_v10  ;;  %v5693_v5 = vmax.bf16 %v5399_v42, %v5187_v29  ;;  %v6020_v62 = vsel %vm8351_vm14, %v6016_v9, %v6019_v20  ;;  %v6219_v33 = vmax.bf16 %v6015_v31, %v5899_v23  ;;  %v10825_v10 = vld [vmem:[#allocation3 + $0xb4] sm:$0xf]  ;;  %v10827_v29 = vld [vmem:[#allocation3 + $0xb8] sm:$0xf] }
 0x31c   : > { %v6026_v39 = vsel %vm8351_vm14, %v6021_v14, %v6025_v4  ;;  %v6310_v11 = vsel %vm8363_vm15, %v6308_v61, %v6309_v37  ;;  %v6311_v35 = vrot.slane %v6309_v37, 4  ;;  %v5064_v27 = vmax.bf16 %v5000_v52, %v10727_v6 }
 0x31d   : > { %v5900_v28 = vmax.bf16 %v5786_v0, %v5692_v15  ;;  %v5901_v53 = vmax.bf16 %v5787_v45, %v5693_v5  ;;  %v6443_v13 = vmax.bf16 %v6307_v12, %v6219_v33  ;;  %v5125_v7 = vmax.bf16 %v10798_v49, %v10770_v54 }
 0x31e   : > { %v6313_v51 = vsel %vm8363_vm15, %v6311_v35, %v6312_v24  ;;  %v5126_v43 = vmax.bf16 %v10801_v60, %v10777_v18  ;;  %v5127_v52 = vmax.bf16 %v10807_v36, %v10779_v34  ;;  %v5128_v55 = vmax.bf16 %v5064_v27, %v10784_v32 }
 0x31f   : > { %v6220_v44 = vmax.bf16 %v6020_v62, %v5900_v28  ;;  %v6221_v57 = vmax.bf16 %v6026_v39, %v5901_v53  ;;  %v7611_v45 = vrot.slane %v6443_v13, 11  ;;  %v5189_v19 = vmax.bf16 %v5125_v7, %v10822_v59 }
 0x320   : > { %v5190_v50 = vmax.bf16 %v5126_v43, %v10825_v10  ;;  %v5191_v49 = vmax.bf16 %v5127_v52, %v10827_v29  ;;  %v10844_v8 = vmax.bf16 %v5128_v55, %v10829_v38  ;;  %v5001_v60 = vmax.bf16 %v10710_v17, %v10660_v21 }
 0x321   : > { %v6444_v56 = vmax.bf16 %v6310_v11, %v6220_v44  ;;  %v6445_v58 = vmax.bf16 %v6313_v51, %v6221_v57  ;;  %v5401_v36 = vshrl.u32 %v5189_v19, 16  ;;  %v5002_v25 = vmax.bf16 %v10712_v48, %v10666_v41 }
 0x322   : > { %v5406_v1 = vshll.u32 %v5190_v50, 16  ;;  %v5410_v0 = vshrl.u32 %v5190_v50, 16  ;;  %v5416_v31 = vshll.u32 %v5191_v49, 16  ;;  %v5420_v46 = vshrl.u32 %v5191_v49, 16 }
 0x323   : > { %v6565_v20 = vrot.slane %v6444_v56, 7  ;;  %v6568_v4 = vrot.slane %v6445_v58, 7  ;;  %v5788_v12 = vrot.slane %v5190_v50, 5  ;;  %v5790_v42 = vrot.slane %v5191_v49, 5 }
 0x324   : > { %v5408_v23 = vrot.slane %v5406_v1, 5  ;;  %v5412_v9 = vrot.slane %v5410_v0, 4  ;;  %v5418_v37 = vrot.slane %v5416_v31, 5  ;;  %v5422_v16 = vrot.slane %v5420_v46, 4 }
 0x325   : > { %v6566_v21 = vsel %vm8429_vm3, %v7611_v45, %v6565_v20  ;;  %v6567_v14 = vrot.slane %v6565_v20, 4  ;;  %v5789_v61 = vrot.slane %v5788_v12, 4  ;;  %v5792_v24 = vrot.slane %v5790_v42, 4 }
 0x326   : > { %v5409_v41 = vsel %vm8312_vm11, %v5401_v36, %v5408_v23  ;;  %v5413_v15 = vor.u32 %v5412_v9, %v5408_v23  ;;  %v5423_v5 = vor.u32 %v5422_v16, %v5418_v37  ;;  %v6027_v62 = vrot.slane %v5410_v0, 5 }
 0x327   : > { %v6569_v33 = vsel %vm8429_vm3, %v6567_v14, %v6568_v4  ;;  %v5694_v39 = vmax.bf16 %v5409_v41, %v5189_v19  ;;  %v5791_v11 = vsel %vm8328_vm12, %v5789_v61, %v5790_v42  ;;  %v6028_v35 = vrot.slane %v5406_v1, 6 }
 0x328   : > { %v7627_v27 = vcombine.low %v6566_v21, %v6569_v33  ;;  %v5414_v28 = vrot.slane %v5413_v15, 4  ;;  %v5424_v53 = vrot.slane %v5423_v5, 4  ;;  %v6031_v13 = vrot.slane %v5420_v46, 5  ;;  %v10880_v5 = vld [vmem:[#allocation3 + $0xc4] sm:$0xf] }
 0x329   : > { %v5902_v7 = vmax.bf16 %v5788_v12, %v5694_v39  ;;  %v6029_v51 = vor.u32 %v6028_v35, %v6027_v62  ;;  %v6032_v43 = vrot.slane %v5416_v31, 6  ;;  %v6037_v52 = vshll.u32 %v10844_v8, 16 }
 0x32a   : > { %7844 = vmatprep.mubr.msk.bf16.mxu0 %vm2214_vm1, %v7627_v27  ;;  %v5419_v55 = vsel %vm8312_vm11, %v5414_v28, %v5418_v37  ;;  %v5696_v44 = vmax.bf16 %v5424_v53, %v5191_v49  ;;  %v6314_v57 = vrot.slane %v5190_v50, 6  ;;  %v6316_v45 = vrot.slane %v5191_v49, 6 }
 0x32b   : > { %v5695_v19 = vmax.bf16 %v5419_v55, %v5190_v50  ;;  %v6030_v56 = vrot.slane %v6029_v51, 4  ;;  %v6033_v58 = vor.u32 %v6032_v43, %v6031_v13  ;;  %v6039_v36 = vrot.slane %v6037_v52, 6 }
 0x32c   : > { %v5904_v1 = vmax.bf16 %v5792_v24, %v5696_v44  ;;  %v6222_v0 = vmax.bf16 %v6029_v51, %v5902_v7  ;;  %v6315_v46 = vrot.slane %v6314_v57, 4  ;;  %v6318_v20 = vrot.slane %v6316_v45, 4  ;;  %v10876_v24 = vld [vmem:[#allocation3 + $0xc0] sm:$0xf] }
 0x32d   : > { %v5903_v4 = vmax.bf16 %v5791_v11, %v5695_v19  ;;  %v6034_v31 = vsel %vm8351_vm14, %v6030_v56, %v6033_v58  ;;  %v6035_v12 = vrot.slane %v6033_v58, 4  ;;  %v6319_v42 = vrot.slane %v10844_v8, 6  ;;  %v10888_v11 = vld [vmem:[#allocation3 + $0xcc] sm:$0x1] }
 0x32e   : > { %v6317_v23 = vsel %vm8363_vm15, %v6315_v46, %v6316_v45  ;;  %v6446_v9 = vmax.bf16 %v6314_v57, %v6222_v0  ;;  %v5003_v50 = vmax.bf16 %v10720_v40, %v10668_v3  ;;  %v5004_v49 = vmax.bf16 %v10727_v6, %v10674_v30  ;;  %v10882_v30 = vld [vmem:[#allocation3 + $0xc8] sm:$0xf] }
 0x32f   : > { %v6040_v37 = vsel %vm8351_vm14, %v6035_v12, %v6039_v36  ;;  %v6223_v16 = vmax.bf16 %v6034_v31, %v5903_v4  ;;  %v6320_v21 = vsel %vm8363_vm15, %v6318_v20, %v6319_v42  ;;  %v5065_v14 = vmax.bf16 %v5001_v60, %v10770_v54 }
 0x330   : > { %v6224_v8 = vmax.bf16 %v6040_v37, %v5904_v1  ;;  %v7612_v61 = vrot.slane %v6446_v9, 11  ;;  %v5066_v41 = vmax.bf16 %v5002_v25, %v10777_v18  ;;  %v5067_v3 = vmax.bf16 %v5003_v50, %v10779_v34 }
 0x331   : > { %v6447_v15 = vmax.bf16 %v6317_v23, %v6223_v16  ;;  %v5068_v62 = vmax.bf16 %v5004_v49, %v10784_v32  ;;  %v5129_v33 = vmax.bf16 %v5065_v14, %v10822_v59  ;;  %v5005_v60 = vmax.bf16 %v10770_v54, %v10710_v17 }
 0x332   : > { %v6448_v39 = vmax.bf16 %v6320_v21, %v6224_v8  ;;  %v5130_v35 = vmax.bf16 %v5066_v41, %v10825_v10  ;;  %v5131_v25 = vmax.bf16 %v5067_v3, %v10827_v29  ;;  %v5006_v27 = vmax.bf16 %v10777_v18, %v10712_v48 }
 0x333   : > { %v6572_v28 = vrot.slane %v6447_v15, 7  ;;  %v5132_v53 = vmax.bf16 %v5068_v62, %v10829_v38  ;;  %v5193_v13 = vmax.bf16 %v5129_v33, %v10876_v24  ;;  %v5007_v7 = vmax.bf16 %v10779_v34, %v10720_v40 }
 0x334   : > { %v6575_v51 = vrot.slane %v6448_v39, 7  ;;  %v5194_v17 = vmax.bf16 %v5130_v35, %v10880_v5  ;;  %v5195_v43 = vmax.bf16 %v5131_v25, %v10882_v30  ;;  %v5008_v52 = vmax.bf16 %v10784_v32, %v10727_v6 }
 0x335   : > { %v6573_v55 = vsel %vm8429_vm3, %v7612_v61, %v6572_v28  ;;  %v6574_v44 = vrot.slane %v6572_v28, 4  ;;  %v5196_v57 = vmax.bf16 %v5132_v53, %v10888_v11  ;;  %v5426_v45 = vshrl.u32 %v5193_v13, 16 }
 0x336   : > { %v5431_v19 = vshll.u32 %v5194_v17, 16  ;;  %v5435_v56 = vshrl.u32 %v5194_v17, 16  ;;  %v5441_v58 = vshll.u32 %v5195_v43, 16  ;;  %v5445_v36 = vshrl.u32 %v5195_v43, 16 }
 0x337   : > { %v6576_v40 = vsel %vm8429_vm3, %v6574_v44, %v6575_v51  ;;  %v5793_v1 = vrot.slane %v5194_v17, 5  ;;  %v5795_v0 = vrot.slane %v5195_v43, 5  ;;  %v6051_v46 = vshll.u32 %v5196_v57, 16 }
 0x338   : > { %v7628_v20 = vcombine.low %v6573_v55, %v6576_v40  ;;  %v5433_v4 = vrot.slane %v5431_v19, 5  ;;  %v5437_v6 = vrot.slane %v5435_v56, 4  ;;  %v5443_v31 = vrot.slane %v5441_v58, 5 }
 0x339   : > { %v5447_v12 = vrot.slane %v5445_v36, 4  ;;  %v5794_v42 = vrot.slane %v5793_v1, 4  ;;  %v5797_v23 = vrot.slane %v5795_v0, 4  ;;  %v6041_v9 = vrot.slane %v5435_v56, 5 }
 0x33a   : > { %7845 = vmatmul.mubr.msk.bf16.gmra.mrb[12].mxu0 %vm2214_vm1, %v7628_v20  ;;  %v5434_v50 = vsel %vm8312_vm11, %v5426_v45, %v5433_v4  ;;  %v5438_v49 = vor.u32 %v5437_v6, %v5433_v4  ;;  %v6042_v37 = vrot.slane %v5431_v19, 6  ;;  %v6045_v16 = vrot.slane %v5445_v36, 5 }
 0x33b   : > { %v5448_v21 = vor.u32 %v5447_v12, %v5443_v31  ;;  %v5697_v14 = vmax.bf16 %v5434_v50, %v5193_v13  ;;  %v5796_v8 = vsel %vm8328_vm12, %v5794_v42, %v5795_v0  ;;  %v6046_v61 = vrot.slane %v5441_v58, 6 }
 0x33c   : > { %v5439_v41 = vrot.slane %v5438_v49, 4  ;;  %v6043_v3 = vor.u32 %v6042_v37, %v6041_v9  ;;  %v6053_v15 = vrot.slane %v6051_v46, 6  ;;  %v6321_v62 = vrot.slane %v5194_v17, 6  ;;  %v10935_v9 = vld [vmem:[#allocation3 + $0xdc] sm:$0x1] }
 0x33d   : > { %v5449_v33 = vrot.slane %v5448_v21, 4  ;;  %v5905_v39 = vmax.bf16 %v5793_v1, %v5697_v14  ;;  %v6047_v35 = vor.u32 %v6046_v61, %v6045_v16  ;;  %v6323_v25 = vrot.slane %v5195_v43, 6 }
 0x33e   : > { %v5444_v28 = vsel %vm8312_vm11, %v5439_v41, %v5443_v31  ;;  %v6044_v53 = vrot.slane %v6043_v3, 4  ;;  %v6322_v51 = vrot.slane %v6321_v62, 4  ;;  %v6326_v55 = vrot.slane %v5196_v57, 6  ;;  %v10925_v57 = vld [vmem:[#allocation3 + $0xd4] sm:$0xf] }
 0x33f   : > { %v5698_v44 = vmax.bf16 %v5444_v28, %v5194_v17  ;;  %v5699_v13 = vmax.bf16 %v5449_v33, %v5195_v43  ;;  %v6049_v45 = vrot.slane %v6047_v35, 4  ;;  %v6225_v19 = vmax.bf16 %v6043_v3, %v5905_v39  ;;  %v10923_v43 = vld [vmem:[#allocation3 + $0xd0] sm:$0xf] }
 0x340   : > { %v6048_v56 = vsel %vm8351_vm14, %v6044_v53, %v6047_v35  ;;  %v6324_v58 = vsel %vm8363_vm15, %v6322_v51, %v6323_v25  ;;  %v6325_v36 = vrot.slane %v6323_v25, 4  ;;  %v5069_v40 = vmax.bf16 %v5005_v60, %v10822_v59 }
 0x341   : > { %v5906_v1 = vmax.bf16 %v5796_v8, %v5698_v44  ;;  %v5907_v0 = vmax.bf16 %v5797_v23, %v5699_v13  ;;  %v6054_v46 = vsel %vm8351_vm14, %v6049_v45, %v6053_v15  ;;  %v6449_v20 = vmax.bf16 %v6321_v62, %v6225_v19  ;;  %v10933_v23 = vld [vmem:[#allocation3 + $0xd8] sm:$0xf] }
 0x342   : > { %v6327_v17 = vsel %vm8363_vm15, %v6325_v36, %v6326_v55  ;;  %v5070_v4 = vmax.bf16 %v5006_v27, %v10825_v10  ;;  %v5071_v60 = vmax.bf16 %v5007_v7, %v10827_v29  ;;  %v5072_v6 = vmax.bf16 %v5008_v52, %v10829_v38 }
 0x343   : > { %v6226_v31 = vmax.bf16 %v6048_v56, %v5906_v1  ;;  %v6227_v12 = vmax.bf16 %v6054_v46, %v5907_v0  ;;  %v7613_v42 = vrot.slane %v6449_v20, 11  ;;  %v5133_v50 = vmax.bf16 %v5069_v40, %v10876_v24 }
 0x344   : > { %v5134_v49 = vmax.bf16 %v5070_v4, %v10880_v5  ;;  %v5135_v37 = vmax.bf16 %v5071_v60, %v10882_v30  ;;  %v5136_v48 = vmax.bf16 %v5072_v6, %v10888_v11  ;;  %v5009_v27 = vmax.bf16 %v10822_v59, %v10770_v54 }
 0x345   : > { %v6450_v7 = vmax.bf16 %v6324_v58, %v6226_v31  ;;  %v6451_v52 = vmax.bf16 %v6327_v17, %v6227_v12  ;;  %v5197_v16 = vmax.bf16 %v5133_v50, %v10923_v43  ;;  %v5010_v21 = vmax.bf16 %v10825_v10, %v10777_v18 }
 0x346   : > { %v5198_v14 = vmax.bf16 %v5134_v49, %v10925_v57  ;;  %v5199_v8 = vmax.bf16 %v5135_v37, %v10933_v23  ;;  %v10949_v61 = vmax.bf16 %v5136_v48, %v10935_v9  ;;  %v5011_v41 = vmax.bf16 %v10827_v29, %v10779_v34 }
 0x347   : > { %v6579_v3 = vrot.slane %v6450_v7, 7  ;;  %v6582_v15 = vrot.slane %v6451_v52, 7  ;;  %v5451_v62 = vshrl.u32 %v5197_v16, 16  ;;  %v5012_v33 = vmax.bf16 %v10829_v38, %v10784_v32 }
 0x348   : > { %v5456_v39 = vshll.u32 %v5198_v14, 16  ;;  %v5460_v35 = vshrl.u32 %v5198_v14, 16  ;;  %v5466_v25 = vshll.u32 %v5199_v8, 16  ;;  %v5470_v28 = vshrl.u32 %v5199_v8, 16 }
 0x349   : > { %v6580_v53 = vsel %vm8429_vm3, %v7613_v42, %v6579_v3  ;;  %v6581_v51 = vrot.slane %v6579_v3, 4  ;;  %v5798_v55 = vrot.slane %v5198_v14, 5  ;;  %v5800_v44 = vrot.slane %v5199_v8, 5  ;;  %v10965_v3 = vpop.f32.mrb[0].mxu1 }
 0x34a   : > { %v5458_v13 = vrot.slane %v5456_v39, 5  ;;  %v5462_v45 = vrot.slane %v5460_v35, 4  ;;  %v5468_v19 = vrot.slane %v5466_v25, 5  ;;  %v5472_v56 = vrot.slane %v5470_v28, 4 }
 0x34b   : > { %v6583_v58 = vsel %vm8429_vm3, %v6581_v51, %v6582_v15  ;;  %v5799_v36 = vrot.slane %v5798_v55, 4  ;;  %v5802_v40 = vrot.slane %v5800_v44, 4  ;;  %v6055_v1 = vrot.slane %v5460_v35, 5  ;;  %v10969_v35 = vpop.f32.mrb[1].mxu1 }
 0x34c   : > { %v7629_v0 = vcombine.low %v6580_v53, %v6583_v58  ;;  %v5459_v46 = vsel %vm8312_vm11, %v5451_v62, %v5458_v13  ;;  %v5463_v20 = vor.u32 %v5462_v45, %v5458_v13  ;;  %v5473_v17 = vor.u32 %v5472_v56, %v5468_v19 }
 0x34d   : > { %v5700_v4 = vmax.bf16 %v5459_v46, %v5197_v16  ;;  %v5801_v60 = vsel %vm8328_vm12, %v5799_v36, %v5800_v44  ;;  %v6056_v6 = vrot.slane %v5456_v39, 6  ;;  %v6059_v31 = vrot.slane %v5470_v28, 5  ;;  %v10971_v44 = vpop.f32.mrb[2].mxu1 }
 0x34e   : > { %7848 = vmatprep.mubr.msk.bf16.mxu0 %vm2214_vm1, %v7629_v0  ;;  %v5464_v12 = vrot.slane %v5463_v20, 4  ;;  %v5474_v42 = vrot.slane %v5473_v17, 4  ;;  %v6060_v50 = vrot.slane %v5466_v25, 6  ;;  %v6065_v49 = vshll.u32 %v10949_v61, 16  ;;  %v10974_v58 = vpop.f32.mrb[3].mxu1 }
 0x34f   : > { %v5908_v37 = vmax.bf16 %v5798_v55, %v5700_v4  ;;  %v6057_v48 = vor.u32 %v6056_v6, %v6055_v1  ;;  %v6328_v7 = vrot.slane %v5198_v14, 6  ;;  %v6330_v52 = vrot.slane %v5199_v8, 6  ;;  %v10980_v1 = vpop.f32.mrb[4].mxu1  ;;  %v10996_v6 = vld [vmem:[#allocation3 + $0xe0] sm:$0xf] }
 0x350   : > { %v5469_v16 = vsel %vm8312_vm11, %v5464_v12, %v5468_v19  ;;  %v5702_v15 = vmax.bf16 %v5474_v42, %v5199_v8  ;;  %v6061_v62 = vor.u32 %v6060_v50, %v6059_v31  ;;  %v6067_v39 = vrot.slane %v6065_v49, 6  ;;  %v10994_v20 = vpop.f32.mrb[5].mxu1  ;;  %v10998_v31 = vld [vmem:[#allocation3 + $0xe4] sm:$0xf]  ;;  %v11006_v12 = vld [vmem:[#allocation3 + $0xe8] sm:$0xf] }
 0x351   : > { %v5701_v28 = vmax.bf16 %v5469_v16, %v5198_v14  ;;  %v6058_v53 = vrot.slane %v6057_v48, 4  ;;  %v6228_v51 = vmax.bf16 %v6057_v48, %v5908_v37  ;;  %v6329_v25 = vrot.slane %v6328_v7, 4  ;;  %v11018_v37 = vld [vmem:[#allocation3 + $0xec] sm:$0x1] }
 0x352   : > { %v5910_v55 = vmax.bf16 %v5802_v40, %v5702_v15  ;;  %v6063_v13 = vrot.slane %v6061_v62, 4  ;;  %v6332_v45 = vrot.slane %v6330_v52, 4  ;;  %v6333_v56 = vrot.slane %v10949_v61, 6 }
 0x353   : > { %v5909_v36 = vmax.bf16 %v5801_v60, %v5701_v28  ;;  %v6062_v8 = vsel %vm8351_vm14, %v6058_v53, %v6061_v62  ;;  %v6331_v19 = vsel %vm8363_vm15, %v6329_v25, %v6330_v52  ;;  %v6452_v14 = vmax.bf16 %v6328_v7, %v6228_v51 }
 0x354   : > { %v6068_v0 = vsel %vm8351_vm14, %v6063_v13, %v6067_v39  ;;  %v6334_v40 = vsel %vm8363_vm15, %v6332_v45, %v6333_v56  ;;  %v5073_v61 = vmax.bf16 %v5009_v27, %v10876_v24  ;;  %v5074_v46 = vmax.bf16 %v5010_v21, %v10880_v5  ;;  %v11004_v27 = vpop.f32.mrb[6].mxu1 }
 0x355   : > { %v6229_v17 = vmax.bf16 %v6062_v8, %v5909_v36  ;;  %v6230_v4 = vmax.bf16 %v6068_v0, %v5910_v55  ;;  %v7614_v60 = vrot.slane %v6452_v14, 11  ;;  %v5075_v54 = vmax.bf16 %v5011_v41, %v10882_v30  ;;  %v11016_v49 = vpop.f32.mrb[7].mxu1 }
 0x356   : > { %v5076_v18 = vmax.bf16 %v5012_v33, %v10888_v11  ;;  %v5137_v21 = vmax.bf16 %v5073_v61, %v10923_v43  ;;  %v5138_v42 = vmax.bf16 %v5074_v46, %v10925_v57  ;;  %11900 = vst [vmem:[#allocation39_spill] sm:$0xff] %v11016_v49  ;;  %v11023_v32 = vpop.f32.mrb[8].mxu1  ;;  %vm244_vm0 = vcmask 64512  }
 0x357   : > { %v6453_v34 = vmax.bf16 %v6331_v19, %v6229_v17  ;;  %v6454_v41 = vmax.bf16 %v6334_v40, %v6230_v4  ;;  %v5139_v48 = vmax.bf16 %v5075_v54, %v10933_v23  ;;  %11901 = vst [vmem:[#allocation44_spill] sm:$0xff] %v11023_v32  ;;  %v11032_v62 = vpop.f32.mrb[9].mxu1 }
 0x358   : > { %v5140_v33 = vmax.bf16 %v5076_v18, %v10935_v9  ;;  %v5201_v52 = vmax.bf16 %v5137_v21, %v10996_v6  ;;  %v11028_v16 = vmax.bf16 %v5138_v42, %v10998_v31  ;;  %11902 = vst [vmem:[#allocation40_spill] sm:$0xff] %v11032_v62  ;;  %v11039_v25 = vpop.f32.mrb[10].mxu1 }
 0x359   : > { %v6586_v39 = vrot.slane %v6453_v34, 7  ;;  %v6589_v28 = vrot.slane %v6454_v41, 7  ;;  %v11035_v53 = vmax.bf16 %v5139_v48, %v11006_v12  ;;  %11903 = vst [vmem:[#allocation37_spill] sm:$0xff] %v11039_v25  ;;  %v11046_v36 = vpop.f32.mrb[11].mxu1 }
 0x35a   : > { %v11042_v55 = vmax.bf16 %v5140_v33, %v11018_v37  ;;  %v5476_v13 = vshrl.u32 %v5201_v52, 16  ;;  %v5481_v45 = vshll.u32 %v11028_v16, 16  ;;  %v5485_v56 = vshrl.u32 %v11028_v16, 16  ;;  %11904 = vst [vmem:[#allocation36_spill] sm:$0xff] %v11046_v36  ;;  %v11052_v40 = vpop.f32.mrb[12].mxu1 }
 0x35b   : > { %v6587_v8 = vsel %vm8429_vm3, %v7614_v60, %v6586_v39  ;;  %v6588_v19 = vrot.slane %v6586_v39, 4  ;;  %v5491_v14 = vshll.u32 %v11035_v53, 16  ;;  %v5495_v0 = vshrl.u32 %v11035_v53, 16  ;;  %11905 = vst [vmem:[#allocation42_spill] sm:$0xff] %v11052_v40  ;;  %v11056_v54 = vpop.f32.mrb[13].mxu1 }
 0x35c   : > { %v5483_v61 = vrot.slane %v5481_v45, 5  ;;  %v5487_v46 = vrot.slane %v5485_v56, 4  ;;  %v5803_v17 = vrot.slane %v11028_v16, 5  ;;  %v5805_v4 = vrot.slane %v11035_v53, 5  ;;  %11906 = vst [vmem:[#allocation43_spill] sm:$0xff] %v11056_v54  ;;  %v11060_v34 = vpop.f32.mrb[14].mxu1 }
 0x35d   : > { %v6590_v18 = vsel %vm8429_vm3, %v6588_v19, %v6589_v28  ;;  %v5493_v21 = vrot.slane %v5491_v14, 5  ;;  %v5497_v60 = vrot.slane %v5495_v0, 4  ;;  %v6069_v42 = vrot.slane %v5485_v56, 5  ;;  %11907 = vst [vmem:[#allocation41_spill] sm:$0xff] %v11060_v34  ;;  %v11064_v51 = vpop.f32.mrb[15].mxu1 }
 0x35e   : > { %v7630_v41 = vcombine.low %v6587_v8, %v6590_v18  ;;  %v5484_v48 = vsel %vm8312_vm11, %v5476_v13, %v5483_v61  ;;  %v5488_v33 = vor.u32 %v5487_v46, %v5483_v61  ;;  %v5804_v39 = vrot.slane %v5803_v17, 4  ;;  %11908 = vst [vmem:[#allocation38_spill] sm:$0xff] %v11064_v51 }
 0x35f   : > { %v5498_v15 = vor.u32 %v5497_v60, %v5493_v21  ;;  %v5703_v7 = vmax.bf16 %v5484_v48, %v5201_v52  ;;  %v5807_v50 = vrot.slane %v5805_v4, 4  ;;  %v6070_v54 = vrot.slane %v5481_v45, 6 }
 0x360   : > { %7849 = vmatmul.mubr.msk.bf16.gmra.mrb[16].mxu0 %vm2214_vm1, %v7630_v41  ;;  %v5489_v28 = vrot.slane %v5488_v33, 4  ;;  %v5806_v56 = vsel %vm8328_vm12, %v5804_v39, %v5805_v4  ;;  %v6073_v19 = vrot.slane %v5495_v0, 5  ;;  %v6074_v34 = vrot.slane %v5491_v14, 6  ;;  %v11069_v8 = vpop.f32.mrb[16].mxu1 }
 0x361   : > { %11909 = vst [vmem:[#allocation5_spill] sm:$0xff] %v11069_v8  ;;  %v5499_v18 = vrot.slane %v5498_v15, 4  ;;  %v5911_v13 = vmax.bf16 %v5803_v17, %v5703_v7  ;;  %v6071_v61 = vor.u32 %v6070_v54, %v6069_v42  ;;  %v6079_v46 = vshll.u32 %v11042_v55, 16  ;;  %v11072_v51 = vpop.f32.mrb[17].mxu1 }
 0x362   : > { %11910 = vst [vmem:[#allocation4_spill] sm:$0xff] %v11072_v51  ;;  %v5494_v52 = vsel %vm8312_vm11, %v5489_v28, %v5493_v21  ;;  %v6075_v45 = vor.u32 %v6074_v34, %v6073_v19  ;;  %v6335_v60 = vrot.slane %v11028_v16, 6  ;;  %v6337_v41 = vrot.slane %v11035_v53, 6  ;;  %v11078_v4 = vpop.f32.mrb[18].mxu1 }
 0x363   : > { %11911 = vst [vmem:[#allocation7_spill] sm:$0xff] %v11078_v4  ;;  %v5704_v14 = vmax.bf16 %v5494_v52, %v11028_v16  ;;  %v5705_v15 = vmax.bf16 %v5499_v18, %v11035_v53  ;;  %v6072_v7 = vrot.slane %v6071_v61, 4  ;;  %v6081_v0 = vrot.slane %v6079_v46, 6  ;;  %v11082_v17 = vpop.f32.mrb[19].mxu1  ;;  %v11097_v46 = vld [vmem:[#allocation3 + $0xf0] sm:$0xf] }
 0x364   : > { %11912 = vst [vmem:[#allocation6_spill] sm:$0xff] %v11082_v17  ;;  %v6077_v54 = vrot.slane %v6075_v45, 4  ;;  %v6231_v42 = vmax.bf16 %v6071_v61, %v5911_v13  ;;  %v6336_v48 = vrot.slane %v6335_v60, 4  ;;  %v6339_v33 = vrot.slane %v6337_v41, 4 }
 0x365   : > { %v5912_v21 = vmax.bf16 %v5806_v56, %v5704_v14  ;;  %v5913_v34 = vmax.bf16 %v5807_v50, %v5705_v15  ;;  %v6076_v39 = vsel %vm8351_vm14, %v6072_v7, %v6075_v45  ;;  %v6340_v28 = vrot.slane %v11042_v55, 6 }
 0x366   : > { %v6082_v16 = vsel %vm8351_vm14, %v6077_v54, %v6081_v0  ;;  %v6338_v53 = vsel %vm8363_vm15, %v6336_v48, %v6337_v41  ;;  %v6455_v19 = vmax.bf16 %v6335_v60, %v6231_v42  ;;  %v11913_v18 = vmax.bf16 %v10876_v24, %v10822_v59  ;;  %v11103_v41 = vld [vmem:[#allocation3 + $0xf4] sm:$0xf]  ;;  %v11114_v42 = vld [vmem:[#allocation3 + $0xf8] sm:$0xf] }
 0x367   : > { %v6232_v61 = vmax.bf16 %v6076_v39, %v5912_v21  ;;  %v6233_v56 = vmax.bf16 %v6082_v16, %v5913_v34  ;;  %v6341_v50 = vsel %vm8363_vm15, %v6339_v33, %v6340_v28  ;;  %v11914_v55 = vmax.bf16 %v10880_v5, %v10825_v10  ;;  %v11116_v10 = vld [vmem:[#allocation3 + $0xfc] sm:$0x1] }
 0x368   : > { %v5077_v13 = vmax.bf16 %v11913_v18, %v10923_v43  ;;  %v7615_v45 = vrot.slane %v6455_v19, 11  ;;  %v11915_v59 = vmax.bf16 %v10882_v30, %v10827_v29  ;;  %v11916_v14 = vmax.bf16 %v10888_v11, %v10829_v38 }
 0x369   : > { %v5078_v52 = vmax.bf16 %v11914_v55, %v10925_v57  ;;  %v6456_v0 = vmax.bf16 %v6338_v53, %v6232_v61  ;;  %v6457_v54 = vmax.bf16 %v6341_v50, %v6233_v56  ;;  %v5018_v34 = vmax.bf16 %v10925_v57, %v10880_v5 }
 0x36a   : > { %v5079_v60 = vmax.bf16 %v11915_v59, %v10933_v23  ;;  %v5080_v15 = vmax.bf16 %v11916_v14, %v10935_v9  ;;  %v5141_v7 = vmax.bf16 %v5077_v13, %v10996_v6  ;;  %v5020_v61 = vmax.bf16 %v10935_v9, %v10888_v11 }
 0x36b   : > { %v5142_v48 = vmax.bf16 %v5078_v52, %v10998_v31  ;;  %v6593_v39 = vrot.slane %v6456_v0, 7  ;;  %v6596_v28 = vrot.slane %v6457_v54, 7 }
 0x36c   : > { %v5143_v29 = vmax.bf16 %v5079_v60, %v11006_v12  ;;  %v5144_v21 = vmax.bf16 %v5080_v15, %v11018_v37  ;;  %v5205_v38 = vmax.bf16 %v5141_v7, %v11097_v46 }
 0x36d   : > { %v5206_v16 = vmax.bf16 %v5142_v48, %v11103_v41  ;;  %v6594_v56 = vsel %vm8429_vm3, %v7615_v45, %v6593_v39  ;;  %v6595_v50 = vrot.slane %v6593_v39, 4 }
 0x36e   : > { %v5207_v19 = vmax.bf16 %v5143_v29, %v11114_v42  ;;  %v5208_v18 = vmax.bf16 %v5144_v21, %v11116_v10  ;;  %v5501_v13 = vshrl.u32 %v5205_v38, 16 }
 0x36f   : > { %v5506_v5 = vshll.u32 %v5206_v16, 16  ;;  %v5510_v55 = vshrl.u32 %v5206_v16, 16  ;;  %v5808_v60 = vrot.slane %v5206_v16, 5  ;;  %v6597_v15 = vsel %vm8429_vm3, %v6595_v50, %v6596_v28 }
 0x370   : > { %v5516_v52 = vshll.u32 %v5207_v19, 16  ;;  %v5520_v59 = vshrl.u32 %v5207_v19, 16  ;;  %v5810_v14 = vrot.slane %v5207_v19, 5  ;;  %v7631_v48 = vcombine.low %v6594_v56, %v6597_v15 }
 0x371   : > { %v5508_v7 = vrot.slane %v5506_v5, 5  ;;  %v5512_v0 = vrot.slane %v5510_v55, 4  ;;  %v6083_v54 = vrot.slane %v5510_v55, 5  ;;  %v5809_v11 = vrot.slane %v5808_v60, 4 }
 0x372   : > { %v5518_v29 = vrot.slane %v5516_v52, 5  ;;  %v5522_v21 = vrot.slane %v5520_v59, 4  ;;  %v5812_v53 = vrot.slane %v5810_v14, 4  ;;  %v6084_v33 = vrot.slane %v5506_v5, 6  ;;  %7852 = vmatprep.mubr.msk.bf16.mxu0 %vm2214_vm1, %v7631_v48 }
 0x373   : > { %v5509_v45 = vsel %vm8312_vm11, %v5501_v13, %v5508_v7  ;;  %v5513_v39 = vor.u32 %v5512_v0, %v5508_v7  ;;  %v5811_v28 = vsel %vm8328_vm12, %v5809_v11, %v5810_v14  ;;  %v6087_v50 = vrot.slane %v5520_v59, 5  ;;  %v11157_v11 = vld [vmem:[#allocation3 + $0x100] sm:$0xf] }
 0x374   : > { %v5523_v17 = vor.u32 %v5522_v21, %v5518_v29  ;;  %v5706_v4 = vmax.bf16 %v5509_v45, %v5205_v38  ;;  %v6085_v55 = vor.u32 %v6084_v33, %v6083_v54  ;;  %v6088_v56 = vrot.slane %v5516_v52, 6 }
 0x375   : > { %v5514_v51 = vrot.slane %v5513_v39, 4  ;;  %v6093_v15 = vshll.u32 %v5208_v18, 16  ;;  %v6342_v36 = vrot.slane %v5206_v16, 6  ;;  %v6344_v25 = vrot.slane %v5207_v19, 6 }
 0x376   : > { %v5524_v8 = vrot.slane %v5523_v17, 4  ;;  %v5914_v40 = vmax.bf16 %v5808_v60, %v5706_v4  ;;  %v6086_v5 = vrot.slane %v6085_v55, 4  ;;  %v6089_v7 = vor.u32 %v6088_v56, %v6087_v50 }
 0x377   : > { %v5519_v13 = vsel %vm8312_vm11, %v5514_v51, %v5518_v29  ;;  %v6095_v0 = vrot.slane %v6093_v15, 6  ;;  %v6343_v45 = vrot.slane %v6342_v36, 4  ;;  %v6346_v52 = vrot.slane %v6344_v25, 4 }
 0x378   : > { %v5707_v48 = vmax.bf16 %v5519_v13, %v5206_v16  ;;  %v5708_v38 = vmax.bf16 %v5524_v8, %v5207_v19  ;;  %v6234_v21 = vmax.bf16 %v6085_v55, %v5914_v40  ;;  %v6090_v59 = vsel %vm8351_vm14, %v6086_v5, %v6089_v7  ;;  %v11172_v13 = vld [vmem:[#allocation3 + $0x10c] sm:$0x1] }
 0x379   : > { %v6091_v33 = vrot.slane %v6089_v7, 4  ;;  %v6347_v14 = vrot.slane %v5208_v18, 6  ;;  %v6345_v60 = vsel %vm8363_vm15, %v6343_v45, %v6344_v25  ;;  %v11917_v40 = vmax.bf16 %v10923_v43, %v10876_v24  ;;  %v11159_v25 = vld [vmem:[#allocation3 + $0x104] sm:$0xf] }
 0x37a   : > { %v5915_v17 = vmax.bf16 %v5811_v28, %v5707_v48  ;;  %v5916_v4 = vmax.bf16 %v5812_v53, %v5708_v38  ;;  %v6458_v54 = vmax.bf16 %v6342_v36, %v6234_v21  ;;  %v5082_v19 = vmax.bf16 %v5018_v34, %v10998_v31  ;;  %v11165_v28 = vld [vmem:[#allocation3 + $0x108] sm:$0xf] }
 0x37b   : > { %v6096_v51 = vsel %vm8351_vm14, %v6091_v33, %v6095_v0  ;;  %v6348_v8 = vsel %vm8363_vm15, %v6346_v52, %v6347_v14  ;;  %v5081_v16 = vmax.bf16 %v11917_v40, %v10996_v6  ;;  %v11918_v36 = vmax.bf16 %v10933_v23, %v10882_v30 }
 0x37c   : > { %v6235_v18 = vmax.bf16 %v6090_v59, %v5915_v17  ;;  %v6236_v29 = vmax.bf16 %v6096_v51, %v5916_v4  ;;  %v7616_v53 = vrot.slane %v6458_v54, 11  ;;  %v5084_v50 = vmax.bf16 %v5020_v61, %v11018_v37 }
 0x37d   : > { %v5083_v39 = vmax.bf16 %v11918_v36, %v11006_v12  ;;  %v5145_v24 = vmax.bf16 %v5081_v16, %v11097_v46  ;;  %v5146_v34 = vmax.bf16 %v5082_v19, %v11103_v41  ;;  %v5024_v59 = vmax.bf16 %v11018_v37, %v10935_v9 }
 0x37e   : > { %v6459_v56 = vmax.bf16 %v6345_v60, %v6235_v18  ;;  %v6460_v15 = vmax.bf16 %v6348_v8, %v6236_v29  ;;  %v5148_v7 = vmax.bf16 %v5084_v50, %v11116_v10 }
 0x37f   : > { %v5147_v5 = vmax.bf16 %v5083_v39, %v11114_v42  ;;  %v5209_v61 = vmax.bf16 %v5145_v24, %v11157_v11  ;;  %v5210_v0 = vmax.bf16 %v5146_v34, %v11159_v25 }
 0x380   : > { %v6600_v38 = vrot.slane %v6459_v56, 7  ;;  %v6603_v21 = vrot.slane %v6460_v15, 7  ;;  %v5212_v33 = vmax.bf16 %v5148_v7, %v11172_v13 }
 0x381   : > { %v5211_v45 = vmax.bf16 %v5147_v5, %v11165_v28  ;;  %v5526_v52 = vshrl.u32 %v5209_v61, 16  ;;  %v5531_v14 = vshll.u32 %v5210_v0, 16  ;;  %v5535_v17 = vshrl.u32 %v5210_v0, 16 }
 0x382   : > { %v6601_v4 = vsel %vm8429_vm3, %v7616_v53, %v6600_v38  ;;  %v6602_v60 = vrot.slane %v6600_v38, 4  ;;  %v5813_v16 = vrot.slane %v5210_v0, 5 }
 0x383   : > { %v5541_v54 = vshll.u32 %v5211_v45, 16  ;;  %v5545_v51 = vshrl.u32 %v5211_v45, 16  ;;  %v5533_v8 = vrot.slane %v5531_v14, 5  ;;  %v5537_v40 = vrot.slane %v5535_v17, 4 }
 0x384   : > { %v5815_v19 = vrot.slane %v5211_v45, 5  ;;  %v6604_v18 = vsel %vm8429_vm3, %v6602_v60, %v6603_v21  ;;  %v6097_v36 = vrot.slane %v5535_v17, 5  ;;  %v5814_v34 = vrot.slane %v5813_v16, 4 }
 0x385   : > { %v5543_v29 = vrot.slane %v5541_v54, 5  ;;  %v5547_v9 = vrot.slane %v5545_v51, 4  ;;  %v7632_v39 = vcombine.low %v6601_v4, %v6604_v18  ;;  %v5534_v50 = vsel %vm8312_vm11, %v5526_v52, %v5533_v8 }
 0x386   : > { %v5538_v24 = vor.u32 %v5537_v40, %v5533_v8  ;;  %v5709_v56 = vmax.bf16 %v5534_v50, %v5209_v61  ;;  %v5817_v15 = vrot.slane %v5815_v19, 4  ;;  %v6098_v5 = vrot.slane %v5531_v14, 6 }
 0x387   : > { %v5548_v53 = vor.u32 %v5547_v9, %v5543_v29  ;;  %7853 = vmatmul.mubr.msk.bf16.gmra.mrb[20].mxu0 %vm2214_vm1, %v7632_v39  ;;  %v5816_v38 = vsel %vm8328_vm12, %v5814_v34, %v5815_v19  ;;  %v6101_v21 = vrot.slane %v5545_v51, 5  ;;  %v6102_v60 = vrot.slane %v5541_v54, 6 }
 0x388   : > { %v5539_v7 = vrot.slane %v5538_v24, 4  ;;  %v5917_v17 = vmax.bf16 %v5813_v16, %v5709_v56  ;;  %v6099_v4 = vor.u32 %v6098_v5, %v6097_v36  ;;  %v6107_v18 = vshll.u32 %v5212_v33, 16  ;;  %v11209_v5 = vld [vmem:[#allocation3 + $0x110] sm:$0xf] }
 0x389   : > { %v5549_v48 = vrot.slane %v5548_v53, 4  ;;  %v6103_v8 = vor.u32 %v6102_v60, %v6101_v21  ;;  %v6349_v40 = vrot.slane %v5210_v0, 6  ;;  %v6351_v61 = vrot.slane %v5211_v45, 6 }
 0x38a   : > { %v5544_v52 = vsel %vm8312_vm11, %v5539_v7, %v5543_v29  ;;  %v6100_v50 = vrot.slane %v6099_v4, 4  ;;  %v6109_v39 = vrot.slane %v6107_v18, 6  ;;  %v6237_v30 = vmax.bf16 %v6099_v4, %v5917_v17  ;;  %v11223_v18 = vld [vmem:[#allocation3 + $0x118] sm:$0xf] }
 0x38b   : > { %v5710_v9 = vmax.bf16 %v5544_v52, %v5210_v0  ;;  %v5711_v14 = vmax.bf16 %v5549_v48, %v5211_v45  ;;  %v6105_v24 = vrot.slane %v6103_v8, 4  ;;  %v6350_v55 = vrot.slane %v6349_v40, 4  ;;  %v11225_v52 = vld [vmem:[#allocation3 + $0x11c] sm:$0x1] }
 0x38c   : > { %v6353_v19 = vrot.slane %v6351_v61, 4  ;;  %v6104_v16 = vsel %vm8351_vm14, %v6100_v50, %v6103_v8  ;;  %v6354_v36 = vrot.slane %v5212_v33, 6  ;;  %v6461_v0 = vmax.bf16 %v6349_v40, %v6237_v30 }
 0x38d   : > { %v5918_v51 = vmax.bf16 %v5816_v38, %v5710_v9  ;;  %v5919_v54 = vmax.bf16 %v5817_v15, %v5711_v14  ;;  %v6110_v29 = vsel %vm8351_vm14, %v6105_v24, %v6109_v39  ;;  %v6352_v34 = vsel %vm8363_vm15, %v6350_v55, %v6351_v61  ;;  %v11215_v55 = vld [vmem:[#allocation3 + $0x114] sm:$0xf] }
 0x38e   : > { %v11919_v48 = vmax.bf16 %v10996_v6, %v10923_v43  ;;  %v6355_v15 = vsel %vm8363_vm15, %v6353_v19, %v6354_v36  ;;  %v11920_v33 = vmax.bf16 %v10998_v31, %v10925_v57  ;;  %v7617_v38 = vrot.slane %v6461_v0, 11 }
 0x38f   : > { %v6238_v53 = vmax.bf16 %v6104_v16, %v5918_v51  ;;  %v6239_v56 = vmax.bf16 %v6110_v29, %v5919_v54  ;;  %v11921_v43 = vmax.bf16 %v11006_v12, %v10933_v23  ;;  %v5088_v21 = vmax.bf16 %v5024_v59, %v11116_v10 }
 0x390   : > { %v5085_v45 = vmax.bf16 %v11919_v48, %v11097_v46  ;;  %v5086_v7 = vmax.bf16 %v11920_v33, %v11103_v41 }
 0x391   : > { %v5087_v30 = vmax.bf16 %v11921_v43, %v11114_v42  ;;  %v6462_v17 = vmax.bf16 %v6352_v34, %v6238_v53  ;;  %v6463_v4 = vmax.bf16 %v6355_v15, %v6239_v56  ;;  %v5152_v23 = vmax.bf16 %v5088_v21, %v11172_v13 }
 0x392   : > { %v5149_v60 = vmax.bf16 %v5085_v45, %v11157_v11  ;;  %v5150_v57 = vmax.bf16 %v5086_v7, %v11159_v25 }
 0x393   : > { %v5151_v40 = vmax.bf16 %v5087_v30, %v11165_v28  ;;  %v6607_v9 = vrot.slane %v6462_v17, 7  ;;  %v6610_v14 = vrot.slane %v6463_v4, 7  ;;  %v5216_v19 = vmax.bf16 %v5152_v23, %v11225_v52  ;;  %v11244_v56 = vpop.f32.mrb[20].mxu1 }
 0x394   : > { %v5213_v61 = vmax.bf16 %v5149_v60, %v11209_v5  ;;  %v5214_v50 = vmax.bf16 %v5150_v57, %v11215_v55  ;;  %11922 = vst [vmem:[#allocation9_spill] sm:$0xff] %v11244_v56  ;;  %v11248_v30 = vpop.f32.mrb[21].mxu1 }
 0x395   : > { %v5215_v24 = vmax.bf16 %v5151_v40, %v11223_v18  ;;  %v6608_v16 = vsel %vm8429_vm3, %v7617_v38, %v6607_v9  ;;  %v6609_v36 = vrot.slane %v6607_v9, 4  ;;  %11923 = vst [vmem:[#allocation8_spill] sm:$0xff] %v11248_v30  ;;  %v11250_v4 = vpop.f32.mrb[22].mxu1  ;;  %v6121_v8 = vshll.u32 %v5216_v19, 16 }
 0x396   : > { %v5551_v51 = vshrl.u32 %v5213_v61, 16  ;;  %v5556_v29 = vshll.u32 %v5214_v50, 16  ;;  %v5560_v34 = vshrl.u32 %v5214_v50, 16  ;;  %v5818_v45 = vrot.slane %v5214_v50, 5  ;;  %11924 = vst [vmem:[#allocation11_spill] sm:$0xff] %v11250_v4  ;;  %v11254_v54 = vpop.f32.mrb[23].mxu1 }
 0x397   : > { %v5566_v0 = vshll.u32 %v5215_v24, 16  ;;  %v5570_v48 = vshrl.u32 %v5215_v24, 16  ;;  %v5820_v53 = vrot.slane %v5215_v24, 5  ;;  %v6611_v15 = vsel %vm8429_vm3, %v6609_v36, %v6610_v14  ;;  %11925 = vst [vmem:[#allocation10_spill] sm:$0xff] %v11254_v54 }
 0x398   : > { %v5558_v33 = vrot.slane %v5556_v29, 5  ;;  %v5562_v7 = vrot.slane %v5560_v34, 4  ;;  %v6111_v43 = vrot.slane %v5560_v34, 5  ;;  %v7633_v21 = vcombine.low %v6608_v16, %v6611_v15 }
 0x399   : > { %v5568_v60 = vrot.slane %v5566_v0, 5  ;;  %v5572_v38 = vrot.slane %v5570_v48, 4  ;;  %v5819_v17 = vrot.slane %v5818_v45, 4  ;;  %v5822_v23 = vrot.slane %v5820_v53, 4 }
 0x39a   : > { %v5559_v57 = vsel %vm8312_vm11, %v5551_v51, %v5558_v33  ;;  %v5563_v40 = vor.u32 %v5562_v7, %v5558_v33  ;;  %v6112_v9 = vrot.slane %v5556_v29, 6  ;;  %7856 = vmatprep.mubr.msk.bf16.mxu0 %vm2214_vm1, %v7633_v21  ;;  %v6115_v34 = vrot.slane %v5570_v48, 5 }
 0x39b   : > { %v5573_v14 = vor.u32 %v5572_v38, %v5568_v60  ;;  %v5712_v36 = vmax.bf16 %v5559_v57, %v5213_v61  ;;  %v5821_v16 = vsel %vm8328_vm12, %v5819_v17, %v5820_v53  ;;  %v6116_v59 = vrot.slane %v5566_v0, 6  ;;  %v11261_v53 = vpop.f32.mrb[0].mxu0 }
 0x39c   : > { %v5564_v15 = vrot.slane %v5563_v40, 4  ;;  %v6113_v39 = vor.u32 %v6112_v9, %v6111_v43  ;;  %v6356_v51 = vrot.slane %v5214_v50, 6  ;;  %v6358_v33 = vrot.slane %v5215_v24, 6  ;;  %v11265_v17 = vpop.f32.mrb[1].mxu0 }
 0x39d   : > { %v5574_v4 = vrot.slane %v5573_v14, 4  ;;  %v5920_v30 = vmax.bf16 %v5818_v45, %v5712_v36  ;;  %v6117_v54 = vor.u32 %v6116_v59, %v6115_v34  ;;  %v6123_v21 = vrot.slane %v6121_v8, 6  ;;  %v11285_v36 = vld [vmem:[#allocation3 + $0x120] sm:$0xf] }
 0x39e   : > { %v5569_v29 = vsel %vm8312_vm11, %v5564_v15, %v5568_v60  ;;  %v6114_v7 = vrot.slane %v6113_v39, 4  ;;  %v6357_v56 = vrot.slane %v6356_v51, 4  ;;  %v6360_v43 = vrot.slane %v6358_v33, 4  ;;  %v11293_v15 = vld [vmem:[#allocation3 + $0x128] sm:$0xf] }
 0x39f   : > { %v5713_v38 = vmax.bf16 %v5569_v29, %v5214_v50  ;;  %v5714_v61 = vmax.bf16 %v5574_v4, %v5215_v24  ;;  %v6240_v57 = vmax.bf16 %v6113_v39, %v5920_v30  ;;  %v6119_v48 = vrot.slane %v6117_v54, 4  ;;  %v11269_v50 = vpop.f32.mrb[2].mxu0 }
 0x3a0   : > { %v6118_v0 = vsel %vm8351_vm14, %v6114_v7, %v6117_v54  ;;  %v6361_v45 = vrot.slane %v5216_v19, 6  ;;  %v6359_v59 = vsel %vm8363_vm15, %v6357_v56, %v6358_v33  ;;  %v11926_v19 = vmax.bf16 %v11097_v46, %v10996_v6  ;;  %v11283_v56 = vpop.f32.mrb[3].mxu0 }
 0x3a1   : > { %v5921_v40 = vmax.bf16 %v5821_v16, %v5713_v38  ;;  %v5922_v9 = vmax.bf16 %v5822_v23, %v5714_v61  ;;  %v6464_v8 = vmax.bf16 %v6356_v51, %v6240_v57  ;;  %v6124_v39 = vsel %vm8351_vm14, %v6119_v48, %v6123_v21  ;;  %v11287_v16 = vld [vmem:[#allocation3 + $0x124] sm:$0xf]  ;;  %v11303_v61 = vld [vmem:[#allocation3 + $0x12c] sm:$0x1] }
 0x3a2   : > { %v6362_v24 = vsel %vm8363_vm15, %v6360_v43, %v6361_v45  ;;  %v5089_v54 = vmax.bf16 %v11926_v19, %v11157_v11  ;;  %v11927_v30 = vmax.bf16 %v11103_v41, %v10998_v31  ;;  %v11928_v34 = vmax.bf16 %v11114_v42, %v11006_v12 }
 0x3a3   : > { %v6241_v4 = vmax.bf16 %v6118_v0, %v5921_v40  ;;  %v6242_v23 = vmax.bf16 %v6124_v39, %v5922_v9  ;;  %v7618_v14 = vrot.slane %v6464_v8, 11  ;;  %v11929_v31 = vmax.bf16 %v11116_v10, %v11018_v37 }
 0x3a4   : > { %v5090_v60 = vmax.bf16 %v11927_v30, %v11159_v25  ;;  %v5091_v6 = vmax.bf16 %v11928_v34, %v11165_v28  ;;  %v5153_v33 = vmax.bf16 %v5089_v54, %v11209_v5  ;;  %v7867_v2 = vadd.f32 %v11283_v56, %v10974_v58 }
 0x3a5   : > { %v5092_v51 = vmax.bf16 %v11929_v31, %v11172_v13  ;;  %v6465_v21 = vmax.bf16 %v6359_v59, %v6241_v4  ;;  %v6466_v38 = vmax.bf16 %v6362_v24, %v6242_v23 }
 0x3a6   : > { %v5154_v29 = vmax.bf16 %v5090_v60, %v11215_v55  ;;  %v5155_v12 = vmax.bf16 %v5091_v6, %v11223_v18  ;;  %v5217_v37 = vmax.bf16 %v5153_v33, %v11285_v36 }
 0x3a7   : > { %v5156_v0 = vmax.bf16 %v5092_v51, %v11225_v52  ;;  %v6614_v45 = vrot.slane %v6465_v21, 7  ;;  %v6617_v40 = vrot.slane %v6466_v38, 7 }
 0x3a8   : > { %v5218_v48 = vmax.bf16 %v5154_v29, %v11287_v16  ;;  %v5219_v9 = vmax.bf16 %v5155_v12, %v11293_v15  ;;  %v5576_v39 = vshrl.u32 %v5217_v37, 16 }
 0x3a9   : > { %v5220_v8 = vmax.bf16 %v5156_v0, %v11303_v61  ;;  %v6615_v54 = vsel %vm8429_vm3, %v7618_v14, %v6614_v45  ;;  %v6616_v30 = vrot.slane %v6614_v45, 4 }
 0x3aa   : > { %v5581_v24 = vshll.u32 %v5218_v48, 16  ;;  %v5585_v19 = vshrl.u32 %v5218_v48, 16  ;;  %v5591_v60 = vshll.u32 %v5219_v9, 16  ;;  %v5595_v4 = vshrl.u32 %v5219_v9, 16 }
 0x3ab   : > { %v5823_v6 = vrot.slane %v5218_v48, 5  ;;  %v5825_v31 = vrot.slane %v5219_v9, 5  ;;  %v6618_v51 = vsel %vm8429_vm3, %v6616_v30, %v6617_v40  ;;  %v11326_v49 = vpop.f32.mrb[24].mxu1 }
 0x3ac   : > { %v5583_v23 = vrot.slane %v5581_v24, 5  ;;  %v5587_v34 = vrot.slane %v5585_v19, 4  ;;  %v5593_v33 = vrot.slane %v5591_v60, 5  ;;  %v5597_v29 = vrot.slane %v5595_v4, 4 }
 0x3ad   : > { %v6125_v21 = vrot.slane %v5585_v19, 5  ;;  %v7634_v38 = vcombine.low %v6615_v54, %v6618_v51  ;;  %v5824_v59 = vrot.slane %v5823_v6, 4  ;;  %v5827_v43 = vrot.slane %v5825_v31, 4 }
 0x3ae   : > { %v5584_v12 = vsel %vm8312_vm11, %v5576_v39, %v5583_v23  ;;  %v5588_v0 = vor.u32 %v5587_v34, %v5583_v23  ;;  %v5598_v14 = vor.u32 %v5597_v29, %v5593_v33  ;;  %v6126_v57 = vrot.slane %v5581_v24, 6  ;;  %v11330_v34 = vpop.f32.mrb[25].mxu1 }
 0x3af   : > { %v5715_v45 = vmax.bf16 %v5584_v12, %v5217_v37  ;;  %7857 = vmatmul.mubr.msk.bf16.gmra.mrb[24].mxu0 %vm2214_vm1, %v7634_v38  ;;  %v5826_v62 = vsel %vm8328_vm12, %v5824_v59, %v5825_v31  ;;  %v6129_v40 = vrot.slane %v5595_v4, 5  ;;  %v6130_v30 = vrot.slane %v5591_v60, 6  ;;  %v11332_v4 = vpop.f32.mrb[26].mxu1 }
 0x3b0   : > { %v5589_v7 = vrot.slane %v5588_v0, 4  ;;  %v5599_v32 = vrot.slane %v5598_v14, 4  ;;  %v6127_v54 = vor.u32 %v6126_v57, %v6125_v21  ;;  %v6135_v51 = vshll.u32 %v5220_v8, 16  ;;  %v11334_v21 = vpop.f32.mrb[27].mxu1 }
 0x3b1   : > { %v5923_v19 = vmax.bf16 %v5823_v6, %v5715_v45  ;;  %v6131_v37 = vor.u32 %v6130_v30, %v6129_v40  ;;  %v6363_v23 = vrot.slane %v5218_v48, 6  ;;  %v6365_v24 = vrot.slane %v5219_v9, 6 }
 0x3b2   : > { %v5594_v39 = vsel %vm8312_vm11, %v5589_v7, %v5593_v33  ;;  %v5717_v38 = vmax.bf16 %v5599_v32, %v5219_v9  ;;  %v6128_v12 = vrot.slane %v6127_v54, 4  ;;  %v6137_v59 = vrot.slane %v6135_v51, 6 }
 0x3b3   : > { %v5716_v29 = vmax.bf16 %v5594_v39, %v5218_v48  ;;  %v6133_v60 = vrot.slane %v6131_v37, 4  ;;  %v6243_v6 = vmax.bf16 %v6127_v54, %v5923_v19  ;;  %v6364_v57 = vrot.slane %v6363_v23, 4  ;;  %v4965_v19 = vld [vmem:[#allocation3 + $0x130] sm:$0xf]  ;;  %v4966_v39 = vld [vmem:[#allocation3 + $0x134] sm:$0xf] }
 0x3b4   : > { %v6367_v31 = vrot.slane %v6365_v24, 4  ;;  %v5925_v14 = vmax.bf16 %v5827_v43, %v5717_v38  ;;  %v6132_v7 = vsel %vm8351_vm14, %v6128_v12, %v6131_v37  ;;  %v6368_v33 = vrot.slane %v5220_v8, 6  ;;  %v4967_v38 = vld [vmem:[#allocation3 + $0x138] sm:$0xf] }
 0x3b5   : > { %v5924_v0 = vmax.bf16 %v5826_v62, %v5716_v29  ;;  %v6138_v48 = vsel %vm8351_vm14, %v6133_v60, %v6137_v59  ;;  %v6366_v32 = vsel %vm8363_vm15, %v6364_v57, %v6365_v24  ;;  %v11342_v9 = vmax.bf16 %v6363_v23, %v6243_v6 }
 0x3b6   : > { %v11930_v45 = vmax.bf16 %v11157_v11, %v11097_v46  ;;  %v6245_v62 = vmax.bf16 %v6138_v48, %v5925_v14  ;;  %v6369_v43 = vsel %vm8363_vm15, %v6367_v31, %v6368_v33  ;;  %v11931_v8 = vmax.bf16 %v11159_v25, %v11103_v41  ;;  %v4968_v41 = vld [vmem:[#allocation3 + $0x13c] sm:$0x1] }
 0x3b7   : > { %v6244_v30 = vmax.bf16 %v6132_v7, %v5924_v0  ;;  %v7619_v51 = vrot.slane %v11342_v9, 11  ;;  %v11932_v37 = vmax.bf16 %v11165_v28, %v11114_v42  ;;  %v11933_v11 = vmax.bf16 %v11172_v13, %v11116_v10 }
 0x3b8   : > { %v5093_v40 = vmax.bf16 %v11930_v45, %v11209_v5  ;;  %v5094_v54 = vmax.bf16 %v11931_v8, %v11215_v55  ;;  %v6469_v29 = vmax.bf16 %v6369_v43, %v6245_v62  ;;  %v8039_v10 = vmov 0.0  }
 0x3b9   : > { %v5095_v46 = vmax.bf16 %v11932_v37, %v11223_v18  ;;  %v5096_v5 = vmax.bf16 %v11933_v11, %v11225_v52  ;;  %v6468_v24 = vmax.bf16 %v6366_v32, %v6244_v30  ;;  %247 = vst.msk [vmem:[#allocation2 + $0x10] sm:$0xff] %vm244_vm0, %v8039_v10  ;;  %v11374_v13 = vadd.f32 %v11261_v53, %v10965_v3 }
 0x3ba   : > { %v5157_v23 = vmax.bf16 %v5093_v40, %v11285_v36  ;;  %v5158_v25 = vmax.bf16 %v5094_v54, %v11287_v16  ;;  %v6624_v18 = vrot.slane %v6469_v29, 7  ;;  %245 = vst.msk [vmem:[#allocation2] sm:$0xff] %vm244_vm0, %v8039_v10  ;;  %246 = vst.msk [vmem:[#allocation2 + $0x8] sm:$0xff] %vm244_vm0, %v8039_v10  ;;  %v7865_v36 = vadd.f32 %v11265_v17, %v10969_v35 }
 0x3bb   : > { %v5159_v55 = vmax.bf16 %v5095_v46, %v11293_v15  ;;  %v5160_v12 = vmax.bf16 %v5096_v5, %v11303_v61  ;;  %v6621_v28 = vrot.slane %v6468_v24, 7  ;;  %248 = vst.msk [vmem:[#allocation2 + $0x18] sm:$0xff] %vm244_vm0, %v8039_v10  ;;  %249 = vst.msk [vmem:[#allocation2 + $0x20] sm:$0xff] %vm244_vm0, %v8039_v10 }
 0x3bc   : > { %v11367_v42 = vmax.bf16 %v5157_v23, %v4965_v19  ;;  %v11369_v59 = vmax.bf16 %v5158_v25, %v4966_v39  ;;  %250 = vst.msk [vmem:[#allocation2 + $0x28] sm:$0xff] %vm244_vm0, %v8039_v10  ;;  %251 = vst.msk [vmem:[#allocation2 + $0x30] sm:$0xff] %vm244_vm0, %v8039_v10 }
 0x3bd   : > { %252 = vst.msk [vmem:[#allocation2 + $0x38] sm:$0xff] %vm244_vm0, %v8039_v10  ;;  %253 = vst.msk [vmem:[#allocation2 + $0x40] sm:$0xff] %vm244_vm0, %v8039_v10  ;;  %v5223_v3 = vmax.bf16 %v5159_v55, %v4967_v38  ;;  %v5224_v52 = vmax.bf16 %v5160_v12, %v4968_v41  ;;  %v6622_v16 = vsel %vm8429_vm3, %v7619_v51, %v6621_v28  ;;  %v6623_v15 = vrot.slane %v6621_v28, 4 }
 0x3be   : > { %254 = vst.msk [vmem:[#allocation2 + $0x48] sm:$0xff] %vm244_vm0, %v8039_v10  ;;  %255 = vst.msk [vmem:[#allocation2 + $0x50] sm:$0xff] %vm244_vm0, %v8039_v10  ;;  %v5601_v53 = vshrl.u32 %v11367_v42, 16  ;;  %v5606_v61 = vshll.u32 %v11369_v59, 16  ;;  %v5610_v60 = vshrl.u32 %v11369_v59, 16  ;;  %v5828_v31 = vrot.slane %v11369_v59, 5 }
 0x3bf   : > { %256 = vst.msk [vmem:[#allocation2 + $0x58] sm:$0xff] %vm244_vm0, %v8039_v10  ;;  %257 = vst.msk [vmem:[#allocation2 + $0x60] sm:$0xff] %vm244_vm0, %v8039_v10  ;;  %v5616_v6 = vshll.u32 %v5223_v3, 16  ;;  %v5620_v57 = vshrl.u32 %v5223_v3, 16  ;;  %v5830_v0 = vrot.slane %v5223_v3, 5  ;;  %v6625_v14 = vsel %vm8429_vm3, %v6623_v15, %v6624_v18 }
 0x3c0   : > { %258 = vst.msk [vmem:[#allocation2 + $0x68] sm:$0xff] %vm244_vm0, %v8039_v10  ;;  %259 = vst.msk [vmem:[#allocation2 + $0x70] sm:$0xff] %vm244_vm0, %v8039_v10  ;;  %v5608_v7 = vrot.slane %v5606_v61, 5  ;;  %v5612_v33 = vrot.slane %v5610_v60, 4  ;;  %v6139_v48 = vrot.slane %v5610_v60, 5  ;;  %v7635_v35 = vcombine.low %v6622_v16, %v6625_v14  ;;  %v6932_v28 = vld [vmem:[#allocation2 + $0x10] sm:$0xff] }
 0x3c1   : > { %260 = vst.msk [vmem:[#allocation2 + $0x78] sm:$0xff] %vm244_vm0, %v8039_v10  ;;  %261 = vst.msk [vmem:[#allocation2 + $0x80] sm:$0xff] %vm244_vm0, %v8039_v10  ;;  %v5618_v17 = vrot.slane %v5616_v6, 5  ;;  %v5622_v32 = vrot.slane %v5620_v57, 4  ;;  %v5829_v9 = vrot.slane %v5828_v31, 4  ;;  %v5832_v30 = vrot.slane %v5830_v0, 4 }
 0x3c2   : > { %262 = vst.msk [vmem:[#allocation2 + $0x88] sm:$0xff] %vm244_vm0, %v8039_v10  ;;  %263 = vst.msk [vmem:[#allocation2 + $0x90] sm:$0xff] %vm244_vm0, %v8039_v10  ;;  %v5609_v45 = vsel %vm8312_vm11, %v5601_v53, %v5608_v7  ;;  %v5613_v40 = vor.u32 %v5612_v33, %v5608_v7  ;;  %v6140_v62 = vrot.slane %v5606_v61, 6  ;;  %7860 = vmatprep.mubr.msk.bf16.mxu0 %vm2214_vm1, %v7635_v35  ;;  %v6143_v54 = vrot.slane %v5620_v57, 5  ;;  %v6930_v18 = vld [vmem:[#allocation2] sm:$0xff]  ;;  %v7838_v57 = vpop.f32.mrb[4].mxu0 }
 0x3c3   : > { %264 = vst.msk [vmem:[#allocation2 + $0x98] sm:$0xff] %vm244_vm0, %v8039_v10  ;;  %265 = vst.msk [vmem:[#allocation2 + $0xa0] sm:$0xff] %vm244_vm0, %v8039_v10  ;;  %v5623_v43 = vor.u32 %v5622_v32, %v5618_v17  ;;  %v5718_v19 = vmax.bf16 %v5609_v45, %v11367_v42  ;;  %v5831_v8 = vsel %vm8328_vm12, %v5829_v9, %v5830_v0  ;;  %v6144_v37 = vrot.slane %v5616_v6, 6  ;;  %v6933_v14 = vld [vmem:[#allocation2 + $0x18] sm:$0xff]  ;;  %v6931_v7 = vld [vmem:[#allocation2 + $0x8] sm:$0xff]  ;;  %v6787_v33 = vpop.f32.mrb[5].mxu0 }
 0x3c4   : > { %266 = vst.msk [vmem:[#allocation2 + $0xa8] sm:$0xff] %vm244_vm0, %v8039_v10  ;;  %267 = vst.msk [vmem:[#allocation2 + $0xb0] sm:$0xff] %vm244_vm0, %v8039_v10  ;;  %v5614_v51 = vrot.slane %v5613_v40, 4  ;;  %v6141_v39 = vor.u32 %v6140_v62, %v6139_v48  ;;  %v6149_v46 = vshll.u32 %v5224_v52, 16  ;;  %v6370_v23 = vrot.slane %v11369_v59, 6  ;;  %v6936_v32 = vld [vmem:[#allocation2 + $0x30] sm:$0xff] }
 0x3c5   : > { %268 = vst.msk [vmem:[#allocation2 + $0xb8] sm:$0xff] %vm244_vm0, %v8039_v10  ;;  %269 = vst.msk [vmem:[#allocation2 + $0xc0] sm:$0xff] %vm244_vm0, %v8039_v10  ;;  %v5624_v11 = vrot.slane %v5623_v43, 4  ;;  %v5926_v5 = vmax.bf16 %v5828_v31, %v5718_v19  ;;  %v6372_v24 = vrot.slane %v5223_v3, 6  ;;  %v6145_v41 = vor.u32 %v6144_v37, %v6143_v54  ;;  %v6934_v9 = vld [vmem:[#allocation2 + $0x20] sm:$0xff]  ;;  %v7839_v45 = vpop.f32.mrb[6].mxu0 }
 0x3c6   : > { %270 = vst.msk [vmem:[#allocation2 + $0xc8] sm:$0xff] %vm244_vm0, %v8039_v10  ;;  %271 = vst.msk [vmem:[#allocation2 + $0xd0] sm:$0xff] %vm244_vm0, %v8039_v10  ;;  %v5619_v29 = vsel %vm8312_vm11, %v5614_v51, %v5618_v17  ;;  %v6142_v38 = vrot.slane %v6141_v39, 4  ;;  %v6151_v25 = vrot.slane %v6149_v46, 6  ;;  %v6371_v42 = vrot.slane %v6370_v23, 4  ;;  %v6937_v26 = vld [vmem:[#allocation2 + $0x38] sm:$0xff] }
 0x3c7   : > { %272 = vst.msk [vmem:[#allocation2 + $0xd8] sm:$0xff] %vm244_vm0, %v8039_v10  ;;  %273 = vst.msk [vmem:[#allocation2 + $0xe0] sm:$0xff] %vm244_vm0, %v8039_v10  ;;  %v5719_v55 = vmax.bf16 %v5619_v29, %v11369_v59  ;;  %v5720_v63 = vmax.bf16 %v5624_v11, %v5223_v3  ;;  %v6246_v12 = vmax.bf16 %v6141_v39, %v5926_v5  ;;  %v6147_v53 = vrot.slane %v6145_v41, 4  ;;  %v6935_v62 = vld [vmem:[#allocation2 + $0x28] sm:$0xff]  ;;  %v11934_v19 = vld [vmem:[#allocation39_spill] sm:$0xff] }
 0x3c8   : > { %274 = vst.msk [vmem:[#allocation2 + $0xe8] sm:$0xff] %vm244_vm0, %v8039_v10  ;;  %275 = vst.msk [vmem:[#allocation2 + $0xf0] sm:$0xff] %vm244_vm0, %v8039_v10  ;;  %v6374_v16 = vrot.slane %v6372_v24, 4  ;;  %v6375_v15 = vrot.slane %v5224_v52, 6  ;;  %v6373_v47 = vsel %vm8363_vm15, %v6371_v42, %v6372_v24  ;;  %v6964_v31 = vadd.f32 %v11374_v13, %v6932_v28 }
 0x3c9   : > { %276 = vst.msk [vmem:[#allocation2 + $0xf8] sm:$0xff] %vm244_vm0, %v8039_v10  ;;  %v6146_v10 = vsel %vm8351_vm14, %v6142_v38, %v6145_v41  ;;  %v5927_v61 = vmax.bf16 %v5831_v8, %v5719_v55  ;;  %v5928_v60 = vmax.bf16 %v5832_v30, %v5720_v63  ;;  %v6470_v6 = vmax.bf16 %v6370_v23, %v6246_v12  ;;  %v6790_v30 = vpop.f32.mrb[7].mxu0  ;;  %v11464_v23 = vld [vmem:[%s11669_s3] ss:$0 sm:$0xff] }
 0x3ca   : > { %v6152_v59 = vsel %vm8351_vm14, %v6147_v53, %v6151_v25  ;;  %v6376_v3 = vsel %vm8363_vm15, %v6374_v16, %v6375_v15  ;;  %v6962_v0 = vadd.f32 %v7865_v36, %v6930_v18  ;;  %v7866_v17 = vadd.f32 %v11269_v50, %v10971_v44  ;;  %6997 = vst.msk [vmem:[#allocation2 + $0x10] sm:$0xff] %vm244_vm0, %v6964_v31 }
 0x3cb   : > { %v6247_v52 = vmax.bf16 %v6146_v10, %v5927_v61  ;;  %v6248_v48 = vmax.bf16 %v6152_v59, %v5928_v60  ;;  %v7620_v35 = vrot.slane %v6470_v6, 11  ;;  %v7868_v13 = vadd.f32 %v7838_v57, %v10980_v1 }
 0x3cc   : > { %6995 = vst.msk [vmem:[#allocation2] sm:$0xff] %vm244_vm0, %v6962_v0  ;;  %v7869_v36 = vadd.f32 %v6787_v33, %v10994_v20  ;;  %v7870_v40 = vadd.f32 %v7839_v45, %v11004_v27  ;;  %v6965_v43 = vadd.f32 %v7866_v17, %v6933_v14  ;;  %v7871_v8 = vadd.f32 %v6790_v30, %v11934_v19  ;;  %v11456_v27 = vld [vmem:[%s11668_s2] ss:$0 sm:$0xff] }
 0x3cd   : > { %v6471_v44 = vmax.bf16 %v6373_v47, %v6247_v52  ;;  %v6472_v50 = vmax.bf16 %v6376_v3, %v6248_v48  ;;  %v6963_v54 = vadd.f32 %v7867_v2, %v6931_v7  ;;  %v6968_v51 = vadd.f32 %v7868_v13, %v6936_v32 }
 0x3ce   : > { %v6966_v39 = vadd.f32 %v7869_v36, %v6934_v9  ;;  %v6969_v37 = vadd.f32 %v7870_v40, %v6937_v26  ;;  %6998 = vst.msk [vmem:[#allocation2 + $0x18] sm:$0xff] %vm244_vm0, %v6965_v43  ;;  %v6967_v58 = vadd.f32 %v7871_v8, %v6935_v62 }
 0x3cf   : > { %v6628_v46 = vrot.slane %v6471_v44, 7  ;;  %v6631_v11 = vrot.slane %v6472_v50, 7  ;;  %6996 = vst.msk [vmem:[#allocation2 + $0x8] sm:$0xff] %vm244_vm0, %v6963_v54  ;;  %7001 = vst.msk [vmem:[#allocation2 + $0x30] sm:$0xff] %vm244_vm0, %v6968_v51 }
 0x3d0   : > { %6999 = vst.msk [vmem:[#allocation2 + $0x20] sm:$0xff] %vm244_vm0, %v6966_v39  ;;  %7002 = vst.msk [vmem:[#allocation2 + $0x38] sm:$0xff] %vm244_vm0, %v6969_v37  ;;  %v11472_v18 = vpop.f32.mrb[28].mxu1 }
 0x3d1   : > { %v6629_v1 = vsel %vm8429_vm3, %v7620_v35, %v6628_v46  ;;  %v6630_v20 = vrot.slane %v6628_v46, 4  ;;  %7000 = vst.msk [vmem:[#allocation2 + $0x28] sm:$0xff] %vm244_vm0, %v6967_v58  ;;  %v7032_v5 = vld [vmem:[#allocation2 + $0x10] sm:$0xff]  ;;  %v11476_v47 = vpop.f32.mrb[29].mxu1 }
 0x3d2   : > { %v7071_v38 = vmul.f32 %v11456_v27, %v7032_v5  ;;  %v11482_v31 = vpop.f32.mrb[30].mxu1 }
 0x3d3   : > { %v6632_v56 = vsel %vm8429_vm3, %v6630_v20, %v6631_v11  ;;  %v7030_v24 = vld [vmem:[#allocation2] sm:$0xff]  ;;  %v11486_v52 = vpop.f32.mrb[31].mxu1 }
 0x3d4   : > { %v7636_v29 = vcombine.low %v6629_v1, %v6632_v56  ;;  %v7069_v41 = vmul.f32 %v11456_v27, %v7030_v24  ;;  %v7110_v25 = vadd.f32 %v11464_v23, %v7071_v38 }
 0x3d5   : > { %v7033_v22 = vld [vmem:[#allocation2 + $0x18] sm:$0xff] }
 0x3d6   : > { %7861 = vmatmul.mubr.msk.bf16.gmra.mrb[28].mxu0 %vm2214_vm1, %v7636_v29  ;;  %v7108_v55 = vadd.f32 %v11464_v23, %v7069_v41  ;;  %v7072_v63 = vmul.f32 %v11456_v27, %v7033_v22  ;;  %v7031_v12 = vld [vmem:[#allocation2 + $0x8] sm:$0xff]  ;;  %v7036_v42 = vld [vmem:[#allocation2 + $0x30] sm:$0xff]  ;;  %v7142_v10 = vadd.f32 3.0, %v7110_v25 }
 0x3d7   : > { %v7034_v28 = vld [vmem:[#allocation2 + $0x20] sm:$0xff]  ;;  %v7070_v16 = vmul.f32 %v11456_v27, %v7031_v12  ;;  %v7075_v15 = vmul.f32 %v11456_v27, %v7036_v42  ;;  %v7037_v61 = vld [vmem:[#allocation2 + $0x38] sm:$0xff] }
 0x3d8   : > { %v7140_v53 = vadd.f32 3.0, %v7108_v55  ;;  %v7035_v60 = vld [vmem:[#allocation2 + $0x28] sm:$0xff]  ;;  %v7111_v6 = vadd.f32 %v11464_v23, %v7072_v63  ;;  %v7073_v57 = vmul.f32 %v11456_v27, %v7034_v28  ;;  %v7076_v59 = vmul.f32 %v11456_v27, %v7037_v61  ;;  %v6938_v61 = vld [vmem:[#allocation2 + $0x40] sm:$0xff] }
 0x3d9   : > { %v7074_v3 = vmul.f32 %v11456_v27, %v7035_v60  ;;  %v7174_v0 = vmax.f32 %v7142_v10, 0.0  ;;  %v7109_v7 = vadd.f32 %v11464_v23, %v7070_v16  ;;  %v7114_v33 = vadd.f32 %v11464_v23, %v7075_v15  ;;  %v6940_v10 = vld [vmem:[#allocation2 + $0x50] sm:$0xff]  ;;  %v11936_v60 = vld [vmem:[#allocation40_spill] sm:$0xff] }
 0x3da   : > { %v7172_v14 = vmax.f32 %v7140_v53, 0.0  ;;  %v7143_v48 = vadd.f32 3.0, %v7111_v6  ;;  %v7112_v35 = vadd.f32 %v11464_v23, %v7073_v57  ;;  %v7115_v17 = vadd.f32 %v11464_v23, %v7076_v59  ;;  %v11935_v53 = vld [vmem:[#allocation44_spill] sm:$0xff]  ;;  %v6941_v59 = vld [vmem:[#allocation2 + $0x58] sm:$0xff] }
 0x3db   : > { %v7113_v32 = vadd.f32 %v11464_v23, %v7074_v3  ;;  %v7206_v9 = vmin.f32 %v7174_v0, 6.0  ;;  %v7141_v26 = vadd.f32 3.0, %v7109_v7  ;;  %v7146_v2 = vadd.f32 3.0, %v7114_v33  ;;  %v11937_v0 = vld [vmem:[#allocation37_spill] sm:$0xff] }
 0x3dc   : > { %v7204_v45 = vmin.f32 %v7172_v14, 6.0  ;;  %v7175_v13 = vmax.f32 %v7143_v48, 0.0  ;;  %v7144_v36 = vadd.f32 3.0, %v7112_v35  ;;  %v7147_v40 = vadd.f32 3.0, %v7115_v17 }
 0x3dd   : > { %v7145_v30 = vadd.f32 3.0, %v7113_v32  ;;  %v7238_v62 = vmul.f32 %v7206_v9, %v7110_v25  ;;  %v7173_v50 = vmax.f32 %v7141_v26, 0.0  ;;  %v7178_v43 = vmax.f32 %v7146_v2, 0.0 }
 0x3de   : > { %v7236_v44 = vmul.f32 %v7204_v45, %v7108_v55  ;;  %v7207_v19 = vmin.f32 %v7175_v13, 6.0  ;;  %v7176_v8 = vmax.f32 %v7144_v36, 0.0  ;;  %v7179_v54 = vmax.f32 %v7147_v40, 0.0 }
 0x3df   : > { %v7177_v51 = vmax.f32 %v7145_v30, 0.0  ;;  %v7270_v39 = vmul.f32 0.16666667, %v7238_v62  ;;  %v7205_v46 = vmin.f32 %v7173_v50, 6.0  ;;  %v7210_v11 = vmin.f32 %v7178_v43, 6.0 }
 0x3e0   : > { %v7268_v37 = vmul.f32 0.16666667, %v7236_v44  ;;  %v7239_v58 = vmul.f32 %v7207_v19, %v7111_v6  ;;  %v7208_v1 = vmin.f32 %v7176_v8, 6.0  ;;  %v7211_v20 = vmin.f32 %v7179_v54, 6.0 }
 0x3e1   : > { %v7209_v56 = vmin.f32 %v7177_v51, 6.0  ;;  %7302 = vst.msk [vmem:[%s11495_s14 + $0x10] sm:$0xff] %vm244_vm0, %v7270_v39  ;;  %v7237_v5 = vmul.f32 %v7205_v46, %v7109_v7  ;;  %v7242_v24 = vmul.f32 %v7210_v11, %v7114_v33  ;;  %v6939_v33 = vld [vmem:[#allocation2 + $0x48] sm:$0xff] }
 0x3e2   : > { %7300 = vst.msk [vmem:[%s11495_s14] sm:$0xff] %vm244_vm0, %v7268_v37  ;;  %v7271_v29 = vmul.f32 0.16666667, %v7239_v58  ;;  %v7240_v38 = vmul.f32 %v7208_v1, %v7112_v35  ;;  %v7243_v41 = vmul.f32 %v7211_v20, %v7115_v17  ;;  %v11938_v35 = vld [vmem:[#allocation36_spill] sm:$0xff] }
 0x3e3   : > { %v7241_v25 = vmul.f32 %v7209_v56, %v7113_v32  ;;  %v7269_v55 = vmul.f32 0.16666667, %v7237_v5  ;;  %v7274_v22 = vmul.f32 0.16666667, %v7242_v24 }
 0x3e4   : > { %7303 = vst.msk [vmem:[%s11495_s14 + $0x18] sm:$0xff] %vm244_vm0, %v7271_v29  ;;  %v7272_v63 = vmul.f32 0.16666667, %v7240_v38  ;;  %v7275_v12 = vmul.f32 0.16666667, %v7243_v41 }
 0x3e5   : > { %v7273_v42 = vmul.f32 0.16666667, %v7241_v25  ;;  %7301 = vst.msk [vmem:[%s11495_s14 + $0x8] sm:$0xff] %vm244_vm0, %v7269_v55  ;;  %7306 = vst.msk [vmem:[%s11495_s14 + $0x30] sm:$0xff] %vm244_vm0, %v7274_v22 }
 0x3e6   : > { %7304 = vst.msk [vmem:[%s11495_s14 + $0x20] sm:$0xff] %vm244_vm0, %v7272_v63  ;;  %7307 = vst.msk [vmem:[%s11495_s14 + $0x38] sm:$0xff] %vm244_vm0, %v7275_v12 }
 0x3e7   : > { %7305 = vst.msk [vmem:[%s11495_s14 + $0x28] sm:$0xff] %vm244_vm0, %v7273_v42  ;;  %v7842_v28 = vpop.f32.mrb[8].mxu0  ;;  %v6944_v42 = vld [vmem:[#allocation2 + $0x70] sm:$0xff] }
 0x3e8   : > { %v7872_v16 = vadd.f32 %v7842_v28, %v11935_v53  ;;  %v6803_v15 = vpop.f32.mrb[9].mxu0  ;;  %v11939_v28 = vld [vmem:[#allocation42_spill] sm:$0xff] }
 0x3e9   : > { %v7873_v6 = vadd.f32 %v6803_v15, %v11936_v60  ;;  %v7843_v57 = vpop.f32.mrb[10].mxu0  ;;  %v11940_v15 = vld [vmem:[#allocation43_spill] sm:$0xff] }
 0x3ea   : > { %v6972_v3 = vadd.f32 %v7872_v16, %v6940_v10  ;;  %v7874_v14 = vadd.f32 %v7843_v57, %v11937_v0  ;;  %v6806_v7 = vpop.f32.mrb[11].mxu0  ;;  %v6942_v16 = vld [vmem:[#allocation2 + $0x60] sm:$0xff] }
 0x3eb   : > { %v6970_v48 = vadd.f32 %v7873_v6, %v6938_v61  ;;  %v7875_v17 = vadd.f32 %v6806_v7, %v11938_v35  ;;  %v6945_v6 = vld [vmem:[#allocation2 + $0x78] sm:$0xff] }
 0x3ec   : > { %7005 = vst.msk [vmem:[#allocation2 + $0x50] sm:$0xff] %vm244_vm0, %v6972_v3  ;;  %v6973_v32 = vadd.f32 %v7874_v14, %v6941_v59  ;;  %v11941_v59 = vld [vmem:[#allocation41_spill] sm:$0xff] }
 0x3ed   : > { %7003 = vst.msk [vmem:[#allocation2 + $0x40] sm:$0xff] %vm244_vm0, %v6970_v48  ;;  %v6971_v9 = vadd.f32 %v7875_v17, %v6939_v33  ;;  %v6943_v14 = vld [vmem:[#allocation2 + $0x68] sm:$0xff]  ;;  %v11942_v33 = vld [vmem:[#allocation38_spill] sm:$0xff] }
 0x3ee   : > { %7006 = vst.msk [vmem:[#allocation2 + $0x58] sm:$0xff] %vm244_vm0, %v6973_v32 }
 0x3ef   : > { %7004 = vst.msk [vmem:[#allocation2 + $0x48] sm:$0xff] %vm244_vm0, %v6971_v9 }
 0x3f3   : > { %v7040_v45 = vld [vmem:[#allocation2 + $0x50] sm:$0xff] }
 0x3f4   : > { %v7079_v26 = vmul.f32 %v11456_v27, %v7040_v45  ;;  %v7038_v2 = vld [vmem:[#allocation2 + $0x40] sm:$0xff] }
 0x3f5   : > { %v7077_v13 = vmul.f32 %v11456_v27, %v7038_v2  ;;  %v7041_v36 = vld [vmem:[#allocation2 + $0x58] sm:$0xff] }
 0x3f6   : > { %v7118_v40 = vadd.f32 %v11464_v23, %v7079_v26  ;;  %v7080_v30 = vmul.f32 %v11456_v27, %v7041_v36  ;;  %v7039_v62 = vld [vmem:[#allocation2 + $0x48] sm:$0xff] }
 0x3f7   : > { %v7116_v44 = vadd.f32 %v11464_v23, %v7077_v13  ;;  %v7078_v50 = vmul.f32 %v11456_v27, %v7039_v62 }
 0x3f8   : > { %v7150_v43 = vadd.f32 3.0, %v7118_v40  ;;  %v7119_v19 = vadd.f32 %v11464_v23, %v7080_v30 }
 0x3f9   : > { %v7148_v8 = vadd.f32 3.0, %v7116_v44  ;;  %v7117_v54 = vadd.f32 %v11464_v23, %v7078_v50 }
 0x3fa   : > { %v7182_v51 = vmax.f32 %v7150_v43, 0.0  ;;  %v7151_v39 = vadd.f32 3.0, %v7119_v19 }
 0x3fb   : > { %v7180_v37 = vmax.f32 %v7148_v8, 0.0  ;;  %v7149_v46 = vadd.f32 3.0, %v7117_v54 }
 0x3fc   : > { %v7214_v11 = vmin.f32 %v7182_v51, 6.0  ;;  %v7183_v58 = vmax.f32 %v7151_v39, 0.0 }
 0x3fd   : > { %v7212_v1 = vmin.f32 %v7180_v37, 6.0  ;;  %v7181_v20 = vmax.f32 %v7149_v46, 0.0 }
 0x3fe   : > { %v7246_v56 = vmul.f32 %v7214_v11, %v7118_v40  ;;  %v7215_v5 = vmin.f32 %v7183_v58, 6.0 }
 0x3ff   : > { %v7244_v24 = vmul.f32 %v7212_v1, %v7116_v44  ;;  %v7213_v29 = vmin.f32 %v7181_v20, 6.0 }
 0x400   : > { %v7278_v38 = vmul.f32 0.16666667, %v7246_v56  ;;  %v7247_v41 = vmul.f32 %v7215_v5, %v7119_v19 }
 0x401   : > { %v7276_v25 = vmul.f32 0.16666667, %v7244_v24  ;;  %v7245_v55 = vmul.f32 %v7213_v29, %v7117_v54 }
 0x402   : > { %7310 = vst.msk [vmem:[%s11495_s14 + $0x50] sm:$0xff] %vm244_vm0, %v7278_v38  ;;  %v7279_v22 = vmul.f32 0.16666667, %v7247_v41 }
 0x403   : > { %7308 = vst.msk [vmem:[%s11495_s14 + $0x40] sm:$0xff] %vm244_vm0, %v7276_v25  ;;  %v7277_v63 = vmul.f32 0.16666667, %v7245_v55 }
 0x404   : > { %7311 = vst.msk [vmem:[%s11495_s14 + $0x58] sm:$0xff] %vm244_vm0, %v7279_v22 }
 0x405   : > { %7309 = vst.msk [vmem:[%s11495_s14 + $0x48] sm:$0xff] %vm244_vm0, %v7277_v63  ;;  %v6948_v63 = vld [vmem:[#allocation2 + $0x90] sm:$0xff] }
 0x40d   : > { %v7846_v12 = vpop.f32.mrb[12].mxu0 }
 0x40e   : > { %v7876_v10 = vadd.f32 %v7846_v12, %v11939_v28  ;;  %v6819_v53 = vpop.f32.mrb[13].mxu0  ;;  %v11943_v12 = vld [vmem:[#allocation5_spill] sm:$0xff] }
 0x40f   : > { %v7877_v61 = vadd.f32 %v6819_v53, %v11940_v15  ;;  %v7847_v60 = vpop.f32.mrb[14].mxu0  ;;  %v11944_v53 = vld [vmem:[#allocation4_spill] sm:$0xff] }
 0x410   : > { %v6976_v57 = vadd.f32 %v7876_v10, %v6944_v42  ;;  %v7878_v3 = vadd.f32 %v7847_v60, %v11941_v59  ;;  %v6822_v0 = vpop.f32.mrb[15].mxu0  ;;  %v6946_v10 = vld [vmem:[#allocation2 + $0x80] sm:$0xff] }
 0x411   : > { %v6974_v7 = vadd.f32 %v7877_v61, %v6942_v16  ;;  %v7879_v48 = vadd.f32 %v6822_v0, %v11942_v33  ;;  %v6949_v61 = vld [vmem:[#allocation2 + $0x98] sm:$0xff] }
 0x412   : > { %7009 = vst.msk [vmem:[#allocation2 + $0x70] sm:$0xff] %vm244_vm0, %v6976_v57  ;;  %v6977_v35 = vadd.f32 %v7878_v3, %v6945_v6  ;;  %v11945_v6 = vld [vmem:[#allocation7_spill] sm:$0xff]  ;;  %v6947_v3 = vld [vmem:[#allocation2 + $0x88] sm:$0xff] }
 0x413   : > { %7007 = vst.msk [vmem:[#allocation2 + $0x60] sm:$0xff] %vm244_vm0, %v6974_v7  ;;  %v6975_v17 = vadd.f32 %v7879_v48, %v6943_v14  ;;  %v11946_v14 = vld [vmem:[#allocation6_spill] sm:$0xff] }
 0x414   : > { %7010 = vst.msk [vmem:[#allocation2 + $0x78] sm:$0xff] %vm244_vm0, %v6977_v35 }
 0x415   : > { %7008 = vst.msk [vmem:[#allocation2 + $0x68] sm:$0xff] %vm244_vm0, %v6975_v17 }
 0x419   : > { %v7044_v32 = vld [vmem:[#allocation2 + $0x70] sm:$0xff] }
 0x41a   : > { %v7083_v9 = vmul.f32 %v11456_v27, %v7044_v32  ;;  %v7042_v45 = vld [vmem:[#allocation2 + $0x60] sm:$0xff] }
 0x41b   : > { %v7081_v26 = vmul.f32 %v11456_v27, %v7042_v45  ;;  %v7045_v2 = vld [vmem:[#allocation2 + $0x78] sm:$0xff] }
 0x41c   : > { %v7122_v13 = vadd.f32 %v11464_v23, %v7083_v9  ;;  %v7084_v36 = vmul.f32 %v11456_v27, %v7045_v2  ;;  %v7043_v40 = vld [vmem:[#allocation2 + $0x68] sm:$0xff] }
 0x41d   : > { %v7120_v30 = vadd.f32 %v11464_v23, %v7081_v26  ;;  %v7082_v62 = vmul.f32 %v11456_v27, %v7043_v40 }
 0x41e   : > { %v7154_v44 = vadd.f32 3.0, %v7122_v13  ;;  %v7123_v50 = vadd.f32 %v11464_v23, %v7084_v36 }
 0x41f   : > { %v7152_v43 = vadd.f32 3.0, %v7120_v30  ;;  %v7121_v19 = vadd.f32 %v11464_v23, %v7082_v62 }
 0x420   : > { %v7186_v8 = vmax.f32 %v7154_v44, 0.0  ;;  %v7155_v54 = vadd.f32 3.0, %v7123_v50 }
 0x421   : > { %v7184_v51 = vmax.f32 %v7152_v43, 0.0  ;;  %v7153_v39 = vadd.f32 3.0, %v7121_v19 }
 0x422   : > { %v7218_v37 = vmin.f32 %v7186_v8, 6.0  ;;  %v7187_v46 = vmax.f32 %v7155_v54, 0.0 }
 0x423   : > { %v7216_v11 = vmin.f32 %v7184_v51, 6.0  ;;  %v7185_v58 = vmax.f32 %v7153_v39, 0.0 }
 0x424   : > { %v7250_v1 = vmul.f32 %v7218_v37, %v7122_v13  ;;  %v7219_v20 = vmin.f32 %v7187_v46, 6.0 }
 0x425   : > { %v7248_v56 = vmul.f32 %v7216_v11, %v7120_v30  ;;  %v7217_v5 = vmin.f32 %v7185_v58, 6.0 }
 0x426   : > { %v7282_v24 = vmul.f32 0.16666667, %v7250_v1  ;;  %v7251_v29 = vmul.f32 %v7219_v20, %v7123_v50 }
 0x427   : > { %v7280_v38 = vmul.f32 0.16666667, %v7248_v56  ;;  %v7249_v41 = vmul.f32 %v7217_v5, %v7121_v19 }
 0x428   : > { %7314 = vst.msk [vmem:[%s11495_s14 + $0x70] sm:$0xff] %vm244_vm0, %v7282_v24  ;;  %v7283_v25 = vmul.f32 0.16666667, %v7251_v29 }
 0x429   : > { %7312 = vst.msk [vmem:[%s11495_s14 + $0x60] sm:$0xff] %vm244_vm0, %v7280_v38  ;;  %v7281_v55 = vmul.f32 0.16666667, %v7249_v41 }
 0x42a   : > { %7315 = vst.msk [vmem:[%s11495_s14 + $0x78] sm:$0xff] %vm244_vm0, %v7283_v25 }
 0x42b   : > { %7313 = vst.msk [vmem:[%s11495_s14 + $0x68] sm:$0xff] %vm244_vm0, %v7281_v55  ;;  %v6952_v55 = vld [vmem:[#allocation2 + $0xb0] sm:$0xff] }
 0x433   : > { %v7850_v22 = vpop.f32.mrb[16].mxu0 }
 0x434   : > { %v7880_v42 = vadd.f32 %v7850_v22, %v11943_v12  ;;  %v6835_v28 = vpop.f32.mrb[17].mxu0  ;;  %v11947_v22 = vld [vmem:[#allocation9_spill] sm:$0xff] }
 0x435   : > { %v7881_v16 = vadd.f32 %v6835_v28, %v11944_v53  ;;  %v7851_v15 = vpop.f32.mrb[18].mxu0  ;;  %v11948_v28 = vld [vmem:[#allocation8_spill] sm:$0xff] }
 0x436   : > { %v6980_v60 = vadd.f32 %v7880_v42, %v6948_v63  ;;  %v7882_v57 = vadd.f32 %v7851_v15, %v11945_v6  ;;  %v6838_v59 = vpop.f32.mrb[19].mxu0  ;;  %v6950_v42 = vld [vmem:[#allocation2 + $0xa0] sm:$0xff] }
 0x437   : > { %v6978_v0 = vadd.f32 %v7881_v16, %v6946_v10  ;;  %v7883_v7 = vadd.f32 %v6838_v59, %v11946_v14  ;;  %v6953_v16 = vld [vmem:[#allocation2 + $0xb8] sm:$0xff] }
 0x438   : > { %7013 = vst.msk [vmem:[#allocation2 + $0x90] sm:$0xff] %vm244_vm0, %v6980_v60  ;;  %v6981_v33 = vadd.f32 %v7882_v57, %v6949_v61  ;;  %v11949_v61 = vld [vmem:[#allocation11_spill] sm:$0xff]  ;;  %v6951_v57 = vld [vmem:[#allocation2 + $0xa8] sm:$0xff] }
 0x439   : > { %7011 = vst.msk [vmem:[#allocation2 + $0x80] sm:$0xff] %vm244_vm0, %v6978_v0  ;;  %v6979_v48 = vadd.f32 %v7883_v7, %v6947_v3  ;;  %v11950_v3 = vld [vmem:[#allocation10_spill] sm:$0xff] }
 0x43a   : > { %7014 = vst.msk [vmem:[#allocation2 + $0x98] sm:$0xff] %vm244_vm0, %v6981_v33 }
 0x43b   : > { %7012 = vst.msk [vmem:[#allocation2 + $0x88] sm:$0xff] %vm244_vm0, %v6979_v48 }
 0x43f   : > { %v7048_v35 = vld [vmem:[#allocation2 + $0x90] sm:$0xff] }
 0x440   : > { %v7087_v17 = vmul.f32 %v11456_v27, %v7048_v35  ;;  %v7046_v32 = vld [vmem:[#allocation2 + $0x80] sm:$0xff] }
 0x441   : > { %v7085_v9 = vmul.f32 %v11456_v27, %v7046_v32  ;;  %v7049_v45 = vld [vmem:[#allocation2 + $0x98] sm:$0xff] }
 0x442   : > { %v7126_v26 = vadd.f32 %v11464_v23, %v7087_v17  ;;  %v7088_v2 = vmul.f32 %v11456_v27, %v7049_v45  ;;  %v7047_v13 = vld [vmem:[#allocation2 + $0x88] sm:$0xff] }
 0x443   : > { %v7124_v36 = vadd.f32 %v11464_v23, %v7085_v9  ;;  %v7086_v40 = vmul.f32 %v11456_v27, %v7047_v13 }
 0x444   : > { %v7158_v30 = vadd.f32 3.0, %v7126_v26  ;;  %v7127_v62 = vadd.f32 %v11464_v23, %v7088_v2 }
 0x445   : > { %v7156_v44 = vadd.f32 3.0, %v7124_v36  ;;  %v7125_v50 = vadd.f32 %v11464_v23, %v7086_v40 }
 0x446   : > { %v7190_v43 = vmax.f32 %v7158_v30, 0.0  ;;  %v7159_v19 = vadd.f32 3.0, %v7127_v62 }
 0x447   : > { %v7188_v8 = vmax.f32 %v7156_v44, 0.0  ;;  %v7157_v54 = vadd.f32 3.0, %v7125_v50 }
 0x448   : > { %v7222_v51 = vmin.f32 %v7190_v43, 6.0  ;;  %v7191_v39 = vmax.f32 %v7159_v19, 0.0 }
 0x449   : > { %v7220_v37 = vmin.f32 %v7188_v8, 6.0  ;;  %v7189_v46 = vmax.f32 %v7157_v54, 0.0 }
 0x44a   : > { %v7254_v11 = vmul.f32 %v7222_v51, %v7126_v26  ;;  %v7223_v58 = vmin.f32 %v7191_v39, 6.0 }
 0x44b   : > { %v7252_v1 = vmul.f32 %v7220_v37, %v7124_v36  ;;  %v7221_v20 = vmin.f32 %v7189_v46, 6.0 }
 0x44c   : > { %v7286_v56 = vmul.f32 0.16666667, %v7254_v11  ;;  %v7255_v5 = vmul.f32 %v7223_v58, %v7127_v62 }
 0x44d   : > { %v7284_v24 = vmul.f32 0.16666667, %v7252_v1  ;;  %v7253_v29 = vmul.f32 %v7221_v20, %v7125_v50 }
 0x44e   : > { %7318 = vst.msk [vmem:[%s11495_s14 + $0x90] sm:$0xff] %vm244_vm0, %v7286_v56  ;;  %v7287_v38 = vmul.f32 0.16666667, %v7255_v5 }
 0x44f   : > { %7316 = vst.msk [vmem:[%s11495_s14 + $0x80] sm:$0xff] %vm244_vm0, %v7284_v24  ;;  %v7285_v41 = vmul.f32 0.16666667, %v7253_v29 }
 0x450   : > { %7319 = vst.msk [vmem:[%s11495_s14 + $0x98] sm:$0xff] %vm244_vm0, %v7287_v38 }
 0x451   : > { %7317 = vst.msk [vmem:[%s11495_s14 + $0x88] sm:$0xff] %vm244_vm0, %v7285_v41  ;;  %v6956_v41 = vld [vmem:[#allocation2 + $0xd0] sm:$0xff] }
 0x45a   : > { %v7854_v25 = vpop.f32.mrb[20].mxu0 }
 0x45b   : > { %v7884_v63 = vadd.f32 %v7854_v25, %v11947_v22  ;;  %v6851_v12 = vpop.f32.mrb[21].mxu0  ;;  %v6954_v22 = vld [vmem:[#allocation2 + $0xc0] sm:$0xff] }
 0x45c   : > { %v7885_v10 = vadd.f32 %v6851_v12, %v11948_v28  ;;  %v7855_v53 = vpop.f32.mrb[22].mxu0 }
 0x45d   : > { %v6984_v15 = vadd.f32 %v7884_v63, %v6952_v55  ;;  %v7886_v60 = vadd.f32 %v7855_v53, %v11949_v61  ;;  %v6854_v6 = vpop.f32.mrb[23].mxu0 }
 0x45e   : > { %v6982_v59 = vadd.f32 %v7885_v10, %v6950_v42  ;;  %v7887_v0 = vadd.f32 %v6854_v6, %v11950_v3  ;;  %v6957_v42 = vld [vmem:[#allocation2 + $0xd8] sm:$0xff] }
 0x45f   : > { %7017 = vst.msk [vmem:[#allocation2 + $0xb0] sm:$0xff] %vm244_vm0, %v6984_v15  ;;  %v6985_v14 = vadd.f32 %v7886_v60, %v6953_v16  ;;  %v6955_v16 = vld [vmem:[#allocation2 + $0xc8] sm:$0xff] }
 0x460   : > { %7015 = vst.msk [vmem:[#allocation2 + $0xa0] sm:$0xff] %vm244_vm0, %v6982_v59  ;;  %v6983_v7 = vadd.f32 %v7887_v0, %v6951_v57 }
 0x461   : > { %7018 = vst.msk [vmem:[#allocation2 + $0xb8] sm:$0xff] %vm244_vm0, %v6985_v14 }
 0x462   : > { %7016 = vst.msk [vmem:[#allocation2 + $0xa8] sm:$0xff] %vm244_vm0, %v6983_v7 }
 0x466   : > { %v7052_v33 = vld [vmem:[#allocation2 + $0xb0] sm:$0xff] }
 0x467   : > { %v7091_v48 = vmul.f32 %v11456_v27, %v7052_v33  ;;  %v7050_v35 = vld [vmem:[#allocation2 + $0xa0] sm:$0xff] }
 0x468   : > { %v7089_v17 = vmul.f32 %v11456_v27, %v7050_v35  ;;  %v7053_v32 = vld [vmem:[#allocation2 + $0xb8] sm:$0xff] }
 0x469   : > { %v7130_v9 = vadd.f32 %v11464_v23, %v7091_v48  ;;  %v7092_v45 = vmul.f32 %v11456_v27, %v7053_v32  ;;  %v7051_v26 = vld [vmem:[#allocation2 + $0xa8] sm:$0xff] }
 0x46a   : > { %v7128_v2 = vadd.f32 %v11464_v23, %v7089_v17  ;;  %v7090_v13 = vmul.f32 %v11456_v27, %v7051_v26 }
 0x46b   : > { %v7162_v36 = vadd.f32 3.0, %v7130_v9  ;;  %v7131_v40 = vadd.f32 %v11464_v23, %v7092_v45 }
 0x46c   : > { %v7160_v30 = vadd.f32 3.0, %v7128_v2  ;;  %v7129_v62 = vadd.f32 %v11464_v23, %v7090_v13 }
 0x46d   : > { %v7194_v44 = vmax.f32 %v7162_v36, 0.0  ;;  %v7163_v50 = vadd.f32 3.0, %v7131_v40 }
 0x46e   : > { %v7192_v43 = vmax.f32 %v7160_v30, 0.0  ;;  %v7161_v19 = vadd.f32 3.0, %v7129_v62 }
 0x46f   : > { %v7226_v8 = vmin.f32 %v7194_v44, 6.0  ;;  %v7195_v54 = vmax.f32 %v7163_v50, 0.0 }
 0x470   : > { %v7224_v51 = vmin.f32 %v7192_v43, 6.0  ;;  %v7193_v39 = vmax.f32 %v7161_v19, 0.0 }
 0x471   : > { %v7258_v37 = vmul.f32 %v7226_v8, %v7130_v9  ;;  %v7227_v46 = vmin.f32 %v7195_v54, 6.0 }
 0x472   : > { %v7256_v11 = vmul.f32 %v7224_v51, %v7128_v2  ;;  %v7225_v58 = vmin.f32 %v7193_v39, 6.0 }
 0x473   : > { %v7290_v1 = vmul.f32 0.16666667, %v7258_v37  ;;  %v7259_v20 = vmul.f32 %v7227_v46, %v7131_v40  ;;  %v6960_v46 = vld [vmem:[#allocation2 + $0xf0] sm:$0xff] }
 0x474   : > { %v7288_v56 = vmul.f32 0.16666667, %v7256_v11  ;;  %v7257_v5 = vmul.f32 %v7225_v58, %v7129_v62 }
 0x475   : > { %7322 = vst.msk [vmem:[%s11495_s14 + $0xb0] sm:$0xff] %vm244_vm0, %v7290_v1  ;;  %v7291_v24 = vmul.f32 0.16666667, %v7259_v20  ;;  %v6958_v1 = vld [vmem:[#allocation2 + $0xe0] sm:$0xff] }
 0x476   : > { %7320 = vst.msk [vmem:[%s11495_s14 + $0xa0] sm:$0xff] %vm244_vm0, %v7288_v56  ;;  %v7289_v29 = vmul.f32 0.16666667, %v7257_v5  ;;  %v6961_v5 = vld [vmem:[#allocation2 + $0xf8] sm:$0xff] }
 0x477   : > { %7323 = vst.msk [vmem:[%s11495_s14 + $0xb8] sm:$0xff] %vm244_vm0, %v7291_v24 }
 0x478   : > { %7321 = vst.msk [vmem:[%s11495_s14 + $0xa8] sm:$0xff] %vm244_vm0, %v7289_v29 }
 0x482   : > { %v7858_v38 = vpop.f32.mrb[24].mxu0 }
 0x483   : > { %v7888_v25 = vadd.f32 %v7858_v38, %v11326_v49  ;;  %v6867_v55 = vpop.f32.mrb[25].mxu0 }
 0x484   : > { %v7889_v63 = vadd.f32 %v6867_v55, %v11330_v34  ;;  %v7859_v12 = vpop.f32.mrb[26].mxu0 }
 0x485   : > { %v6988_v28 = vadd.f32 %v7888_v25, %v6956_v41  ;;  %v7890_v10 = vadd.f32 %v7859_v12, %v11332_v4  ;;  %v6870_v53 = vpop.f32.mrb[27].mxu0  ;;  %v6959_v41 = vld [vmem:[#allocation2 + $0xe8] sm:$0xff] }
 0x486   : > { %v6986_v15 = vadd.f32 %v7889_v63, %v6954_v22  ;;  %v7891_v61 = vadd.f32 %v6870_v53, %v11334_v21 }
 0x487   : > { %7021 = vst.msk [vmem:[#allocation2 + $0xd0] sm:$0xff] %vm244_vm0, %v6988_v28  ;;  %v6989_v60 = vadd.f32 %v7890_v10, %v6957_v42 }
 0x488   : > { %7019 = vst.msk [vmem:[#allocation2 + $0xc0] sm:$0xff] %vm244_vm0, %v6986_v15  ;;  %v6987_v49 = vadd.f32 %v7891_v61, %v6955_v16 }
 0x489   : > { %7022 = vst.msk [vmem:[#allocation2 + $0xd8] sm:$0xff] %vm244_vm0, %v6989_v60 }
 0x48a   : > { %7020 = vst.msk [vmem:[#allocation2 + $0xc8] sm:$0xff] %vm244_vm0, %v6987_v49 }
 0x48e   : > { %v7056_v34 = vld [vmem:[#allocation2 + $0xd0] sm:$0xff] }
 0x48f   : > { %v7095_v6 = vmul.f32 %v11456_v27, %v7056_v34  ;;  %v7054_v57 = vld [vmem:[#allocation2 + $0xc0] sm:$0xff] }
 0x490   : > { %v7093_v4 = vmul.f32 %v11456_v27, %v7054_v57  ;;  %v7057_v59 = vld [vmem:[#allocation2 + $0xd8] sm:$0xff] }
 0x491   : > { %v7134_v3 = vadd.f32 %v11464_v23, %v7095_v6  ;;  %v7096_v21 = vmul.f32 %v11456_v27, %v7057_v59  ;;  %v7055_v0 = vld [vmem:[#allocation2 + $0xc8] sm:$0xff] }
 0x492   : > { %v7132_v14 = vadd.f32 %v11464_v23, %v7093_v4  ;;  %v7094_v7 = vmul.f32 %v11456_v27, %v7055_v0 }
 0x493   : > { %v7166_v33 = vadd.f32 3.0, %v7134_v3  ;;  %v7135_v48 = vadd.f32 %v11464_v23, %v7096_v21 }
 0x494   : > { %v7164_v35 = vadd.f32 3.0, %v7132_v14  ;;  %v7133_v17 = vadd.f32 %v11464_v23, %v7094_v7 }
 0x495   : > { %v7198_v32 = vmax.f32 %v7166_v33, 0.0  ;;  %v7167_v9 = vadd.f32 3.0, %v7135_v48 }
 0x496   : > { %v7196_v45 = vmax.f32 %v7164_v35, 0.0  ;;  %v7165_v26 = vadd.f32 3.0, %v7133_v17 }
 0x497   : > { %v7230_v2 = vmin.f32 %v7198_v32, 6.0  ;;  %v7199_v13 = vmax.f32 %v7167_v9, 0.0 }
 0x498   : > { %v7228_v36 = vmin.f32 %v7196_v45, 6.0  ;;  %v7197_v40 = vmax.f32 %v7165_v26, 0.0 }
 0x499   : > { %v7262_v30 = vmul.f32 %v7230_v2, %v7134_v3  ;;  %v7231_v62 = vmin.f32 %v7199_v13, 6.0 }
 0x49a   : > { %v7260_v44 = vmul.f32 %v7228_v36, %v7132_v14  ;;  %v7229_v50 = vmin.f32 %v7197_v40, 6.0 }
 0x49b   : > { %v7294_v43 = vmul.f32 0.16666667, %v7262_v30  ;;  %v7263_v19 = vmul.f32 %v7231_v62, %v7135_v48 }
 0x49c   : > { %v7292_v8 = vmul.f32 0.16666667, %v7260_v44  ;;  %v7261_v54 = vmul.f32 %v7229_v50, %v7133_v17 }
 0x49d   : > { %7326 = vst.msk [vmem:[%s11495_s14 + $0xd0] sm:$0xff] %vm244_vm0, %v7294_v43  ;;  %v7295_v51 = vmul.f32 0.16666667, %v7263_v19 }
 0x49e   : > { %7324 = vst.msk [vmem:[%s11495_s14 + $0xc0] sm:$0xff] %vm244_vm0, %v7292_v8  ;;  %v7293_v39 = vmul.f32 0.16666667, %v7261_v54 }
 0x49f   : > { %7327 = vst.msk [vmem:[%s11495_s14 + $0xd8] sm:$0xff] %vm244_vm0, %v7295_v51 }
 0x4a0   : > { %7325 = vst.msk [vmem:[%s11495_s14 + $0xc8] sm:$0xff] %vm244_vm0, %v7293_v39 }
 0x4a9   : > { %v7862_v37 = vpop.f32.mrb[28].mxu0 }
 0x4aa   : > { %v7892_v11 = vadd.f32 %v7862_v37, %v11472_v18  ;;  %v6883_v58 = vpop.f32.mrb[29].mxu0 }
 0x4ab   : > { %v7893_v20 = vadd.f32 %v6883_v58, %v11476_v47  ;;  %v7863_v56 = vpop.f32.mrb[30].mxu0 }
 0x4ac   : > { %v6992_v24 = vadd.f32 %v7892_v11, %v6960_v46  ;;  %v7894_v29 = vadd.f32 %v7863_v56, %v11482_v31  ;;  %v6886_v38 = vpop.f32.mrb[31].mxu0 }
 0x4ad   : > { %v6990_v25 = vadd.f32 %v7893_v20, %v6958_v1  ;;  %v7895_v55 = vadd.f32 %v6886_v38, %v11486_v52 }
 0x4ae   : > { %7025 = vst.msk [vmem:[#allocation2 + $0xf0] sm:$0xff] %vm244_vm0, %v6992_v24  ;;  %v6993_v22 = vadd.f32 %v7894_v29, %v6961_v5 }
 0x4af   : > { %7023 = vst.msk [vmem:[#allocation2 + $0xe0] sm:$0xff] %vm244_vm0, %v6990_v25  ;;  %v6991_v18 = vadd.f32 %v7895_v55, %v6959_v41 }
 0x4b0   : > { %7026 = vst.msk [vmem:[#allocation2 + $0xf8] sm:$0xff] %vm244_vm0, %v6993_v22 }
 0x4b1   : > { %7024 = vst.msk [vmem:[#allocation2 + $0xe8] sm:$0xff] %vm244_vm0, %v6991_v18 }
 0x4b5   : > { %v7060_v47 = vld [vmem:[#allocation2 + $0xf0] sm:$0xff] }
 0x4b6   : > { %v7099_v63 = vmul.f32 %v11456_v27, %v7060_v47  ;;  %v7058_v12 = vld [vmem:[#allocation2 + $0xe0] sm:$0xff] }
 0x4b7   : > { %v7097_v31 = vmul.f32 %v11456_v27, %v7058_v12  ;;  %v7061_v42 = vld [vmem:[#allocation2 + $0xf8] sm:$0xff] }
 0x4b8   : > { %v7138_v28 = vadd.f32 %v11464_v23, %v7099_v63  ;;  %v7100_v52 = vmul.f32 %v11456_v27, %v7061_v42  ;;  %v7059_v10 = vld [vmem:[#allocation2 + $0xe8] sm:$0xff] }
 0x4b9   : > { %v7136_v53 = vadd.f32 %v11464_v23, %v7097_v31  ;;  %v7098_v16 = vmul.f32 %v11456_v27, %v7059_v10 }
 0x4ba   : > { %v7170_v15 = vadd.f32 3.0, %v7138_v28  ;;  %v7139_v61 = vadd.f32 %v11464_v23, %v7100_v52 }
 0x4bb   : > { %v7168_v60 = vadd.f32 3.0, %v7136_v53  ;;  %v7137_v49 = vadd.f32 %v11464_v23, %v7098_v16 }
 0x4bc   : > { %v7202_v34 = vmax.f32 %v7170_v15, 0.0  ;;  %v7171_v6 = vadd.f32 3.0, %v7139_v61 }
 0x4bd   : > { %v7200_v57 = vmax.f32 %v7168_v60, 0.0  ;;  %v7169_v4 = vadd.f32 3.0, %v7137_v49 }
 0x4be   : > { %v7234_v59 = vmin.f32 %v7202_v34, 6.0  ;;  %v7203_v3 = vmax.f32 %v7171_v6, 0.0 }
 0x4bf   : > { %v7232_v21 = vmin.f32 %v7200_v57, 6.0  ;;  %v7201_v0 = vmax.f32 %v7169_v4, 0.0 }
 0x4c0   : > { %v7266_v14 = vmul.f32 %v7234_v59, %v7138_v28  ;;  %v7235_v27 = vmin.f32 %v7203_v3, 6.0 }
 0x4c1   : > { %v7264_v7 = vmul.f32 %v7232_v21, %v7136_v53  ;;  %v7233_v33 = vmin.f32 %v7201_v0, 6.0 }
 0x4c2   : > { %v7298_v48 = vmul.f32 0.16666667, %v7266_v14  ;;  %v7267_v35 = vmul.f32 %v7235_v27, %v7139_v61 }
 0x4c3   : > { %v7296_v17 = vmul.f32 0.16666667, %v7264_v7  ;;  %v7265_v23 = vmul.f32 %v7233_v33, %v7137_v49 }
 0x4c4   : > { %7330 = vst.msk [vmem:[%s11495_s14 + $0xf0] sm:$0xff] %vm244_vm0, %v7298_v48  ;;  %v7299_v32 = vmul.f32 0.16666667, %v7267_v35 }
 0x4c5   : > { %7328 = vst.msk [vmem:[%s11495_s14 + $0xe0] sm:$0xff] %vm244_vm0, %v7296_v17  ;;  %v7297_v9 = vmul.f32 0.16666667, %v7265_v23 }
 0x4c6   : > { %7331 = vst.msk [vmem:[%s11495_s14 + $0xf8] sm:$0xff] %vm244_vm0, %v7299_v32 }
 0x4c7   : > { %7329 = vst.msk [vmem:[%s11495_s14 + $0xe8] sm:$0xff] %vm244_vm0, %v7297_v9 }
 0x4c8 PF: > { %s14_s17 = sadd.s32 1, %s8036_s17   ;;  %s11951_s15 = smov %s8032_s16 }
 0x4c9   : > { %p11_p5 = scmp.ge.s32.totalorder %s14_s17, 4   ;;  %s11952_s16 = smov %s11954_s18 }
 0x4cb   :  { %13 = sbr.rel (!%p11_p5) target bundleno = 2 (0x2), region = 79 }

</bundles_post_ra>
